<compile_context>
chip_gen: v6e
topology: v6e:2x2x1
jax: 0.10.0
libtpu: 0.0.40
codegen_flags: <defaults>
</compile_context>

<pallas_src>
import functools
import math

import jax
import jax.numpy as jnp
from jax.experimental import pallas as pl
from jax.experimental.pallas import tpu as pltpu

LN_EPS = 1e-5          # nn.LayerNorm default eps
FORGET_BIAS = 1.0      # module's self._forget_bias
CIN_SUBLANES = 8       # x channels zero-padded to this multiple (sublane alignment)


# ------------------------------ fused kernel ---------------------------------

def _st_lstm_cell_kernel(
        mask_ref, x_ref, h_ref, m_ref, c_ref,
        wx_ref, wh_ref, wm_ref, wo_ref, wlc_ref, wlm_ref,
        gx_ref, bx_ref, gh_ref, bh_ref, gm_ref, bm_ref, go_ref, bo_ref,
        h_new_ref, c_new_ref, m_new_ref,
        pad_ref, col_ref, xc_ref, hc_ref, mc_ref, oo_ref, clast_ref,
        *, H, W, nh, c_in, kh, kw, pad0):
    """Whole ST-LSTM cell for one batch element, channel-major (C, H*W) slabs."""
    HW = H * W
    cdtype = pad_ref.dtype            # matmul operand dtype (f32 or bf16)

    # Zero ONLY the lane-halo strips of the shared padded slab; the centre is
    # fully rewritten before every use.  Done every grid step (not just at
    # program_id == 0) so it stays correct when the batch axis is sharded
    # across TensorCores (v7x megacore), where a core may never see index 0.
    zhalo = jnp.zeros((pad_ref.shape[0], pad0), cdtype)
    pad_ref[:, 0:pad0] = zhalo
    pad_ref[:, pad0 + HW:pad0 + HW + pad0] = zhalo

    def stage_center(src, c):
        pad_ref[0:c, pad0:pad0 + HW] = src.astype(cdtype)

    def conv_ln_stats(c_rows, w_ref, raw_ref, n_chunks):
        """'same' conv (fused-K matmul, nh-row output chunks into VMEM) + LN stats."""
        # im2col slab: row (di*kw + dj)*c_rows + ci  <->  shifted input channel ci
        for di in range(kh):
            for dj in range(kw):
                t = di * kw + dj
                start = pad0 + (di - kh // 2) * W + (dj - kw // 2)
                slab = pad_ref[0:c_rows, start:start + HW]
                if dj != kw // 2:                       # kill flattened row wrap
                    slab = slab * mask_ref[dj:dj + 1, :]
                col_ref[t * c_rows:(t + 1) * c_rows, :] = slab.astype(cdtype)
        kdim = kh * kw * c_rows
        total = jnp.zeros((), jnp.float32)
        for k in range(n_chunks):                       # full-K matmul per nh rows
            chunk = jnp.dot(w_ref[k * nh:(k + 1) * nh, :],
                            col_ref[0:kdim, :],
                            preferred_element_type=jnp.float32)
            raw_ref[k * nh:(k + 1) * nh, :] = chunk
            total = total + jnp.sum(chunk)              # mean pass fused in
        n = n_chunks * nh * HW
        mu = total / n
        ssq = jnp.zeros((), jnp.float32)
        for k in range(n_chunks):                       # two-pass variance
            d = raw_ref[k * nh:(k + 1) * nh, :] - mu
            ssq = ssq + jnp.sum(d * d)
        rstd = jax.lax.rsqrt(ssq / n + LN_EPS)
        return mu, rstd

    def ln_slice(raw_ref, g_ref, b_ref, mu, rstd, k):
        sl = slice(k * nh, (k + 1) * nh)
        return ((raw_ref[sl, :] - mu) * rstd) * g_ref[sl, :] + b_ref[sl, :]

    # ---- conv_x / conv_h / conv_m + LayerNorm statistics ---------------------
    stage_center(x_ref[0], c_in)
    mu_x, rs_x = conv_ln_stats(c_in, wx_ref, xc_ref, 7)
    stage_center(h_ref[0], nh)
    mu_h, rs_h = conv_ln_stats(nh, wh_ref, hc_ref, 4)
    stage_center(m_ref[0], nh)
    mu_m, rs_m = conv_ln_stats(nh, wm_ref, mc_ref, 3)

    def lnx(k): return ln_slice(xc_ref, gx_ref, bx_ref, mu_x, rs_x, k)
    def lnh(k): return ln_slice(hc_ref, gh_ref, bh_ref, mu_h, rs_h, k)
    def lnm(k): return ln_slice(mc_ref, gm_ref, bm_ref, mu_m, rs_m, k)

    # ---- temporal / spatio-temporal memories ---------------------------------
    i_t = jax.nn.sigmoid(lnx(0) + lnh(0))
    f_t = jax.nn.sigmoid(lnx(1) + lnh(1))        # FORGET_BIAS folded into bx
    g_t = jnp.tanh(lnx(2) + lnh(2))
    c_new = f_t * c_ref[0] + i_t * g_t

    i_p = jax.nn.sigmoid(lnx(3) + lnm(0))
    f_p = jax.nn.sigmoid(lnx(4) + lnm(1))        # FORGET_BIAS folded into bx
    g_p = jnp.tanh(lnx(5) + lnm(2))
    m_new = f_p * m_ref[0] + i_p * g_p

    c_new_ref[0] = c_new.astype(c_new_ref.dtype)
    m_new_ref[0] = m_new.astype(m_new_ref.dtype)

    # 1x1 conv_last straight from the live c_new / m_new values (no padded-slab
    # round trip); parked in scratch so it is not register-live across conv_o.
    clast_ref[...] = (
        jnp.dot(wlc_ref[...], c_new.astype(cdtype), preferred_element_type=jnp.float32)
        + jnp.dot(wlm_ref[...], m_new.astype(cdtype), preferred_element_type=jnp.float32))

    # ---- conv_o over mem = [c_new; m_new] -------------------------------------
    pad_ref[0:nh, pad0:pad0 + HW] = c_new.astype(cdtype)
    pad_ref[nh:2 * nh, pad0:pad0 + HW] = m_new.astype(cdtype)
    mu_o, rs_o = conv_ln_stats(2 * nh, wo_ref, oo_ref, 1)
    oo = ((oo_ref[...] - mu_o) * rs_o) * go_ref[...] + bo_ref[...]

    o_t = jax.nn.sigmoid(lnx(6) + lnh(3) + oo)
    h_new_ref[0] = (o_t * jnp.tanh(clast_ref[...])).astype(h_new_ref.dtype)


# ------------------------------ wrapper ---------------------------------------

def st_lstm_forward(packed, x_t, h_t, c_t, m_t, *, num_hidden,
                    filter_size=(3, 3), matmul_dtype=jnp.float32):
    """Inputs/outputs are NCHW, exactly like the PyTorch module."""
    N, c_in, H, W = x_t.shape
    nh = num_hidden
    HW = H * W
    kh, kw = filter_size
    cd = jnp.dtype(matmul_dtype)

    assert kh % 2 == 1 and kw % 2 == 1, "odd filter sizes only"
    assert HW % 128 == 0, "H*W must be a multiple of 128 (lane-dense layout)"
    assert nh % 8 == 0, "num_hidden must be a multiple of 8 (16 preferred for bf16)"
    # TODO(synk): stride != 1 (module constructor arg) is not implemented; the
    # GFST-LSTM configuration uses stride=1 / 'same' padding.
    # TODO(synk): for N == 1 on v7x (2 TensorCores) add a second parallel grid
    # axis (spatial halves + cross-tile LayerNorm) so both cores are fed.

    c_in_p = -(-c_in // CIN_SUBLANES) * CIN_SUBLANES      # sublane-aligned Cin
    halo = (kh // 2) * W + (kw // 2)
    pad0 = -(-max(halo, 1) // 128) * 128                  # lane-aligned halo width
    pad_len = 2 * pad0 + HW
    c_pad = max(c_in_p, 2 * nh)                           # shared slab row count

    x_f = x_t.reshape(N, c_in, HW)
    if c_in_p != c_in:                                    # zero-pad extra channels
        x_f = jnp.pad(x_f, ((0, 0), (0, c_in_p - c_in), (0, 0)))
    h_f = h_t.reshape(N, nh, HW)
    m_f = m_t.reshape(N, nh, HW)
    c_f = c_t.reshape(N, nh, HW)

    # Row-wrap lane masks, one per horizontal tap offset (hoisted out of kernel).
    colw = jnp.arange(HW, dtype=jnp.int32) % W
    mask = jnp.stack(
        [((colw + (dj - kw // 2) >= 0) & (colw + (dj - kw // 2) <= W - 1))
         for dj in range(kw)], axis=0).astype(cd)          # (kw, HW)

    wx = packed["wx"].astype(cd)
    wh = packed["wh"].astype(cd)
    wm = packed["wm"].astype(cd)
    wo = packed["wo"].astype(cd)
    wlc = packed["wlc"].astype(cd)
    wlm = packed["wlm"].astype(cd)
    # LN affine params follow the matmul dtype (bf16 halves their VMEM/DMA
    # footprint on v6e/v7x); statistics / normalization stay in f32.
    gnb = [packed[k].astype(cd)
           for k in ("gx", "bx", "gh", "bh", "gm", "bm", "go", "bo")]

    kern = functools.partial(_st_lstm_cell_kernel, H=H, W=W, nh=nh, c_in=c_in_p,
                             kh=kh, kw=kw, pad0=pad0)

    def batch_spec(c):
        return pl.BlockSpec((1, c, HW), lambda n: (n, 0, 0))

    def full_spec(a):
        zero = (0,) * a.ndim
        return pl.BlockSpec(a.shape, lambda n, _z=zero: _z)

    out_shapes = (jax.ShapeDtypeStruct((N, nh, HW), h_t.dtype),
                  jax.ShapeDtypeStruct((N, nh, HW), c_t.dtype),
                  jax.ShapeDtypeStruct((N, nh, HW), m_t.dtype))

    scratch_defs = [
        ((c_pad, pad_len), cd),              # shared zero-halo padded slab
        ((kh * kw * c_pad, HW), cd),         # shared im2col slab
        ((7 * nh, HW), jnp.float32),         # raw conv_x output
        ((4 * nh, HW), jnp.float32),         # raw conv_h output
        ((3 * nh, HW), jnp.float32),         # raw conv_m output
        ((nh, HW), jnp.float32),             # raw conv_o output
        ((nh, HW), jnp.float32),             # conv_last result
    ]
    scratch = [pltpu.VMEM(s, d) for s, d in scratch_defs]

    ins = [mask, x_f, h_f, m_f, c_f, wx, wh, wm, wo, wlc, wlm] + gnb
    in_specs = ([full_spec(mask), batch_spec(c_in_p), batch_spec(nh),
                 batch_spec(nh), batch_spec(nh)]
                + [full_spec(a) for a in (wx, wh, wm, wo, wlc, wlm)]
                + [full_spec(a) for a in gnb])

    # Right-sized VMEM budget + advisory cost estimate.
    scratch_bytes = sum(math.prod(s) * jnp.dtype(d).itemsize for s, d in scratch_defs)
    param_bytes = sum(int(a.size) * a.dtype.itemsize
                      for a in [mask, wx, wh, wm, wo, wlc, wlm] + gnb)
    io_bytes = 2 * ((c_in_p * HW) * x_t.dtype.itemsize
                    + 6 * (nh * HW) * h_t.dtype.itemsize)   # double-buffered blocks
    vmem_limit = int(1.25 * (scratch_bytes + param_bytes + io_bytes)) + (4 << 20)
    vmem_limit = min(max(vmem_limit, 16 << 20), 64 << 20)

    taps = kh * kw
    flops = 2 * N * HW * (7 * nh * taps * c_in_p + 4 * nh * taps * nh
                          + 3 * nh * taps * nh + nh * taps * 2 * nh
                          + nh * 2 * nh)
    transcendentals = N * 8 * nh * HW
    bytes_accessed = N * (io_bytes // 2) + param_bytes

    h_new, c_new, m_new = pl.pallas_call(
        kern,
        out_shape=out_shapes,
        grid=(N,),
        in_specs=in_specs,
        out_specs=(batch_spec(nh), batch_spec(nh), batch_spec(nh)),
        scratch_shapes=scratch,
        compiler_params=pltpu.CompilerParams(
            dimension_semantics=("parallel",),
            vmem_limit_bytes=vmem_limit),
        cost_estimate=pl.CostEstimate(flops=flops,
                                      transcendentals=transcendentals,
                                      bytes_accessed=bytes_accessed),
    )(*ins)

    return (h_new.reshape(N, nh, H, W),
            c_new.reshape(N, nh, H, W),
            m_new.reshape(N, nh, H, W))


# ------------------------------ parameters ------------------------------------

def init_params(key, in_channel, num_hidden, H, W, kh=3, kw=3):
    """Torch-layout parameters: OIHW conv weights, LayerNorm affine (C, H, W)."""
    nh = num_hidden
    ks = jax.random.split(key, 13)

    def conv_w(k, cout, cin):
        return 0.1 * jax.random.normal(k, (cout, cin, kh, kw), jnp.float32)

    def ln_g(k, c):
        return 1.0 + 0.1 * jax.random.normal(k, (c, H, W), jnp.float32)

    def ln_b(k, c):
        return 0.1 * jax.random.normal(k, (c, H, W), jnp.float32)

    return {
        "wx": conv_w(ks[0], 7 * nh, in_channel),
        "gx": ln_g(ks[1], 7 * nh), "bx": ln_b(ks[2], 7 * nh),
        "wh": conv_w(ks[3], 4 * nh, nh),
        "gh": ln_g(ks[4], 4 * nh), "bh": ln_b(ks[5], 4 * nh),
        "wm": conv_w(ks[6], 3 * nh, nh),
        "gm": ln_g(ks[7], 3 * nh), "bm": ln_b(ks[8], 3 * nh),
        "wo": conv_w(ks[9], nh, 2 * nh),
        "go": ln_g(ks[10], nh), "bo": ln_b(ks[11], nh),
        "wl": 0.1 * jax.random.normal(ks[12], (nh, 2 * nh, 1, 1), jnp.float32),
    }


def pack_params(params, num_hidden, H, W):
    """Kernel-layout parameters: fused im2col weight matrices (Cout, kh*kw*Cin),
    Cin of conv_x zero-padded to a sublane multiple, LN affine as (C, H*W), and
    FORGET_BIAS folded into the f_x / f_x' LayerNorm beta rows."""
    nh = num_hidden
    HW = H * W

    def fuse(w):                      # OIHW -> (Cout, kh*kw*Cin)
        cout, cin, kh_, kw_ = w.shape
        return jnp.transpose(w, (0, 2, 3, 1)).reshape(cout, kh_ * kw_ * cin)

    def flat(a):                      # (C, H, W) -> (C, H*W)
        return a.reshape(a.shape[0], HW)

    wx = params["wx"]
    c_in = wx.shape[1]
    c_in_p = -(-c_in // CIN_SUBLANES) * CIN_SUBLANES
    if c_in_p != c_in:                # zero-pad Cin to match the padded x slab
        wx = jnp.pad(wx, ((0, 0), (0, c_in_p - c_in), (0, 0), (0, 0)))

    bx = flat(params["bx"])
    bx = bx.at[nh:2 * nh].add(FORGET_BIAS).at[4 * nh:5 * nh].add(FORGET_BIAS)

    wl = params["wl"][:, :, 0, 0]
    return {
        "wx": fuse(wx), "wh": fuse(params["wh"]),
        "wm": fuse(params["wm"]), "wo": fuse(params["wo"]),
        "wlc": wl[:, :nh], "wlm": wl[:, nh:],
        "gx": flat(params["gx"]), "bx": bx,
        "gh": flat(params["gh"]), "bh": flat(params["bh"]),
        "gm": flat(params["gm"]), "bm": flat(params["bm"]),
        "go": flat(params["go"]), "bo": flat(params["bo"]),
    }


# ------------------------------ pure-JAX reference ----------------------------

def reference_forward(params, x_t, h_t, c_t, m_t, num_hidden):
    nh = num_hidden

    def conv(x, w):
        return jax.lax.conv_general_dilated(
            x, w, window_strides=(1, 1), padding="SAME",
            dimension_numbers=("NCHW", "OIHW", "NCHW"))

    def ln(y, g, b):
        mu = jnp.mean(y, axis=(1, 2, 3), keepdims=True)
        var = jnp.mean((y - mu) ** 2, axis=(1, 2, 3), keepdims=True)
        return (y - mu) * jax.lax.rsqrt(var + LN_EPS) * g[None] + b[None]

    x_c = ln(conv(x_t, params["wx"]), params["gx"], params["bx"])
    h_c = ln(conv(h_t, params["wh"]), params["gh"], params["bh"])
    m_c = ln(conv(m_t, params["wm"]), params["gm"], params["bm"])

    def split(a, n):
        return [a[:, k * nh:(k + 1) * nh] for k in range(n)]

    i_x, f_x, g_x, i_xp, f_xp, g_xp, o_x = split(x_c, 7)
    i_h, f_h, g_h, o_h = split(h_c, 4)
    i_m, f_m, g_m = split(m_c, 3)

    i_t = jax.nn.sigmoid(i_x + i_h)
    f_t = jax.nn.sigmoid(f_x + f_h + FORGET_BIAS)
    g_t = jnp.tanh(g_x + g_h)
    c_new = f_t * c_t + i_t * g_t

    i_tp = jax.nn.sigmoid(i_xp + i_m)
    f_tp = jax.nn.sigmoid(f_xp + f_m + FORGET_BIAS)
    g_tp = jnp.tanh(g_xp + g_m)
    m_new = f_tp * m_t + i_tp * g_tp

    mem = jnp.concatenate([c_new, m_new], axis=1)
    o_o = ln(conv(mem, params["wo"]), params["go"], params["bo"])
    o_t = jax.nn.sigmoid(o_x + o_h + o_o)
    h_new = o_t * jnp.tanh(conv(mem, params["wl"]))
    return h_new, c_new, m_new


# ------------------------------ main -------------------------------------------

if __name__ == "__main__":
    N, CIN, H, W, NH = 2, 4, 16, 16, 32
    KH = KW = 3

    key = jax.random.PRNGKey(0)
    kp, kx, khh, kc, km = jax.random.split(key, 5)
    params = init_params(kp, CIN, NH, H, W, KH, KW)
    packed = pack_params(params, NH, H, W)

    x_t = jax.random.normal(kx, (N, CIN, H, W), jnp.float32)   # NCHW like PyTorch
    h_t = jax.random.normal(khh, (N, NH, H, W), jnp.float32)
    c_t = jax.random.normal(kc, (N, NH, H, W), jnp.float32)
    m_t = jax.random.normal(km, (N, NH, H, W), jnp.float32)

    h_ref, c_ref, m_ref = reference_forward(params, x_t, h_t, c_t, m_t, NH)

    # f32 MXU operands, then bf16 operands (v5e/v6e/v7x fast path, f32 accumulation).
    # Tolerances are absolute max-error sanity bounds: the f32 bound covers the
    # TPU default-precision matmul path, the bf16 bound covers operand rounding
    # propagated through the gate chain; structural/wiring bugs give O(1) errors.
    for mm_dtype, tol in ((jnp.float32, 3e-2), (jnp.bfloat16, 3e-1)):
        fwd = jax.jit(functools.partial(st_lstm_forward, num_hidden=NH,
                                        filter_size=(KH, KW),
                                        matmul_dtype=mm_dtype))
        h_new, c_new, m_new = fwd(packed, x_t, h_t, c_t, m_t)
        jax.block_until_ready((h_new, c_new, m_new))
        for name, got, ref in (("h_new", h_new, h_ref),
                               ("c_new", c_new, c_ref),
                               ("m_new", m_new, m_ref)):
            err = float(jnp.max(jnp.abs(got.astype(jnp.float32) - ref)))
            assert err < tol, (
                f"{name} mismatch vs reference ({jnp.dtype(mm_dtype).name}): "
                f"max abs err = {err}")

    print("KERNEL_OK")
</pallas_src>

<mosaic_0001>
module attributes {stable_mosaic.version = 11 : i64} {
  func.func @_st_lstm_cell_kernel(%arg0: i32, %arg1: memref<3x256xf32, #tpu.memory_space<vmem>>, %arg2: memref<1x8x256xf32, #tpu.memory_space<vmem>>, %arg3: memref<1x32x256xf32, #tpu.memory_space<vmem>>, %arg4: memref<1x32x256xf32, #tpu.memory_space<vmem>>, %arg5: memref<1x32x256xf32, #tpu.memory_space<vmem>>, %arg6: memref<224x72xf32, #tpu.memory_space<vmem>>, %arg7: memref<128x288xf32, #tpu.memory_space<vmem>>, %arg8: memref<96x288xf32, #tpu.memory_space<vmem>>, %arg9: memref<32x576xf32, #tpu.memory_space<vmem>>, %arg10: memref<32x32xf32, #tpu.memory_space<vmem>>, %arg11: memref<32x32xf32, #tpu.memory_space<vmem>>, %arg12: memref<224x256xf32, #tpu.memory_space<vmem>>, %arg13: memref<224x256xf32, #tpu.memory_space<vmem>>, %arg14: memref<128x256xf32, #tpu.memory_space<vmem>>, %arg15: memref<128x256xf32, #tpu.memory_space<vmem>>, %arg16: memref<96x256xf32, #tpu.memory_space<vmem>>, %arg17: memref<96x256xf32, #tpu.memory_space<vmem>>, %arg18: memref<32x256xf32, #tpu.memory_space<vmem>>, %arg19: memref<32x256xf32, #tpu.memory_space<vmem>>, %arg20: memref<1x32x256xf32, #tpu.memory_space<vmem>>, %arg21: memref<1x32x256xf32, #tpu.memory_space<vmem>>, %arg22: memref<1x32x256xf32, #tpu.memory_space<vmem>>, %arg23: memref<64x512xf32, #tpu.memory_space<vmem>>, %arg24: memref<576x256xf32, #tpu.memory_space<vmem>>, %arg25: memref<224x256xf32, #tpu.memory_space<vmem>>, %arg26: memref<128x256xf32, #tpu.memory_space<vmem>>, %arg27: memref<96x256xf32, #tpu.memory_space<vmem>>, %arg28: memref<32x256xf32, #tpu.memory_space<vmem>>, %arg29: memref<32x256xf32, #tpu.memory_space<vmem>>) attributes {dimension_semantics = [#tpu.dimension_semantics<parallel>], iteration_bounds = array<i64: 2>, scalar_prefetch = 0 : i64, scratch_operands = 7 : i64, tpu.core_type = #tpu.core_type<tc>, window_params = [{pipeline_mode = #tpu.pipeline_mode<synchronous>, transform_indices = @transform_0, window_bounds = array<i64: 3, 256>}, {transform_indices = @transform_1, window_bounds = array<i64: 1, 8, 256>}, {transform_indices = @transform_2, window_bounds = array<i64: 1, 32, 256>}, {transform_indices = @transform_3, window_bounds = array<i64: 1, 32, 256>}, {transform_indices = @transform_4, window_bounds = array<i64: 1, 32, 256>}, {pipeline_mode = #tpu.pipeline_mode<synchronous>, transform_indices = @transform_5, window_bounds = array<i64: 224, 72>}, {pipeline_mode = #tpu.pipeline_mode<synchronous>, transform_indices = @transform_6, window_bounds = array<i64: 128, 288>}, {pipeline_mode = #tpu.pipeline_mode<synchronous>, transform_indices = @transform_7, window_bounds = array<i64: 96, 288>}, {pipeline_mode = #tpu.pipeline_mode<synchronous>, transform_indices = @transform_8, window_bounds = array<i64: 32, 576>}, {pipeline_mode = #tpu.pipeline_mode<synchronous>, transform_indices = @transform_9, window_bounds = array<i64: 32, 32>}, {pipeline_mode = #tpu.pipeline_mode<synchronous>, transform_indices = @transform_10, window_bounds = array<i64: 32, 32>}, {pipeline_mode = #tpu.pipeline_mode<synchronous>, transform_indices = @transform_11, window_bounds = array<i64: 224, 256>}, {pipeline_mode = #tpu.pipeline_mode<synchronous>, transform_indices = @transform_12, window_bounds = array<i64: 224, 256>}, {pipeline_mode = #tpu.pipeline_mode<synchronous>, transform_indices = @transform_13, window_bounds = array<i64: 128, 256>}, {pipeline_mode = #tpu.pipeline_mode<synchronous>, transform_indices = @transform_14, window_bounds = array<i64: 128, 256>}, {pipeline_mode = #tpu.pipeline_mode<synchronous>, transform_indices = @transform_15, window_bounds = array<i64: 96, 256>}, {pipeline_mode = #tpu.pipeline_mode<synchronous>, transform_indices = @transform_16, window_bounds = array<i64: 96, 256>}, {pipeline_mode = #tpu.pipeline_mode<synchronous>, transform_indices = @transform_17, window_bounds = array<i64: 32, 256>}, {pipeline_mode = #tpu.pipeline_mode<synchronous>, transform_indices = @transform_18, window_bounds = array<i64: 32, 256>}, {transform_indices = @transform_19, window_bounds = array<i64: 1, 32, 256>}, {transform_indices = @transform_20, window_bounds = array<i64: 1, 32, 256>}, {transform_indices = @transform_21, window_bounds = array<i64: 1, 32, 256>}]} {
    %cst = arith.constant 0.000000e+00 : f32
    %0 = vector.broadcast %cst : f32 to vector<64x128xf32>
    %c0 = arith.constant 0 : index
    %c0_0 = arith.constant 0 : index
    %1 = vector.load %arg23[%c0, %c0_0] : memref<64x512xf32, #tpu.memory_space<vmem>>, vector<64x128xf32>
    tpu.vector_store %arg23[%c0, %c0_0], %0 {strides = array<i32>} : memref<64x512xf32, #tpu.memory_space<vmem>>, vector<64x128xf32>,
    %c0_1 = arith.constant 0 : index
    %c384 = arith.constant 384 : index
    %2 = vector.load %arg23[%c0_1, %c384] : memref<64x512xf32, #tpu.memory_space<vmem>>, vector<64x128xf32>
    tpu.vector_store %arg23[%c0_1, %c384], %0 {strides = array<i32>} : memref<64x512xf32, #tpu.memory_space<vmem>>, vector<64x128xf32>,
    %c0_2 = arith.constant 0 : index
    %c0_3 = arith.constant 0 : index
    %c0_4 = arith.constant 0 : index
    %3 = vector.load %arg2[%c0_2, %c0_3, %c0_4] : memref<1x8x256xf32, #tpu.memory_space<vmem>>, vector<1x8x256xf32>
    %4 = vector.shape_cast %3 : vector<1x8x256xf32> to vector<8x256xf32>
    %c0_5 = arith.constant 0 : index
    %c128 = arith.constant 128 : index
    %5 = vector.load %arg23[%c0_5, %c128] : memref<64x512xf32, #tpu.memory_space<vmem>>, vector<8x256xf32>
    tpu.vector_store %arg23[%c0_5, %c128], %4 {strides = array<i32>} : memref<64x512xf32, #tpu.memory_space<vmem>>, vector<8x256xf32>,
    %c0_6 = arith.constant 0 : index
    %c111 = arith.constant 111 : index
    %6 = vector.load %arg23[%c0_6, %c111] : memref<64x512xf32, #tpu.memory_space<vmem>>, vector<8x256xf32>
    %c0_7 = arith.constant 0 : index
    %c0_8 = arith.constant 0 : index
    %7 = vector.load %arg1[%c0_7, %c0_8] : memref<3x256xf32, #tpu.memory_space<vmem>>, vector<1x256xf32>
    %8 = vector.broadcast %7 : vector<1x256xf32> to vector<8x256xf32>
    %9 = arith.mulf %6, %8 : vector<8x256xf32>
    %c0_9 = arith.constant 0 : index
    %c0_10 = arith.constant 0 : index
    %10 = vector.load %arg24[%c0_9, %c0_10] : memref<576x256xf32, #tpu.memory_space<vmem>>, vector<8x256xf32>
    tpu.vector_store %arg24[%c0_9, %c0_10], %9 {strides = array<i32>} : memref<576x256xf32, #tpu.memory_space<vmem>>, vector<8x256xf32>,
    %c0_11 = arith.constant 0 : index
    %c112 = arith.constant 112 : index
    %11 = vector.load %arg23[%c0_11, %c112] : memref<64x512xf32, #tpu.memory_space<vmem>>, vector<8x256xf32>
    %c8 = arith.constant 8 : index
    %c0_12 = arith.constant 0 : index
    %12 = vector.load %arg24[%c8, %c0_12] : memref<576x256xf32, #tpu.memory_space<vmem>>, vector<8x256xf32>
    tpu.vector_store %arg24[%c8, %c0_12], %11 {strides = array<i32>} : memref<576x256xf32, #tpu.memory_space<vmem>>, vector<8x256xf32>,
    %c0_13 = arith.constant 0 : index
    %c113 = arith.constant 113 : index
    %13 = vector.load %arg23[%c0_13, %c113] : memref<64x512xf32, #tpu.memory_space<vmem>>, vector<8x256xf32>
    %c2 = arith.constant 2 : index
    %c0_14 = arith.constant 0 : index
    %14 = vector.load %arg1[%c2, %c0_14] : memref<3x256xf32, #tpu.memory_space<vmem>>, vector<1x256xf32>
    %15 = vector.broadcast %14 : vector<1x256xf32> to vector<8x256xf32>
    %16 = arith.mulf %13, %15 : vector<8x256xf32>
    %c16 = arith.constant 16 : index
    %c0_15 = arith.constant 0 : index
    %17 = vector.load %arg24[%c16, %c0_15] : memref<576x256xf32, #tpu.memory_space<vmem>>, vector<8x256xf32>
    tpu.vector_store %arg24[%c16, %c0_15], %16 {strides = array<i32>} : memref<576x256xf32, #tpu.memory_space<vmem>>, vector<8x256xf32>,
    %c0_16 = arith.constant 0 : index
    %c127 = arith.constant 127 : index
    %18 = vector.load %arg23[%c0_16, %c127] : memref<64x512xf32, #tpu.memory_space<vmem>>, vector<8x256xf32>
    %c0_17 = arith.constant 0 : index
    %c0_18 = arith.constant 0 : index
    %19 = vector.load %arg1[%c0_17, %c0_18] : memref<3x256xf32, #tpu.memory_space<vmem>>, vector<1x256xf32>
    %20 = vector.broadcast %19 : vector<1x256xf32> to vector<8x256xf32>
    %21 = arith.mulf %18, %20 : vector<8x256xf32>
    %c24 = arith.constant 24 : index
    %c0_19 = arith.constant 0 : index
    %22 = vector.load %arg24[%c24, %c0_19] : memref<576x256xf32, #tpu.memory_space<vmem>>, vector<8x256xf32>
    tpu.vector_store %arg24[%c24, %c0_19], %21 {strides = array<i32>} : memref<576x256xf32, #tpu.memory_space<vmem>>, vector<8x256xf32>,
    %c0_20 = arith.constant 0 : index
    %c128_21 = arith.constant 128 : index
    %23 = vector.load %arg23[%c0_20, %c128_21] : memref<64x512xf32, #tpu.memory_space<vmem>>, vector<8x256xf32>
    %c32 = arith.constant 32 : index
    %c0_22 = arith.constant 0 : index
    %24 = vector.load %arg24[%c32, %c0_22] : memref<576x256xf32, #tpu.memory_space<vmem>>, vector<8x256xf32>
    tpu.vector_store %arg24[%c32, %c0_22], %23 {strides = array<i32>} : memref<576x256xf32, #tpu.memory_space<vmem>>, vector<8x256xf32>,
    %c0_23 = arith.constant 0 : index
    %c129 = arith.constant 129 : index
    %25 = vector.load %arg23[%c0_23, %c129] : memref<64x512xf32, #tpu.memory_space<vmem>>, vector<8x256xf32>
    %c2_24 = arith.constant 2 : index
    %c0_25 = arith.constant 0 : index
    %26 = vector.load %arg1[%c2_24, %c0_25] : memref<3x256xf32, #tpu.memory_space<vmem>>, vector<1x256xf32>
    %27 = vector.broadcast %26 : vector<1x256xf32> to vector<8x256xf32>
    %28 = arith.mulf %25, %27 : vector<8x256xf32>
    %c40 = arith.constant 40 : index
    %c0_26 = arith.constant 0 : index
    %29 = vector.load %arg24[%c40, %c0_26] : memref<576x256xf32, #tpu.memory_space<vmem>>, vector<8x256xf32>
    tpu.vector_store %arg24[%c40, %c0_26], %28 {strides = array<i32>} : memref<576x256xf32, #tpu.memory_space<vmem>>, vector<8x256xf32>,
    %c0_27 = arith.constant 0 : index
    %c143 = arith.constant 143 : index
    %30 = vector.load %arg23[%c0_27, %c143] : memref<64x512xf32, #tpu.memory_space<vmem>>, vector<8x256xf32>
    %c0_28 = arith.constant 0 : index
    %c0_29 = arith.constant 0 : index
    %31 = vector.load %arg1[%c0_28, %c0_29] : memref<3x256xf32, #tpu.memory_space<vmem>>, vector<1x256xf32>
    %32 = vector.broadcast %31 : vector<1x256xf32> to vector<8x256xf32>
    %33 = arith.mulf %30, %32 : vector<8x256xf32>
    %c48 = arith.constant 48 : index
    %c0_30 = arith.constant 0 : index
    %34 = vector.load %arg24[%c48, %c0_30] : memref<576x256xf32, #tpu.memory_space<vmem>>, vector<8x256xf32>
    tpu.vector_store %arg24[%c48, %c0_30], %33 {strides = array<i32>} : memref<576x256xf32, #tpu.memory_space<vmem>>, vector<8x256xf32>,
    %c0_31 = arith.constant 0 : index
    %c144 = arith.constant 144 : index
    %35 = vector.load %arg23[%c0_31, %c144] : memref<64x512xf32, #tpu.memory_space<vmem>>, vector<8x256xf32>
    %c56 = arith.constant 56 : index
    %c0_32 = arith.constant 0 : index
    %36 = vector.load %arg24[%c56, %c0_32] : memref<576x256xf32, #tpu.memory_space<vmem>>, vector<8x256xf32>
    tpu.vector_store %arg24[%c56, %c0_32], %35 {strides = array<i32>} : memref<576x256xf32, #tpu.memory_space<vmem>>, vector<8x256xf32>,
    %c0_33 = arith.constant 0 : index
    %c145 = arith.constant 145 : index
    %37 = vector.load %arg23[%c0_33, %c145] : memref<64x512xf32, #tpu.memory_space<vmem>>, vector<8x256xf32>
    %c2_34 = arith.constant 2 : index
    %c0_35 = arith.constant 0 : index
    %38 = vector.load %arg1[%c2_34, %c0_35] : memref<3x256xf32, #tpu.memory_space<vmem>>, vector<1x256xf32>
    %39 = vector.broadcast %38 : vector<1x256xf32> to vector<8x256xf32>
    %40 = arith.mulf %37, %39 : vector<8x256xf32>
    %c64 = arith.constant 64 : index
    %c0_36 = arith.constant 0 : index
    %41 = vector.load %arg24[%c64, %c0_36] : memref<576x256xf32, #tpu.memory_space<vmem>>, vector<8x256xf32>
    tpu.vector_store %arg24[%c64, %c0_36], %40 {strides = array<i32>} : memref<576x256xf32, #tpu.memory_space<vmem>>, vector<8x256xf32>,
    %c0_37 = arith.constant 0 : index
    %c0_38 = arith.constant 0 : index
    %42 = vector.load %arg6[%c0_37, %c0_38] : memref<224x72xf32, #tpu.memory_space<vmem>>, vector<32x72xf32>
    %c0_39 = arith.constant 0 : index
    %c0_40 = arith.constant 0 : index
    %43 = vector.load %arg24[%c0_39, %c0_40] : memref<576x256xf32, #tpu.memory_space<vmem>>, vector<72x256xf32>
    %cst_41 = arith.constant dense<0.000000e+00> : vector<32x256xf32>
    %44 = tpu.matmul %42, %43, %cst_41 {dimension_numbers = #tpu.dot_dimension_numbers<[1], [0], [0], [1], [0, 0, 1, 1], [], []>} : vector<32x72xf32>, vector<72x256xf32>, vector<32x256xf32> -> vector<32x256xf32>
    %c0_42 = arith.constant 0 : index
    %c0_43 = arith.constant 0 : index
    %45 = vector.load %arg25[%c0_42, %c0_43] : memref<224x256xf32, #tpu.memory_space<vmem>>, vector<32x256xf32>
    tpu.vector_store %arg25[%c0_42, %c0_43], %44 {strides = array<i32>} : memref<224x256xf32, #tpu.memory_space<vmem>>, vector<32x256xf32>,
    %46 = vector.shape_cast %44 : vector<32x256xf32> to vector<1x32x256xf32>
    %cst_44 = arith.constant dense<0.000000e+00> : vector<1xf32>
    %47 = vector.multi_reduction <add>, %46, %cst_44 [1, 2] : vector<1x32x256xf32> to vector<1xf32>
    %48 = vector.shape_cast %47 : vector<1xf32> to vector<1x1x1xf32>
    %49 = vector.extract %48[0, 0, 0] : f32 from vector<1x1x1xf32>
    %cst_45 = arith.constant 0.000000e+00 : f32
    %50 = arith.addf %cst_45, %49 : f32
    %c32_46 = arith.constant 32 : index
    %c0_47 = arith.constant 0 : index
    %51 = vector.load %arg6[%c32_46, %c0_47] : memref<224x72xf32, #tpu.memory_space<vmem>>, vector<32x72xf32>
    %c0_48 = arith.constant 0 : index
    %c0_49 = arith.constant 0 : index
    %52 = vector.load %arg24[%c0_48, %c0_49] : memref<576x256xf32, #tpu.memory_space<vmem>>, vector<72x256xf32>
    %cst_50 = arith.constant dense<0.000000e+00> : vector<32x256xf32>
    %53 = tpu.matmul %51, %52, %cst_50 {dimension_numbers = #tpu.dot_dimension_numbers<[1], [0], [0], [1], [0, 0, 1, 1], [], []>} : vector<32x72xf32>, vector<72x256xf32>, vector<32x256xf32> -> vector<32x256xf32>
    %c32_51 = arith.constant 32 : index
    %c0_52 = arith.constant 0 : index
    %54 = vector.load %arg25[%c32_51, %c0_52] : memref<224x256xf32, #tpu.memory_space<vmem>>, vector<32x256xf32>
    tpu.vector_store %arg25[%c32_51, %c0_52], %53 {strides = array<i32>} : memref<224x256xf32, #tpu.memory_space<vmem>>, vector<32x256xf32>,
    %55 = vector.shape_cast %53 : vector<32x256xf32> to vector<1x32x256xf32>
    %cst_53 = arith.constant dense<0.000000e+00> : vector<1xf32>
    %56 = vector.multi_reduction <add>, %55, %cst_53 [1, 2] : vector<1x32x256xf32> to vector<1xf32>
    %57 = vector.shape_cast %56 : vector<1xf32> to vector<1x1x1xf32>
    %58 = vector.extract %57[0, 0, 0] : f32 from vector<1x1x1xf32>
    %59 = arith.addf %50, %58 : f32
    %c64_54 = arith.constant 64 : index
    %c0_55 = arith.constant 0 : index
    %60 = vector.load %arg6[%c64_54, %c0_55] : memref<224x72xf32, #tpu.memory_space<vmem>>, vector<32x72xf32>
    %c0_56 = arith.constant 0 : index
    %c0_57 = arith.constant 0 : index
    %61 = vector.load %arg24[%c0_56, %c0_57] : memref<576x256xf32, #tpu.memory_space<vmem>>, vector<72x256xf32>
    %cst_58 = arith.constant dense<0.000000e+00> : vector<32x256xf32>
    %62 = tpu.matmul %60, %61, %cst_58 {dimension_numbers = #tpu.dot_dimension_numbers<[1], [0], [0], [1], [0, 0, 1, 1], [], []>} : vector<32x72xf32>, vector<72x256xf32>, vector<32x256xf32> -> vector<32x256xf32>
    %c64_59 = arith.constant 64 : index
    %c0_60 = arith.constant 0 : index
    %63 = vector.load %arg25[%c64_59, %c0_60] : memref<224x256xf32, #tpu.memory_space<vmem>>, vector<32x256xf32>
    tpu.vector_store %arg25[%c64_59, %c0_60], %62 {strides = array<i32>} : memref<224x256xf32, #tpu.memory_space<vmem>>, vector<32x256xf32>,
    %64 = vector.shape_cast %62 : vector<32x256xf32> to vector<1x32x256xf32>
    %cst_61 = arith.constant dense<0.000000e+00> : vector<1xf32>
    %65 = vector.multi_reduction <add>, %64, %cst_61 [1, 2] : vector<1x32x256xf32> to vector<1xf32>
    %66 = vector.shape_cast %65 : vector<1xf32> to vector<1x1x1xf32>
    %67 = vector.extract %66[0, 0, 0] : f32 from vector<1x1x1xf32>
    %68 = arith.addf %59, %67 : f32
    %c96 = arith.constant 96 : index
    %c0_62 = arith.constant 0 : index
    %69 = vector.load %arg6[%c96, %c0_62] : memref<224x72xf32, #tpu.memory_space<vmem>>, vector<32x72xf32>
    %c0_63 = arith.constant 0 : index
    %c0_64 = arith.constant 0 : index
    %70 = vector.load %arg24[%c0_63, %c0_64] : memref<576x256xf32, #tpu.memory_space<vmem>>, vector<72x256xf32>
    %cst_65 = arith.constant dense<0.000000e+00> : vector<32x256xf32>
    %71 = tpu.matmul %69, %70, %cst_65 {dimension_numbers = #tpu.dot_dimension_numbers<[1], [0], [0], [1], [0, 0, 1, 1], [], []>} : vector<32x72xf32>, vector<72x256xf32>, vector<32x256xf32> -> vector<32x256xf32>
    %c96_66 = arith.constant 96 : index
    %c0_67 = arith.constant 0 : index
    %72 = vector.load %arg25[%c96_66, %c0_67] : memref<224x256xf32, #tpu.memory_space<vmem>>, vector<32x256xf32>
    tpu.vector_store %arg25[%c96_66, %c0_67], %71 {strides = array<i32>} : memref<224x256xf32, #tpu.memory_space<vmem>>, vector<32x256xf32>,
    %73 = vector.shape_cast %71 : vector<32x256xf32> to vector<1x32x256xf32>
    %cst_68 = arith.constant dense<0.000000e+00> : vector<1xf32>
    %74 = vector.multi_reduction <add>, %73, %cst_68 [1, 2] : vector<1x32x256xf32> to vector<1xf32>
    %75 = vector.shape_cast %74 : vector<1xf32> to vector<1x1x1xf32>
    %76 = vector.extract %75[0, 0, 0] : f32 from vector<1x1x1xf32>
    %77 = arith.addf %68, %76 : f32
    %c128_69 = arith.constant 128 : index
    %c0_70 = arith.constant 0 : index
    %78 = vector.load %arg6[%c128_69, %c0_70] : memref<224x72xf32, #tpu.memory_space<vmem>>, vector<32x72xf32>
    %c0_71 = arith.constant 0 : index
    %c0_72 = arith.constant 0 : index
    %79 = vector.load %arg24[%c0_71, %c0_72] : memref<576x256xf32, #tpu.memory_space<vmem>>, vector<72x256xf32>
    %cst_73 = arith.constant dense<0.000000e+00> : vector<32x256xf32>
    %80 = tpu.matmul %78, %79, %cst_73 {dimension_numbers = #tpu.dot_dimension_numbers<[1], [0], [0], [1], [0, 0, 1, 1], [], []>} : vector<32x72xf32>, vector<72x256xf32>, vector<32x256xf32> -> vector<32x256xf32>
    %c128_74 = arith.constant 128 : index
    %c0_75 = arith.constant 0 : index
    %81 = vector.load %arg25[%c128_74, %c0_75] : memref<224x256xf32, #tpu.memory_space<vmem>>, vector<32x256xf32>
    tpu.vector_store %arg25[%c128_74, %c0_75], %80 {strides = array<i32>} : memref<224x256xf32, #tpu.memory_space<vmem>>, vector<32x256xf32>,
    %82 = vector.shape_cast %80 : vector<32x256xf32> to vector<1x32x256xf32>
    %cst_76 = arith.constant dense<0.000000e+00> : vector<1xf32>
    %83 = vector.multi_reduction <add>, %82, %cst_76 [1, 2] : vector<1x32x256xf32> to vector<1xf32>
    %84 = vector.shape_cast %83 : vector<1xf32> to vector<1x1x1xf32>
    %85 = vector.extract %84[0, 0, 0] : f32 from vector<1x1x1xf32>
    %86 = arith.addf %77, %85 : f32
    %c160 = arith.constant 160 : index
    %c0_77 = arith.constant 0 : index
    %87 = vector.load %arg6[%c160, %c0_77] : memref<224x72xf32, #tpu.memory_space<vmem>>, vector<32x72xf32>
    %c0_78 = arith.constant 0 : index
    %c0_79 = arith.constant 0 : index
    %88 = vector.load %arg24[%c0_78, %c0_79] : memref<576x256xf32, #tpu.memory_space<vmem>>, vector<72x256xf32>
    %cst_80 = arith.constant dense<0.000000e+00> : vector<32x256xf32>
    %89 = tpu.matmul %87, %88, %cst_80 {dimension_numbers = #tpu.dot_dimension_numbers<[1], [0], [0], [1], [0, 0, 1, 1], [], []>} : vector<32x72xf32>, vector<72x256xf32>, vector<32x256xf32> -> vector<32x256xf32>
    %c160_81 = arith.constant 160 : index
    %c0_82 = arith.constant 0 : index
    %90 = vector.load %arg25[%c160_81, %c0_82] : memref<224x256xf32, #tpu.memory_space<vmem>>, vector<32x256xf32>
    tpu.vector_store %arg25[%c160_81, %c0_82], %89 {strides = array<i32>} : memref<224x256xf32, #tpu.memory_space<vmem>>, vector<32x256xf32>,
    %91 = vector.shape_cast %89 : vector<32x256xf32> to vector<1x32x256xf32>
    %cst_83 = arith.constant dense<0.000000e+00> : vector<1xf32>
    %92 = vector.multi_reduction <add>, %91, %cst_83 [1, 2] : vector<1x32x256xf32> to vector<1xf32>
    %93 = vector.shape_cast %92 : vector<1xf32> to vector<1x1x1xf32>
    %94 = vector.extract %93[0, 0, 0] : f32 from vector<1x1x1xf32>
    %95 = arith.addf %86, %94 : f32
    %c192 = arith.constant 192 : index
    %c0_84 = arith.constant 0 : index
    %96 = vector.load %arg6[%c192, %c0_84] : memref<224x72xf32, #tpu.memory_space<vmem>>, vector<32x72xf32>
    %c0_85 = arith.constant 0 : index
    %c0_86 = arith.constant 0 : index
    %97 = vector.load %arg24[%c0_85, %c0_86] : memref<576x256xf32, #tpu.memory_space<vmem>>, vector<72x256xf32>
    %cst_87 = arith.constant dense<0.000000e+00> : vector<32x256xf32>
    %98 = tpu.matmul %96, %97, %cst_87 {dimension_numbers = #tpu.dot_dimension_numbers<[1], [0], [0], [1], [0, 0, 1, 1], [], []>} : vector<32x72xf32>, vector<72x256xf32>, vector<32x256xf32> -> vector<32x256xf32>
    %c192_88 = arith.constant 192 : index
    %c0_89 = arith.constant 0 : index
    %99 = vector.load %arg25[%c192_88, %c0_89] : memref<224x256xf32, #tpu.memory_space<vmem>>, vector<32x256xf32>
    tpu.vector_store %arg25[%c192_88, %c0_89], %98 {strides = array<i32>} : memref<224x256xf32, #tpu.memory_space<vmem>>, vector<32x256xf32>,
    %100 = vector.shape_cast %98 : vector<32x256xf32> to vector<1x32x256xf32>
    %cst_90 = arith.constant dense<0.000000e+00> : vector<1xf32>
    %101 = vector.multi_reduction <add>, %100, %cst_90 [1, 2] : vector<1x32x256xf32> to vector<1xf32>
    %102 = vector.shape_cast %101 : vector<1xf32> to vector<1x1x1xf32>
    %103 = vector.extract %102[0, 0, 0] : f32 from vector<1x1x1xf32>
    %104 = arith.addf %95, %103 : f32
    %cst_91 = arith.constant 5.734400e+04 : f32
    %105 = arith.divf %104, %cst_91 : f32
    %c0_92 = arith.constant 0 : index
    %c0_93 = arith.constant 0 : index
    %106 = vector.load %arg25[%c0_92, %c0_93] : memref<224x256xf32, #tpu.memory_space<vmem>>, vector<32x256xf32>
    %107 = vector.broadcast %105 : f32 to vector<32x256xf32>
    %108 = arith.subf %106, %107 : vector<32x256xf32>
    %109 = arith.mulf %108, %108 : vector<32x256xf32>
    %110 = vector.shape_cast %109 : vector<32x256xf32> to vector<1x32x256xf32>
    %cst_94 = arith.constant dense<0.000000e+00> : vector<1xf32>
    %111 = vector.multi_reduction <add>, %110, %cst_94 [1, 2] : vector<1x32x256xf32> to vector<1xf32>
    %112 = vector.shape_cast %111 : vector<1xf32> to vector<1x1x1xf32>
    %113 = vector.extract %112[0, 0, 0] : f32 from vector<1x1x1xf32>
    %cst_95 = arith.constant 0.000000e+00 : f32
    %114 = arith.addf %cst_95, %113 : f32
    %c32_96 = arith.constant 32 : index
    %c0_97 = arith.constant 0 : index
    %115 = vector.load %arg25[%c32_96, %c0_97] : memref<224x256xf32, #tpu.memory_space<vmem>>, vector<32x256xf32>
    %116 = vector.broadcast %105 : f32 to vector<32x256xf32>
    %117 = arith.subf %115, %116 : vector<32x256xf32>
    %118 = arith.mulf %117, %117 : vector<32x256xf32>
    %119 = vector.shape_cast %118 : vector<32x256xf32> to vector<1x32x256xf32>
    %cst_98 = arith.constant dense<0.000000e+00> : vector<1xf32>
    %120 = vector.multi_reduction <add>, %119, %cst_98 [1, 2] : vector<1x32x256xf32> to vector<1xf32>
    %121 = vector.shape_cast %120 : vector<1xf32> to vector<1x1x1xf32>
    %122 = vector.extract %121[0, 0, 0] : f32 from vector<1x1x1xf32>
    %123 = arith.addf %114, %122 : f32
    %c64_99 = arith.constant 64 : index
    %c0_100 = arith.constant 0 : index
    %124 = vector.load %arg25[%c64_99, %c0_100] : memref<224x256xf32, #tpu.memory_space<vmem>>, vector<32x256xf32>
    %125 = vector.broadcast %105 : f32 to vector<32x256xf32>
    %126 = arith.subf %124, %125 : vector<32x256xf32>
    %127 = arith.mulf %126, %126 : vector<32x256xf32>
    %128 = vector.shape_cast %127 : vector<32x256xf32> to vector<1x32x256xf32>
    %cst_101 = arith.constant dense<0.000000e+00> : vector<1xf32>
    %129 = vector.multi_reduction <add>, %128, %cst_101 [1, 2] : vector<1x32x256xf32> to vector<1xf32>
    %130 = vector.shape_cast %129 : vector<1xf32> to vector<1x1x1xf32>
    %131 = vector.extract %130[0, 0, 0] : f32 from vector<1x1x1xf32>
    %132 = arith.addf %123, %131 : f32
    %c96_102 = arith.constant 96 : index
    %c0_103 = arith.constant 0 : index
    %133 = vector.load %arg25[%c96_102, %c0_103] : memref<224x256xf32, #tpu.memory_space<vmem>>, vector<32x256xf32>
    %134 = vector.broadcast %105 : f32 to vector<32x256xf32>
    %135 = arith.subf %133, %134 : vector<32x256xf32>
    %136 = arith.mulf %135, %135 : vector<32x256xf32>
    %137 = vector.shape_cast %136 : vector<32x256xf32> to vector<1x32x256xf32>
    %cst_104 = arith.constant dense<0.000000e+00> : vector<1xf32>
    %138 = vector.multi_reduction <add>, %137, %cst_104 [1, 2] : vector<1x32x256xf32> to vector<1xf32>
    %139 = vector.shape_cast %138 : vector<1xf32> to vector<1x1x1xf32>
    %140 = vector.extract %139[0, 0, 0] : f32 from vector<1x1x1xf32>
    %141 = arith.addf %132, %140 : f32
    %c128_105 = arith.constant 128 : index
    %c0_106 = arith.constant 0 : index
    %142 = vector.load %arg25[%c128_105, %c0_106] : memref<224x256xf32, #tpu.memory_space<vmem>>, vector<32x256xf32>
    %143 = vector.broadcast %105 : f32 to vector<32x256xf32>
    %144 = arith.subf %142, %143 : vector<32x256xf32>
    %145 = arith.mulf %144, %144 : vector<32x256xf32>
    %146 = vector.shape_cast %145 : vector<32x256xf32> to vector<1x32x256xf32>
    %cst_107 = arith.constant dense<0.000000e+00> : vector<1xf32>
    %147 = vector.multi_reduction <add>, %146, %cst_107 [1, 2] : vector<1x32x256xf32> to vector<1xf32>
    %148 = vector.shape_cast %147 : vector<1xf32> to vector<1x1x1xf32>
    %149 = vector.extract %148[0, 0, 0] : f32 from vector<1x1x1xf32>
    %150 = arith.addf %141, %149 : f32
    %c160_108 = arith.constant 160 : index
    %c0_109 = arith.constant 0 : index
    %151 = vector.load %arg25[%c160_108, %c0_109] : memref<224x256xf32, #tpu.memory_space<vmem>>, vector<32x256xf32>
    %152 = vector.broadcast %105 : f32 to vector<32x256xf32>
    %153 = arith.subf %151, %152 : vector<32x256xf32>
    %154 = arith.mulf %153, %153 : vector<32x256xf32>
    %155 = vector.shape_cast %154 : vector<32x256xf32> to vector<1x32x256xf32>
    %cst_110 = arith.constant dense<0.000000e+00> : vector<1xf32>
    %156 = vector.multi_reduction <add>, %155, %cst_110 [1, 2] : vector<1x32x256xf32> to vector<1xf32>
    %157 = vector.shape_cast %156 : vector<1xf32> to vector<1x1x1xf32>
    %158 = vector.extract %157[0, 0, 0] : f32 from vector<1x1x1xf32>
    %159 = arith.addf %150, %158 : f32
    %c192_111 = arith.constant 192 : index
    %c0_112 = arith.constant 0 : index
    %160 = vector.load %arg25[%c192_111, %c0_112] : memref<224x256xf32, #tpu.memory_space<vmem>>, vector<32x256xf32>
    %161 = vector.broadcast %105 : f32 to vector<32x256xf32>
    %162 = arith.subf %160, %161 : vector<32x256xf32>
    %163 = arith.mulf %162, %162 : vector<32x256xf32>
    %164 = vector.shape_cast %163 : vector<32x256xf32> to vector<1x32x256xf32>
    %cst_113 = arith.constant dense<0.000000e+00> : vector<1xf32>
    %165 = vector.multi_reduction <add>, %164, %cst_113 [1, 2] : vector<1x32x256xf32> to vector<1xf32>
    %166 = vector.shape_cast %165 : vector<1xf32> to vector<1x1x1xf32>
    %167 = vector.extract %166[0, 0, 0] : f32 from vector<1x1x1xf32>
    %168 = arith.addf %159, %167 : f32
    %cst_114 = arith.constant 5.734400e+04 : f32
    %169 = arith.divf %168, %cst_114 : f32
    %cst_115 = arith.constant 9.99999974E-6 : f32
    %170 = arith.addf %169, %cst_115 : f32
    %171 = math.rsqrt %170 : f32
    %c0_116 = arith.constant 0 : index
    %c0_117 = arith.constant 0 : index
    %c0_118 = arith.constant 0 : index
    %172 = vector.load %arg3[%c0_116, %c0_117, %c0_118] : memref<1x32x256xf32, #tpu.memory_space<vmem>>, vector<1x32x256xf32>
    %173 = vector.shape_cast %172 : vector<1x32x256xf32> to vector<32x256xf32>
    %c0_119 = arith.constant 0 : index
    %c128_120 = arith.constant 128 : index
    %174 = vector.load %arg23[%c0_119, %c128_120] : memref<64x512xf32, #tpu.memory_space<vmem>>, vector<32x256xf32>
    tpu.vector_store %arg23[%c0_119, %c128_120], %173 {strides = array<i32>} : memref<64x512xf32, #tpu.memory_space<vmem>>, vector<32x256xf32>,
    %c0_121 = arith.constant 0 : index
    %c111_122 = arith.constant 111 : index
    %175 = vector.load %arg23[%c0_121, %c111_122] : memref<64x512xf32, #tpu.memory_space<vmem>>, vector<32x256xf32>
    %c0_123 = arith.constant 0 : index
    %c0_124 = arith.constant 0 : index
    %176 = vector.load %arg1[%c0_123, %c0_124] : memref<3x256xf32, #tpu.memory_space<vmem>>, vector<1x256xf32>
    %177 = vector.broadcast %176 : vector<1x256xf32> to vector<32x256xf32>
    %178 = arith.mulf %175, %177 : vector<32x256xf32>
    %c0_125 = arith.constant 0 : index
    %c0_126 = arith.constant 0 : index
    %179 = vector.load %arg24[%c0_125, %c0_126] : memref<576x256xf32, #tpu.memory_space<vmem>>, vector<32x256xf32>
    tpu.vector_store %arg24[%c0_125, %c0_126], %178 {strides = array<i32>} : memref<576x256xf32, #tpu.memory_space<vmem>>, vector<32x256xf32>,
    %c0_127 = arith.constant 0 : index
    %c112_128 = arith.constant 112 : index
    %180 = vector.load %arg23[%c0_127, %c112_128] : memref<64x512xf32, #tpu.memory_space<vmem>>, vector<32x256xf32>
    %c32_129 = arith.constant 32 : index
    %c0_130 = arith.constant 0 : index
    %181 = vector.load %arg24[%c32_129, %c0_130] : memref<576x256xf32, #tpu.memory_space<vmem>>, vector<32x256xf32>
    tpu.vector_store %arg24[%c32_129, %c0_130], %180 {strides = array<i32>} : memref<576x256xf32, #tpu.memory_space<vmem>>, vector<32x256xf32>,
    %c0_131 = arith.constant 0 : index
    %c113_132 = arith.constant 113 : index
    %182 = vector.load %arg23[%c0_131, %c113_132] : memref<64x512xf32, #tpu.memory_space<vmem>>, vector<32x256xf32>
    %c2_133 = arith.constant 2 : index
    %c0_134 = arith.constant 0 : index
    %183 = vector.load %arg1[%c2_133, %c0_134] : memref<3x256xf32, #tpu.memory_space<vmem>>, vector<1x256xf32>
    %184 = vector.broadcast %183 : vector<1x256xf32> to vector<32x256xf32>
    %185 = arith.mulf %182, %184 : vector<32x256xf32>
    %c64_135 = arith.constant 64 : index
    %c0_136 = arith.constant 0 : index
    %186 = vector.load %arg24[%c64_135, %c0_136] : memref<576x256xf32, #tpu.memory_space<vmem>>, vector<32x256xf32>
    tpu.vector_store %arg24[%c64_135, %c0_136], %185 {strides = array<i32>} : memref<576x256xf32, #tpu.memory_space<vmem>>, vector<32x256xf32>,
    %c0_137 = arith.constant 0 : index
    %c127_138 = arith.constant 127 : index
    %187 = vector.load %arg23[%c0_137, %c127_138] : memref<64x512xf32, #tpu.memory_space<vmem>>, vector<32x256xf32>
    %c0_139 = arith.constant 0 : index
    %c0_140 = arith.constant 0 : index
    %188 = vector.load %arg1[%c0_139, %c0_140] : memref<3x256xf32, #tpu.memory_space<vmem>>, vector<1x256xf32>
    %189 = vector.broadcast %188 : vector<1x256xf32> to vector<32x256xf32>
    %190 = arith.mulf %187, %189 : vector<32x256xf32>
    %c96_141 = arith.constant 96 : index
    %c0_142 = arith.constant 0 : index
    %191 = vector.load %arg24[%c96_141, %c0_142] : memref<576x256xf32, #tpu.memory_space<vmem>>, vector<32x256xf32>
    tpu.vector_store %arg24[%c96_141, %c0_142], %190 {strides = array<i32>} : memref<576x256xf32, #tpu.memory_space<vmem>>, vector<32x256xf32>,
    %c0_143 = arith.constant 0 : index
    %c128_144 = arith.constant 128 : index
    %192 = vector.load %arg23[%c0_143, %c128_144] : memref<64x512xf32, #tpu.memory_space<vmem>>, vector<32x256xf32>
    %c128_145 = arith.constant 128 : index
    %c0_146 = arith.constant 0 : index
    %193 = vector.load %arg24[%c128_145, %c0_146] : memref<576x256xf32, #tpu.memory_space<vmem>>, vector<32x256xf32>
    tpu.vector_store %arg24[%c128_145, %c0_146], %192 {strides = array<i32>} : memref<576x256xf32, #tpu.memory_space<vmem>>, vector<32x256xf32>,
    %c0_147 = arith.constant 0 : index
    %c129_148 = arith.constant 129 : index
    %194 = vector.load %arg23[%c0_147, %c129_148] : memref<64x512xf32, #tpu.memory_space<vmem>>, vector<32x256xf32>
    %c2_149 = arith.constant 2 : index
    %c0_150 = arith.constant 0 : index
    %195 = vector.load %arg1[%c2_149, %c0_150] : memref<3x256xf32, #tpu.memory_space<vmem>>, vector<1x256xf32>
    %196 = vector.broadcast %195 : vector<1x256xf32> to vector<32x256xf32>
    %197 = arith.mulf %194, %196 : vector<32x256xf32>
    %c160_151 = arith.constant 160 : index
    %c0_152 = arith.constant 0 : index
    %198 = vector.load %arg24[%c160_151, %c0_152] : memref<576x256xf32, #tpu.memory_space<vmem>>, vector<32x256xf32>
    tpu.vector_store %arg24[%c160_151, %c0_152], %197 {strides = array<i32>} : memref<576x256xf32, #tpu.memory_space<vmem>>, vector<32x256xf32>,
    %c0_153 = arith.constant 0 : index
    %c143_154 = arith.constant 143 : index
    %199 = vector.load %arg23[%c0_153, %c143_154] : memref<64x512xf32, #tpu.memory_space<vmem>>, vector<32x256xf32>
    %c0_155 = arith.constant 0 : index
    %c0_156 = arith.constant 0 : index
    %200 = vector.load %arg1[%c0_155, %c0_156] : memref<3x256xf32, #tpu.memory_space<vmem>>, vector<1x256xf32>
    %201 = vector.broadcast %200 : vector<1x256xf32> to vector<32x256xf32>
    %202 = arith.mulf %199, %201 : vector<32x256xf32>
    %c192_157 = arith.constant 192 : index
    %c0_158 = arith.constant 0 : index
    %203 = vector.load %arg24[%c192_157, %c0_158] : memref<576x256xf32, #tpu.memory_space<vmem>>, vector<32x256xf32>
    tpu.vector_store %arg24[%c192_157, %c0_158], %202 {strides = array<i32>} : memref<576x256xf32, #tpu.memory_space<vmem>>, vector<32x256xf32>,
    %c0_159 = arith.constant 0 : index
    %c144_160 = arith.constant 144 : index
    %204 = vector.load %arg23[%c0_159, %c144_160] : memref<64x512xf32, #tpu.memory_space<vmem>>, vector<32x256xf32>
    %c224 = arith.constant 224 : index
    %c0_161 = arith.constant 0 : index
    %205 = vector.load %arg24[%c224, %c0_161] : memref<576x256xf32, #tpu.memory_space<vmem>>, vector<32x256xf32>
    tpu.vector_store %arg24[%c224, %c0_161], %204 {strides = array<i32>} : memref<576x256xf32, #tpu.memory_space<vmem>>, vector<32x256xf32>,
    %c0_162 = arith.constant 0 : index
    %c145_163 = arith.constant 145 : index
    %206 = vector.load %arg23[%c0_162, %c145_163] : memref<64x512xf32, #tpu.memory_space<vmem>>, vector<32x256xf32>
    %c2_164 = arith.constant 2 : index
    %c0_165 = arith.constant 0 : index
    %207 = vector.load %arg1[%c2_164, %c0_165] : memref<3x256xf32, #tpu.memory_space<vmem>>, vector<1x256xf32>
    %208 = vector.broadcast %207 : vector<1x256xf32> to vector<32x256xf32>
    %209 = arith.mulf %206, %208 : vector<32x256xf32>
    %c256 = arith.constant 256 : index
    %c0_166 = arith.constant 0 : index
    %210 = vector.load %arg24[%c256, %c0_166] : memref<576x256xf32, #tpu.memory_space<vmem>>, vector<32x256xf32>
    tpu.vector_store %arg24[%c256, %c0_166], %209 {strides = array<i32>} : memref<576x256xf32, #tpu.memory_space<vmem>>, vector<32x256xf32>,
    %c0_167 = arith.constant 0 : index
    %c0_168 = arith.constant 0 : index
    %211 = vector.load %arg7[%c0_167, %c0_168] : memref<128x288xf32, #tpu.memory_space<vmem>>, vector<32x288xf32>
    %c0_169 = arith.constant 0 : index
    %c0_170 = arith.constant 0 : index
    %212 = vector.load %arg24[%c0_169, %c0_170] : memref<576x256xf32, #tpu.memory_space<vmem>>, vector<288x256xf32>
    %cst_171 = arith.constant dense<0.000000e+00> : vector<32x256xf32>
    %213 = tpu.matmul %211, %212, %cst_171 {dimension_numbers = #tpu.dot_dimension_numbers<[1], [0], [0], [1], [0, 0, 1, 1], [], []>} : vector<32x288xf32>, vector<288x256xf32>, vector<32x256xf32> -> vector<32x256xf32>
    %c0_172 = arith.constant 0 : index
    %c0_173 = arith.constant 0 : index
    %214 = vector.load %arg26[%c0_172, %c0_173] : memref<128x256xf32, #tpu.memory_space<vmem>>, vector<32x256xf32>
    tpu.vector_store %arg26[%c0_172, %c0_173], %213 {strides = array<i32>} : memref<128x256xf32, #tpu.memory_space<vmem>>, vector<32x256xf32>,
    %215 = vector.shape_cast %213 : vector<32x256xf32> to vector<1x32x256xf32>
    %cst_174 = arith.constant dense<0.000000e+00> : vector<1xf32>
    %216 = vector.multi_reduction <add>, %215, %cst_174 [1, 2] : vector<1x32x256xf32> to vector<1xf32>
    %217 = vector.shape_cast %216 : vector<1xf32> to vector<1x1x1xf32>
    %218 = vector.extract %217[0, 0, 0] : f32 from vector<1x1x1xf32>
    %cst_175 = arith.constant 0.000000e+00 : f32
    %219 = arith.addf %cst_175, %218 : f32
    %c32_176 = arith.constant 32 : index
    %c0_177 = arith.constant 0 : index
    %220 = vector.load %arg7[%c32_176, %c0_177] : memref<128x288xf32, #tpu.memory_space<vmem>>, vector<32x288xf32>
    %c0_178 = arith.constant 0 : index
    %c0_179 = arith.constant 0 : index
    %221 = vector.load %arg24[%c0_178, %c0_179] : memref<576x256xf32, #tpu.memory_space<vmem>>, vector<288x256xf32>
    %cst_180 = arith.constant dense<0.000000e+00> : vector<32x256xf32>
    %222 = tpu.matmul %220, %221, %cst_180 {dimension_numbers = #tpu.dot_dimension_numbers<[1], [0], [0], [1], [0, 0, 1, 1], [], []>} : vector<32x288xf32>, vector<288x256xf32>, vector<32x256xf32> -> vector<32x256xf32>
    %c32_181 = arith.constant 32 : index
    %c0_182 = arith.constant 0 : index
    %223 = vector.load %arg26[%c32_181, %c0_182] : memref<128x256xf32, #tpu.memory_space<vmem>>, vector<32x256xf32>
    tpu.vector_store %arg26[%c32_181, %c0_182], %222 {strides = array<i32>} : memref<128x256xf32, #tpu.memory_space<vmem>>, vector<32x256xf32>,
    %224 = vector.shape_cast %222 : vector<32x256xf32> to vector<1x32x256xf32>
    %cst_183 = arith.constant dense<0.000000e+00> : vector<1xf32>
    %225 = vector.multi_reduction <add>, %224, %cst_183 [1, 2] : vector<1x32x256xf32> to vector<1xf32>
    %226 = vector.shape_cast %225 : vector<1xf32> to vector<1x1x1xf32>
    %227 = vector.extract %226[0, 0, 0] : f32 from vector<1x1x1xf32>
    %228 = arith.addf %219, %227 : f32
    %c64_184 = arith.constant 64 : index
    %c0_185 = arith.constant 0 : index
    %229 = vector.load %arg7[%c64_184, %c0_185] : memref<128x288xf32, #tpu.memory_space<vmem>>, vector<32x288xf32>
    %c0_186 = arith.constant 0 : index
    %c0_187 = arith.constant 0 : index
    %230 = vector.load %arg24[%c0_186, %c0_187] : memref<576x256xf32, #tpu.memory_space<vmem>>, vector<288x256xf32>
    %cst_188 = arith.constant dense<0.000000e+00> : vector<32x256xf32>
    %231 = tpu.matmul %229, %230, %cst_188 {dimension_numbers = #tpu.dot_dimension_numbers<[1], [0], [0], [1], [0, 0, 1, 1], [], []>} : vector<32x288xf32>, vector<288x256xf32>, vector<32x256xf32> -> vector<32x256xf32>
    %c64_189 = arith.constant 64 : index
    %c0_190 = arith.constant 0 : index
    %232 = vector.load %arg26[%c64_189, %c0_190] : memref<128x256xf32, #tpu.memory_space<vmem>>, vector<32x256xf32>
    tpu.vector_store %arg26[%c64_189, %c0_190], %231 {strides = array<i32>} : memref<128x256xf32, #tpu.memory_space<vmem>>, vector<32x256xf32>,
    %233 = vector.shape_cast %231 : vector<32x256xf32> to vector<1x32x256xf32>
    %cst_191 = arith.constant dense<0.000000e+00> : vector<1xf32>
    %234 = vector.multi_reduction <add>, %233, %cst_191 [1, 2] : vector<1x32x256xf32> to vector<1xf32>
    %235 = vector.shape_cast %234 : vector<1xf32> to vector<1x1x1xf32>
    %236 = vector.extract %235[0, 0, 0] : f32 from vector<1x1x1xf32>
    %237 = arith.addf %228, %236 : f32
    %c96_192 = arith.constant 96 : index
    %c0_193 = arith.constant 0 : index
    %238 = vector.load %arg7[%c96_192, %c0_193] : memref<128x288xf32, #tpu.memory_space<vmem>>, vector<32x288xf32>
    %c0_194 = arith.constant 0 : index
    %c0_195 = arith.constant 0 : index
    %239 = vector.load %arg24[%c0_194, %c0_195] : memref<576x256xf32, #tpu.memory_space<vmem>>, vector<288x256xf32>
    %cst_196 = arith.constant dense<0.000000e+00> : vector<32x256xf32>
    %240 = tpu.matmul %238, %239, %cst_196 {dimension_numbers = #tpu.dot_dimension_numbers<[1], [0], [0], [1], [0, 0, 1, 1], [], []>} : vector<32x288xf32>, vector<288x256xf32>, vector<32x256xf32> -> vector<32x256xf32>
    %c96_197 = arith.constant 96 : index
    %c0_198 = arith.constant 0 : index
    %241 = vector.load %arg26[%c96_197, %c0_198] : memref<128x256xf32, #tpu.memory_space<vmem>>, vector<32x256xf32>
    tpu.vector_store %arg26[%c96_197, %c0_198], %240 {strides = array<i32>} : memref<128x256xf32, #tpu.memory_space<vmem>>, vector<32x256xf32>,
    %242 = vector.shape_cast %240 : vector<32x256xf32> to vector<1x32x256xf32>
    %cst_199 = arith.constant dense<0.000000e+00> : vector<1xf32>
    %243 = vector.multi_reduction <add>, %242, %cst_199 [1, 2] : vector<1x32x256xf32> to vector<1xf32>
    %244 = vector.shape_cast %243 : vector<1xf32> to vector<1x1x1xf32>
    %245 = vector.extract %244[0, 0, 0] : f32 from vector<1x1x1xf32>
    %246 = arith.addf %237, %245 : f32
    %cst_200 = arith.constant 3.276800e+04 : f32
    %247 = arith.divf %246, %cst_200 : f32
    %c0_201 = arith.constant 0 : index
    %c0_202 = arith.constant 0 : index
    %248 = vector.load %arg26[%c0_201, %c0_202] : memref<128x256xf32, #tpu.memory_space<vmem>>, vector<32x256xf32>
    %249 = vector.broadcast %247 : f32 to vector<32x256xf32>
    %250 = arith.subf %248, %249 : vector<32x256xf32>
    %251 = arith.mulf %250, %250 : vector<32x256xf32>
    %252 = vector.shape_cast %251 : vector<32x256xf32> to vector<1x32x256xf32>
    %cst_203 = arith.constant dense<0.000000e+00> : vector<1xf32>
    %253 = vector.multi_reduction <add>, %252, %cst_203 [1, 2] : vector<1x32x256xf32> to vector<1xf32>
    %254 = vector.shape_cast %253 : vector<1xf32> to vector<1x1x1xf32>
    %255 = vector.extract %254[0, 0, 0] : f32 from vector<1x1x1xf32>
    %cst_204 = arith.constant 0.000000e+00 : f32
    %256 = arith.addf %cst_204, %255 : f32
    %c32_205 = arith.constant 32 : index
    %c0_206 = arith.constant 0 : index
    %257 = vector.load %arg26[%c32_205, %c0_206] : memref<128x256xf32, #tpu.memory_space<vmem>>, vector<32x256xf32>
    %258 = vector.broadcast %247 : f32 to vector<32x256xf32>
    %259 = arith.subf %257, %258 : vector<32x256xf32>
    %260 = arith.mulf %259, %259 : vector<32x256xf32>
    %261 = vector.shape_cast %260 : vector<32x256xf32> to vector<1x32x256xf32>
    %cst_207 = arith.constant dense<0.000000e+00> : vector<1xf32>
    %262 = vector.multi_reduction <add>, %261, %cst_207 [1, 2] : vector<1x32x256xf32> to vector<1xf32>
    %263 = vector.shape_cast %262 : vector<1xf32> to vector<1x1x1xf32>
    %264 = vector.extract %263[0, 0, 0] : f32 from vector<1x1x1xf32>
    %265 = arith.addf %256, %264 : f32
    %c64_208 = arith.constant 64 : index
    %c0_209 = arith.constant 0 : index
    %266 = vector.load %arg26[%c64_208, %c0_209] : memref<128x256xf32, #tpu.memory_space<vmem>>, vector<32x256xf32>
    %267 = vector.broadcast %247 : f32 to vector<32x256xf32>
    %268 = arith.subf %266, %267 : vector<32x256xf32>
    %269 = arith.mulf %268, %268 : vector<32x256xf32>
    %270 = vector.shape_cast %269 : vector<32x256xf32> to vector<1x32x256xf32>
    %cst_210 = arith.constant dense<0.000000e+00> : vector<1xf32>
    %271 = vector.multi_reduction <add>, %270, %cst_210 [1, 2] : vector<1x32x256xf32> to vector<1xf32>
    %272 = vector.shape_cast %271 : vector<1xf32> to vector<1x1x1xf32>
    %273 = vector.extract %272[0, 0, 0] : f32 from vector<1x1x1xf32>
    %274 = arith.addf %265, %273 : f32
    %c96_211 = arith.constant 96 : index
    %c0_212 = arith.constant 0 : index
    %275 = vector.load %arg26[%c96_211, %c0_212] : memref<128x256xf32, #tpu.memory_space<vmem>>, vector<32x256xf32>
    %276 = vector.broadcast %247 : f32 to vector<32x256xf32>
    %277 = arith.subf %275, %276 : vector<32x256xf32>
    %278 = arith.mulf %277, %277 : vector<32x256xf32>
    %279 = vector.shape_cast %278 : vector<32x256xf32> to vector<1x32x256xf32>
    %cst_213 = arith.constant dense<0.000000e+00> : vector<1xf32>
    %280 = vector.multi_reduction <add>, %279, %cst_213 [1, 2] : vector<1x32x256xf32> to vector<1xf32>
    %281 = vector.shape_cast %280 : vector<1xf32> to vector<1x1x1xf32>
    %282 = vector.extract %281[0, 0, 0] : f32 from vector<1x1x1xf32>
    %283 = arith.addf %274, %282 : f32
    %cst_214 = arith.constant 3.276800e+04 : f32
    %284 = arith.divf %283, %cst_214 : f32
    %cst_215 = arith.constant 9.99999974E-6 : f32
    %285 = arith.addf %284, %cst_215 : f32
    %286 = math.rsqrt %285 : f32
    %c0_216 = arith.constant 0 : index
    %c0_217 = arith.constant 0 : index
    %c0_218 = arith.constant 0 : index
    %287 = vector.load %arg4[%c0_216, %c0_217, %c0_218] : memref<1x32x256xf32, #tpu.memory_space<vmem>>, vector<1x32x256xf32>
    %288 = vector.shape_cast %287 : vector<1x32x256xf32> to vector<32x256xf32>
    %c0_219 = arith.constant 0 : index
    %c128_220 = arith.constant 128 : index
    %289 = vector.load %arg23[%c0_219, %c128_220] : memref<64x512xf32, #tpu.memory_space<vmem>>, vector<32x256xf32>
    tpu.vector_store %arg23[%c0_219, %c128_220], %288 {strides = array<i32>} : memref<64x512xf32, #tpu.memory_space<vmem>>, vector<32x256xf32>,
    %c0_221 = arith.constant 0 : index
    %c111_222 = arith.constant 111 : index
    %290 = vector.load %arg23[%c0_221, %c111_222] : memref<64x512xf32, #tpu.memory_space<vmem>>, vector<32x256xf32>
    %c0_223 = arith.constant 0 : index
    %c0_224 = arith.constant 0 : index
    %291 = vector.load %arg1[%c0_223, %c0_224] : memref<3x256xf32, #tpu.memory_space<vmem>>, vector<1x256xf32>
    %292 = vector.broadcast %291 : vector<1x256xf32> to vector<32x256xf32>
    %293 = arith.mulf %290, %292 : vector<32x256xf32>
    %c0_225 = arith.constant 0 : index
    %c0_226 = arith.constant 0 : index
    %294 = vector.load %arg24[%c0_225, %c0_226] : memref<576x256xf32, #tpu.memory_space<vmem>>, vector<32x256xf32>
    tpu.vector_store %arg24[%c0_225, %c0_226], %293 {strides = array<i32>} : memref<576x256xf32, #tpu.memory_space<vmem>>, vector<32x256xf32>,
    %c0_227 = arith.constant 0 : index
    %c112_228 = arith.constant 112 : index
    %295 = vector.load %arg23[%c0_227, %c112_228] : memref<64x512xf32, #tpu.memory_space<vmem>>, vector<32x256xf32>
    %c32_229 = arith.constant 32 : index
    %c0_230 = arith.constant 0 : index
    %296 = vector.load %arg24[%c32_229, %c0_230] : memref<576x256xf32, #tpu.memory_space<vmem>>, vector<32x256xf32>
    tpu.vector_store %arg24[%c32_229, %c0_230], %295 {strides = array<i32>} : memref<576x256xf32, #tpu.memory_space<vmem>>, vector<32x256xf32>,
    %c0_231 = arith.constant 0 : index
    %c113_232 = arith.constant 113 : index
    %297 = vector.load %arg23[%c0_231, %c113_232] : memref<64x512xf32, #tpu.memory_space<vmem>>, vector<32x256xf32>
    %c2_233 = arith.constant 2 : index
    %c0_234 = arith.constant 0 : index
    %298 = vector.load %arg1[%c2_233, %c0_234] : memref<3x256xf32, #tpu.memory_space<vmem>>, vector<1x256xf32>
    %299 = vector.broadcast %298 : vector<1x256xf32> to vector<32x256xf32>
    %300 = arith.mulf %297, %299 : vector<32x256xf32>
    %c64_235 = arith.constant 64 : index
    %c0_236 = arith.constant 0 : index
    %301 = vector.load %arg24[%c64_235, %c0_236] : memref<576x256xf32, #tpu.memory_space<vmem>>, vector<32x256xf32>
    tpu.vector_store %arg24[%c64_235, %c0_236], %300 {strides = array<i32>} : memref<576x256xf32, #tpu.memory_space<vmem>>, vector<32x256xf32>,
    %c0_237 = arith.constant 0 : index
    %c127_238 = arith.constant 127 : index
    %302 = vector.load %arg23[%c0_237, %c127_238] : memref<64x512xf32, #tpu.memory_space<vmem>>, vector<32x256xf32>
    %c0_239 = arith.constant 0 : index
    %c0_240 = arith.constant 0 : index
    %303 = vector.load %arg1[%c0_239, %c0_240] : memref<3x256xf32, #tpu.memory_space<vmem>>, vector<1x256xf32>
    %304 = vector.broadcast %303 : vector<1x256xf32> to vector<32x256xf32>
    %305 = arith.mulf %302, %304 : vector<32x256xf32>
    %c96_241 = arith.constant 96 : index
    %c0_242 = arith.constant 0 : index
    %306 = vector.load %arg24[%c96_241, %c0_242] : memref<576x256xf32, #tpu.memory_space<vmem>>, vector<32x256xf32>
    tpu.vector_store %arg24[%c96_241, %c0_242], %305 {strides = array<i32>} : memref<576x256xf32, #tpu.memory_space<vmem>>, vector<32x256xf32>,
    %c0_243 = arith.constant 0 : index
    %c128_244 = arith.constant 128 : index
    %307 = vector.load %arg23[%c0_243, %c128_244] : memref<64x512xf32, #tpu.memory_space<vmem>>, vector<32x256xf32>
    %c128_245 = arith.constant 128 : index
    %c0_246 = arith.constant 0 : index
    %308 = vector.load %arg24[%c128_245, %c0_246] : memref<576x256xf32, #tpu.memory_space<vmem>>, vector<32x256xf32>
    tpu.vector_store %arg24[%c128_245, %c0_246], %307 {strides = array<i32>} : memref<576x256xf32, #tpu.memory_space<vmem>>, vector<32x256xf32>,
    %c0_247 = arith.constant 0 : index
    %c129_248 = arith.constant 129 : index
    %309 = vector.load %arg23[%c0_247, %c129_248] : memref<64x512xf32, #tpu.memory_space<vmem>>, vector<32x256xf32>
    %c2_249 = arith.constant 2 : index
    %c0_250 = arith.constant 0 : index
    %310 = vector.load %arg1[%c2_249, %c0_250] : memref<3x256xf32, #tpu.memory_space<vmem>>, vector<1x256xf32>
    %311 = vector.broadcast %310 : vector<1x256xf32> to vector<32x256xf32>
    %312 = arith.mulf %309, %311 : vector<32x256xf32>
    %c160_251 = arith.constant 160 : index
    %c0_252 = arith.constant 0 : index
    %313 = vector.load %arg24[%c160_251, %c0_252] : memref<576x256xf32, #tpu.memory_space<vmem>>, vector<32x256xf32>
    tpu.vector_store %arg24[%c160_251, %c0_252], %312 {strides = array<i32>} : memref<576x256xf32, #tpu.memory_space<vmem>>, vector<32x256xf32>,
    %c0_253 = arith.constant 0 : index
    %c143_254 = arith.constant 143 : index
    %314 = vector.load %arg23[%c0_253, %c143_254] : memref<64x512xf32, #tpu.memory_space<vmem>>, vector<32x256xf32>
    %c0_255 = arith.constant 0 : index
    %c0_256 = arith.constant 0 : index
    %315 = vector.load %arg1[%c0_255, %c0_256] : memref<3x256xf32, #tpu.memory_space<vmem>>, vector<1x256xf32>
    %316 = vector.broadcast %315 : vector<1x256xf32> to vector<32x256xf32>
    %317 = arith.mulf %314, %316 : vector<32x256xf32>
    %c192_257 = arith.constant 192 : index
    %c0_258 = arith.constant 0 : index
    %318 = vector.load %arg24[%c192_257, %c0_258] : memref<576x256xf32, #tpu.memory_space<vmem>>, vector<32x256xf32>
    tpu.vector_store %arg24[%c192_257, %c0_258], %317 {strides = array<i32>} : memref<576x256xf32, #tpu.memory_space<vmem>>, vector<32x256xf32>,
    %c0_259 = arith.constant 0 : index
    %c144_260 = arith.constant 144 : index
    %319 = vector.load %arg23[%c0_259, %c144_260] : memref<64x512xf32, #tpu.memory_space<vmem>>, vector<32x256xf32>
    %c224_261 = arith.constant 224 : index
    %c0_262 = arith.constant 0 : index
    %320 = vector.load %arg24[%c224_261, %c0_262] : memref<576x256xf32, #tpu.memory_space<vmem>>, vector<32x256xf32>
    tpu.vector_store %arg24[%c224_261, %c0_262], %319 {strides = array<i32>} : memref<576x256xf32, #tpu.memory_space<vmem>>, vector<32x256xf32>,
    %c0_263 = arith.constant 0 : index
    %c145_264 = arith.constant 145 : index
    %321 = vector.load %arg23[%c0_263, %c145_264] : memref<64x512xf32, #tpu.memory_space<vmem>>, vector<32x256xf32>
    %c2_265 = arith.constant 2 : index
    %c0_266 = arith.constant 0 : index
    %322 = vector.load %arg1[%c2_265, %c0_266] : memref<3x256xf32, #tpu.memory_space<vmem>>, vector<1x256xf32>
    %323 = vector.broadcast %322 : vector<1x256xf32> to vector<32x256xf32>
    %324 = arith.mulf %321, %323 : vector<32x256xf32>
    %c256_267 = arith.constant 256 : index
    %c0_268 = arith.constant 0 : index
    %325 = vector.load %arg24[%c256_267, %c0_268] : memref<576x256xf32, #tpu.memory_space<vmem>>, vector<32x256xf32>
    tpu.vector_store %arg24[%c256_267, %c0_268], %324 {strides = array<i32>} : memref<576x256xf32, #tpu.memory_space<vmem>>, vector<32x256xf32>,
    %c0_269 = arith.constant 0 : index
    %c0_270 = arith.constant 0 : index
    %326 = vector.load %arg8[%c0_269, %c0_270] : memref<96x288xf32, #tpu.memory_space<vmem>>, vector<32x288xf32>
    %c0_271 = arith.constant 0 : index
    %c0_272 = arith.constant 0 : index
    %327 = vector.load %arg24[%c0_271, %c0_272] : memref<576x256xf32, #tpu.memory_space<vmem>>, vector<288x256xf32>
    %cst_273 = arith.constant dense<0.000000e+00> : vector<32x256xf32>
    %328 = tpu.matmul %326, %327, %cst_273 {dimension_numbers = #tpu.dot_dimension_numbers<[1], [0], [0], [1], [0, 0, 1, 1], [], []>} : vector<32x288xf32>, vector<288x256xf32>, vector<32x256xf32> -> vector<32x256xf32>
    %c0_274 = arith.constant 0 : index
    %c0_275 = arith.constant 0 : index
    %329 = vector.load %arg27[%c0_274, %c0_275] : memref<96x256xf32, #tpu.memory_space<vmem>>, vector<32x256xf32>
    tpu.vector_store %arg27[%c0_274, %c0_275], %328 {strides = array<i32>} : memref<96x256xf32, #tpu.memory_space<vmem>>, vector<32x256xf32>,
    %330 = vector.shape_cast %328 : vector<32x256xf32> to vector<1x32x256xf32>
    %cst_276 = arith.constant dense<0.000000e+00> : vector<1xf32>
    %331 = vector.multi_reduction <add>, %330, %cst_276 [1, 2] : vector<1x32x256xf32> to vector<1xf32>
    %332 = vector.shape_cast %331 : vector<1xf32> to vector<1x1x1xf32>
    %333 = vector.extract %332[0, 0, 0] : f32 from vector<1x1x1xf32>
    %cst_277 = arith.constant 0.000000e+00 : f32
    %334 = arith.addf %cst_277, %333 : f32
    %c32_278 = arith.constant 32 : index
    %c0_279 = arith.constant 0 : index
    %335 = vector.load %arg8[%c32_278, %c0_279] : memref<96x288xf32, #tpu.memory_space<vmem>>, vector<32x288xf32>
    %c0_280 = arith.constant 0 : index
    %c0_281 = arith.constant 0 : index
    %336 = vector.load %arg24[%c0_280, %c0_281] : memref<576x256xf32, #tpu.memory_space<vmem>>, vector<288x256xf32>
    %cst_282 = arith.constant dense<0.000000e+00> : vector<32x256xf32>
    %337 = tpu.matmul %335, %336, %cst_282 {dimension_numbers = #tpu.dot_dimension_numbers<[1], [0], [0], [1], [0, 0, 1, 1], [], []>} : vector<32x288xf32>, vector<288x256xf32>, vector<32x256xf32> -> vector<32x256xf32>
    %c32_283 = arith.constant 32 : index
    %c0_284 = arith.constant 0 : index
    %338 = vector.load %arg27[%c32_283, %c0_284] : memref<96x256xf32, #tpu.memory_space<vmem>>, vector<32x256xf32>
    tpu.vector_store %arg27[%c32_283, %c0_284], %337 {strides = array<i32>} : memref<96x256xf32, #tpu.memory_space<vmem>>, vector<32x256xf32>,
    %339 = vector.shape_cast %337 : vector<32x256xf32> to vector<1x32x256xf32>
    %cst_285 = arith.constant dense<0.000000e+00> : vector<1xf32>
    %340 = vector.multi_reduction <add>, %339, %cst_285 [1, 2] : vector<1x32x256xf32> to vector<1xf32>
    %341 = vector.shape_cast %340 : vector<1xf32> to vector<1x1x1xf32>
    %342 = vector.extract %341[0, 0, 0] : f32 from vector<1x1x1xf32>
    %343 = arith.addf %334, %342 : f32
    %c64_286 = arith.constant 64 : index
    %c0_287 = arith.constant 0 : index
    %344 = vector.load %arg8[%c64_286, %c0_287] : memref<96x288xf32, #tpu.memory_space<vmem>>, vector<32x288xf32>
    %c0_288 = arith.constant 0 : index
    %c0_289 = arith.constant 0 : index
    %345 = vector.load %arg24[%c0_288, %c0_289] : memref<576x256xf32, #tpu.memory_space<vmem>>, vector<288x256xf32>
    %cst_290 = arith.constant dense<0.000000e+00> : vector<32x256xf32>
    %346 = tpu.matmul %344, %345, %cst_290 {dimension_numbers = #tpu.dot_dimension_numbers<[1], [0], [0], [1], [0, 0, 1, 1], [], []>} : vector<32x288xf32>, vector<288x256xf32>, vector<32x256xf32> -> vector<32x256xf32>
    %c64_291 = arith.constant 64 : index
    %c0_292 = arith.constant 0 : index
    %347 = vector.load %arg27[%c64_291, %c0_292] : memref<96x256xf32, #tpu.memory_space<vmem>>, vector<32x256xf32>
    tpu.vector_store %arg27[%c64_291, %c0_292], %346 {strides = array<i32>} : memref<96x256xf32, #tpu.memory_space<vmem>>, vector<32x256xf32>,
    %348 = vector.shape_cast %346 : vector<32x256xf32> to vector<1x32x256xf32>
    %cst_293 = arith.constant dense<0.000000e+00> : vector<1xf32>
    %349 = vector.multi_reduction <add>, %348, %cst_293 [1, 2] : vector<1x32x256xf32> to vector<1xf32>
    %350 = vector.shape_cast %349 : vector<1xf32> to vector<1x1x1xf32>
    %351 = vector.extract %350[0, 0, 0] : f32 from vector<1x1x1xf32>
    %352 = arith.addf %343, %351 : f32
    %cst_294 = arith.constant 2.457600e+04 : f32
    %353 = arith.divf %352, %cst_294 : f32
    %c0_295 = arith.constant 0 : index
    %c0_296 = arith.constant 0 : index
    %354 = vector.load %arg27[%c0_295, %c0_296] : memref<96x256xf32, #tpu.memory_space<vmem>>, vector<32x256xf32>
    %355 = vector.broadcast %353 : f32 to vector<32x256xf32>
    %356 = arith.subf %354, %355 : vector<32x256xf32>
    %357 = arith.mulf %356, %356 : vector<32x256xf32>
    %358 = vector.shape_cast %357 : vector<32x256xf32> to vector<1x32x256xf32>
    %cst_297 = arith.constant dense<0.000000e+00> : vector<1xf32>
    %359 = vector.multi_reduction <add>, %358, %cst_297 [1, 2] : vector<1x32x256xf32> to vector<1xf32>
    %360 = vector.shape_cast %359 : vector<1xf32> to vector<1x1x1xf32>
    %361 = vector.extract %360[0, 0, 0] : f32 from vector<1x1x1xf32>
    %cst_298 = arith.constant 0.000000e+00 : f32
    %362 = arith.addf %cst_298, %361 : f32
    %c32_299 = arith.constant 32 : index
    %c0_300 = arith.constant 0 : index
    %363 = vector.load %arg27[%c32_299, %c0_300] : memref<96x256xf32, #tpu.memory_space<vmem>>, vector<32x256xf32>
    %364 = vector.broadcast %353 : f32 to vector<32x256xf32>
    %365 = arith.subf %363, %364 : vector<32x256xf32>
    %366 = arith.mulf %365, %365 : vector<32x256xf32>
    %367 = vector.shape_cast %366 : vector<32x256xf32> to vector<1x32x256xf32>
    %cst_301 = arith.constant dense<0.000000e+00> : vector<1xf32>
    %368 = vector.multi_reduction <add>, %367, %cst_301 [1, 2] : vector<1x32x256xf32> to vector<1xf32>
    %369 = vector.shape_cast %368 : vector<1xf32> to vector<1x1x1xf32>
    %370 = vector.extract %369[0, 0, 0] : f32 from vector<1x1x1xf32>
    %371 = arith.addf %362, %370 : f32
    %c64_302 = arith.constant 64 : index
    %c0_303 = arith.constant 0 : index
    %372 = vector.load %arg27[%c64_302, %c0_303] : memref<96x256xf32, #tpu.memory_space<vmem>>, vector<32x256xf32>
    %373 = vector.broadcast %353 : f32 to vector<32x256xf32>
    %374 = arith.subf %372, %373 : vector<32x256xf32>
    %375 = arith.mulf %374, %374 : vector<32x256xf32>
    %376 = vector.shape_cast %375 : vector<32x256xf32> to vector<1x32x256xf32>
    %cst_304 = arith.constant dense<0.000000e+00> : vector<1xf32>
    %377 = vector.multi_reduction <add>, %376, %cst_304 [1, 2] : vector<1x32x256xf32> to vector<1xf32>
    %378 = vector.shape_cast %377 : vector<1xf32> to vector<1x1x1xf32>
    %379 = vector.extract %378[0, 0, 0] : f32 from vector<1x1x1xf32>
    %380 = arith.addf %371, %379 : f32
    %cst_305 = arith.constant 2.457600e+04 : f32
    %381 = arith.divf %380, %cst_305 : f32
    %cst_306 = arith.constant 9.99999974E-6 : f32
    %382 = arith.addf %381, %cst_306 : f32
    %383 = math.rsqrt %382 : f32
    %c0_307 = arith.constant 0 : index
    %c0_308 = arith.constant 0 : index
    %384 = vector.load %arg25[%c0_307, %c0_308] : memref<224x256xf32, #tpu.memory_space<vmem>>, vector<32x256xf32>
    %385 = vector.broadcast %105 : f32 to vector<32x256xf32>
    %386 = arith.subf %384, %385 : vector<32x256xf32>
    %387 = vector.broadcast %171 : f32 to vector<32x256xf32>
    %388 = arith.mulf %386, %387 : vector<32x256xf32>
    %c0_309 = arith.constant 0 : index
    %c0_310 = arith.constant 0 : index
    %389 = vector.load %arg12[%c0_309, %c0_310] : memref<224x256xf32, #tpu.memory_space<vmem>>, vector<32x256xf32>
    %390 = arith.mulf %388, %389 : vector<32x256xf32>
    %c0_311 = arith.constant 0 : index
    %c0_312 = arith.constant 0 : index
    %391 = vector.load %arg13[%c0_311, %c0_312] : memref<224x256xf32, #tpu.memory_space<vmem>>, vector<32x256xf32>
    %392 = arith.addf %390, %391 : vector<32x256xf32>
    %c0_313 = arith.constant 0 : index
    %c0_314 = arith.constant 0 : index
    %393 = vector.load %arg26[%c0_313, %c0_314] : memref<128x256xf32, #tpu.memory_space<vmem>>, vector<32x256xf32>
    %394 = vector.broadcast %247 : f32 to vector<32x256xf32>
    %395 = arith.subf %393, %394 : vector<32x256xf32>
    %396 = vector.broadcast %286 : f32 to vector<32x256xf32>
    %397 = arith.mulf %395, %396 : vector<32x256xf32>
    %c0_315 = arith.constant 0 : index
    %c0_316 = arith.constant 0 : index
    %398 = vector.load %arg14[%c0_315, %c0_316] : memref<128x256xf32, #tpu.memory_space<vmem>>, vector<32x256xf32>
    %399 = arith.mulf %397, %398 : vector<32x256xf32>
    %c0_317 = arith.constant 0 : index
    %c0_318 = arith.constant 0 : index
    %400 = vector.load %arg15[%c0_317, %c0_318] : memref<128x256xf32, #tpu.memory_space<vmem>>, vector<32x256xf32>
    %401 = arith.addf %399, %400 : vector<32x256xf32>
    %402 = arith.addf %392, %401 : vector<32x256xf32>
    %403 = arith.negf %402 : vector<32x256xf32>
    %404 = math.exp %403 : vector<32x256xf32>
    %cst_319 = arith.constant 1.000000e+00 : f32
    %405 = vector.broadcast %cst_319 : f32 to vector<32x256xf32>
    %406 = arith.addf %405, %404 : vector<32x256xf32>
    %407 = arith.divf %405, %406 : vector<32x256xf32>
    %c32_320 = arith.constant 32 : index
    %c0_321 = arith.constant 0 : index
    %408 = vector.load %arg25[%c32_320, %c0_321] : memref<224x256xf32, #tpu.memory_space<vmem>>, vector<32x256xf32>
    %409 = vector.broadcast %105 : f32 to vector<32x256xf32>
    %410 = arith.subf %408, %409 : vector<32x256xf32>
    %411 = vector.broadcast %171 : f32 to vector<32x256xf32>
    %412 = arith.mulf %410, %411 : vector<32x256xf32>
    %c32_322 = arith.constant 32 : index
    %c0_323 = arith.constant 0 : index
    %413 = vector.load %arg12[%c32_322, %c0_323] : memref<224x256xf32, #tpu.memory_space<vmem>>, vector<32x256xf32>
    %414 = arith.mulf %412, %413 : vector<32x256xf32>
    %c32_324 = arith.constant 32 : index
    %c0_325 = arith.constant 0 : index
    %415 = vector.load %arg13[%c32_324, %c0_325] : memref<224x256xf32, #tpu.memory_space<vmem>>, vector<32x256xf32>
    %416 = arith.addf %414, %415 : vector<32x256xf32>
    %c32_326 = arith.constant 32 : index
    %c0_327 = arith.constant 0 : index
    %417 = vector.load %arg26[%c32_326, %c0_327] : memref<128x256xf32, #tpu.memory_space<vmem>>, vector<32x256xf32>
    %418 = vector.broadcast %247 : f32 to vector<32x256xf32>
    %419 = arith.subf %417, %418 : vector<32x256xf32>
    %420 = vector.broadcast %286 : f32 to vector<32x256xf32>
    %421 = arith.mulf %419, %420 : vector<32x256xf32>
    %c32_328 = arith.constant 32 : index
    %c0_329 = arith.constant 0 : index
    %422 = vector.load %arg14[%c32_328, %c0_329] : memref<128x256xf32, #tpu.memory_space<vmem>>, vector<32x256xf32>
    %423 = arith.mulf %421, %422 : vector<32x256xf32>
    %c32_330 = arith.constant 32 : index
    %c0_331 = arith.constant 0 : index
    %424 = vector.load %arg15[%c32_330, %c0_331] : memref<128x256xf32, #tpu.memory_space<vmem>>, vector<32x256xf32>
    %425 = arith.addf %423, %424 : vector<32x256xf32>
    %426 = arith.addf %416, %425 : vector<32x256xf32>
    %427 = arith.negf %426 : vector<32x256xf32>
    %428 = math.exp %427 : vector<32x256xf32>
    %cst_332 = arith.constant 1.000000e+00 : f32
    %429 = vector.broadcast %cst_332 : f32 to vector<32x256xf32>
    %430 = arith.addf %429, %428 : vector<32x256xf32>
    %431 = arith.divf %429, %430 : vector<32x256xf32>
    %c64_333 = arith.constant 64 : index
    %c0_334 = arith.constant 0 : index
    %432 = vector.load %arg25[%c64_333, %c0_334] : memref<224x256xf32, #tpu.memory_space<vmem>>, vector<32x256xf32>
    %433 = vector.broadcast %105 : f32 to vector<32x256xf32>
    %434 = arith.subf %432, %433 : vector<32x256xf32>
    %435 = vector.broadcast %171 : f32 to vector<32x256xf32>
    %436 = arith.mulf %434, %435 : vector<32x256xf32>
    %c64_335 = arith.constant 64 : index
    %c0_336 = arith.constant 0 : index
    %437 = vector.load %arg12[%c64_335, %c0_336] : memref<224x256xf32, #tpu.memory_space<vmem>>, vector<32x256xf32>
    %438 = arith.mulf %436, %437 : vector<32x256xf32>
    %c64_337 = arith.constant 64 : index
    %c0_338 = arith.constant 0 : index
    %439 = vector.load %arg13[%c64_337, %c0_338] : memref<224x256xf32, #tpu.memory_space<vmem>>, vector<32x256xf32>
    %440 = arith.addf %438, %439 : vector<32x256xf32>
    %c64_339 = arith.constant 64 : index
    %c0_340 = arith.constant 0 : index
    %441 = vector.load %arg26[%c64_339, %c0_340] : memref<128x256xf32, #tpu.memory_space<vmem>>, vector<32x256xf32>
    %442 = vector.broadcast %247 : f32 to vector<32x256xf32>
    %443 = arith.subf %441, %442 : vector<32x256xf32>
    %444 = vector.broadcast %286 : f32 to vector<32x256xf32>
    %445 = arith.mulf %443, %444 : vector<32x256xf32>
    %c64_341 = arith.constant 64 : index
    %c0_342 = arith.constant 0 : index
    %446 = vector.load %arg14[%c64_341, %c0_342] : memref<128x256xf32, #tpu.memory_space<vmem>>, vector<32x256xf32>
    %447 = arith.mulf %445, %446 : vector<32x256xf32>
    %c64_343 = arith.constant 64 : index
    %c0_344 = arith.constant 0 : index
    %448 = vector.load %arg15[%c64_343, %c0_344] : memref<128x256xf32, #tpu.memory_space<vmem>>, vector<32x256xf32>
    %449 = arith.addf %447, %448 : vector<32x256xf32>
    %450 = arith.addf %440, %449 : vector<32x256xf32>
    %451 = math.tanh %450 : vector<32x256xf32>
    %c0_345 = arith.constant 0 : index
    %c0_346 = arith.constant 0 : index
    %c0_347 = arith.constant 0 : index
    %452 = vector.load %arg5[%c0_345, %c0_346, %c0_347] : memref<1x32x256xf32, #tpu.memory_space<vmem>>, vector<1x32x256xf32>
    %453 = vector.shape_cast %452 : vector<1x32x256xf32> to vector<32x256xf32>
    %454 = arith.mulf %431, %453 : vector<32x256xf32>
    %455 = arith.mulf %407, %451 : vector<32x256xf32>
    %456 = arith.addf %454, %455 : vector<32x256xf32>
    %c96_348 = arith.constant 96 : index
    %c0_349 = arith.constant 0 : index
    %457 = vector.load %arg25[%c96_348, %c0_349] : memref<224x256xf32, #tpu.memory_space<vmem>>, vector<32x256xf32>
    %458 = vector.broadcast %105 : f32 to vector<32x256xf32>
    %459 = arith.subf %457, %458 : vector<32x256xf32>
    %460 = vector.broadcast %171 : f32 to vector<32x256xf32>
    %461 = arith.mulf %459, %460 : vector<32x256xf32>
    %c96_350 = arith.constant 96 : index
    %c0_351 = arith.constant 0 : index
    %462 = vector.load %arg12[%c96_350, %c0_351] : memref<224x256xf32, #tpu.memory_space<vmem>>, vector<32x256xf32>
    %463 = arith.mulf %461, %462 : vector<32x256xf32>
    %c96_352 = arith.constant 96 : index
    %c0_353 = arith.constant 0 : index
    %464 = vector.load %arg13[%c96_352, %c0_353] : memref<224x256xf32, #tpu.memory_space<vmem>>, vector<32x256xf32>
    %465 = arith.addf %463, %464 : vector<32x256xf32>
    %c0_354 = arith.constant 0 : index
    %c0_355 = arith.constant 0 : index
    %466 = vector.load %arg27[%c0_354, %c0_355] : memref<96x256xf32, #tpu.memory_space<vmem>>, vector<32x256xf32>
    %467 = vector.broadcast %353 : f32 to vector<32x256xf32>
    %468 = arith.subf %466, %467 : vector<32x256xf32>
    %469 = vector.broadcast %383 : f32 to vector<32x256xf32>
    %470 = arith.mulf %468, %469 : vector<32x256xf32>
    %c0_356 = arith.constant 0 : index
    %c0_357 = arith.constant 0 : index
    %471 = vector.load %arg16[%c0_356, %c0_357] : memref<96x256xf32, #tpu.memory_space<vmem>>, vector<32x256xf32>
    %472 = arith.mulf %470, %471 : vector<32x256xf32>
    %c0_358 = arith.constant 0 : index
    %c0_359 = arith.constant 0 : index
    %473 = vector.load %arg17[%c0_358, %c0_359] : memref<96x256xf32, #tpu.memory_space<vmem>>, vector<32x256xf32>
    %474 = arith.addf %472, %473 : vector<32x256xf32>
    %475 = arith.addf %465, %474 : vector<32x256xf32>
    %476 = arith.negf %475 : vector<32x256xf32>
    %477 = math.exp %476 : vector<32x256xf32>
    %cst_360 = arith.constant 1.000000e+00 : f32
    %478 = vector.broadcast %cst_360 : f32 to vector<32x256xf32>
    %479 = arith.addf %478, %477 : vector<32x256xf32>
    %480 = arith.divf %478, %479 : vector<32x256xf32>
    %c128_361 = arith.constant 128 : index
    %c0_362 = arith.constant 0 : index
    %481 = vector.load %arg25[%c128_361, %c0_362] : memref<224x256xf32, #tpu.memory_space<vmem>>, vector<32x256xf32>
    %482 = vector.broadcast %105 : f32 to vector<32x256xf32>
    %483 = arith.subf %481, %482 : vector<32x256xf32>
    %484 = vector.broadcast %171 : f32 to vector<32x256xf32>
    %485 = arith.mulf %483, %484 : vector<32x256xf32>
    %c128_363 = arith.constant 128 : index
    %c0_364 = arith.constant 0 : index
    %486 = vector.load %arg12[%c128_363, %c0_364] : memref<224x256xf32, #tpu.memory_space<vmem>>, vector<32x256xf32>
    %487 = arith.mulf %485, %486 : vector<32x256xf32>
    %c128_365 = arith.constant 128 : index
    %c0_366 = arith.constant 0 : index
    %488 = vector.load %arg13[%c128_365, %c0_366] : memref<224x256xf32, #tpu.memory_space<vmem>>, vector<32x256xf32>
    %489 = arith.addf %487, %488 : vector<32x256xf32>
    %c32_367 = arith.constant 32 : index
    %c0_368 = arith.constant 0 : index
    %490 = vector.load %arg27[%c32_367, %c0_368] : memref<96x256xf32, #tpu.memory_space<vmem>>, vector<32x256xf32>
    %491 = vector.broadcast %353 : f32 to vector<32x256xf32>
    %492 = arith.subf %490, %491 : vector<32x256xf32>
    %493 = vector.broadcast %383 : f32 to vector<32x256xf32>
    %494 = arith.mulf %492, %493 : vector<32x256xf32>
    %c32_369 = arith.constant 32 : index
    %c0_370 = arith.constant 0 : index
    %495 = vector.load %arg16[%c32_369, %c0_370] : memref<96x256xf32, #tpu.memory_space<vmem>>, vector<32x256xf32>
    %496 = arith.mulf %494, %495 : vector<32x256xf32>
    %c32_371 = arith.constant 32 : index
    %c0_372 = arith.constant 0 : index
    %497 = vector.load %arg17[%c32_371, %c0_372] : memref<96x256xf32, #tpu.memory_space<vmem>>, vector<32x256xf32>
    %498 = arith.addf %496, %497 : vector<32x256xf32>
    %499 = arith.addf %489, %498 : vector<32x256xf32>
    %500 = arith.negf %499 : vector<32x256xf32>
    %501 = math.exp %500 : vector<32x256xf32>
    %cst_373 = arith.constant 1.000000e+00 : f32
    %502 = vector.broadcast %cst_373 : f32 to vector<32x256xf32>
    %503 = arith.addf %502, %501 : vector<32x256xf32>
    %504 = arith.divf %502, %503 : vector<32x256xf32>
    %c160_374 = arith.constant 160 : index
    %c0_375 = arith.constant 0 : index
    %505 = vector.load %arg25[%c160_374, %c0_375] : memref<224x256xf32, #tpu.memory_space<vmem>>, vector<32x256xf32>
    %506 = vector.broadcast %105 : f32 to vector<32x256xf32>
    %507 = arith.subf %505, %506 : vector<32x256xf32>
    %508 = vector.broadcast %171 : f32 to vector<32x256xf32>
    %509 = arith.mulf %507, %508 : vector<32x256xf32>
    %c160_376 = arith.constant 160 : index
    %c0_377 = arith.constant 0 : index
    %510 = vector.load %arg12[%c160_376, %c0_377] : memref<224x256xf32, #tpu.memory_space<vmem>>, vector<32x256xf32>
    %511 = arith.mulf %509, %510 : vector<32x256xf32>
    %c160_378 = arith.constant 160 : index
    %c0_379 = arith.constant 0 : index
    %512 = vector.load %arg13[%c160_378, %c0_379] : memref<224x256xf32, #tpu.memory_space<vmem>>, vector<32x256xf32>
    %513 = arith.addf %511, %512 : vector<32x256xf32>
    %c64_380 = arith.constant 64 : index
    %c0_381 = arith.constant 0 : index
    %514 = vector.load %arg27[%c64_380, %c0_381] : memref<96x256xf32, #tpu.memory_space<vmem>>, vector<32x256xf32>
    %515 = vector.broadcast %353 : f32 to vector<32x256xf32>
    %516 = arith.subf %514, %515 : vector<32x256xf32>
    %517 = vector.broadcast %383 : f32 to vector<32x256xf32>
    %518 = arith.mulf %516, %517 : vector<32x256xf32>
    %c64_382 = arith.constant 64 : index
    %c0_383 = arith.constant 0 : index
    %519 = vector.load %arg16[%c64_382, %c0_383] : memref<96x256xf32, #tpu.memory_space<vmem>>, vector<32x256xf32>
    %520 = arith.mulf %518, %519 : vector<32x256xf32>
    %c64_384 = arith.constant 64 : index
    %c0_385 = arith.constant 0 : index
    %521 = vector.load %arg17[%c64_384, %c0_385] : memref<96x256xf32, #tpu.memory_space<vmem>>, vector<32x256xf32>
    %522 = arith.addf %520, %521 : vector<32x256xf32>
    %523 = arith.addf %513, %522 : vector<32x256xf32>
    %524 = math.tanh %523 : vector<32x256xf32>
    %c0_386 = arith.constant 0 : index
    %c0_387 = arith.constant 0 : index
    %c0_388 = arith.constant 0 : index
    %525 = vector.load %arg4[%c0_386, %c0_387, %c0_388] : memref<1x32x256xf32, #tpu.memory_space<vmem>>, vector<1x32x256xf32>
    %526 = vector.shape_cast %525 : vector<1x32x256xf32> to vector<32x256xf32>
    %527 = arith.mulf %504, %526 : vector<32x256xf32>
    %528 = arith.mulf %480, %524 : vector<32x256xf32>
    %529 = arith.addf %527, %528 : vector<32x256xf32>
    %c0_389 = arith.constant 0 : index
    %c0_390 = arith.constant 0 : index
    %c0_391 = arith.constant 0 : index
    %530 = vector.load %arg21[%c0_389, %c0_390, %c0_391] : memref<1x32x256xf32, #tpu.memory_space<vmem>>, vector<1x32x256xf32>
    %531 = vector.shape_cast %530 : vector<1x32x256xf32> to vector<32x256xf32>
    %532 = vector.shape_cast %456 : vector<32x256xf32> to vector<1x32x256xf32>
    tpu.vector_store %arg21[%c0_389, %c0_390, %c0_391], %532 {strides = array<i32>} : memref<1x32x256xf32, #tpu.memory_space<vmem>>, vector<1x32x256xf32>,
    %c0_392 = arith.constant 0 : index
    %c0_393 = arith.constant 0 : index
    %c0_394 = arith.constant 0 : index
    %533 = vector.load %arg22[%c0_392, %c0_393, %c0_394] : memref<1x32x256xf32, #tpu.memory_space<vmem>>, vector<1x32x256xf32>
    %534 = vector.shape_cast %533 : vector<1x32x256xf32> to vector<32x256xf32>
    %535 = vector.shape_cast %529 : vector<32x256xf32> to vector<1x32x256xf32>
    tpu.vector_store %arg22[%c0_392, %c0_393, %c0_394], %535 {strides = array<i32>} : memref<1x32x256xf32, #tpu.memory_space<vmem>>, vector<1x32x256xf32>,
    %c0_395 = arith.constant 0 : index
    %c0_396 = arith.constant 0 : index
    %536 = vector.load %arg10[%c0_395, %c0_396] : memref<32x32xf32, #tpu.memory_space<vmem>>, vector<32x32xf32>
    %cst_397 = arith.constant dense<0.000000e+00> : vector<32x256xf32>
    %537 = tpu.matmul %536, %456, %cst_397 {dimension_numbers = #tpu.dot_dimension_numbers<[1], [0], [0], [1], [0, 0, 1, 1], [], []>} : vector<32x32xf32>, vector<32x256xf32>, vector<32x256xf32> -> vector<32x256xf32>
    %c0_398 = arith.constant 0 : index
    %c0_399 = arith.constant 0 : index
    %538 = vector.load %arg11[%c0_398, %c0_399] : memref<32x32xf32, #tpu.memory_space<vmem>>, vector<32x32xf32>
    %cst_400 = arith.constant dense<0.000000e+00> : vector<32x256xf32>
    %539 = tpu.matmul %538, %529, %cst_400 {dimension_numbers = #tpu.dot_dimension_numbers<[1], [0], [0], [1], [0, 0, 1, 1], [], []>} : vector<32x32xf32>, vector<32x256xf32>, vector<32x256xf32> -> vector<32x256xf32>
    %540 = arith.addf %537, %539 : vector<32x256xf32>
    %c0_401 = arith.constant 0 : index
    %c0_402 = arith.constant 0 : index
    %541 = vector.load %arg29[%c0_401, %c0_402] : memref<32x256xf32, #tpu.memory_space<vmem>>, vector<32x256xf32>
    tpu.vector_store %arg29[%c0_401, %c0_402], %540 {strides = array<i32>} : memref<32x256xf32, #tpu.memory_space<vmem>>, vector<32x256xf32>,
    %c0_403 = arith.constant 0 : index
    %c128_404 = arith.constant 128 : index
    %542 = vector.load %arg23[%c0_403, %c128_404] : memref<64x512xf32, #tpu.memory_space<vmem>>, vector<32x256xf32>
    tpu.vector_store %arg23[%c0_403, %c128_404], %456 {strides = array<i32>} : memref<64x512xf32, #tpu.memory_space<vmem>>, vector<32x256xf32>,
    %c32_405 = arith.constant 32 : index
    %c128_406 = arith.constant 128 : index
    %543 = vector.load %arg23[%c32_405, %c128_406] : memref<64x512xf32, #tpu.memory_space<vmem>>, vector<32x256xf32>
    tpu.vector_store %arg23[%c32_405, %c128_406], %529 {strides = array<i32>} : memref<64x512xf32, #tpu.memory_space<vmem>>, vector<32x256xf32>,
    %c0_407 = arith.constant 0 : index
    %c111_408 = arith.constant 111 : index
    %544 = vector.load %arg23[%c0_407, %c111_408] : memref<64x512xf32, #tpu.memory_space<vmem>>, vector<64x256xf32>
    %c0_409 = arith.constant 0 : index
    %c0_410 = arith.constant 0 : index
    %545 = vector.load %arg1[%c0_409, %c0_410] : memref<3x256xf32, #tpu.memory_space<vmem>>, vector<1x256xf32>
    %546 = vector.broadcast %545 : vector<1x256xf32> to vector<64x256xf32>
    %547 = arith.mulf %544, %546 : vector<64x256xf32>
    %c0_411 = arith.constant 0 : index
    %c0_412 = arith.constant 0 : index
    %548 = vector.load %arg24[%c0_411, %c0_412] : memref<576x256xf32, #tpu.memory_space<vmem>>, vector<64x256xf32>
    tpu.vector_store %arg24[%c0_411, %c0_412], %547 {strides = array<i32>} : memref<576x256xf32, #tpu.memory_space<vmem>>, vector<64x256xf32>,
    %c0_413 = arith.constant 0 : index
    %c112_414 = arith.constant 112 : index
    %549 = vector.load %arg23[%c0_413, %c112_414] : memref<64x512xf32, #tpu.memory_space<vmem>>, vector<64x256xf32>
    %c64_415 = arith.constant 64 : index
    %c0_416 = arith.constant 0 : index
    %550 = vector.load %arg24[%c64_415, %c0_416] : memref<576x256xf32, #tpu.memory_space<vmem>>, vector<64x256xf32>
    tpu.vector_store %arg24[%c64_415, %c0_416], %549 {strides = array<i32>} : memref<576x256xf32, #tpu.memory_space<vmem>>, vector<64x256xf32>,
    %c0_417 = arith.constant 0 : index
    %c113_418 = arith.constant 113 : index
    %551 = vector.load %arg23[%c0_417, %c113_418] : memref<64x512xf32, #tpu.memory_space<vmem>>, vector<64x256xf32>
    %c2_419 = arith.constant 2 : index
    %c0_420 = arith.constant 0 : index
    %552 = vector.load %arg1[%c2_419, %c0_420] : memref<3x256xf32, #tpu.memory_space<vmem>>, vector<1x256xf32>
    %553 = vector.broadcast %552 : vector<1x256xf32> to vector<64x256xf32>
    %554 = arith.mulf %551, %553 : vector<64x256xf32>
    %c128_421 = arith.constant 128 : index
    %c0_422 = arith.constant 0 : index
    %555 = vector.load %arg24[%c128_421, %c0_422] : memref<576x256xf32, #tpu.memory_space<vmem>>, vector<64x256xf32>
    tpu.vector_store %arg24[%c128_421, %c0_422], %554 {strides = array<i32>} : memref<576x256xf32, #tpu.memory_space<vmem>>, vector<64x256xf32>,
    %c0_423 = arith.constant 0 : index
    %c127_424 = arith.constant 127 : index
    %556 = vector.load %arg23[%c0_423, %c127_424] : memref<64x512xf32, #tpu.memory_space<vmem>>, vector<64x256xf32>
    %c0_425 = arith.constant 0 : index
    %c0_426 = arith.constant 0 : index
    %557 = vector.load %arg1[%c0_425, %c0_426] : memref<3x256xf32, #tpu.memory_space<vmem>>, vector<1x256xf32>
    %558 = vector.broadcast %557 : vector<1x256xf32> to vector<64x256xf32>
    %559 = arith.mulf %556, %558 : vector<64x256xf32>
    %c192_427 = arith.constant 192 : index
    %c0_428 = arith.constant 0 : index
    %560 = vector.load %arg24[%c192_427, %c0_428] : memref<576x256xf32, #tpu.memory_space<vmem>>, vector<64x256xf32>
    tpu.vector_store %arg24[%c192_427, %c0_428], %559 {strides = array<i32>} : memref<576x256xf32, #tpu.memory_space<vmem>>, vector<64x256xf32>,
    %c0_429 = arith.constant 0 : index
    %c128_430 = arith.constant 128 : index
    %561 = vector.load %arg23[%c0_429, %c128_430] : memref<64x512xf32, #tpu.memory_space<vmem>>, vector<64x256xf32>
    %c256_431 = arith.constant 256 : index
    %c0_432 = arith.constant 0 : index
    %562 = vector.load %arg24[%c256_431, %c0_432] : memref<576x256xf32, #tpu.memory_space<vmem>>, vector<64x256xf32>
    tpu.vector_store %arg24[%c256_431, %c0_432], %561 {strides = array<i32>} : memref<576x256xf32, #tpu.memory_space<vmem>>, vector<64x256xf32>,
    %c0_433 = arith.constant 0 : index
    %c129_434 = arith.constant 129 : index
    %563 = vector.load %arg23[%c0_433, %c129_434] : memref<64x512xf32, #tpu.memory_space<vmem>>, vector<64x256xf32>
    %c2_435 = arith.constant 2 : index
    %c0_436 = arith.constant 0 : index
    %564 = vector.load %arg1[%c2_435, %c0_436] : memref<3x256xf32, #tpu.memory_space<vmem>>, vector<1x256xf32>
    %565 = vector.broadcast %564 : vector<1x256xf32> to vector<64x256xf32>
    %566 = arith.mulf %563, %565 : vector<64x256xf32>
    %c320 = arith.constant 320 : index
    %c0_437 = arith.constant 0 : index
    %567 = vector.load %arg24[%c320, %c0_437] : memref<576x256xf32, #tpu.memory_space<vmem>>, vector<64x256xf32>
    tpu.vector_store %arg24[%c320, %c0_437], %566 {strides = array<i32>} : memref<576x256xf32, #tpu.memory_space<vmem>>, vector<64x256xf32>,
    %c0_438 = arith.constant 0 : index
    %c143_439 = arith.constant 143 : index
    %568 = vector.load %arg23[%c0_438, %c143_439] : memref<64x512xf32, #tpu.memory_space<vmem>>, vector<64x256xf32>
    %c0_440 = arith.constant 0 : index
    %c0_441 = arith.constant 0 : index
    %569 = vector.load %arg1[%c0_440, %c0_441] : memref<3x256xf32, #tpu.memory_space<vmem>>, vector<1x256xf32>
    %570 = vector.broadcast %569 : vector<1x256xf32> to vector<64x256xf32>
    %571 = arith.mulf %568, %570 : vector<64x256xf32>
    %c384_442 = arith.constant 384 : index
    %c0_443 = arith.constant 0 : index
    %572 = vector.load %arg24[%c384_442, %c0_443] : memref<576x256xf32, #tpu.memory_space<vmem>>, vector<64x256xf32>
    tpu.vector_store %arg24[%c384_442, %c0_443], %571 {strides = array<i32>} : memref<576x256xf32, #tpu.memory_space<vmem>>, vector<64x256xf32>,
    %c0_444 = arith.constant 0 : index
    %c144_445 = arith.constant 144 : index
    %573 = vector.load %arg23[%c0_444, %c144_445] : memref<64x512xf32, #tpu.memory_space<vmem>>, vector<64x256xf32>
    %c448 = arith.constant 448 : index
    %c0_446 = arith.constant 0 : index
    %574 = vector.load %arg24[%c448, %c0_446] : memref<576x256xf32, #tpu.memory_space<vmem>>, vector<64x256xf32>
    tpu.vector_store %arg24[%c448, %c0_446], %573 {strides = array<i32>} : memref<576x256xf32, #tpu.memory_space<vmem>>, vector<64x256xf32>,
    %c0_447 = arith.constant 0 : index
    %c145_448 = arith.constant 145 : index
    %575 = vector.load %arg23[%c0_447, %c145_448] : memref<64x512xf32, #tpu.memory_space<vmem>>, vector<64x256xf32>
    %c2_449 = arith.constant 2 : index
    %c0_450 = arith.constant 0 : index
    %576 = vector.load %arg1[%c2_449, %c0_450] : memref<3x256xf32, #tpu.memory_space<vmem>>, vector<1x256xf32>
    %577 = vector.broadcast %576 : vector<1x256xf32> to vector<64x256xf32>
    %578 = arith.mulf %575, %577 : vector<64x256xf32>
    %c512 = arith.constant 512 : index
    %c0_451 = arith.constant 0 : index
    %579 = vector.load %arg24[%c512, %c0_451] : memref<576x256xf32, #tpu.memory_space<vmem>>, vector<64x256xf32>
    tpu.vector_store %arg24[%c512, %c0_451], %578 {strides = array<i32>} : memref<576x256xf32, #tpu.memory_space<vmem>>, vector<64x256xf32>,
    %c0_452 = arith.constant 0 : index
    %c0_453 = arith.constant 0 : index
    %580 = vector.load %arg9[%c0_452, %c0_453] : memref<32x576xf32, #tpu.memory_space<vmem>>, vector<32x576xf32>
    %c0_454 = arith.constant 0 : index
    %c0_455 = arith.constant 0 : index
    %581 = vector.load %arg24[%c0_454, %c0_455] : memref<576x256xf32, #tpu.memory_space<vmem>>, vector<576x256xf32>
    %cst_456 = arith.constant dense<0.000000e+00> : vector<32x256xf32>
    %582 = tpu.matmul %580, %581, %cst_456 {dimension_numbers = #tpu.dot_dimension_numbers<[1], [0], [0], [1], [0, 0, 1, 1], [], []>} : vector<32x576xf32>, vector<576x256xf32>, vector<32x256xf32> -> vector<32x256xf32>
    %c0_457 = arith.constant 0 : index
    %c0_458 = arith.constant 0 : index
    %583 = vector.load %arg28[%c0_457, %c0_458] : memref<32x256xf32, #tpu.memory_space<vmem>>, vector<32x256xf32>
    tpu.vector_store %arg28[%c0_457, %c0_458], %582 {strides = array<i32>} : memref<32x256xf32, #tpu.memory_space<vmem>>, vector<32x256xf32>,
    %584 = vector.shape_cast %582 : vector<32x256xf32> to vector<1x32x256xf32>
    %cst_459 = arith.constant dense<0.000000e+00> : vector<1xf32>
    %585 = vector.multi_reduction <add>, %584, %cst_459 [1, 2] : vector<1x32x256xf32> to vector<1xf32>
    %586 = vector.shape_cast %585 : vector<1xf32> to vector<1x1x1xf32>
    %587 = vector.extract %586[0, 0, 0] : f32 from vector<1x1x1xf32>
    %cst_460 = arith.constant 0.000000e+00 : f32
    %588 = arith.addf %cst_460, %587 : f32
    %cst_461 = arith.constant 8.192000e+03 : f32
    %589 = arith.divf %588, %cst_461 : f32
    %c0_462 = arith.constant 0 : index
    %c0_463 = arith.constant 0 : index
    %590 = vector.load %arg28[%c0_462, %c0_463] : memref<32x256xf32, #tpu.memory_space<vmem>>, vector<32x256xf32>
    %591 = vector.broadcast %589 : f32 to vector<32x256xf32>
    %592 = arith.subf %590, %591 : vector<32x256xf32>
    %593 = arith.mulf %592, %592 : vector<32x256xf32>
    %594 = vector.shape_cast %593 : vector<32x256xf32> to vector<1x32x256xf32>
    %cst_464 = arith.constant dense<0.000000e+00> : vector<1xf32>
    %595 = vector.multi_reduction <add>, %594, %cst_464 [1, 2] : vector<1x32x256xf32> to vector<1xf32>
    %596 = vector.shape_cast %595 : vector<1xf32> to vector<1x1x1xf32>
    %597 = vector.extract %596[0, 0, 0] : f32 from vector<1x1x1xf32>
    %cst_465 = arith.constant 0.000000e+00 : f32
    %598 = arith.addf %cst_465, %597 : f32
    %cst_466 = arith.constant 8.192000e+03 : f32
    %599 = arith.divf %598, %cst_466 : f32
    %cst_467 = arith.constant 9.99999974E-6 : f32
    %600 = arith.addf %599, %cst_467 : f32
    %601 = math.rsqrt %600 : f32
    %c0_468 = arith.constant 0 : index
    %c0_469 = arith.constant 0 : index
    %602 = vector.load %arg28[%c0_468, %c0_469] : memref<32x256xf32, #tpu.memory_space<vmem>>, vector<32x256xf32>
    %603 = vector.broadcast %589 : f32 to vector<32x256xf32>
    %604 = arith.subf %602, %603 : vector<32x256xf32>
    %605 = vector.broadcast %601 : f32 to vector<32x256xf32>
    %606 = arith.mulf %604, %605 : vector<32x256xf32>
    %c0_470 = arith.constant 0 : index
    %c0_471 = arith.constant 0 : index
    %607 = vector.load %arg18[%c0_470, %c0_471] : memref<32x256xf32, #tpu.memory_space<vmem>>, vector<32x256xf32>
    %608 = arith.mulf %606, %607 : vector<32x256xf32>
    %c0_472 = arith.constant 0 : index
    %c0_473 = arith.constant 0 : index
    %609 = vector.load %arg19[%c0_472, %c0_473] : memref<32x256xf32, #tpu.memory_space<vmem>>, vector<32x256xf32>
    %610 = arith.addf %608, %609 : vector<32x256xf32>
    %c192_474 = arith.constant 192 : index
    %c0_475 = arith.constant 0 : index
    %611 = vector.load %arg25[%c192_474, %c0_475] : memref<224x256xf32, #tpu.memory_space<vmem>>, vector<32x256xf32>
    %612 = vector.broadcast %105 : f32 to vector<32x256xf32>
    %613 = arith.subf %611, %612 : vector<32x256xf32>
    %614 = vector.broadcast %171 : f32 to vector<32x256xf32>
    %615 = arith.mulf %613, %614 : vector<32x256xf32>
    %c192_476 = arith.constant 192 : index
    %c0_477 = arith.constant 0 : index
    %616 = vector.load %arg12[%c192_476, %c0_477] : memref<224x256xf32, #tpu.memory_space<vmem>>, vector<32x256xf32>
    %617 = arith.mulf %615, %616 : vector<32x256xf32>
    %c192_478 = arith.constant 192 : index
    %c0_479 = arith.constant 0 : index
    %618 = vector.load %arg13[%c192_478, %c0_479] : memref<224x256xf32, #tpu.memory_space<vmem>>, vector<32x256xf32>
    %619 = arith.addf %617, %618 : vector<32x256xf32>
    %c96_480 = arith.constant 96 : index
    %c0_481 = arith.constant 0 : index
    %620 = vector.load %arg26[%c96_480, %c0_481] : memref<128x256xf32, #tpu.memory_space<vmem>>, vector<32x256xf32>
    %621 = vector.broadcast %247 : f32 to vector<32x256xf32>
    %622 = arith.subf %620, %621 : vector<32x256xf32>
    %623 = vector.broadcast %286 : f32 to vector<32x256xf32>
    %624 = arith.mulf %622, %623 : vector<32x256xf32>
    %c96_482 = arith.constant 96 : index
    %c0_483 = arith.constant 0 : index
    %625 = vector.load %arg14[%c96_482, %c0_483] : memref<128x256xf32, #tpu.memory_space<vmem>>, vector<32x256xf32>
    %626 = arith.mulf %624, %625 : vector<32x256xf32>
    %c96_484 = arith.constant 96 : index
    %c0_485 = arith.constant 0 : index
    %627 = vector.load %arg15[%c96_484, %c0_485] : memref<128x256xf32, #tpu.memory_space<vmem>>, vector<32x256xf32>
    %628 = arith.addf %626, %627 : vector<32x256xf32>
    %629 = arith.addf %619, %628 : vector<32x256xf32>
    %630 = arith.addf %629, %610 : vector<32x256xf32>
    %631 = arith.negf %630 : vector<32x256xf32>
    %632 = math.exp %631 : vector<32x256xf32>
    %cst_486 = arith.constant 1.000000e+00 : f32
    %633 = vector.broadcast %cst_486 : f32 to vector<32x256xf32>
    %634 = arith.addf %633, %632 : vector<32x256xf32>
    %635 = arith.divf %633, %634 : vector<32x256xf32>
    %c0_487 = arith.constant 0 : index
    %c0_488 = arith.constant 0 : index
    %636 = vector.load %arg29[%c0_487, %c0_488] : memref<32x256xf32, #tpu.memory_space<vmem>>, vector<32x256xf32>
    %637 = math.tanh %636 : vector<32x256xf32>
    %638 = arith.mulf %635, %637 : vector<32x256xf32>
    %c0_489 = arith.constant 0 : index
    %c0_490 = arith.constant 0 : index
    %c0_491 = arith.constant 0 : index
    %639 = vector.load %arg20[%c0_489, %c0_490, %c0_491] : memref<1x32x256xf32, #tpu.memory_space<vmem>>, vector<1x32x256xf32>
    %640 = vector.shape_cast %639 : vector<1x32x256xf32> to vector<32x256xf32>
    %641 = vector.shape_cast %638 : vector<32x256xf32> to vector<1x32x256xf32>
    tpu.vector_store %arg20[%c0_489, %c0_490, %c0_491], %641 {strides = array<i32>} : memref<1x32x256xf32, #tpu.memory_space<vmem>>, vector<1x32x256xf32>,
    return
  }
  func.func @transform_0(%arg0: i32) -> (i32, i32) {
    %c0_i32 = arith.constant 0 : i32
    %c0_i32_0 = arith.constant 0 : i32
    %c0_i32_1 = arith.constant 0 : i32
    return %c0_i32, %c0_i32_0 : i32, i32
  }
  func.func @transform_1(%arg0: i32) -> (i32, i32, i32) {
    %c0_i32 = arith.constant 0 : i32
    %c0_i32_0 = arith.constant 0 : i32
    %c0_i32_1 = arith.constant 0 : i32
    return %arg0, %c0_i32, %c0_i32_0 : i32, i32, i32
  }
  func.func @transform_2(%arg0: i32) -> (i32, i32, i32) {
    %c0_i32 = arith.constant 0 : i32
    %c0_i32_0 = arith.constant 0 : i32
    %c0_i32_1 = arith.constant 0 : i32
    return %arg0, %c0_i32, %c0_i32_0 : i32, i32, i32
  }
  func.func @transform_3(%arg0: i32) -> (i32, i32, i32) {
    %c0_i32 = arith.constant 0 : i32
    %c0_i32_0 = arith.constant 0 : i32
    %c0_i32_1 = arith.constant 0 : i32
    return %arg0, %c0_i32, %c0_i32_0 : i32, i32, i32
  }
  func.func @transform_4(%arg0: i32) -> (i32, i32, i32) {
    %c0_i32 = arith.constant 0 : i32
    %c0_i32_0 = arith.constant 0 : i32
    %c0_i32_1 = arith.constant 0 : i32
    return %arg0, %c0_i32, %c0_i32_0 : i32, i32, i32
  }
  func.func @transform_5(%arg0: i32) -> (i32, i32) {
    %c0_i32 = arith.constant 0 : i32
    %c0_i32_0 = arith.constant 0 : i32
    %c0_i32_1 = arith.constant 0 : i32
    return %c0_i32, %c0_i32_0 : i32, i32
  }
  func.func @transform_6(%arg0: i32) -> (i32, i32) {
    %c0_i32 = arith.constant 0 : i32
    %c0_i32_0 = arith.constant 0 : i32
    %c0_i32_1 = arith.constant 0 : i32
    return %c0_i32, %c0_i32_0 : i32, i32
  }
  func.func @transform_7(%arg0: i32) -> (i32, i32) {
    %c0_i32 = arith.constant 0 : i32
    %c0_i32_0 = arith.constant 0 : i32
    %c0_i32_1 = arith.constant 0 : i32
    return %c0_i32, %c0_i32_0 : i32, i32
  }
  func.func @transform_8(%arg0: i32) -> (i32, i32) {
    %c0_i32 = arith.constant 0 : i32
    %c0_i32_0 = arith.constant 0 : i32
    %c0_i32_1 = arith.constant 0 : i32
    return %c0_i32, %c0_i32_0 : i32, i32
  }
  func.func @transform_9(%arg0: i32) -> (i32, i32) {
    %c0_i32 = arith.constant 0 : i32
    %c0_i32_0 = arith.constant 0 : i32
    %c0_i32_1 = arith.constant 0 : i32
    return %c0_i32, %c0_i32_0 : i32, i32
  }
  func.func @transform_10(%arg0: i32) -> (i32, i32) {
    %c0_i32 = arith.constant 0 : i32
    %c0_i32_0 = arith.constant 0 : i32
    %c0_i32_1 = arith.constant 0 : i32
    return %c0_i32, %c0_i32_0 : i32, i32
  }
  func.func @transform_11(%arg0: i32) -> (i32, i32) {
    %c0_i32 = arith.constant 0 : i32
    %c0_i32_0 = arith.constant 0 : i32
    %c0_i32_1 = arith.constant 0 : i32
    return %c0_i32, %c0_i32_0 : i32, i32
  }
  func.func @transform_12(%arg0: i32) -> (i32, i32) {
    %c0_i32 = arith.constant 0 : i32
    %c0_i32_0 = arith.constant 0 : i32
    %c0_i32_1 = arith.constant 0 : i32
    return %c0_i32, %c0_i32_0 : i32, i32
  }
  func.func @transform_13(%arg0: i32) -> (i32, i32) {
    %c0_i32 = arith.constant 0 : i32
    %c0_i32_0 = arith.constant 0 : i32
    %c0_i32_1 = arith.constant 0 : i32
    return %c0_i32, %c0_i32_0 : i32, i32
  }
  func.func @transform_14(%arg0: i32) -> (i32, i32) {
    %c0_i32 = arith.constant 0 : i32
    %c0_i32_0 = arith.constant 0 : i32
    %c0_i32_1 = arith.constant 0 : i32
    return %c0_i32, %c0_i32_0 : i32, i32
  }
  func.func @transform_15(%arg0: i32) -> (i32, i32) {
    %c0_i32 = arith.constant 0 : i32
    %c0_i32_0 = arith.constant 0 : i32
    %c0_i32_1 = arith.constant 0 : i32
    return %c0_i32, %c0_i32_0 : i32, i32
  }
  func.func @transform_16(%arg0: i32) -> (i32, i32) {
    %c0_i32 = arith.constant 0 : i32
    %c0_i32_0 = arith.constant 0 : i32
    %c0_i32_1 = arith.constant 0 : i32
    return %c0_i32, %c0_i32_0 : i32, i32
  }
  func.func @transform_17(%arg0: i32) -> (i32, i32) {
    %c0_i32 = arith.constant 0 : i32
    %c0_i32_0 = arith.constant 0 : i32
    %c0_i32_1 = arith.constant 0 : i32
    return %c0_i32, %c0_i32_0 : i32, i32
  }
  func.func @transform_18(%arg0: i32) -> (i32, i32) {
    %c0_i32 = arith.constant 0 : i32
    %c0_i32_0 = arith.constant 0 : i32
    %c0_i32_1 = arith.constant 0 : i32
    return %c0_i32, %c0_i32_0 : i32, i32
  }
  func.func @transform_19(%arg0: i32) -> (i32, i32, i32) {
    %c0_i32 = arith.constant 0 : i32
    %c0_i32_0 = arith.constant 0 : i32
    %c0_i32_1 = arith.constant 0 : i32
    return %arg0, %c0_i32, %c0_i32_0 : i32, i32, i32
  }
  func.func @transform_20(%arg0: i32) -> (i32, i32, i32) {
    %c0_i32 = arith.constant 0 : i32
    %c0_i32_0 = arith.constant 0 : i32
    %c0_i32_1 = arith.constant 0 : i32
    return %arg0, %c0_i32, %c0_i32_0 : i32, i32, i32
  }
  func.func @transform_21(%arg0: i32) -> (i32, i32, i32) {
    %c0_i32 = arith.constant 0 : i32
    %c0_i32_0 = arith.constant 0 : i32
    %c0_i32_1 = arith.constant 0 : i32
    return %arg0, %c0_i32, %c0_i32_0 : i32, i32, i32
  }
}

</mosaic_0001>

<bundles_post_ra>
// kernel: st_lstm_forward.1
= control target key start
LH: loop header
LB: loop body
LE: loop exit
PB: predicated region body
PF: predicated region fallthrough
CT: control target
= control target key end

     0   :  { %s17304_s0 = inlined_call_operand.vmem [shape: f32[3,256], index: 0, kind: input, shape index: {}]   ;;  %s17305_s1 = inlined_call_operand.vmem [shape: f32[2,8,256], index: 1, kind: input, shape index: {}]   ;;  %s17306_s2 = inlined_call_operand.vmem [shape: f32[2,32,256], index: 2, kind: input, shape index: {}]   ;;  %s17307_s3 = inlined_call_operand.vmem [shape: f32[2,32,256], index: 3, kind: input, shape index: {}]   ;;  %s17308_s4 = inlined_call_operand.vmem [shape: f32[2,32,256], index: 4, kind: input, shape index: {}]   ;;  %s17309_s5 = inlined_call_operand.vmem [shape: f32[224,72], index: 5, kind: input, shape index: {}]   ;;  %s17310_s6 = inlined_call_operand.vmem [shape: f32[128,288], index: 6, kind: input, shape index: {}]   ;;  %s17311_s7 = inlined_call_operand.vmem [shape: f32[96,288], index: 7, kind: input, shape index: {}]   ;;  %s17312_s8 = inlined_call_operand.hbm [shape: f32[32,576], index: 8, kind: input, shape index: {}]   ;;  %s17313_s9 = inlined_call_operand.hbm [shape: f32[32,32], index: 9, kind: input, shape index: {}]   ;;  %s17314_s10 = inlined_call_operand.hbm [shape: f32[32,32], index: 10, kind: input, shape index: {}]   ;;  %s17315_s11 = inlined_call_operand.vmem [shape: f32[224,256], index: 11, kind: input, shape index: {}]   ;;  %s17316_s12 = inlined_call_operand.vmem [shape: f32[224,256], index: 12, kind: input, shape index: {}]   ;;  %s17317_s13 = inlined_call_operand.vmem [shape: f32[128,256], index: 13, kind: input, shape index: {}]   ;;  %s17318_s14 = inlined_call_operand.vmem [shape: f32[128,256], index: 14, kind: input, shape index: {}]   ;;  %s17319_s15 = inlined_call_operand.vmem [shape: f32[96,256], index: 15, kind: input, shape index: {}]   ;;  %s17320_s16 = inlined_call_operand.hbm [shape: f32[96,256], index: 16, kind: input, shape index: {}]   ;;  %s17321_s17 = inlined_call_operand.hbm [shape: f32[32,256], index: 17, kind: input, shape index: {}]   ;;  %s17322_s18 = inlined_call_operand.hbm [shape: f32[32,256], index: 18, kind: input, shape index: {}]   ;;  %s17323_s19 = inlined_call_operand.vmem [shape: f32[2,32,256], index: 19, kind: output, shape index: {0}]   ;;  %s17324_s20 = inlined_call_operand.vmem [shape: f32[2,32,256], index: 20, kind: output, shape index: {1}]   ;;  %s17325_s21 = inlined_call_operand.vmem [shape: f32[2,32,256], index: 21, kind: output, shape index: {2}]  }
   0x1   :  { %17759 = sst [smem:[#allocation185_spill]] %s17304_s0 }
   0x2   :  { %17760 = sst [smem:[#allocation186_spill]] %s17305_s1 }
   0x3   :  { %17761 = sst [smem:[#allocation187_spill]] %s17306_s2 }
   0x4   :  { %17762 = sst [smem:[#allocation188_spill]] %s17307_s3 }
   0x5   :  { %17763 = sst [smem:[#allocation189_spill]] %s17308_s4 }
   0x6   :  { %17764 = sst [smem:[#allocation190_spill]] %s17309_s5 }
   0x7   :  { %17765 = sst [smem:[#allocation191_spill]] %s17310_s6 }
   0x8   :  { %17766 = sst [smem:[#allocation192_spill]] %s17311_s7 }
   0x9   :  { %17767 = sst [smem:[#allocation193_spill]] %s17312_s8 }
   0xa   :  { %17768 = sst [smem:[#allocation194_spill]] %s17313_s9 }
   0xb   :  { %17769 = sst [smem:[#allocation195_spill]] %s17314_s10 }
   0xc   :  { %17770 = sst [smem:[#allocation196_spill]] %s17320_s16 }
   0xd   :  { %17771 = sst [smem:[#allocation197_spill]] %s17321_s17 }
   0xe   :  { %17772 = sst [smem:[#allocation198_spill]] %s17322_s18 }
   0xf   :  { %27 = vsyncpa [#allocation10], 0 }
  0x10   :  { %28 = vsyncpa [#allocation12], 0 }
  0x11   :  { %29 = vsyncpa [#allocation15], 0 }
  0x12   :  { %30 = vsyncpa [#allocation18], 0  ;;  %s11036_s2 = smov 0  }
  0x13 LB: > { %17773 = sst [smem:[#allocation23_spill]] %s10903_s2  ;;  %s10905_s25 = smov [#allocation11]   ;;  %s10903_s2 = sphi %s11036_s2, %s36_s2  }
  0x14   : > { %s575_s26 = sshll.u32 %s10905_s25, 4  ;;  %s11042_s27 = sadd.s32 4294967295, %s10903_s2   ;;  %s576_s26 = int_to_ptr.vmem [resolvable:$true] %s575_s26 }
  0x15   : > { %p10069_p0 = scmp.ge.s32.totalorder %s10903_s2, 1  ;;  %p538_p1 = scmp.lt.s32.totalorder %s10903_s2, 3 }
  0x16   : > { %p10354_p2 = scmp.eq.s32.totalorder %s11042_s27, 0  ;;  %s10906_s28 = smov [#allocation14]  }
  0x17   : > { %p11047_p3 = pnand %p10069_p0, %p538_p1  ;;  %s616_s29 = sshll.u32 %s10906_s28, 4  ;;  %s11053_s29 = int_to_ptr.vmem [resolvable:$true] %s616_s29 }
  0x18   : > { %s10907_s4 = smov [#allocation9]   ;;  %s10736_s22 = scalar_lea.vmem %s576_s26, 512 }
  0x19   : > { %p10335_p4 = pneg %p11047_p3  ;;  %s11061_s30 = sshll.u32 %s10907_s4, 4  ;;  %s563_s30 = int_to_ptr.vmem [resolvable:$true] %s11061_s30 }
  0x1a   : > { %p10737_p7 = scmp.ne.s32.totalorder %s576_s26, %s10736_s22  ;;  %p10744_p10 = scmp.lt.s32.totalorder %s576_s26, %s576_s26 }
  0x1b   : > { %p11057_p5 = pnand %p10354_p2, %p10335_p4  ;;  %p10745_p11 = scmp.lt.s32.totalorder %s10736_s22, %s10736_s22 }
  0x1d   : > { %p11065_p6 = pneg %p11057_p5  ;;  %p10746_p12 = por %p10745_p11, %p10744_p10 }
  0x1f   : > { %p10739_p8 = pnand %p10737_p7, %p11065_p6 }
  0x21   : > { %p10740_p9 = pneg %p10739_p8 }
  0x23   : > { %p10747_p13 = pnand %p10746_p12, %p10740_p9 }
  0x25   : > { %10750 = shalt.err (!%p10747_p13)
}
  0x26   : > { %s17328_s23 = smov 128   ;;  %s17329_s1 = smov 8  }
  0x27   : > { %s17777_s9 = sld [smem:[#allocation194_spill]]  ;;  %s10762_s28 = scalar_lea.vmem %s11053_s29, 3072 }
  0x28   : > { %p10763_p0 = scmp.ne.s32.totalorder %s11053_s29, %s10762_s28  ;;  %p10770_p7 = scmp.lt.s32.totalorder %s11053_s29, %s11053_s29 }
  0x29   : > { %p10771_p8 = scmp.lt.s32.totalorder %s10762_s28, %s10762_s28 }
  0x2a   : > { %p10765_p1 = pnand %p10763_p0, %p11065_p6 }
  0x2b   : > { %p10772_p9 = por %p10771_p8, %p10770_p7 }
  0x2c   : > { %p10766_p4 = pneg %p10765_p1 }
  0x2d   : > { %10341 = dma.hbm_to_vmem [thread:$0]  (!%p11057_p5), %s17777_s9, 512, %s576_s26, [#allocation12], %s17328_s23, %s17328_s23, %s17329_s1  }
  0x2e   : > { %p10773_p10 = pnand %p10772_p9, %p10766_p4 }
  0x30   : > { %10776 = shalt.err (!%p10773_p10)
}
  0x31   : > { %s17330_s4 = smov 256   ;;  %s17332_s22 = smov 16  }
  0x32   : > { %s17778_s16 = sld [smem:[#allocation196_spill]]  ;;  %s10788_s25 = scalar_lea.vmem %s563_s30, 2560 }
  0x33   : > { %p10789_p11 = scmp.ne.s32.totalorder %s563_s30, %s10788_s25  ;;  %p10796_p0 = scmp.lt.s32.totalorder %s563_s30, %s563_s30 }
  0x34   : > { %p10797_p1 = scmp.lt.s32.totalorder %s10788_s25, %s10788_s25 }
  0x35   : > { %p10791_p12 = pnand %p10789_p11, %p11065_p6 }
  0x36   : > { %p10798_p4 = por %p10797_p1, %p10796_p0 }
  0x37   : > { %p10792_p13 = pneg %p10791_p12 }
  0x38   : > { %10347 = dma.hbm_to_vmem [thread:$0]  (!%p11057_p5), %s17778_s16, 3072, %s11053_s29, [#allocation15], %s17330_s4, %s17330_s4, %s17332_s22  }
  0x39   : > { %p10799_p7 = pnand %p10798_p4, %p10792_p13 }
  0x3b   : > { %10802 = shalt.err (!%p10799_p7)
}
  0x3c   : > { %s10912_s28 = smov 640   ;;  %s10913_s23 = smov 40  }
  0x3d   : > { %s17779_s8 = sld [smem:[#allocation193_spill]]  ;;  %s10914_s29 = smov [#allocation13]  }
  0x3e   : > { %s588_s26 = sshll.u32 %s10914_s29, 4  ;;  %s10915_s24 = smov [#allocation16]   ;;  %s589_s26 = int_to_ptr.vmem [resolvable:$true] %s588_s26 }
  0x3f   : > { %s629_s4 = sshll.u32 %s10915_s24, 4  ;;  %s10814_s22 = scalar_lea.vmem %s589_s26, 512  ;;  %s630_s4 = int_to_ptr.vmem [resolvable:$true] %s629_s4 }
  0x40   : > { %p10815_p8 = scmp.ne.s32.totalorder %s589_s26, %s10814_s22  ;;  %p10822_p11 = scmp.lt.s32.totalorder %s589_s26, %s589_s26 }
  0x41   : > { %p10823_p12 = scmp.lt.s32.totalorder %s10814_s22, %s10814_s22 }
  0x42   : > { %p10817_p9 = pnand %p10815_p8, %p11065_p6 }
  0x43   : > { %10338 = dma.hbm_to_vmem [thread:$0]  (!%p11057_p5), %s17779_s8, 2560, %s563_s30, [#allocation10], %s10912_s28, %s10912_s28, %s10913_s23  }
  0x44   : > { %p10818_p10 = pneg %p10817_p9  ;;  %p10824_p13 = por %p10823_p12, %p10822_p11 }
  0x46   : > { %p10825_p0 = pnand %p10824_p13, %p10818_p10 }
  0x48   : > { %10828 = shalt.err (!%p10825_p0)
}
  0x49   : > { %s17780_s9 = smov 8   ;;  %s17781_s30 = smov 128  }
  0x4a   : > { %s17782_s10 = sld [smem:[#allocation195_spill]]  ;;  %s10840_s25 = scalar_lea.vmem %s630_s4, 1024 }
  0x4b   : > { %p10841_p1 = scmp.ne.s32.totalorder %s630_s4, %s10840_s25  ;;  %p10848_p8 = scmp.lt.s32.totalorder %s630_s4, %s630_s4 }
  0x4c   : > { %p10849_p9 = scmp.lt.s32.totalorder %s10840_s25, %s10840_s25 }
  0x4d   : > { %p10843_p4 = pnand %p10841_p1, %p11065_p6 }
  0x4e   : > { %p10850_p11 = por %p10849_p9, %p10848_p8 }
  0x4f   : > { %p10844_p7 = pneg %p10843_p4 }
  0x50   : > { %10344 = dma.hbm_to_vmem [thread:$0]  (!%p11057_p5), %s17782_s10, 512, %s589_s26, [#allocation12], %s17781_s30, %s17781_s30, %s17780_s9  }
  0x51   : > { %p10851_p10 = pnand %p10850_p11, %p10844_p7 }
  0x53   : > { %10854 = shalt.err (!%p10851_p10)
}
  0x54   : > { %s17783_s22 = smov 16   ;;  %s17784_s28 = smov 256  }
  0x55   : > { %s17785_s17 = sld [smem:[#allocation197_spill]]  ;;  %s10916_s26 = smov [#allocation17]  }
  0x56   : > { %s642_s9 = sshll.u32 %s10916_s26, 4  ;;  %s643_s9 = int_to_ptr.vmem [resolvable:$true] %s642_s9 }
  0x57   : > { %s10866_s30 = scalar_lea.vmem %s643_s9, 1024  ;;  %p10874_p1 = scmp.lt.s32.totalorder %s643_s9, %s643_s9 }
  0x58   : > { %p10867_p12 = scmp.ne.s32.totalorder %s643_s9, %s10866_s30  ;;  %p10875_p4 = scmp.lt.s32.totalorder %s10866_s30, %s10866_s30 }
  0x5a   : > { %p10869_p13 = pnand %p10867_p12, %p11065_p6  ;;  %p10876_p7 = por %p10875_p4, %p10874_p1 }
  0x5b   : > { %10350 = dma.hbm_to_vmem [thread:$0]  (!%p11057_p5), %s17785_s17, 1024, %s630_s4, [#allocation15], %s17784_s28, %s17784_s28, %s17783_s22  }
  0x5c   : > { %p10870_p0 = pneg %p10869_p13 }
  0x5e   : > { %p10877_p8 = pnand %p10876_p7, %p10870_p0 }
  0x60   : > { %10880 = shalt.err (!%p10877_p8)
}
  0x61   : > { %s17786_s18 = sld [smem:[#allocation198_spill]] }
  0x63   : > { %690 = sbr.rel (%p11047_p3) target bundleno = 3109 (0xc25), region = 96 }
  0x67   : > { %10353 = dma.hbm_to_vmem [thread:$0]  (!%p11057_p5), %s17786_s18, 1024, %s643_s9, [#allocation18], %s17784_s28, %s17784_s28, %s17783_s22  }
  0x68   : > { %10886 = dma.done.wait (%p10354_p2), [#allocation10], 2560  }
  0x69   : > { %10888 = vsyncadd (%p10354_p2), [#allocation10], 4294964736 }
  0x6a   : > { %10890 = dma.done.wait (%p10354_p2), [#allocation12], 1024  }
  0x6b   : > { %10892 = vsyncadd (%p10354_p2), [#allocation12], 4294966272 }
  0x6c   : > { %10894 = dma.done.wait (%p10354_p2), [#allocation15], 4096  }
  0x6d   : > { %10896 = vsyncadd (%p10354_p2), [#allocation15], 4294963200 }
  0x6e   : > { %10898 = dma.done.wait (%p10354_p2), [#allocation18], 1024  }
  0x6f   : > { %10900 = vsyncadd (%p10354_p2), [#allocation18], 4294966272  ;;  %v855_v0 = vlaneseq  ;;  %v17341_v1 = vmov 0.0   ;;  %s17789_s5 = sld [smem:[#allocation185_spill]]  ;;  %s17536_s22 = smov 17   ;;  %vm884_vm0 = vcmask 138240  }
  0x70   : > { %1232 = vmatprep.mubr.f32.mxu0 %v17341_v1  ;;  %1380 = vmatprep.mubr.f32.mxu1 %v17341_v1  ;;  %s17541_s28 = smov 15   ;;  %p795_p2 = scmp.lt.s32.totalorder %s11042_s27, 1  ;;  %vm945_vm1 = vcmask 121856   ;;  %vm986_vm2 = vcmask 7168   ;;  %vm969_vm3 = vcmask 1039360   ;;  %vm928_vm4 = vcmask 924672  }
  0x71   : > { %v856_v2 = vshrl.u32 %v855_v0, 7  ;;  %s17338_s30 = smov 1   ;;  %s17398_s3 = smov 127   ;;  %vm867_vm5 = vcmask 908288   ;;  %vm1087_vm6 = vcmask 916480   ;;  %vm903_vm7 = vcmask 130048  }
  0x72   : > { %s18625_s27 = smov (!%p795_p2, %s11042_s27), 1  ;;  %s17402_s29 = smov 113   ;;  %vm1155_vm8 = vcmask 588800   ;;  %vm3340_vm9 = vcmask 261120   ;;  %vm9244_vm10 = vcmask 523264  }
  0x73   : > { %v11152_v3 = vsub.s32 0, %v856_v2  ;;  %v11154_v4 = vsub.s32 1, %v856_v2  ;;  %s10220_s25 = sshll.u32 %s18625_s27, 4  ;;  %s17790_s9 = sld [smem:[#allocation186_spill]] }
  0x74   : > { %s17346_s4 = smov 111   ;;  %s17334_s0 = smov 112  }
  0x75   : > { %17787 = vst [vmem:[#allocation24_spill] sm:$0xff] %v11152_v3  ;;  %17788 = vst [vmem:[#allocation25_spill] sm:$0xff] %v11154_v4  ;;  %v10100_v5 = vld [vmem:[%s17789_s5 + $0x2] ss:$4 sm:$0x3]  ;;  %s17336_s1 = smov 16  }
  0x76   : > { %v1039_v6 = vld [vmem:[%s17789_s5] ss:$4 sm:$0x3]  ;;  %v1102_v7 = vrot.slane %v10100_v5, %v11152_v3  ;;  %v1106_v9 = vrot.slane %v10100_v5, %v11154_v4  ;;  %v10099_v11 = vld [vmem:[%s17789_s5 + $0x2] ss:$4 sm:$0x3] }
  0x77   : > { %v1044_v8 = vrot.slane %v1039_v6, %v11152_v3  ;;  %v1048_v10 = vrot.slane %v1039_v6, %v11154_v4  ;;  %v1009_v12 = vrot.slane %v10099_v11, %v11154_v4  ;;  %v1005_v13 = vrot.slane %v10099_v11, %v11152_v3  ;;  %v955_v14 = vld [vmem:[%s17789_s5] ss:$4 sm:$0x3]  ;;  %v10098_v17 = vld [vmem:[%s17789_s5 + $0x2] ss:$4 sm:$0x3] }
  0x78   : > { %1107 = vrot.lane.b32.xlu0 %v1102_v7, %s17536_s22  ;;  %v964_v15 = vrot.slane %v955_v14, %v11154_v4  ;;  %v960_v16 = vrot.slane %v955_v14, %v11152_v3  ;;  %v923_v18 = vrot.slane %v10098_v17, %v11154_v4  ;;  %v919_v19 = vrot.slane %v10098_v17, %v11152_v3  ;;  %v853_v20 = vld [vmem:[%s17789_s5] ss:$4 sm:$0x3]  ;;  %v10129_v28 = vld [vmem:[%s17789_s5 + $0x2] ss:$4 sm:$0x3] }
  0x79   : > { %1049 = vrot.lane.b32.xlu1 %v1044_v8, %s17541_s28  ;;  %v862_v21 = vrot.slane %v853_v20, %v11154_v4  ;;  %v858_v22 = vrot.slane %v853_v20, %v11152_v3  ;;  %s11204_s23 = scalar_lea.vmem %s17790_s9, %s10220_s25  ;;  %v2772_v25 = vld [vmem:[%s17789_s5] ss:$4 sm:$0x3]  ;;  %v2675_v29 = vrot.slane %v10129_v28, %v11152_v3  ;;  %v2679_v30 = vrot.slane %v10129_v28, %v11154_v4  ;;  %v10131_v31 = vld [vmem:[%s17789_s5 + $0x2] ss:$4 sm:$0x3] }
  0x7a   : > { %v11209_v23 = vld [vmem:[%s11204_s23 + $0x8] sm:$0xff]  ;;  %v11216_v24 = vld [vmem:[%s11204_s23] sm:$0xff]  ;;  %v2777_v26 = vrot.slane %v2772_v25, %v11152_v3  ;;  %v2781_v27 = vrot.slane %v2772_v25, %v11154_v4  ;;  %v3171_v32 = vrot.slane %v10131_v31, %v11152_v3  ;;  %v3175_v33 = vrot.slane %v10131_v31, %v11154_v4  ;;  %s11327_s25 = sshll.u32 %s18625_s27, 6  ;;  %s17791_s9 = sld [smem:[#allocation187_spill]] }
  0x7b   : > { %v2496_v34 = vld [vmem:[%s17789_s5] ss:$4 sm:$0x3]  ;;  %v10130_v40 = vld [vmem:[%s17789_s5 + $0x2] ss:$4 sm:$0x3] }
  0x7c   : > { %1109 = vrot.lane.b32.xlu0 %v1106_v9, %s17536_s22  ;;  %v2501_v35 = vrot.slane %v2496_v34, %v11152_v3  ;;  %v2505_v36 = vrot.slane %v2496_v34, %v11154_v4  ;;  %v2992_v37 = vld [vmem:[%s17789_s5] ss:$4 sm:$0x3]  ;;  %v2895_v41 = vrot.slane %v10130_v40, %v11152_v3  ;;  %v2899_v42 = vrot.slane %v10130_v40, %v11154_v4  ;;  %s17792_s27 = smov 112   ;;  %s17825_s6 = sld [smem:[#allocation191_spill]] }
  0x7d   : > { %1051 = vrot.lane.b32.xlu1 %v1048_v10, %s17541_s28  ;;  %v2997_v38 = vrot.slane %v2992_v37, %v11152_v3  ;;  %v3001_v39 = vrot.slane %v2992_v37, %v11154_v4  ;;  %s17933_s26 = smov 113   ;;  %s17951_s7 = sld [smem:[#allocation192_spill]] }
  0x80   : > { %1010 = vrot.lane.b32.xlu0 %v1005_v13, %s17338_s30 }
  0x81   : > { %1012 = vrot.lane.b32.xlu1 %v1009_v12, %s17338_s30 }
  0x84   : > { %965 = vrot.lane.b32.xlu0 %v960_v16, %s17398_s3 }
  0x85   : > { %967 = vrot.lane.b32.xlu1 %v964_v15, %s17398_s3 }
  0x88   : > { %924 = vrot.lane.b32.xlu0 %v919_v19, %s17402_s29 }
  0x89   : > { %926 = vrot.lane.b32.xlu1 %v923_v18, %s17402_s29 }
  0x8c   : > { %863 = vrot.lane.b32.xlu0 %v858_v22, %s17346_s4 }
  0x8d   : > { %865 = vrot.lane.b32.xlu1 %v862_v21, %s17346_s4 }
  0x90   : > { %1085 = vrot.lane.b32.xlu0 %v17341_v1, %s17334_s0 }
  0x91   : > { %1083 = vrot.lane.b32.xlu1 %v11209_v23, %s17334_s0 }
  0x94   : > { %899 = vrot.lane.b32.xlu0 %v11216_v24, %s17336_s1 }
  0x95   : > { %1081 = vrot.lane.b32.xlu1 %v11216_v24, %s17334_s0  ;;  %s11337_s0 = scalar_lea.vmem %s17791_s9, %s11327_s25  ;;  %s17793_s9 = sld [smem:[#allocation190_spill]] }
  0x96   : > { %v11344_v12 = vld [vmem:[%s11337_s0 + $0x38] sm:$0xff]  ;;  %v11348_v17 = vld [vmem:[%s11337_s0 + $0x28] sm:$0xff] }
  0x97   : > { %v11354_v19 = vld [vmem:[%s11337_s0 + $0x18] sm:$0xff]  ;;  %v11360_v21 = vld [vmem:[%s11337_s0 + $0x8] sm:$0xff] }
  0x98   : > { %897 = vrot.lane.b32.xlu0 %v17341_v1, %s17336_s1 }
  0x99   : > { %901 = vrot.lane.b32.xlu1 %v11209_v23, %s17336_s1 }
  0x9c   : > { %2782 = vrot.lane.b32.xlu0 %v2777_v26, %s17398_s3 }
  0x9d   : > { %2784 = vrot.lane.b32.xlu1 %v2781_v27, %s17398_s3 }
  0xa0   : > { %2680 = vrot.lane.b32.xlu0 %v2675_v29, %s17402_s29 }
  0xa1   : > { %2682 = vrot.lane.b32.xlu1 %v2679_v30, %s17402_s29 }
  0xa4   : > { %3176 = vrot.lane.b32.xlu0 %v3171_v32, %s17536_s22 }
  0xa5   : > { %3178 = vrot.lane.b32.xlu1 %v3175_v33, %s17536_s22 }
  0xa8   : > { %2506 = vrot.lane.b32.xlu0 %v2501_v35, %s17346_s4 }
  0xa9   : > { %2508 = vrot.lane.b32.xlu1 %v2505_v36, %s17346_s4 }
  0xac   : > { %3002 = vrot.lane.b32.xlu0 %v2997_v38, %s17541_s28 }
  0xad   : > { %3004 = vrot.lane.b32.xlu1 %v3001_v39, %s17541_s28  ;;  %v11399_v39 = vld [vmem:[%s11337_s0 + $0x30] sm:$0xff] }
  0xb0   : > { %2900 = vrot.lane.b32.xlu0 %v2895_v41, %s17338_s30 }
  0xb1   : > { %2902 = vrot.lane.b32.xlu1 %v2899_v42, %s17338_s30 }
  0xea   : > { %v11268_v43 = vpop.permute.xlu0 %1107 }
  0xeb   : > { %v11270_v44 = vpop.permute.xlu1 %1049  ;;  %v1115_v45 = vmul.f32 %v11268_v43, %v11216_v24 }
  0xec   : > { %v1057_v48 = vmul.f32 %v11270_v44, %v11216_v24 }
  0xed   : > { %1121 = vrot.lane.b32.xlu0 %v1115_v45, %s17346_s4 }
  0xee   : > { %v11275_v46 = vpop.permute.xlu0 %1109 }
  0xef   : > { %v11277_v47 = vpop.permute.xlu1 %1051  ;;  %v1117_v49 = vmul.f32 0.0, %v11275_v46  ;;  %v1111_v30 = vsel %vm884_vm0, %v11268_v43, %v11275_v46 }
  0xf0   : > { %v1059_v52 = vmul.f32 0.0, %v11277_v47  ;;  %v1116_v32 = vmul.f32 %v1111_v30, %v11209_v23  ;;  %v1053_v33 = vsel %vm945_vm1, %v11270_v44, %v11277_v47  ;;  %v11418_v47 = vld [vmem:[%s11337_s0 + $0x10] sm:$0xff] }
  0xf1   : > { %1125 = vrot.lane.b32.xlu1 %v1117_v49, %s17346_s4  ;;  %1063 = vrot.lane.b32.xlu0 %v1057_v48, %s17402_s29  ;;  %v1058_v35 = vmul.f32 %v1053_v33, %v11209_v23 }
  0xf2   : > { %v11286_v51 = vpop.permute.xlu0 %1010 }
  0xf3   : > { %v11284_v50 = vpop.permute.xlu1 %1012  ;;  %v1018_v56 = vmul.f32 %v11286_v51, %v11216_v24 }
  0xf4   : > { %v1020_v53 = vmul.f32 0.0, %v11284_v50  ;;  %v1014_v34 = vsel %vm986_vm2, %v11286_v51, %v11284_v50  ;;  %v11427_v51 = vld [vmem:[%s11337_s0 + $0x20] sm:$0xff] }
  0xf5   : > { %1067 = vrot.lane.b32.xlu1 %v1059_v52, %s17402_s29  ;;  %v1019_v36 = vmul.f32 %v1014_v34, %v11209_v23 }
  0xf6   : > { %1028 = vrot.lane.b32.xlu0 %v1020_v53, %s17398_s3  ;;  %v11294_v55 = vpop.permute.xlu0 %965 }
  0xf7   : > { %v11292_v54 = vpop.permute.xlu1 %967  ;;  %v974_v57 = vmul.f32 0.0, %v11294_v55 }
  0xf8   : > { %v976_v60 = vmul.f32 %v11292_v54, %v11209_v23  ;;  %v970_v37 = vsel %vm969_vm3, %v11294_v55, %v11292_v54  ;;  %v11436_v55 = vld [vmem:[%s11337_s0] sm:$0xff] }
  0xf9   : > { %1024 = vrot.lane.b32.xlu1 %v1018_v56, %s17398_s3  ;;  %v975_v41 = vmul.f32 %v970_v37, %v11216_v24 }
  0xfa   : > { %980 = vrot.lane.b32.xlu0 %v974_v57, %s17338_s30  ;;  %v11303_v59 = vpop.permute.xlu0 %924 }
  0xfb   : > { %v11301_v58 = vpop.permute.xlu1 %926  ;;  %v933_v0 = vmul.f32 0.0, %v11303_v59 }
  0xfc   : > { %v935_v61 = vmul.f32 %v11301_v58, %v11209_v23  ;;  %v929_v42 = vsel %vm928_vm4, %v11303_v59, %v11301_v58 }
  0xfd   : > { %984 = vrot.lane.b32.xlu1 %v976_v60, %s17338_s30  ;;  %v934_v45 = vmul.f32 %v929_v42, %v11216_v24 }
  0xfe   : > { %943 = vrot.lane.b32.xlu0 %v935_v61, %s17541_s28  ;;  %v11313_v63 = vpop.permute.xlu0 %863 }
  0xff   : > { %v11311_v62 = vpop.permute.xlu1 %865  ;;  %v872_v7 = vmul.f32 0.0, %v11313_v63 }
 0x100   : > { %v874_v2 = vmul.f32 %v11311_v62, %v11209_v23  ;;  %v868_v46 = vsel %vm867_vm5, %v11313_v63, %v11311_v62 }
 0x101   : > { %939 = vrot.lane.b32.xlu1 %v933_v0, %s17541_s28  ;;  %v873_v49 = vmul.f32 %v868_v46, %v11216_v24 }
 0x102   : > { %882 = vrot.lane.b32.xlu0 %v874_v2, %s17536_s22  ;;  %v11320_v5 = vpop.permute.xlu0 %1085 }
 0x103   : > { %v11322_v6 = vpop.permute.xlu1 %1083 }
 0x105   : > { %878 = vrot.lane.b32.xlu1 %v872_v7, %s17536_s22 }
 0x106   : > { %v11329_v8 = vpop.permute.xlu0 %899 }
 0x107   : > { %v11331_v9 = vpop.permute.xlu1 %1081 }
 0x10a   : > { %v11339_v10 = vpop.permute.xlu0 %897 }
 0x10b   : > { %v11341_v11 = vpop.permute.xlu1 %901 }
 0x10e   : > { %v2783_v13 = vpop.permute.xlu0 %2782 }
 0x10f   : > { %v2785_v14 = vpop.permute.xlu1 %2784  ;;  %v2790_v15 = vmul.f32 0.0, %v2783_v13 }
 0x110   : > { %v2801_v16 = vmul.f32 %v2785_v14, %v11344_v12  ;;  %v2798_v18 = vmul.f32 %v2785_v14, %v11348_v17  ;;  %v2795_v20 = vmul.f32 %v2785_v14, %v11354_v19  ;;  %v2792_v26 = vmul.f32 %v2785_v14, %v11360_v21 }
 0x111   : > { %2832 = vrot.lane.b32.xlu0 %v2790_v15, %s17338_s30  ;;  %v2786_v43 = vsel %vm969_vm3, %v2783_v13, %v2785_v14 }
 0x112   : > { %2836 = vrot.lane.b32.xlu1 %v2801_v16, %s17338_s30  ;;  %v2681_v25 = vpop.permute.xlu0 %2680  ;;  %v2800_v44 = vmul.f32 %v2786_v43, %v11399_v39  ;;  %v2794_v48 = vmul.f32 %v2786_v43, %v11418_v47  ;;  %v2797_v53 = vmul.f32 %v2786_v43, %v11427_v51  ;;  %v2791_v57 = vmul.f32 %v2786_v43, %v11436_v55 }
 0x113   : > { %v11362_v22 = vpop.permute.xlu1 %2682  ;;  %v11369_v27 = vmul.f32 0.0, %v2681_v25 }
 0x114   : > { %v2699_v28 = vmul.f32 %v11362_v22, %v11344_v12  ;;  %v2684_v50 = vsel %vm928_vm4, %v2681_v25, %v11362_v22  ;;  %v2696_v59 = vmul.f32 %v11362_v22, %v11348_v17  ;;  %v2693_v63 = vmul.f32 %v11362_v22, %v11354_v19 }
 0x115   : > { %2830 = vrot.lane.b32.xlu0 %v2798_v18, %s17338_s30  ;;  %v2698_v52 = vmul.f32 %v2684_v50, %v11399_v39  ;;  %v2695_v58 = vmul.f32 %v2684_v50, %v11427_v51  ;;  %v2692_v62 = vmul.f32 %v2684_v50, %v11418_v47  ;;  %v2690_v16 = vmul.f32 %v11362_v22, %v11360_v21 }
 0x116   : > { %2826 = vrot.lane.b32.xlu1 %v2790_v15, %s17338_s30  ;;  %v11396_v38 = vpop.permute.xlu0 %3176 }
 0x117   : > { %v3179_v29 = vpop.permute.xlu1 %3178  ;;  %v3193_v40 = vmul.f32 %v11396_v38, %v11399_v39  ;;  %v3190_v61 = vmul.f32 %v11396_v38, %v11427_v51  ;;  %v3187_v13 = vmul.f32 %v11396_v38, %v11418_v47  ;;  %v3184_v22 = vmul.f32 %v11396_v38, %v11436_v55 }
 0x118   : > { %v11379_v31 = vmul.f32 0.0, %v3179_v29  ;;  %v3180_v54 = vsel %vm884_vm0, %v11396_v38, %v3179_v29 }
 0x119   : > { %2820 = vrot.lane.b32.xlu0 %v2790_v15, %s17338_s30  ;;  %v3194_v56 = vmul.f32 %v3180_v54, %v11344_v12  ;;  %v3191_v60 = vmul.f32 %v3180_v54, %v11348_v17  ;;  %v3188_v0 = vmul.f32 %v3180_v54, %v11354_v19  ;;  %v3185_v25 = vmul.f32 %v3180_v54, %v11360_v21 }
 0x11a   : > { %2824 = vrot.lane.b32.xlu1 %v2795_v20, %s17338_s30  ;;  %v2507_v2 = vpop.permute.xlu0 %2506 }
 0x11b   : > { %v11467_v7 = vpop.permute.xlu1 %2508 }
 0x11c   : > { %v2525_v37 = vmul.f32 %v11467_v7, %v11344_v12 }
 0x11d   : > { %2818 = vrot.lane.b32.xlu0 %v2792_v26, %s17338_s30 }
 0x11e   : > { %2814 = vrot.lane.b32.xlu1 %v2790_v15, %s17338_s30  ;;  %v11474_v14 = vpop.permute.xlu0 %3002  ;;  %v2689_v15 = vmul.f32 %v2684_v50, %v11436_v55  ;;  %v2519_v50 = vmul.f32 %v11467_v7, %v11354_v19 }
 0x11f   : > { %v11479_v18 = vpop.permute.xlu1 %3004 }
 0x121   : > { %2730 = vrot.lane.b32.xlu0 %v11369_v27, %s17541_s28 }
 0x122   : > { %2734 = vrot.lane.b32.xlu1 %v2699_v28, %s17541_s28  ;;  %v11483_v20 = vpop.permute.xlu0 %2900 }
 0x123   : > { %v11489_v26 = vpop.permute.xlu1 %2902 }
 0x125   : > { %1123 = vrot.lane.b32.xlu0 %v1116_v32, %s17346_s4 }
 0x126   : > { %3230 = vrot.lane.b32.xlu1 %v11379_v31, %s17346_s4 }
 0x129   : > { %1065 = vrot.lane.b32.xlu0 %v1058_v35, %s17402_s29  ;;  %v2510_v35 = vsel %vm867_vm5, %v2507_v2, %v11467_v7 }
 0x12a   : > { %1026 = vrot.lane.b32.xlu1 %v1019_v36, %s17398_s3  ;;  %v2524_v36 = vmul.f32 %v2510_v35, %v11399_v39  ;;  %v2521_v42 = vmul.f32 %v2510_v35, %v11427_v51  ;;  %v2515_v54 = vmul.f32 %v2510_v35, %v11436_v55 }
 0x12d   : > { %982 = vrot.lane.b32.xlu0 %v975_v41, %s17338_s30  ;;  %v2514_v41 = vmul.f32 0.0, %v2507_v2 }
 0x12e   : > { %3226 = vrot.lane.b32.xlu1 %v3193_v40, %s17346_s4 }
 0x131   : > { %2834 = vrot.lane.b32.xlu0 %v2800_v44, %s17338_s30 }
 0x132   : > { %941 = vrot.lane.b32.xlu1 %v934_v45, %s17541_s28  ;;  %v2522_v45 = vmul.f32 %v11467_v7, %v11348_v17 }
 0x135   : > { %2822 = vrot.lane.b32.xlu0 %v2794_v48, %s17338_s30 }
 0x136   : > { %880 = vrot.lane.b32.xlu1 %v873_v49, %s17536_s22  ;;  %v2518_v49 = vmul.f32 %v2510_v35, %v11418_v47 }
 0x139   : > { %2732 = vrot.lane.b32.xlu0 %v2698_v52, %s17541_s28 }
 0x13a   : > { %2828 = vrot.lane.b32.xlu1 %v2797_v53, %s17338_s30 }
 0x13d   : > { %3228 = vrot.lane.b32.xlu0 %v3194_v56, %s17346_s4 }
 0x13e   : > { %2816 = vrot.lane.b32.xlu1 %v2791_v57, %s17338_s30  ;;  %s17944_s30 = smov 127  }
 0x141   : > { %2726 = vrot.lane.b32.xlu0 %v2695_v58, %s17541_s28  ;;  %v2516_v58 = vmul.f32 %v11467_v7, %v11360_v21 }
 0x142   : > { %2728 = vrot.lane.b32.xlu1 %v2696_v59, %s17541_s28 }
 0x145   : > { %3222 = vrot.lane.b32.xlu0 %v3191_v60, %s17346_s4 }
 0x146   : > { %3224 = vrot.lane.b32.xlu1 %v11379_v31, %s17346_s4 }
 0x149   : > { %2724 = vrot.lane.b32.xlu0 %v11369_v27, %s17541_s28 }
 0x14a   : > { %3220 = vrot.lane.b32.xlu1 %v3190_v61, %s17346_s4 }
 0x14d   : > { %2720 = vrot.lane.b32.xlu0 %v2692_v62, %s17541_s28 }
 0x14e   : > { %2722 = vrot.lane.b32.xlu1 %v2693_v63, %s17541_s28 }
 0x151   : > { %3216 = vrot.lane.b32.xlu0 %v3188_v0, %s17346_s4 }
 0x152   : > { %3218 = vrot.lane.b32.xlu1 %v11379_v31, %s17346_s4 }
 0x155   : > { %2718 = vrot.lane.b32.xlu0 %v11369_v27, %s17541_s28 }
 0x156   : > { %3214 = vrot.lane.b32.xlu1 %v3187_v13, %s17346_s4  ;;  %v11610_v13 = vsel %vm1087_vm6, %v11322_v6, %v11320_v5 }
 0x159   : > { %2714 = vrot.lane.b32.xlu0 %v2689_v15, %s17541_s28 }
 0x15a   : > { %2716 = vrot.lane.b32.xlu1 %v2690_v16, %s17541_s28 }
 0x15d   : > { %3210 = vrot.lane.b32.xlu0 %v3185_v25, %s17346_s4  ;;  %v11617_v25 = vsel %vm1087_vm6, %v11331_v9, %v11322_v6 }
 0x15e   : > { %3212 = vrot.lane.b32.xlu1 %v11379_v31, %s17346_s4 }
 0x15f   : > { %v11493_v28 = vpop.permute.xlu0 %1121 }
 0x161   : > { %2712 = vrot.lane.b32.xlu0 %v11369_v27, %s17541_s28 }
 0x162   : > { %3208 = vrot.lane.b32.xlu1 %v3184_v22, %s17346_s4 }
 0x163   : > { %v1126_v29 = vpop.permute.xlu1 %1125  ;;  %v11502_v30 = vpop.permute.xlu0 %1063 }
 0x165   : > { %2630 = vrot.lane.b32.xlu0 %v11399_v39, %s17336_s1 }
 0x166   : > { %2632 = vrot.lane.b32.xlu1 %v11344_v12, %s17336_s1 }
 0x167   : > { %v11504_v31 = vpop.permute.xlu1 %1067 }
 0x168   : > { %v11510_v27 = vpop.permute.xlu0 %1028 }
 0x169   : > { %10396 = vrot.lane.b32.xlu0 %v17341_v1, %s17336_s1 }
 0x16a   : > { %2624 = vrot.lane.b32.xlu1 %v11427_v51, %s17336_s1 }
 0x16b   : > { %v11512_v32 = vpop.permute.xlu1 %1024 }
 0x16c   : > { %v11522_v33 = vpop.permute.xlu0 %980 }
 0x16d   : > { %2626 = vrot.lane.b32.xlu0 %v11348_v17, %s17336_s1 }
 0x16e   : > { %2618 = vrot.lane.b32.xlu1 %v11418_v47, %s17336_s1 }
 0x16f   : > { %v11524_v34 = vpop.permute.xlu1 %984 }
 0x170   : > { %v11535_v38 = vpop.permute.xlu0 %943 }
 0x171   : > { %2620 = vrot.lane.b32.xlu0 %v11354_v19, %s17336_s1 }
 0x172   : > { %10401 = vrot.lane.b32.xlu1 %v17341_v1, %s17336_s1 }
 0x173   : > { %v11537_v40 = vpop.permute.xlu1 %939 }
 0x174   : > { %v11544_v43 = vpop.permute.xlu0 %882 }
 0x175   : > { %2612 = vrot.lane.b32.xlu0 %v11436_v55, %s17336_s1 }
 0x176   : > { %2614 = vrot.lane.b32.xlu1 %v11360_v21, %s17336_s1 }
 0x177   : > { %v11546_v44 = vpop.permute.xlu1 %878 }
 0x179   : > { %2558 = vrot.lane.b32.xlu0 %v2524_v36, %s17536_s22 }
 0x17a   : > { %2560 = vrot.lane.b32.xlu1 %v2525_v37, %s17536_s22  ;;  %v11685_v37 = vmul.f32 0.0, %v11479_v18 }
 0x17d   : > { %2556 = vrot.lane.b32.xlu0 %v2514_v41, %s17536_s22 }
 0x17e   : > { %2552 = vrot.lane.b32.xlu1 %v2521_v42, %s17536_s22 }
 0x181   : > { %2554 = vrot.lane.b32.xlu0 %v2522_v45, %s17536_s22 }
 0x182   : > { %2550 = vrot.lane.b32.xlu1 %v2514_v41, %s17536_s22 }
 0x183   : > { %v11552_v46 = vpop.permute.xlu0 %2832 }
 0x184   : > { %v11554_v48 = vpop.permute.xlu1 %2836 }
 0x185   : > { %2546 = vrot.lane.b32.xlu0 %v2518_v49, %s17536_s22 }
 0x186   : > { %2548 = vrot.lane.b32.xlu1 %v2519_v50, %s17536_s22 }
 0x187   : > { %v11561_v52 = vpop.permute.xlu0 %2830 }
 0x188   : > { %v11563_v53 = vpop.permute.xlu1 %2826 }
 0x189   : > { %2544 = vrot.lane.b32.xlu0 %v2514_v41, %s17536_s22 }
 0x18a   : > { %2540 = vrot.lane.b32.xlu1 %v2515_v54, %s17536_s22 }
 0x18b   : > { %v11568_v56 = vpop.permute.xlu0 %2820 }
 0x18c   : > { %v11570_v57 = vpop.permute.xlu1 %2824 }
 0x18d   : > { %2542 = vrot.lane.b32.xlu0 %v2516_v58, %s17536_s22  ;;  %v3016_v58 = vmul.f32 %v11474_v14, %v11427_v51 }
 0x18e   : > { %2538 = vrot.lane.b32.xlu1 %v2514_v41, %s17536_s22 }
 0x18f   : > { %v11576_v59 = vpop.permute.xlu0 %2818 }
 0x190   : > { %v11578_v60 = vpop.permute.xlu1 %2814 }
 0x191   : > { %3126 = vrot.lane.b32.xlu0 %v11344_v12, %s17792_s27 }
 0x192   : > { %10406 = vrot.lane.b32.xlu1 %v17341_v1, %s17792_s27 }
 0x193   : > { %v11584_v61 = vpop.permute.xlu0 %2730 }
 0x194   : > { %v11586_v62 = vpop.permute.xlu1 %2734 }
 0x195   : > { %3124 = vrot.lane.b32.xlu0 %v11399_v39, %s17792_s27 }
 0x196   : > { %3120 = vrot.lane.b32.xlu1 %v11348_v17, %s17792_s27 }
 0x197   : > { %v1124_v63 = vpop.permute.xlu0 %1123 }
 0x198   : > { %v11592_v0 = vpop.permute.xlu1 %3230  ;;  %v11596_v2 = vsel %vm867_vm5, %v11493_v28, %v1124_v63  ;;  %v11599_v7 = vsel %vm867_vm5, %v1124_v63, %v1126_v29 }
 0x199   : > { %1182 = vmatprep.subr.mxu0 %v11599_v7  ;;  %1330 = vmatprep.subr.mxu1 %v11599_v7 }
 0x19a   : > { %3118 = vrot.lane.b32.xlu0 %v11427_v51, %s17792_s27  ;;  %3114 = vrot.lane.b32.xlu1 %v11354_v19, %s17792_s27 }
 0x19b   : > { %1183 = vmatpush1.msra.mxu0 %v11596_v2  ;;  %1331 = vmatpush1.msra.mxu1 %v11596_v2  ;;  %v1066_v15 = vpop.permute.xlu0 %1065 }
 0x19c   : > { %v1027_v16 = vpop.permute.xlu1 %1026  ;;  %1184 = vmatprep.subr.mxu0 %v11610_v13  ;;  %1332 = vmatprep.subr.mxu1 %v11610_v13  ;;  %v11623_v22 = vsel %vm928_vm4, %v1066_v15, %v11504_v31  ;;  %v11627_v5 = vsel %vm928_vm4, %v11502_v30, %v1066_v15  ;;  %v11656_v30 = vsel %vm945_vm1, %v11474_v14, %v11479_v18 }
 0x19d   : > { %1185 = vmatpush1.msra.mxu0 %v11617_v25  ;;  %1333 = vmatpush1.msra.mxu1 %v11617_v25  ;;  %v11641_v28 = vsel %vm969_vm3, %v1027_v16, %v11510_v27  ;;  %v11647_v29 = vsel %vm969_vm3, %v11512_v32, %v1027_v16  ;;  %v11703_v18 = vsel %vm903_vm7, %v11339_v10, %v11329_v8 }
 0x19e   : > { %1186 = vmatprep.subr.mxu0 %v11623_v22  ;;  %1334 = vmatprep.subr.mxu1 %v11623_v22  ;;  %v3019_v10 = vmul.f32 %v11474_v14, %v11399_v39  ;;  %v3017_v45 = vmul.f32 %v11656_v30, %v11348_v17  ;;  %v3014_v16 = vmul.f32 %v11656_v30, %v11354_v19 }
 0x19f   : > { %10411 = vrot.lane.b32.xlu0 %v17341_v1, %s17792_s27  ;;  %3112 = vrot.lane.b32.xlu1 %v11418_v47, %s17792_s27  ;;  %v983_v9 = vpop.permute.xlu0 %982 }
 0x1a0   : > { %v11637_v6 = vpop.permute.xlu1 %3226  ;;  %1187 = vmatpush1.msra.mxu0 %v11627_v5  ;;  %1335 = vmatpush1.msra.mxu1 %v11627_v5  ;;  %v11668_v32 = vsel %vm986_vm2, %v983_v9, %v11524_v34  ;;  %v11678_v36 = vsel %vm986_vm2, %v11522_v33, %v983_v9  ;;  %v3020_v34 = vmul.f32 %v11656_v30, %v11344_v12 }
 0x1a1   : > { %1188 = vmatprep.subr.mxu0 %v11641_v28  ;;  %1336 = vmatprep.subr.mxu1 %v11641_v28 }
 0x1a2   : > { %1189 = vmatpush1.msra.mxu0 %v11647_v29  ;;  %1337 = vmatpush1.msra.mxu1 %v11647_v29 }
 0x1a3   : > { %1190 = vmatprep.subr.mxu0 %v11209_v23  ;;  %1338 = vmatprep.subr.mxu1 %v11209_v23  ;;  %v11660_v31 = vpop.permute.xlu0 %2834 }
 0x1a4   : > { %v942_v27 = vpop.permute.xlu1 %941  ;;  %3108 = vrot.lane.b32.xlu0 %v11360_v21, %s17792_s27  ;;  %3106 = vrot.lane.b32.xlu1 %v11436_v55, %s17792_s27 }
 0x1a5   : > { %1191 = vmatpush1.msra.mxu0 %v11216_v24  ;;  %1339 = vmatpush1.msra.mxu1 %v11216_v24  ;;  %v11674_v35 = vsel %vm945_vm1, %v942_v27, %v11535_v38  ;;  %v11689_v41 = vsel %vm945_vm1, %v11537_v40, %v942_v27  ;;  %v11708_v40 = vsel %vm903_vm7, %v11329_v8, %v11341_v11 }
 0x1a6   : > { %1192 = vmatprep.subr.mxu0 %v11668_v32  ;;  %1340 = vmatprep.subr.mxu1 %v11668_v32 }
 0x1a7   : > { %1193 = vmatpush1.msra.mxu0 %v11678_v36  ;;  %1341 = vmatpush1.msra.mxu1 %v11678_v36  ;;  %v11693_v33 = vpop.permute.xlu0 %2822 }
 0x1a8   : > { %v881_v38 = vpop.permute.xlu1 %880  ;;  %3054 = vrot.lane.b32.xlu0 %v3020_v34, %s17402_s29  ;;  %1194 = vmatprep.subr.mxu0 %v11674_v35  ;;  %v1134_v34 = vld [vmem:[%s17793_s9 + $0x8] sm:$0xff] }
 0x1a9   : > { %1342 = vmatprep.subr.mxu1 %v11674_v35  ;;  %3056 = vrot.lane.b32.xlu1 %v11685_v37, %s17402_s29  ;;  %v11716_v42 = vsel %vm884_vm0, %v881_v38, %v11544_v43  ;;  %v11728_v49 = vsel %vm884_vm0, %v11546_v44, %v881_v38  ;;  %v1133_v43 = vld [vmem:[%s17793_s9] sm:$0xff]  ;;  %v1283_v38 = vld [vmem:[%s17793_s9 + $0x28] sm:$0xff] }
 0x1aa   : > { %1195 = vmatpush1.msra.mxu0 %v11689_v41  ;;  %1343 = vmatpush1.msra.mxu1 %v11689_v41  ;;  %v1282_v44 = vld [vmem:[%s17793_s9 + $0x20] sm:$0xff] }
 0x1ab   : > { %1196 = vmatprep.subr.mxu0 %v11708_v40  ;;  %1344 = vmatprep.subr.mxu1 %v11708_v40  ;;  %v11722_v8 = vpop.permute.xlu0 %2732 }
 0x1ac   : > { %v11724_v11 = vpop.permute.xlu1 %2828  ;;  %1197 = vmatpush1.msra.mxu0 %v11703_v18  ;;  %1345 = vmatpush1.msra.mxu1 %v11703_v18 }
 0x1ad   : > { %3052 = vrot.lane.b32.xlu0 %v3019_v10, %s17402_s29  ;;  %3048 = vrot.lane.b32.xlu1 %v3017_v45, %s17402_s29 }
 0x1ae   : > { %1198 = vmatprep.subr.mxu0 %v11716_v42  ;;  %1346 = vmatprep.subr.mxu1 %v11716_v42 }
 0x1af   : > { %1199 = vmatpush1.msra.mxu0 %v11728_v49  ;;  %1347 = vmatpush1.msra.mxu1 %v11728_v49  ;;  %v11744_v50 = vpop.permute.xlu0 %3228 }
 0x1b0   : > { %v11746_v54 = vpop.permute.xlu1 %2816  ;;  %1478 = vmatprep.subr.mxu0 %v11599_v7  ;;  %1626 = vmatprep.subr.mxu1 %v11599_v7 }
 0x1b1   : > { %10101 = vmatmul.mubr.msk.f32.vlgmr.msra.gmra.mxu0 %vm1155_vm8, %v1133_v43  ;;  %10105 = vmatmul.mubr.msk.f32.vlgmr.msra.gmra.mxu1 %vm1155_vm8, %v1282_v44  ;;  %v3013_v43 = vmul.f32 %v11474_v14, %v11418_v47  ;;  %v3011_v44 = vmul.f32 %v11656_v30, %v11360_v21 }
 0x1b2   : > { %1479 = vmatpush1.msra.mxu0 %v11596_v2  ;;  %1627 = vmatpush1.msra.mxu1 %v11596_v2 }
 0x1b3   : > { %3050 = vrot.lane.b32.xlu0 %v11685_v37, %s17402_s29  ;;  %3046 = vrot.lane.b32.xlu1 %v3016_v58, %s17402_s29  ;;  %v11759_v63 = vpop.permute.xlu0 %2726  ;;  %v1135_v58 = vld [vmem:[%s17793_s9 + $0x10] sm:$0xff] }
 0x1b4   : > { %v11761_v15 = vpop.permute.xlu1 %2728  ;;  %1480 = vmatprep.subr.mxu0 %v11610_v13  ;;  %1628 = vmatprep.subr.mxu1 %v11610_v13 }
 0x1b5   : > { %1481 = vmatpush1.msra.mxu0 %v11617_v25  ;;  %1629 = vmatpush1.msra.mxu1 %v11617_v25 }
 0x1b6   : > { %1482 = vmatprep.subr.mxu0 %v11623_v22  ;;  %1630 = vmatprep.subr.mxu1 %v11623_v22 }
 0x1b7   : > { %1483 = vmatpush1.msra.mxu0 %v11627_v5  ;;  %1631 = vmatpush1.msra.mxu1 %v11627_v5  ;;  %v11773_v9 = vpop.permute.xlu0 %3222 }
 0x1b8   : > { %17794 = vst [vmem:[#allocation26_spill] sm:$0xff] %v11773_v9  ;;  %v11775_v27 = vpop.permute.xlu1 %3224  ;;  %3042 = vrot.lane.b32.xlu0 %v3014_v16, %s17402_s29  ;;  %3044 = vrot.lane.b32.xlu1 %v11685_v37, %s17402_s29  ;;  %v1284_v16 = vld [vmem:[%s17793_s9 + $0x30] sm:$0xff] }
 0x1b9   : > { %17795 = vst [vmem:[#allocation27_spill] sm:$0xff] %v11775_v27  ;;  %1238 = vmatprep.mubr.f32.mxu0 %v17341_v1  ;;  %1386 = vmatprep.mubr.f32.mxu1 %v17341_v1 }
 0x1ba   : > { %1484 = vmatprep.subr.mxu0 %v11641_v28  ;;  %1632 = vmatprep.subr.mxu1 %v11641_v28 }
 0x1bb   : > { %10102 = vmatmul.mubr.msk.f32.gmra.mxu0 %vm1155_vm8, %v1134_v34  ;;  %10106 = vmatmul.mubr.msk.f32.gmra.mxu1 %vm1155_vm8, %v1283_v38  ;;  %v11792_v10 = vpop.permute.xlu0 %2724 }
 0x1bc   : > { %v11794_v45 = vpop.permute.xlu1 %3220  ;;  %1485 = vmatpush1.msra.mxu0 %v11647_v29  ;;  %1633 = vmatpush1.msra.mxu1 %v11647_v29 }
 0x1bd   : > { %17796 = vst [vmem:[#allocation28_spill] sm:$0xff] %v11794_v45  ;;  %1486 = vmatprep.subr.mxu0 %v11209_v23  ;;  %1634 = vmatprep.subr.mxu1 %v11209_v23  ;;  %v2917_v45 = vmul.f32 %v11483_v20, %v11399_v39  ;;  %v1579_v39 = vld [vmem:[%s17793_s9 + $0x68] sm:$0xff] }
 0x1be   : > { %1487 = vmatpush1.msra.mxu0 %v11216_v24  ;;  %1635 = vmatpush1.msra.mxu1 %v11216_v24 }
 0x1bf   : > { %3040 = vrot.lane.b32.xlu0 %v3013_v43, %s17402_s29  ;;  %3036 = vrot.lane.b32.xlu1 %v3011_v44, %s17402_s29  ;;  %v11814_v34 = vpop.permute.xlu0 %2720  ;;  %v3010_v44 = vmul.f32 %v11474_v14, %v11436_v55 }
 0x1c0   : > { %v11816_v38 = vpop.permute.xlu1 %2722  ;;  %1244 = vmatprep.mubr.f32.mxu0 %v17341_v1  ;;  %1392 = vmatprep.mubr.f32.mxu1 %v17341_v1 }
 0x1c1   : > { %1488 = vmatprep.subr.mxu0 %v11668_v32  ;;  %1636 = vmatprep.subr.mxu1 %v11668_v32 }
 0x1c2   : > { %10103 = vmatmul.mubr.msk.f32.gmra.mxu0 %vm1155_vm8, %v1135_v58  ;;  %10107 = vmatmul.mubr.msk.f32.gmra.mxu1 %vm1155_vm8, %v1284_v16  ;;  %v1136_v58 = vld [vmem:[%s17793_s9 + $0x18] sm:$0xff] }
 0x1c3   : > { %1489 = vmatpush1.msra.mxu0 %v11678_v36  ;;  %1637 = vmatpush1.msra.mxu1 %v11678_v36  ;;  %v11826_v30 = vpop.permute.xlu0 %3216  ;;  %v1285_v16 = vld [vmem:[%s17793_s9 + $0x38] sm:$0xff] }
 0x1c4   : > { %17797 = vst [vmem:[#allocation29_spill] sm:$0xff] %v11826_v30  ;;  %v11828_v43 = vpop.permute.xlu1 %3218  ;;  %1490 = vmatprep.subr.mxu0 %v11674_v35  ;;  %1638 = vmatprep.subr.mxu1 %v11674_v35 }
 0x1c5   : > { %17798 = vst [vmem:[#allocation30_spill] sm:$0xff] %v11828_v43  ;;  %1491 = vmatpush1.msra.mxu0 %v11689_v41  ;;  %1639 = vmatpush1.msra.mxu1 %v11689_v41 }
 0x1c6   : > { %3038 = vrot.lane.b32.xlu0 %v11685_v37, %s17402_s29  ;;  %3034 = vrot.lane.b32.xlu1 %v3010_v44, %s17402_s29  ;;  %v11854_v37 = vsel %vm986_vm2, %v11483_v20, %v11489_v26  ;;  %v11863_v44 = vmul.f32 0.0, %v11489_v26  ;;  %v1430_v26 = vld [vmem:[%s17793_s9 + $0x40] sm:$0xff] }
 0x1c7   : > { %1250 = vmatprep.mubr.f32.mxu0 %v17341_v1  ;;  %1398 = vmatprep.mubr.f32.mxu1 %v17341_v1  ;;  %v11847_v14 = vpop.permute.xlu0 %2718  ;;  %v2918_v1 = vmul.f32 %v11854_v37, %v11344_v12  ;;  %v1578_v12 = vld [vmem:[%s17793_s9 + $0x60] sm:$0xff]  ;;  %v2909_v27 = vmul.f32 %v11854_v37, %v11360_v21 }
 0x1c8   : > { %v11849_v30 = vpop.permute.xlu1 %3214  ;;  %1492 = vmatprep.subr.mxu0 %v11708_v40  ;;  %1640 = vmatprep.subr.mxu1 %v11708_v40  ;;  %v1726_v21 = vld [vmem:[%s17793_s9 + $0x80] sm:$0xff] }
 0x1c9   : > { %17799 = vst [vmem:[#allocation31_spill] sm:$0xff] %v11849_v30  ;;  %10104 = vmatmul.mubr.msk.f32.gmra.mxu0 %vm1155_vm8, %v1136_v58  ;;  %10108 = vmatmul.mubr.msk.f32.gmra.mxu1 %vm1155_vm8, %v1285_v16  ;;  %v17800_v58 = vmov 0.0  }
 0x1ca   : > { %1493 = vmatpush1.msra.mxu0 %v11703_v18  ;;  %1641 = vmatpush1.msra.mxu1 %v11703_v18 }
 0x1cb   : > { %1494 = vmatprep.subr.mxu0 %v11716_v42  ;;  %1642 = vmatprep.subr.mxu1 %v11716_v42  ;;  %v11869_v30 = vpop.permute.xlu0 %2714 }
 0x1cc   : > { %v11871_v43 = vpop.permute.xlu1 %2716  ;;  %1495 = vmatpush1.msra.mxu0 %v11728_v49  ;;  %1643 = vmatpush1.msra.mxu1 %v11728_v49 }
 0x1cd   : > { %2952 = vrot.lane.b32.xlu0 %v2918_v1, %s17398_s3  ;;  %2954 = vrot.lane.b32.xlu1 %v11863_v44, %s17398_s3 }
 0x1ce   : > { %1528 = vmatprep.mubr.f32.mxu0 %v17800_v58  ;;  %1676 = vmatprep.mubr.f32.mxu1 %v17800_v58 }
 0x1cf   : > { %1774 = vmatprep.subr.mxu0 %v11599_v7  ;;  %1922 = vmatprep.subr.mxu1 %v11599_v7  ;;  %v11888_v1 = vpop.permute.xlu0 %3210 }
 0x1d0   : > { %17801 = vst [vmem:[#allocation32_spill] sm:$0xff] %v11888_v1  ;;  %v11890_v16 = vpop.permute.xlu1 %3212  ;;  %10109 = vmatmul.mubr.msk.f32.vlgmr.msra.gmra.mxu0 %vm1155_vm8, %v1430_v26  ;;  %10113 = vmatmul.mubr.msk.f32.vlgmr.msra.gmra.mxu1 %vm1155_vm8, %v1578_v12  ;;  %v2915_v1 = vmul.f32 %v11854_v37, %v11348_v17  ;;  %v1431_v17 = vld [vmem:[%s17793_s9 + $0x48] sm:$0xff] }
 0x1d1   : > { %17802 = vst [vmem:[#allocation33_spill] sm:$0xff] %v11890_v16  ;;  %1775 = vmatpush1.msra.mxu0 %v11596_v2  ;;  %1923 = vmatpush1.msra.mxu1 %v11596_v2 }
 0x1d2   : > { %1776 = vmatprep.subr.mxu0 %v11610_v13  ;;  %1924 = vmatprep.subr.mxu1 %v11610_v13 }
 0x1d3   : > { %1777 = vmatpush1.msra.mxu0 %v11617_v25  ;;  %1925 = vmatpush1.msra.mxu1 %v11617_v25  ;;  %v11904_v26 = vpop.permute.xlu0 %2712 }
 0x1d4   : > { %v11906_v12 = vpop.permute.xlu1 %3208  ;;  %2950 = vrot.lane.b32.xlu0 %v2917_v45, %s17398_s3  ;;  %2946 = vrot.lane.b32.xlu1 %v2915_v1, %s17398_s3 }
 0x1d5   : > { %17803 = vst [vmem:[#allocation34_spill] sm:$0xff] %v11906_v12  ;;  %1778 = vmatprep.subr.mxu0 %v11623_v22  ;;  %1926 = vmatprep.subr.mxu1 %v11623_v22  ;;  %v2914_v12 = vmul.f32 %v11483_v20, %v11427_v51  ;;  %v1432_v51 = vld [vmem:[%s17793_s9 + $0x50] sm:$0xff] }
 0x1d6   : > { %1779 = vmatpush1.msra.mxu0 %v11627_v5  ;;  %1927 = vmatpush1.msra.mxu1 %v11627_v5 }
 0x1d7   : > { %1534 = vmatprep.mubr.f32.mxu0 %v17800_v58  ;;  %1682 = vmatprep.mubr.f32.mxu1 %v17800_v58  ;;  %v11922_v45 = vpop.permute.xlu0 %2630 }
 0x1d8   : > { %v11924_v1 = vpop.permute.xlu1 %2632  ;;  %1780 = vmatprep.subr.mxu0 %v11641_v28  ;;  %1928 = vmatprep.subr.mxu1 %v11641_v28 }
 0x1d9   : > { %10110 = vmatmul.mubr.msk.f32.gmra.mxu0 %vm1155_vm8, %v1431_v17  ;;  %10114 = vmatmul.mubr.msk.f32.gmra.mxu1 %vm1155_vm8, %v1579_v39 }
 0x1da   : > { %1781 = vmatpush1.msra.mxu0 %v11647_v29  ;;  %1929 = vmatpush1.msra.mxu1 %v11647_v29 }
 0x1db   : > { %2948 = vrot.lane.b32.xlu0 %v11863_v44, %s17398_s3  ;;  %2944 = vrot.lane.b32.xlu1 %v2914_v12, %s17398_s3  ;;  %v11937_v16 = vpop.permute.xlu0 %10396  ;;  %v1580_v12 = vld [vmem:[%s17793_s9 + $0x70] sm:$0xff] }
 0x1dc   : > { %v11939_v9 = vpop.permute.xlu1 %2624  ;;  %1782 = vmatprep.subr.mxu0 %v11209_v23  ;;  %1930 = vmatprep.subr.mxu1 %v11209_v23 }
 0x1dd   : > { %1783 = vmatpush1.msra.mxu0 %v11216_v24  ;;  %1931 = vmatpush1.msra.mxu1 %v11216_v24  ;;  %v2912_v24 = vmul.f32 %v11854_v37, %v11354_v19  ;;  %v1433_v19 = vld [vmem:[%s17793_s9 + $0x58] sm:$0xff] }
 0x1de   : > { %1540 = vmatprep.mubr.f32.mxu0 %v17800_v58  ;;  %1688 = vmatprep.mubr.f32.mxu1 %v17800_v58 }
 0x1df   : > { %1784 = vmatprep.subr.mxu0 %v11668_v32  ;;  %1932 = vmatprep.subr.mxu1 %v11668_v32  ;;  %v11955_v23 = vpop.permute.xlu0 %2626 }
 0x1e0   : > { %v11957_v17 = vpop.permute.xlu1 %2618  ;;  %10111 = vmatmul.mubr.msk.f32.gmra.mxu0 %vm1155_vm8, %v1432_v51  ;;  %10115 = vmatmul.mubr.msk.f32.gmra.mxu1 %vm1155_vm8, %v1580_v12  ;;  %v1581_v12 = vld [vmem:[%s17793_s9 + $0x78] sm:$0xff] }
 0x1e1   : > { %17804 = vst [vmem:[#allocation35_spill] sm:$0xff] %v11957_v17  ;;  %1785 = vmatpush1.msra.mxu0 %v11678_v36  ;;  %1933 = vmatpush1.msra.mxu1 %v11678_v36 }
 0x1e2   : > { %2940 = vrot.lane.b32.xlu0 %v2912_v24, %s17398_s3  ;;  %2942 = vrot.lane.b32.xlu1 %v11863_v44, %s17398_s3  ;;  %v2911_v24 = vmul.f32 %v11483_v20, %v11418_v47  ;;  %v1874_v47 = vld [vmem:[%s17793_s9 + $0xa0] sm:$0xff] }
 0x1e3   : > { %1786 = vmatprep.subr.mxu0 %v11674_v35  ;;  %1934 = vmatprep.subr.mxu1 %v11674_v35  ;;  %v11970_v39 = vpop.permute.xlu0 %2620 }
 0x1e4   : > { %17805 = vst [vmem:[#allocation36_spill] sm:$0xff] %v11970_v39  ;;  %v11972_v51 = vpop.permute.xlu1 %10401  ;;  %1787 = vmatpush1.msra.mxu0 %v11689_v41  ;;  %1935 = vmatpush1.msra.mxu1 %v11689_v41 }
 0x1e5   : > { %1546 = vmatprep.mubr.f32.mxu0 %v17800_v58  ;;  %1694 = vmatprep.mubr.f32.mxu1 %v17800_v58 }
 0x1e6   : > { %1788 = vmatprep.subr.mxu0 %v11708_v40  ;;  %1936 = vmatprep.subr.mxu1 %v11708_v40 }
 0x1e7   : > { %10112 = vmatmul.mubr.msk.f32.gmra.mxu0 %vm1155_vm8, %v1433_v19  ;;  %10116 = vmatmul.mubr.msk.f32.gmra.mxu1 %vm1155_vm8, %v1581_v12  ;;  %v11992_v17 = vpop.permute.xlu0 %2612  ;;  %v12028_v12 = vsel %vm986_vm2, %v11552_v46, %v11660_v31 }
 0x1e8   : > { %v11994_v39 = vpop.permute.xlu1 %2614  ;;  %1789 = vmatpush1.msra.mxu0 %v11703_v18  ;;  %1937 = vmatpush1.msra.mxu1 %v11703_v18 }
 0x1e9   : > { %2938 = vrot.lane.b32.xlu0 %v2911_v24, %s17398_s3  ;;  %2934 = vrot.lane.b32.xlu1 %v2909_v27, %s17398_s3  ;;  %v12019_v27 = vsel %vm986_vm2, %v11660_v31, %v11554_v48  ;;  %v2908_v24 = vmul.f32 %v11483_v20, %v11436_v55  ;;  %v4932_v48 = vld [vmem:[%s17789_s5] ss:$4 sm:$0x3]  ;;  %v12047_v55 = vsel %vm986_vm2, %v11724_v11, %v11561_v52 }
 0x1ea   : > { %1790 = vmatprep.subr.mxu0 %v11716_v42  ;;  %1938 = vmatprep.subr.mxu1 %v11716_v42  ;;  %v12054_v20 = vsel %vm986_vm2, %v11563_v53, %v11724_v11  ;;  %v4941_v46 = vrot.slane %v4932_v48, %v11154_v4  ;;  %v12062_v52 = vsel %vm986_vm2, %v11693_v33, %v11570_v57  ;;  %v1727_v53 = vld [vmem:[%s17793_s9 + $0x88] sm:$0xff] }
 0x1eb   : > { %1791 = vmatpush1.msra.mxu0 %v11728_v49  ;;  %1939 = vmatpush1.msra.mxu1 %v11728_v49  ;;  %v12010_v37 = vpop.permute.xlu0 %2558  ;;  %v12079_v57 = vsel %vm986_vm2, %v11568_v56, %v11693_v33  ;;  %v12095_v56 = vsel %vm986_vm2, %v11578_v60, %v11746_v54  ;;  %v10691_v33 = vld [vmem:[%s11204_s23 + $0x8] sm:$0xff]  ;;  %v10692_v60 = vld [vmem:[%s11204_s23] sm:$0xff]  ;;  %s17827_s23 = smov 1  }
 0x1ec   : > { %v12012_v19 = vpop.permute.xlu1 %2560  ;;  %1824 = vmatprep.mubr.f32.mxu0 %v17800_v58  ;;  %1972 = vmatprep.mubr.f32.mxu1 %v17800_v58 }
 0x1ed   : > { %2070 = vmatprep.subr.mxu0 %v11599_v7  ;;  %3353 = vmatprep.subr.mxu1 %v12019_v27 }
 0x1ee   : > { %10117 = vmatmul.mubr.msk.f32.vlgmr.msra.gmra.mxu0 %vm1155_vm8, %v1726_v21  ;;  %10121 = vmatmul.mubr.msk.f32.vlgmr.msra.gmra.mxu1 %vm1155_vm8, %v1874_v47 }
 0x1ef   : > { %2071 = vmatpush1.msra.mxu0 %v11596_v2  ;;  %3354 = vmatpush1.msra.mxu1 %v12028_v12  ;;  %v12037_v7 = vpop.permute.xlu0 %2556  ;;  %v4937_v2 = vrot.slane %v4932_v48, %v11152_v3 }
 0x1f0   : > { %v12039_v21 = vpop.permute.xlu1 %2552  ;;  %2936 = vrot.lane.b32.xlu0 %v11863_v44, %s17398_s3  ;;  %2932 = vrot.lane.b32.xlu1 %v2908_v24, %s17398_s3  ;;  %v12134_v44 = vsel %vm945_vm1, %v11792_v10, %v11759_v63  ;;  %v12165_v10 = vsel %vm945_vm1, %v11869_v30, %v11871_v43 }
 0x1f1   : > { %2072 = vmatprep.subr.mxu0 %v11610_v13  ;;  %3355 = vmatprep.subr.mxu1 %v12047_v55 }
 0x1f2   : > { %2073 = vmatpush1.msra.mxu0 %v11617_v25  ;;  %3356 = vmatpush1.msra.mxu1 %v12054_v20 }
 0x1f3   : > { %2074 = vmatprep.subr.mxu0 %v11623_v22  ;;  %3357 = vmatprep.subr.mxu1 %v12062_v52  ;;  %v12070_v13 = vpop.permute.xlu0 %2554  ;;  %v12088_v22 = vsel %vm986_vm2, %v11746_v54, %v11576_v59  ;;  %v12106_v59 = vsel %vm945_vm1, %v11722_v8, %v11586_v62  ;;  %v12123_v62 = vsel %vm945_vm1, %v11759_v63, %v11761_v15  ;;  %v10398_v63 = vunpack.i.l.bf16 %v11937_v16 }
 0x1f4   : > { %v12072_v25 = vpop.permute.xlu1 %2550  ;;  %1830 = vmatprep.mubr.f32.mxu0 %v17800_v58  ;;  %2075 = vmatpush1.msra.mxu0 %v11627_v5 }
 0x1f5   : > { %3358 = vmatpush1.msra.mxu1 %v12079_v57  ;;  %4944 = vrot.lane.b32.xlu0 %v4941_v46, %s17398_s3  ;;  %v12189_v43 = vsel %vm903_vm7, %v10398_v63, %v11922_v45  ;;  %v17810_v46 = vld [vmem:[#allocation27_spill] sm:$0xff] }
 0x1f6   : > { %4942 = vrot.lane.b32.xlu1 %v4937_v2, %s17398_s3  ;;  %10118 = vmatmul.mubr.msk.f32.gmra.mxu0 %vm1155_vm8, %v1727_v53  ;;  %v17811_v2 = vld [vmem:[#allocation26_spill] sm:$0xff]  ;;  %v17818_v63 = vld [vmem:[#allocation31_spill] sm:$0xff] }
 0x1f7   : > { %2076 = vmatprep.subr.mxu0 %v11641_v28  ;;  %3359 = vmatprep.subr.mxu1 %v12088_v22  ;;  %v12097_v5 = vpop.permute.xlu0 %2546  ;;  %v1728_v28 = vld [vmem:[%s17793_s9 + $0x90] sm:$0xff]  ;;  %v12245_v53 = vsel %vm867_vm5, %v17811_v2, %v17810_v46 }
 0x1f8   : > { %v12099_v31 = vpop.permute.xlu1 %2548  ;;  %2077 = vmatpush1.msra.mxu0 %v11647_v29  ;;  %3360 = vmatpush1.msra.mxu1 %v12095_v56  ;;  %v12118_v29 = vsel %vm945_vm1, %v11584_v61, %v11722_v8  ;;  %v12141_v61 = vsel %vm945_vm1, %v11814_v34, %v11816_v38  ;;  %v1729_v8 = vld [vmem:[%s17793_s9 + $0x98] sm:$0xff]  ;;  %v10399_v38 = vunpack.i.h.bf16 %v11937_v16 }
 0x1f9   : > { %2078 = vmatprep.subr.mxu0 %v10691_v33  ;;  %3361 = vmatprep.subr.mxu1 %v12106_v59  ;;  %v17815_v33 = vld [vmem:[#allocation30_spill] sm:$0xff] }
 0x1fa   : > { %1836 = vmatprep.mubr.f32.mxu0 %v17800_v58  ;;  %2079 = vmatpush1.msra.mxu0 %v10692_v60  ;;  %v17816_v60 = vld [vmem:[#allocation29_spill] sm:$0xff] }
 0x1fb   : > { %3362 = vmatpush1.msra.mxu1 %v12118_v29  ;;  %10119 = vmatmul.mubr.msk.f32.gmra.mxu0 %vm1155_vm8, %v1728_v28  ;;  %v12127_v11 = vpop.permute.xlu0 %2544 }
 0x1fc   : > { %v12129_v54 = vpop.permute.xlu1 %2540  ;;  %2080 = vmatprep.subr.mxu0 %v11668_v32  ;;  %3363 = vmatprep.subr.mxu1 %v12123_v62  ;;  %v12154_v32 = vsel %vm945_vm1, %v11847_v14, %v11814_v34  ;;  %v12182_v34 = vsel %vm903_vm7, %v11922_v45, %v11924_v1  ;;  %v2023_v45 = vld [vmem:[%s17793_s9 + $0xc8] sm:$0xff]  ;;  %v17807_v1 = vld [vmem:[#allocation36_spill] sm:$0xff] }
 0x1fd   : > { %2081 = vmatpush1.msra.mxu0 %v11678_v36  ;;  %3364 = vmatpush1.msra.mxu1 %v12134_v44 }
 0x1fe   : > { %2082 = vmatprep.subr.mxu0 %v11674_v35  ;;  %3365 = vmatprep.subr.mxu1 %v12141_v61  ;;  %v10148_v35 = vld [vmem:[%s17789_s5 + $0x2] ss:$4 sm:$0x3] }
 0x1ff   : > { %1842 = vmatprep.mubr.f32.mxu0 %v17800_v58  ;;  %2083 = vmatpush1.msra.mxu0 %v11689_v41  ;;  %v12158_v36 = vpop.permute.xlu0 %2542  ;;  %v12175_v41 = vsel %vm945_vm1, %v11904_v26, %v11869_v30  ;;  %v12197_v30 = vsel %vm903_vm7, %v11939_v9, %v11955_v23  ;;  %v10403_v26 = vunpack.i.l.bf16 %v11972_v51  ;;  %v17808_v23 = vld [vmem:[#allocation35_spill] sm:$0xff] }
 0x200   : > { %v12160_v15 = vpop.permute.xlu1 %2538  ;;  %3366 = vmatpush1.msra.mxu1 %v12154_v32  ;;  %10120 = vmatmul.mubr.msk.f32.gmra.mxu0 %vm1155_vm8, %v1729_v8  ;;  %v12235_v47 = vsel %vm903_vm7, %v17808_v23, %v17807_v1  ;;  %17812 = vst [vmem:[#allocation35_spill] sm:$0xff] %v12245_v53  ;;  %v12263_v8 = vsel %vm867_vm5, %v17816_v60, %v17815_v33 }
 0x201   : > { %2084 = vmatprep.subr.mxu0 %v11708_v40  ;;  %3367 = vmatprep.subr.mxu1 %v12165_v10  ;;  %v2022_v40 = vld [vmem:[%s17793_s9 + $0xc0] sm:$0xff]  ;;  %17809 = vst [vmem:[#allocation36_spill] sm:$0xff] %v12235_v47  ;;  %v12258_v28 = vsel %vm903_vm7, %v10403_v26, %v17808_v23  ;;  %17817 = vst [vmem:[#allocation26_spill] sm:$0xff] %v12263_v8  ;;  %v17820_v26 = vld [vmem:[#allocation33_spill] sm:$0xff] }
 0x202   : > { %2085 = vmatpush1.msra.mxu0 %v11703_v18  ;;  %3368 = vmatpush1.msra.mxu1 %v12175_v41  ;;  %v4835_v18 = vrot.slane %v10148_v35, %v11152_v3 }
 0x203   : > { %2086 = vmatprep.subr.mxu0 %v11716_v42  ;;  %3369 = vmatprep.subr.mxu1 %v12182_v34  ;;  %v12202_v14 = vpop.permute.xlu0 %3126  ;;  %v12213_v42 = vsel %vm867_vm5, %v11744_v50, %v11592_v0  ;;  %v12230_v0 = vsel %vm867_vm5, %v11637_v6, %v11744_v50  ;;  %v17813_v6 = vld [vmem:[#allocation28_spill] sm:$0xff] }
 0x204   : > { %v12204_v16 = vpop.permute.xlu1 %10406  ;;  %2087 = vmatpush1.msra.mxu0 %v11728_v49  ;;  %2120 = vmatprep.mubr.f32.mxu0 %v17800_v58  ;;  %v12220_v49 = vsel %vm903_vm7, %v10399_v38, %v11939_v9  ;;  %17806 = vst [vmem:[#allocation37_spill] sm:$0xff] %v12230_v0  ;;  %v4839_v9 = vrot.slane %v10148_v35, %v11154_v4  ;;  %v10404_v38 = vunpack.i.h.bf16 %v11972_v51  ;;  %v2024_v51 = vld [vmem:[%s17793_s9 + $0xd0] sm:$0xff] }
 0x205   : > { %3370 = vmatpush1.msra.mxu1 %v12189_v43  ;;  %10125 = vmatmul.mubr.msk.f32.vlgmr.msra.gmra.mxu0 %vm1155_vm8, %v2022_v40  ;;  %v12252_v50 = vsel %vm867_vm5, %v17813_v6, %v17811_v2  ;;  %v12270_v35 = vsel %vm867_vm5, %v17818_v63, %v17816_v60  ;;  %v12278_v40 = vsel %vm903_vm7, %v11992_v17, %v11994_v39 }
 0x206   : > { %3371 = vmatprep.subr.mxu1 %v12197_v30  ;;  %3466 = vmatprep.subr.mxu0 %v12213_v42  ;;  %17814 = vst [vmem:[#allocation27_spill] sm:$0xff] %v12252_v50  ;;  %17819 = vst [vmem:[#allocation28_spill] sm:$0xff] %v12270_v35  ;;  %v12308_v2 = vsel %vm903_vm7, %v10404_v38, %v11992_v17  ;;  %v12315_v6 = vsel %vm884_vm0, %v12010_v37, %v12012_v19  ;;  %v2025_v19 = vld [vmem:[%s17793_s9 + $0xd8] sm:$0xff] }
 0x207   : > { %4840 = vrot.lane.b32.xlu0 %v4835_v18, %s17402_s29  ;;  %3372 = vmatpush1.msra.mxu1 %v12220_v49  ;;  %v12238_v24 = vpop.permute.xlu0 %3124  ;;  %v12283_v18 = vld [vmem:[%s17789_s5] ss:$4 sm:$0x3]  ;;  %v12324_v17 = vsel %vm884_vm0, %v12037_v7, %v12010_v37  ;;  %v12334_v60 = vsel %vm884_vm0, %v12039_v21, %v12070_v13  ;;  %v12340_v37 = vsel %vm884_vm0, %v12072_v25, %v12039_v21  ;;  %v1875_v13 = vld [vmem:[%s17793_s9 + $0xa8] sm:$0xff]  ;;  %v10408_v25 = vunpack.i.l.bf16 %v12204_v16 }
 0x208   : > { %v12240_v48 = vpop.permute.xlu1 %3120  ;;  %3467 = vmatpush1.msra.mxu0 %v12230_v0  ;;  %2126 = vmatprep.mubr.f32.mxu0 %v17800_v58  ;;  %v4661_v33 = vrot.slane %v12283_v18, %v11152_v3  ;;  %v12347_v38 = vsel %vm884_vm0, %v12097_v5, %v12099_v31  ;;  %v12358_v21 = vsel %vm884_vm0, %v12127_v11, %v12097_v5  ;;  %v3258_v31 = vld [vmem:[%s17825_s6 + $0x10] sm:$0xff] }
 0x209   : > { %3468 = vmatprep.subr.mxu0 %v12245_v53  ;;  %10126 = vmatmul.mubr.msk.f32.gmra.mxu0 %vm1155_vm8, %v2023_v45  ;;  %v17821_v45 = vld [vmem:[#allocation32_spill] sm:$0xff]  ;;  %v12375_v5 = vsel %vm884_vm0, %v12160_v15, %v12129_v54  ;;  %v1876_v11 = vld [vmem:[%s17793_s9 + $0xb0] sm:$0xff]  ;;  %v10409_v15 = vunpack.i.h.bf16 %v12204_v16 }
 0x20a   : > { %3469 = vmatpush1.msra.mxu0 %v12252_v50  ;;  %3373 = vmatprep.subr.mxu1 %v12235_v47  ;;  %v12288_v1 = vsel %vm867_vm5, %v17821_v45, %v17820_v26  ;;  %v12369_v26 = vsel %vm884_vm0, %v12129_v54, %v12158_v36  ;;  %v12387_v54 = vsel %vm1087_vm6, %v12202_v14, %v10408_v25 }
 0x20b   : > { %3470 = vmatprep.subr.mxu0 %v12263_v8  ;;  %4842 = vrot.lane.b32.xlu0 %v4839_v9, %s17402_s29  ;;  %17822 = vst [vmem:[#allocation30_spill] sm:$0xff] %v12288_v1  ;;  %v17823_v9 = vld [vmem:[#allocation34_spill] sm:$0xff]  ;;  %v12408_v16 = vsel %vm1087_vm6, %v12240_v48, %v10409_v15 }
 0x20c   : > { %3471 = vmatpush1.msra.mxu0 %v12270_v35  ;;  %3374 = vmatpush1.msra.mxu1 %v12258_v28  ;;  %v12295_v39 = vpop.permute.xlu0 %3118  ;;  %v12297_v23 = vpop.permute.xlu1 %3114  ;;  %v12302_v46 = vsel %vm867_vm5, %v17823_v9, %v17821_v45  ;;  %v1877_v9 = vld [vmem:[%s17793_s9 + $0xb8] sm:$0xff] }
 0x20d   : > { %17824 = vst [vmem:[#allocation29_spill] sm:$0xff] %v12302_v46  ;;  %3472 = vmatprep.subr.mxu0 %v12288_v1  ;;  %2132 = vmatprep.mubr.f32.mxu0 %v17800_v58 }
 0x20e   : > { %3473 = vmatpush1.msra.mxu0 %v12302_v46  ;;  %3375 = vmatprep.subr.mxu1 %v12278_v40 }
 0x20f   : > { %10127 = vmatmul.mubr.msk.f32.gmra.mxu0 %vm1155_vm8, %v2024_v51  ;;  %3652 = vmatprep.subr.mxu0 %v12019_v27  ;;  %v12397_v51 = vsel %vm1087_vm6, %v12238_v24, %v12202_v14  ;;  %v12415_v24 = vsel %vm1087_vm6, %v12295_v39, %v12240_v48 }
 0x210   : > { %3376 = vmatpush1.msra.mxu1 %v12308_v2  ;;  %2138 = vmatprep.mubr.f32.mxu0 %v17800_v58 }
 0x211   : > { %3377 = vmatprep.subr.mxu1 %v12315_v6  ;;  %1978 = vmatprep.mubr.f32.mxu1 %v17800_v58  ;;  %v10412_v7 = vpop.permute.xlu0 %10411  ;;  %v3113_v63 = vpop.permute.xlu1 %3112 }
 0x212   : > { %3378 = vmatpush1.msra.mxu1 %v12324_v17  ;;  %4666 = vrot.lane.b32.xlu0 %v4661_v33, %s17346_s4  ;;  %v10413_v33 = vunpack.i.l.bf16 %v10412_v7  ;;  %v10414_v25 = vunpack.i.h.bf16 %v10412_v7  ;;  %v12437_v7 = vsel %vm1087_vm6, %v3113_v63, %v12297_v23 }
 0x213   : > { %10128 = vmatmul.mubr.msk.f32.gmra.mxu0 %vm1155_vm8, %v2025_v19  ;;  %3379 = vmatprep.subr.mxu1 %v12334_v60 }
 0x214   : > { %3506 = vmatprep.mubr.f32.mxu0 %v17800_v58  ;;  %3380 = vmatpush1.msra.mxu1 %v12340_v37 }
 0x215   : > { %3381 = vmatprep.subr.mxu1 %v12347_v38  ;;  %10122 = vmatmul.mubr.msk.f32.gmra.mxu1 %vm1155_vm8, %v1875_v13  ;;  %v4665_v13 = vrot.slane %v12283_v18, %v11154_v4 }
 0x216   : > { %3382 = vmatpush1.msra.mxu1 %v12358_v21  ;;  %1984 = vmatprep.mubr.f32.mxu1 %v17800_v58  ;;  %v3109_v45 = vpop.permute.xlu0 %3108  ;;  %v3107_v36 = vpop.permute.xlu1 %3106 }
 0x217   : > { %10132 = vmatmul.mubr.msk.f32.vlgmr.msra.gmra.mxu0 %vm3340_vm9, %v3258_v31  ;;  %3383 = vmatprep.subr.mxu1 %v12369_v26  ;;  %v12425_v31 = vsel %vm1087_vm6, %v12297_v23, %v10413_v33  ;;  %v12432_v18 = vsel %vm1087_vm6, %v3109_v45, %v10414_v25 }
 0x218   : > { %3653 = vmatpush1.msra.mxu0 %v12028_v12  ;;  %3384 = vmatpush1.msra.mxu1 %v12375_v5 }
 0x219   : > { %3654 = vmatprep.subr.mxu0 %v12047_v55  ;;  %10123 = vmatmul.mubr.msk.f32.gmra.mxu1 %vm1155_vm8, %v1876_v11  ;;  %v12440_v11 = vsel %vm1087_vm6, %v3107_v36, %v3109_v45 }
 0x21a   : > { %3655 = vmatpush1.msra.mxu0 %v12054_v20  ;;  %3385 = vmatprep.subr.mxu1 %v12387_v54  ;;  %v3055_v19 = vpop.permute.xlu0 %3054 }
 0x21b   : > { %3656 = vmatprep.subr.mxu0 %v12062_v52  ;;  %1990 = vmatprep.mubr.f32.mxu1 %v17800_v58  ;;  %v3057_v14 = vpop.permute.xlu1 %3056 }
 0x21c   : > { %3657 = vmatpush1.msra.mxu0 %v12079_v57  ;;  %3386 = vmatpush2.msra.mxu1 %v12397_v51  ;;  %v12446_v15 = vsel %vm928_vm4, %v3055_v19, %v3057_v14  ;;  %v3261_v14 = vld [vmem:[%s17825_s6 + $0x28] sm:$0xff] }
 0x21d   : > { %3658 = vmatprep.subr.mxu0 %v12088_v22  ;;  %10124 = vmatmul.mubr.msk.f32.gmra.mxu1 %vm1155_vm8, %v1877_v9  ;;  %v5152_v9 = vld [vmem:[%s17789_s5] ss:$4 sm:$0x3] }
 0x21e   : > { %3659 = vmatpush1.msra.mxu0 %v12095_v56  ;;  %3387 = vmatprep.subr.mxu1 %v12408_v16  ;;  %v5157_v36 = vrot.slane %v5152_v9, %v11152_v3  ;;  %v5161_v25 = vrot.slane %v5152_v9, %v11154_v4 }
 0x21f   : > { %3660 = vmatprep.subr.mxu0 %v12106_v59  ;;  %3388 = vmatpush2.msra.mxu1 %v12415_v24  ;;  %v3053_v48 = vpop.permute.xlu0 %3052  ;;  %v3049_v39 = vpop.permute.xlu1 %3048 }
 0x220   : > { %3661 = vmatpush1.msra.mxu0 %v12118_v29  ;;  %4668 = vrot.lane.b32.xlu0 %v4665_v13, %s17346_s4  ;;  %v12454_v23 = vsel %vm928_vm4, %v3053_v48, %v3055_v19  ;;  %v10150_v13 = vld [vmem:[%s17789_s5 + $0x2] ss:$4 sm:$0x3]  ;;  %s17839_s4 = sld [smem:[#allocation188_spill]] }
 0x221   : > { %3662 = vmatprep.subr.mxu0 %v12123_v62  ;;  %3389 = vmatprep.subr.mxu1 %v12425_v31 }
 0x222   : > { %3663 = vmatpush1.msra.mxu0 %v12134_v44  ;;  %3390 = vmatpush2.msra.mxu1 %v12437_v7 }
 0x223   : > { %3664 = vmatprep.subr.mxu0 %v12141_v61  ;;  %3391 = vmatprep.subr.mxu1 %v12432_v18 }
 0x224   : > { %3665 = vmatpush1.msra.mxu0 %v12154_v32  ;;  %3392 = vmatpush2.msra.mxu1 %v12440_v11 }
 0x225   : > { %3666 = vmatprep.subr.mxu0 %v12165_v10  ;;  %3393 = vmatprep.subr.mxu1 %v12446_v15  ;;  %v3051_v63 = vpop.permute.xlu0 %3050  ;;  %v3047_v45 = vpop.permute.xlu1 %3046 }
 0x226   : > { %3667 = vmatpush1.msra.mxu0 %v12175_v41  ;;  %3394 = vmatpush2.msra.mxu1 %v12454_v23  ;;  %v12464_v33 = vsel %vm928_vm4, %v3049_v39, %v3051_v63  ;;  %v12467_v19 = vsel %vm928_vm4, %v3047_v45, %v3049_v39  ;;  %v10149_v63 = vld [vmem:[%s17789_s5 + $0x2] ss:$4 sm:$0x3]  ;;  %s12597_s1 = scalar_lea.vmem %s17839_s4, %s11327_s25  ;;  %s17849_s4 = smov 16  }
 0x227   : > { %3668 = vmatprep.subr.mxu0 %v12182_v34  ;;  %3395 = vmatprep.subr.mxu1 %v12464_v33  ;;  %v5055_v9 = vrot.slane %v10149_v63, %v11152_v3 }
 0x228   : > { %3669 = vmatpush1.msra.mxu0 %v12189_v43  ;;  %3396 = vmatpush2.msra.mxu1 %v12467_v19 }
 0x229   : > { %3670 = vmatprep.subr.mxu0 %v12197_v30  ;;  %5162 = vrot.lane.b32.xlu0 %v5157_v36, %s17541_s28  ;;  %v5331_v36 = vrot.slane %v10150_v13, %v11152_v3 }
 0x22a   : > { %3671 = vmatpush1.msra.mxu0 %v12220_v49  ;;  %v3043_v48 = vpop.permute.xlu0 %3042  ;;  %v3045_v39 = vpop.permute.xlu1 %3044  ;;  %3512 = vmatprep.mubr.f32.mxu0 %v17800_v58 }
 0x22b   : > { %3672 = vmatprep.subr.mxu0 %v12235_v47  ;;  %v12489_v45 = vsel %vm928_vm4, %v3043_v48, %v3045_v39  ;;  %10133 = vmatmul.mubr.msk.f32.gmra.mxu0 %vm3340_vm9, %v3261_v14  ;;  %v3257_v47 = vld [vmem:[%s17825_s6 + $0x8] sm:$0xff] }
 0x22c   : > { %17826 = vst [vmem:[#allocation31_spill] sm:$0xff] %v12489_v45  ;;  %3673 = vmatpush1.msra.mxu0 %v12258_v28  ;;  %3397 = vmatprep.subr.mxu1 %v12489_v45 }
 0x22d   : > { %3674 = vmatprep.subr.mxu0 %v12278_v40  ;;  %5164 = vrot.lane.b32.xlu0 %v5161_v25, %s17541_s28  ;;  %v5059_v25 = vrot.slane %v10149_v63, %v11154_v4  ;;  %v5335_v63 = vrot.slane %v10150_v13, %v11154_v4  ;;  %v3267_v13 = vld [vmem:[%s17825_s6 + $0x58] sm:$0xff] }
 0x22e   : > { %3675 = vmatpush1.msra.mxu0 %v12308_v2  ;;  %3518 = vmatprep.mubr.f32.mxu0 %v17800_v58 }
 0x22f   : > { %3676 = vmatprep.subr.mxu0 %v12315_v6  ;;  %5336 = vrot.lane.b32.xlu1 %v5331_v36, %s17536_s22 }
 0x230   : > { %3677 = vmatpush1.msra.mxu0 %v12324_v17  ;;  %3417 = vmatprep.mubr.f32.mxu1 %v3257_v47  ;;  %v3264_v47 = vld [vmem:[%s17825_s6 + $0x40] sm:$0xff] }
 0x231   : > { %3678 = vmatprep.subr.mxu0 %v12334_v60  ;;  %v3041_v14 = vpop.permute.xlu0 %3040  ;;  %5060 = vrot.lane.b32.xlu0 %v5055_v9, %s17827_s23  ;;  %v3037_v3 = vpop.permute.xlu1 %3036 }
 0x232   : > { %3679 = vmatpush1.msra.mxu0 %v12340_v37  ;;  %v12511_v39 = vsel %vm928_vm4, %v3041_v14, %v3043_v48 }
 0x233   : > { %17828 = vst [vmem:[#allocation33_spill] sm:$0xff] %v12511_v39  ;;  %3680 = vmatprep.subr.mxu0 %v12347_v38  ;;  %3398 = vmatpush2.msra.mxu1 %v12511_v39 }
 0x234   : > { %3681 = vmatpush1.msra.mxu0 %v12358_v21 }
 0x235   : > { %3682 = vmatprep.subr.mxu0 %v12369_v26  ;;  %5062 = vrot.lane.b32.xlu0 %v5059_v25, %s17827_s23  ;;  %v3557_v25 = vld [vmem:[%s17825_s6 + $0x68] sm:$0xff] }
 0x236   : > { %3683 = vmatpush1.msra.mxu0 %v12375_v5 }
 0x237   : > { %3684 = vmatprep.subr.mxu0 %v12387_v54  ;;  %10134 = vmatmul.mubr.msk.f32.gmra.mxu0 %vm3340_vm9, %v3264_v47 }
 0x238   : > { %3685 = vmatpush2.msra.mxu0 %v12397_v51  ;;  %v3039_v48 = vpop.permute.xlu0 %3038  ;;  %v3035_v36 = vpop.permute.xlu1 %3034  ;;  %3524 = vmatprep.mubr.f32.mxu0 %v17800_v58 }
 0x239   : > { %3686 = vmatprep.subr.mxu0 %v12408_v16  ;;  %v12529_v9 = vsel %vm928_vm4, %v3037_v3, %v3039_v48  ;;  %v12532_v14 = vsel %vm928_vm4, %v3035_v36, %v3037_v3  ;;  %5338 = vrot.lane.b32.xlu0 %v5335_v63, %s17536_s22 }
 0x23a   : > { %17829 = vst [vmem:[#allocation32_spill] sm:$0xff] %v12529_v9  ;;  %17830 = vst [vmem:[#allocation34_spill] sm:$0xff] %v12532_v14  ;;  %3687 = vmatpush2.msra.mxu0 %v12415_v24  ;;  %3399 = vmatprep.subr.mxu1 %v12529_v9 }
 0x23b   : > { %3688 = vmatprep.subr.mxu0 %v12425_v31  ;;  %3400 = vmatpush2.msra.mxu1 %v12532_v14 }
 0x23c   : > { %3689 = vmatpush2.msra.mxu0 %v12437_v7 }
 0x23d   : > { %3690 = vmatprep.subr.mxu0 %v12432_v18  ;;  %10135 = vmatmul.mubr.msk.f32.gmra.mxu0 %vm3340_vm9, %v3267_v13 }
 0x23e   : > { %3691 = vmatpush2.msra.mxu0 %v12440_v11  ;;  %3716 = vmatprep.mubr.f32.mxu0 %v3557_v25 }
 0x23f   : > { %3692 = vmatprep.subr.mxu0 %v12446_v15  ;;  %v2953_v3 = vpop.permute.xlu0 %2952  ;;  %v2955_v47 = vpop.permute.xlu1 %2954 }
 0x240   : > { %3693 = vmatpush2.msra.mxu0 %v12454_v23  ;;  %v12552_v63 = vsel %vm969_vm3, %v2953_v3, %v2955_v47 }
 0x241   : > { %17831 = vst [vmem:[#allocation38_spill] sm:$0xff] %v12552_v63  ;;  %3694 = vmatprep.subr.mxu0 %v12464_v33  ;;  %3401 = vmatprep.subr.mxu1 %v12552_v63 }
 0x242   : > { %3695 = vmatpush2.msra.mxu0 %v12467_v19 }
 0x243   : > { %3696 = vmatprep.subr.mxu0 %v12489_v45  ;;  %v12661_v45 = vld [vmem:[%s11337_s0 + $0x8] sm:$0xff] }
 0x244   : > { %3697 = vmatpush2.msra.mxu0 %v12511_v39  ;;  %v3256_v39 = vld [vmem:[%s17825_s6] sm:$0xff]  ;;  %17846 = vst [vmem:[#allocation52_spill] sm:$0xff] %v12661_v45 }
 0x245   : > { %3698 = vmatprep.subr.mxu0 %v12529_v9 }
 0x246   : > { %3699 = vmatpush2.msra.mxu0 %v12532_v14  ;;  %v2951_v48 = vpop.permute.xlu0 %2950  ;;  %v2947_v13 = vpop.permute.xlu1 %2946  ;;  %v12640_v14 = vld [vmem:[%s11337_s0 + $0x18] sm:$0xff] }
 0x247   : > { %3700 = vmatprep.subr.mxu0 %v12552_v63  ;;  %v12563_v36 = vsel %vm969_vm3, %v2951_v48, %v2953_v3  ;;  %17844 = vst [vmem:[#allocation50_spill] sm:$0xff] %v12640_v14 }
 0x248   : > { %17832 = vst [vmem:[#allocation39_spill] sm:$0xff] %v12563_v36  ;;  %3402 = vmatpush2.msra.mxu1 %v12563_v36  ;;  %3701 = vmatpush2.msra.mxu0 %v12563_v36 }
 0x24d   : > { %v2949_v25 = vpop.permute.xlu0 %2948  ;;  %v2945_v47 = vpop.permute.xlu1 %2944 }
 0x24e   : > { %v12568_v4 = vsel %vm969_vm3, %v2947_v13, %v2949_v25  ;;  %v12571_v9 = vsel %vm969_vm3, %v2945_v47, %v2947_v13 }
 0x24f   : > { %17833 = vst [vmem:[#allocation40_spill] sm:$0xff] %v12568_v4  ;;  %17834 = vst [vmem:[#allocation41_spill] sm:$0xff] %v12571_v9  ;;  %3403 = vmatprep.subr.mxu1 %v12568_v4  ;;  %3702 = vmatprep.subr.mxu0 %v12568_v4 }
 0x250   : > { %3404 = vmatpush2.msra.mxu1 %v12571_v9  ;;  %3703 = vmatpush2.msra.mxu0 %v12571_v9 }
 0x254   : > { %v2941_v3 = vpop.permute.xlu0 %2940  ;;  %v2943_v48 = vpop.permute.xlu1 %2942 }
 0x255   : > { %v12578_v36 = vsel %vm969_vm3, %v2941_v3, %v2943_v48 }
 0x256   : > { %17835 = vst [vmem:[#allocation42_spill] sm:$0xff] %v12578_v36  ;;  %3405 = vmatprep.subr.mxu1 %v12578_v36  ;;  %3704 = vmatprep.subr.mxu0 %v12578_v36 }
 0x25b   : > { %v2939_v13 = vpop.permute.xlu0 %2938  ;;  %v2935_v47 = vpop.permute.xlu1 %2934 }
 0x25c   : > { %v12583_v25 = vsel %vm969_vm3, %v2939_v13, %v2941_v3  ;;  %v12611_v3 = vld [vmem:[%s11337_s0 + $0x30] sm:$0xff] }
 0x25d   : > { %17836 = vst [vmem:[#allocation43_spill] sm:$0xff] %v12583_v25  ;;  %3406 = vmatpush2.msra.mxu1 %v12583_v25  ;;  %3705 = vmatpush2.msra.mxu0 %v12583_v25  ;;  %17841 = vst [vmem:[#allocation47_spill] sm:$0xff] %v12611_v3  ;;  %v12616_v13 = vld [vmem:[%s12597_s1 + $0x30] sm:$0xff]  ;;  %v12631_v25 = vld [vmem:[%s11337_s0 + $0x20] sm:$0xff] }
 0x25e   : > { %17843 = vst [vmem:[#allocation49_spill] sm:$0xff] %v12631_v25 }
 0x262   : > { %v2937_v9 = vpop.permute.xlu0 %2936  ;;  %v2933_v4 = vpop.permute.xlu1 %2932 }
 0x263   : > { %v12588_v48 = vsel %vm969_vm3, %v2935_v47, %v2937_v9  ;;  %v12591_v63 = vsel %vm969_vm3, %v2933_v4, %v2935_v47  ;;  %v12604_v9 = vld [vmem:[%s11337_s0 + $0x38] sm:$0xff]  ;;  %v12619_v47 = vld [vmem:[%s12597_s1 + $0x20] sm:$0xff] }
 0x264   : > { %17837 = vst [vmem:[#allocation44_spill] sm:$0xff] %v12588_v48  ;;  %17838 = vst [vmem:[#allocation45_spill] sm:$0xff] %v12591_v63  ;;  %3407 = vmatprep.subr.mxu1 %v12588_v48  ;;  %3706 = vmatprep.subr.mxu0 %v12588_v48  ;;  %v12622_v48 = vld [vmem:[%s11337_s0 + $0x28] sm:$0xff] }
 0x265   : > { %3408 = vmatpush2.msra.mxu1 %v12591_v63  ;;  %3707 = vmatpush2.msra.mxu0 %v12591_v63  ;;  %17840 = vst [vmem:[#allocation46_spill] sm:$0xff] %v12604_v9  ;;  %17842 = vst [vmem:[#allocation48_spill] sm:$0xff] %v12622_v48 }
 0x266   : > { %3409 = vmatprep.subr.mxu1 %v12604_v9  ;;  %3708 = vmatprep.subr.mxu0 %v12604_v9 }
 0x267   : > { %v12608_v4 = vpop.permute.xlu0 %4944  ;;  %3410 = vmatpush2.msra.mxu1 %v12611_v3  ;;  %3709 = vmatpush2.msra.mxu0 %v12611_v3 }
 0x268   : > { %v4943_v63 = vpop.permute.xlu1 %4942  ;;  %3411 = vmatprep.subr.mxu1 %v12622_v48  ;;  %3710 = vmatprep.subr.mxu0 %v12622_v48  ;;  %v12645_v48 = vld [vmem:[%s11337_s0 + $0x10] sm:$0xff] }
 0x269   : > { %v12628_v9 = vsel %vm969_vm3, %v4943_v63, %v12608_v4  ;;  %3412 = vmatpush2.msra.mxu1 %v12631_v25  ;;  %3711 = vmatpush2.msra.mxu0 %v12631_v25  ;;  %17845 = vst [vmem:[#allocation51_spill] sm:$0xff] %v12645_v48  ;;  %v12650_v25 = vld [vmem:[%s12597_s1 + $0x38] sm:$0xff] }
 0x26a   : > { %v4960_v3 = vmul.f32 %v12628_v9, %v12616_v13  ;;  %v4957_v36 = vmul.f32 %v12628_v9, %v12619_v47  ;;  %3413 = vmatprep.subr.mxu1 %v12640_v14  ;;  %3712 = vmatprep.subr.mxu0 %v12640_v14  ;;  %v3556_v14 = vld [vmem:[%s17825_s6 + $0x60] sm:$0xff] }
 0x26b   : > { %3414 = vmatpush2.msra.mxu1 %v12645_v48  ;;  %3713 = vmatpush2.msra.mxu0 %v12645_v48  ;;  %v12665_v48 = vmul.f32 0.0, %v4943_v63  ;;  %v3260_v63 = vld [vmem:[%s17825_s6 + $0x20] sm:$0xff] }
 0x26c   : > { %4994 = vrot.lane.b32.xlu0 %v4960_v3, %s17827_s23  ;;  %4988 = vrot.lane.b32.xlu1 %v4957_v36, %s17827_s23  ;;  %v12668_v3 = vld [vmem:[%s11337_s0] sm:$0xff]  ;;  %v4961_v36 = vmul.f32 %v12608_v4, %v12650_v25  ;;  %s17947_s0 = smov 111  }
 0x26d   : > { %3415 = vmatprep.subr.mxu1 %v12661_v45  ;;  %3714 = vmatprep.subr.mxu0 %v12661_v45  ;;  %17847 = vst [vmem:[#allocation53_spill] sm:$0xff] %v12668_v3  ;;  %v12686_v45 = vld [vmem:[%s12597_s1 + $0x18] sm:$0xff] }
 0x26e   : > { %3416 = vmatpush2.msra.mxu1 %v12668_v3  ;;  %3715 = vmatpush2.msra.mxu0 %v12668_v3  ;;  %v3560_v3 = vld [vmem:[%s17825_s6 + $0x80] sm:$0xff] }
 0x26f   : > { %3418 = vmatmul.mubr.f32.vlgmr.msra.gmra.mxu1 %v3256_v39  ;;  %3717 = vmatmul.mubr.f32.vlgmr.msra.gmra.mxu0 %v3556_v14  ;;  %v4955_v39 = vmul.f32 %v12608_v4, %v12686_v45  ;;  %v3259_v14 = vld [vmem:[%s17825_s6 + $0x18] sm:$0xff] }
 0x270   : > { %4996 = vrot.lane.b32.xlu0 %v4961_v36, %s17827_s23  ;;  %4986 = vrot.lane.b32.xlu1 %v12665_v48, %s17827_s23  ;;  %v3559_v36 = vld [vmem:[%s17825_s6 + $0x78] sm:$0xff] }
 0x271   : > { %3765 = vmatprep.subr.mxu1 %v12213_v42  ;;  %4064 = vmatprep.subr.mxu0 %v12213_v42 }
 0x272   : > { %3766 = vmatpush1.msra.mxu1 %v12230_v0  ;;  %4065 = vmatpush1.msra.mxu0 %v12230_v0 }
 0x273   : > { %3767 = vmatprep.subr.mxu1 %v12245_v53  ;;  %4066 = vmatprep.subr.mxu0 %v12245_v53  ;;  %v12717_v53 = vld [vmem:[%s12597_s1] sm:$0xff] }
 0x274   : > { %3423 = vmatprep.mubr.f32.mxu1 %v3260_v63  ;;  %3722 = vmatprep.mubr.f32.mxu0 %v3560_v3  ;;  %v12706_v3 = vld [vmem:[%s12597_s1 + $0x28] sm:$0xff]  ;;  %v3263_v63 = vld [vmem:[%s17825_s6 + $0x38] sm:$0xff] }
 0x275   : > { %3768 = vmatpush1.msra.mxu1 %v12252_v50  ;;  %4067 = vmatpush1.msra.mxu0 %v12252_v50  ;;  %v3563_v50 = vld [vmem:[%s17825_s6 + $0x98] sm:$0xff] }
 0x276   : > { %4992 = vrot.lane.b32.xlu0 %v12665_v48, %s17827_s23  ;;  %4984 = vrot.lane.b32.xlu1 %v4955_v39, %s17827_s23 }
 0x277   : > { %3424 = vmatmul.mubr.f32.gmra.mxu1 %v3259_v14  ;;  %3723 = vmatmul.mubr.f32.gmra.mxu0 %v3559_v36  ;;  %v4958_v14 = vmul.f32 %v12608_v4, %v12706_v3  ;;  %v4951_v36 = vmul.f32 %v12628_v9, %v12717_v53 }
 0x278   : > { %3769 = vmatprep.subr.mxu1 %v12263_v8  ;;  %4068 = vmatprep.subr.mxu0 %v12263_v8  ;;  %v3262_v8 = vld [vmem:[%s17825_s6 + $0x30] sm:$0xff] }
 0x279   : > { %3770 = vmatpush1.msra.mxu1 %v12270_v35  ;;  %4069 = vmatpush1.msra.mxu0 %v12270_v35  ;;  %v4841_v39 = vpop.permute.xlu0 %4840  ;;  %v3562_v35 = vld [vmem:[%s17825_s6 + $0x90] sm:$0xff] }
 0x27a   : > { %3771 = vmatprep.subr.mxu1 %v12288_v1  ;;  %4070 = vmatprep.subr.mxu0 %v12288_v1  ;;  %v3566_v1 = vld [vmem:[%s17825_s6 + $0xb0] sm:$0xff] }
 0x27b   : > { %3429 = vmatprep.mubr.f32.mxu1 %v3263_v63  ;;  %3728 = vmatprep.mubr.f32.mxu0 %v3563_v50  ;;  %v12736_v63 = vld [vmem:[%s12597_s1 + $0x10] sm:$0xff] }
 0x27c   : > { %3772 = vmatpush1.msra.mxu1 %v12302_v46  ;;  %4071 = vmatpush1.msra.mxu0 %v12302_v46  ;;  %v3266_v50 = vld [vmem:[%s17825_s6 + $0x50] sm:$0xff]  ;;  %v4954_v46 = vmul.f32 %v12628_v9, %v12736_v63 }
 0x27d   : > { %4990 = vrot.lane.b32.xlu0 %v4958_v14, %s17827_s23  ;;  %4976 = vrot.lane.b32.xlu1 %v4951_v36, %s17827_s23  ;;  %v3265_v14 = vld [vmem:[%s17825_s6 + $0x48] sm:$0xff]  ;;  %v12756_v0 = vpop.permute.xlu0 %4842 }
 0x27e   : > { %3430 = vmatmul.mubr.f32.gmra.mxu1 %v3262_v8  ;;  %3729 = vmatmul.mubr.f32.gmra.mxu0 %v3562_v35  ;;  %v3565_v36 = vld [vmem:[%s17825_s6 + $0xa8] sm:$0xff]  ;;  %v3558_v8 = vld [vmem:[%s17825_s6 + $0x70] sm:$0xff] }
 0x27f   : > { %3951 = vmatprep.subr.mxu1 %v12019_v27  ;;  %4250 = vmatprep.subr.mxu0 %v12019_v27  ;;  %v4859_v27 = vmul.f32 %v12756_v0, %v12650_v25  ;;  %v3857_v35 = vld [vmem:[%s17825_s6 + $0xd0] sm:$0xff] }
 0x280   : > { %3435 = vmatprep.mubr.f32.mxu1 %v3266_v50  ;;  %3734 = vmatprep.mubr.f32.mxu0 %v3566_v1  ;;  %v12777_v1 = vld [vmem:[%s12597_s1 + $0x8] sm:$0xff] }
 0x281   : > { %4982 = vrot.lane.b32.xlu0 %v4954_v46, %s17827_s23  ;;  %4974 = vrot.lane.b32.xlu1 %v12665_v48, %s17827_s23  ;;  %v4844_v46 = vsel %vm928_vm4, %v4841_v39, %v12756_v0 }
 0x282   : > { %3436 = vmatmul.mubr.f32.gmra.mxu1 %v3265_v14  ;;  %3735 = vmatmul.mubr.f32.gmra.mxu0 %v3565_v36  ;;  %v4855_v9 = vmul.f32 %v4844_v46, %v12619_v47  ;;  %v17859_v14 = vld [vmem:[#allocation42_spill] sm:$0xff] }
 0x283   : > { %3805 = vmatprep.mubr.f32.mxu1 %v17800_v58  ;;  %4104 = vmatprep.mubr.f32.mxu0 %v17800_v58 }
 0x285   : > { %4980 = vrot.lane.b32.xlu0 %v12665_v48, %s17827_s23  ;;  %4894 = vrot.lane.b32.xlu1 %v4859_v27, %s17541_s28  ;;  %v4952_v48 = vmul.f32 %v12608_v4, %v12777_v1  ;;  %v17861_v27 = vld [vmem:[#allocation43_spill] sm:$0xff] }
 0x286   : > { %10136 = vmatmul.mubr.msk.f32.vlgmr.msra.gmra.mxu1 %vm3340_vm9, %v3558_v8  ;;  %10140 = vmatmul.mubr.msk.f32.vlgmr.msra.gmra.mxu0 %vm3340_vm9, %v3857_v35  ;;  %v17862_v35 = vld [vmem:[#allocation44_spill] sm:$0xff] }
 0x287   : > { %3952 = vmatpush1.msra.mxu1 %v12028_v12  ;;  %4251 = vmatpush1.msra.mxu0 %v12028_v12  ;;  %v4848_v12 = vmul.f32 0.0, %v4841_v39 }
 0x288   : > { %3953 = vmatprep.subr.mxu1 %v12047_v55  ;;  %4252 = vmatprep.subr.mxu0 %v12047_v55  ;;  %v4858_v55 = vmul.f32 %v4844_v46, %v12616_v13 }
 0x289   : > { %3954 = vmatpush1.msra.mxu1 %v12054_v20  ;;  %4253 = vmatpush1.msra.mxu0 %v12054_v20  ;;  %v4853_v20 = vmul.f32 %v12756_v0, %v12686_v45 }
 0x28a   : > { %3955 = vmatprep.subr.mxu1 %v12062_v52  ;;  %4254 = vmatprep.subr.mxu0 %v12062_v52  ;;  %v4856_v52 = vmul.f32 %v12756_v0, %v12706_v3 }
 0x28b   : > { %4978 = vrot.lane.b32.xlu0 %v4952_v48, %s17827_s23  ;;  %4886 = vrot.lane.b32.xlu1 %v4855_v9, %s17541_s28  ;;  %v3564_v9 = vld [vmem:[%s17825_s6 + $0xa0] sm:$0xff] }
 0x28c   : > { %3956 = vmatpush1.msra.mxu1 %v12079_v57  ;;  %4255 = vmatpush1.msra.mxu0 %v12079_v57  ;;  %v4849_v57 = vmul.f32 %v4844_v46, %v12717_v53 }
 0x28d   : > { %3957 = vmatprep.subr.mxu1 %v12088_v22  ;;  %4256 = vmatprep.subr.mxu0 %v12088_v22  ;;  %v12832_v22 = vpop.f32.mrf.mxu0 }
 0x28e   : > { %3958 = vmatpush1.msra.mxu1 %v12095_v56  ;;  %4257 = vmatpush1.msra.mxu0 %v12095_v56  ;;  %v4852_v56 = vmul.f32 %v4844_v46, %v12736_v63  ;;  %v17863_v46 = vld [vmem:[#allocation45_spill] sm:$0xff] }
 0x28f   : > { %3959 = vmatprep.subr.mxu1 %v12106_v59  ;;  %4258 = vmatprep.subr.mxu0 %v12106_v59  ;;  %v17848_v59 = vld [vmem:[#allocation36_spill] sm:$0xff] }
 0x290   : > { %4892 = vrot.lane.b32.xlu0 %v4858_v55, %s17541_s28  ;;  %4884 = vrot.lane.b32.xlu1 %v4848_v12, %s17541_s28 }
 0x291   : > { %3960 = vmatpush1.msra.mxu1 %v12118_v29  ;;  %4259 = vmatpush1.msra.mxu0 %v12118_v29  ;;  %v12843_v29 = vpop.f32.mrf.mxu0 }
 0x292   : > { %3961 = vmatprep.subr.mxu1 %v12123_v62  ;;  %4260 = vmatprep.subr.mxu0 %v12123_v62  ;;  %v12847_v62 = vpop.f32.mrf.mxu1 }
 0x293   : > { %3962 = vmatpush1.msra.mxu1 %v12134_v44  ;;  %4261 = vmatpush1.msra.mxu0 %v12134_v44  ;;  %v12855_v44 = vpop.f32.mrf.mxu0 }
 0x294   : > { %3963 = vmatprep.subr.mxu1 %v12141_v61  ;;  %4262 = vmatprep.subr.mxu0 %v12141_v61  ;;  %v12860_v61 = vpop.f32.mrf.mxu1 }
 0x295   : > { %4890 = vrot.lane.b32.xlu0 %v4848_v12, %s17541_s28  ;;  %4882 = vrot.lane.b32.xlu1 %v4853_v20, %s17541_s28 }
 0x296   : > { %3964 = vmatpush1.msra.mxu1 %v12154_v32  ;;  %4263 = vmatpush1.msra.mxu0 %v12154_v32  ;;  %v4850_v32 = vmul.f32 %v12756_v0, %v12777_v1  ;;  %v4667_v0 = vpop.permute.xlu0 %4666 }
 0x297   : > { %3965 = vmatprep.subr.mxu1 %v12165_v10  ;;  %4264 = vmatprep.subr.mxu0 %v12165_v10  ;;  %v12870_v10 = vpop.f32.mrf.mxu0  ;;  %v12990_v50 = vmul.f32 0.0, %v4667_v0 }
 0x298   : > { %3966 = vmatpush1.msra.mxu1 %v12175_v41  ;;  %4265 = vmatpush1.msra.mxu0 %v12175_v41  ;;  %v12874_v41 = vpop.f32.mrf.mxu1 }
 0x299   : > { %3967 = vmatprep.subr.mxu1 %v12182_v34  ;;  %4266 = vmatprep.subr.mxu0 %v12182_v34  ;;  %v12883_v34 = vpop.f32.mrf.mxu0 }
 0x29a   : > { %4888 = vrot.lane.b32.xlu0 %v4856_v52, %s17541_s28  ;;  %4874 = vrot.lane.b32.xlu1 %v4849_v57, %s17541_s28 }
 0x29b   : > { %3968 = vmatpush1.msra.mxu1 %v12189_v43  ;;  %4267 = vmatpush1.msra.mxu0 %v12189_v43  ;;  %v12887_v43 = vpop.f32.mrf.mxu1 }
 0x29c   : > { %3969 = vmatprep.subr.mxu1 %v12197_v30  ;;  %4268 = vmatprep.subr.mxu0 %v12197_v30  ;;  %v12897_v30 = vpop.f32.mrf.mxu0 }
 0x29d   : > { %3970 = vmatpush1.msra.mxu1 %v12220_v49  ;;  %4269 = vmatpush1.msra.mxu0 %v12220_v49  ;;  %v12901_v49 = vpop.f32.mrf.mxu1 }
 0x29e   : > { %3971 = vmatprep.subr.mxu1 %v17848_v59  ;;  %4270 = vmatprep.subr.mxu0 %v17848_v59 }
 0x29f   : > { %4880 = vrot.lane.b32.xlu0 %v4852_v56, %s17541_s28  ;;  %4872 = vrot.lane.b32.xlu1 %v4848_v12, %s17541_s28  ;;  %v17867_v56 = vld [vmem:[#allocation48_spill] sm:$0xff] }
 0x2a0   : > { %3972 = vmatpush1.msra.mxu1 %v12258_v28  ;;  %4271 = vmatpush1.msra.mxu0 %v12258_v28  ;;  %v12911_v28 = vpop.f32.mrf.mxu0 }
 0x2a1   : > { %3973 = vmatprep.subr.mxu1 %v12278_v40  ;;  %4272 = vmatprep.subr.mxu0 %v12278_v40  ;;  %v12915_v40 = vpop.f32.mrf.mxu1 }
 0x2a2   : > { %3974 = vmatpush1.msra.mxu1 %v12308_v2  ;;  %4273 = vmatpush1.msra.mxu0 %v12308_v2  ;;  %v12923_v2 = vpop.f32.mrf.mxu0 }
 0x2a3   : > { %3975 = vmatprep.subr.mxu1 %v12315_v6  ;;  %4274 = vmatprep.subr.mxu0 %v12315_v6  ;;  %v12925_v6 = vpop.permute.xlu0 %4668 }
 0x2a4   : > { %4878 = vrot.lane.b32.xlu0 %v4848_v12, %s17541_s28  ;;  %4792 = vrot.lane.b32.xlu1 %v12650_v25, %s17849_s4  ;;  %v4679_v48 = vmul.f32 %v12925_v6, %v12686_v45  ;;  %v17864_v12 = vld [vmem:[#allocation46_spill] sm:$0xff]  ;;  %v4682_v57 = vmul.f32 %v12925_v6, %v12706_v3 }
 0x2a5   : > { %3976 = vmatpush1.msra.mxu1 %v12324_v17  ;;  %4275 = vmatpush1.msra.mxu0 %v12324_v17  ;;  %v12931_v17 = vpop.f32.mrf.mxu1 }
 0x2a6   : > { %3977 = vmatprep.subr.mxu1 %v12334_v60  ;;  %4276 = vmatprep.subr.mxu0 %v12334_v60  ;;  %v4685_v60 = vmul.f32 %v12925_v6, %v12650_v25 }
 0x2a7   : > { %3978 = vmatpush1.msra.mxu1 %v12340_v37  ;;  %4277 = vmatpush1.msra.mxu0 %v12340_v37  ;;  %v12937_v37 = vpop.f32.mrf.mxu0 }
 0x2a8   : > { %3979 = vmatprep.subr.mxu1 %v12347_v38  ;;  %4278 = vmatprep.subr.mxu0 %v12347_v38  ;;  %v17850_v38 = vld [vmem:[#allocation31_spill] sm:$0xff] }
 0x2a9   : > { %4876 = vrot.lane.b32.xlu0 %v4850_v32, %s17541_s28  ;;  %4784 = vrot.lane.b32.xlu1 %v12619_v47, %s17849_s4  ;;  %v3567_v32 = vld [vmem:[%s17825_s6 + $0xb8] sm:$0xff] }
 0x2aa   : > { %3980 = vmatpush1.msra.mxu1 %v12358_v21  ;;  %4279 = vmatpush1.msra.mxu0 %v12358_v21  ;;  %v12945_v21 = vpop.f32.mrf.mxu1 }
 0x2ab   : > { %3981 = vmatprep.subr.mxu1 %v12369_v26  ;;  %4280 = vmatprep.subr.mxu0 %v12369_v26  ;;  %v12952_v26 = vsel %vm867_vm5, %v4667_v0, %v12925_v6 }
 0x2ac   : > { %3982 = vmatpush1.msra.mxu1 %v12375_v5  ;;  %4281 = vmatpush1.msra.mxu0 %v12375_v5  ;;  %v12954_v5 = vpop.f32.mrf.mxu0  ;;  %v4684_v4 = vmul.f32 %v12952_v26, %v12616_v13  ;;  %v4675_v59 = vmul.f32 %v12952_v26, %v12717_v53 }
 0x2ad   : > { %3983 = vmatprep.subr.mxu1 %v12387_v54  ;;  %4282 = vmatprep.subr.mxu0 %v12387_v54  ;;  %v17851_v54 = vld [vmem:[#allocation33_spill] sm:$0xff] }
 0x2ae   : > { %4790 = vrot.lane.b32.xlu0 %v12616_v13, %s17849_s4  ;;  %4778 = vrot.lane.b32.xlu1 %v12736_v63, %s17849_s4 }
 0x2af   : > { %3984 = vmatpush2.msra.mxu1 %v12397_v51  ;;  %4283 = vmatpush2.msra.mxu0 %v12397_v51  ;;  %v17852_v51 = vld [vmem:[#allocation32_spill] sm:$0xff] }
 0x2b0   : > { %3985 = vmatprep.subr.mxu1 %v12408_v16  ;;  %4284 = vmatprep.subr.mxu0 %v12408_v16  ;;  %v17853_v16 = vld [vmem:[#allocation34_spill] sm:$0xff] }
 0x2b1   : > { %3986 = vmatpush2.msra.mxu1 %v12415_v24  ;;  %4285 = vmatpush2.msra.mxu0 %v12415_v24  ;;  %v4681_v24 = vmul.f32 %v12952_v26, %v12619_v47  ;;  %v3561_v47 = vld [vmem:[%s17825_s6 + $0x88] sm:$0xff] }
 0x2b2   : > { %3987 = vmatprep.subr.mxu1 %v12425_v31  ;;  %4286 = vmatprep.subr.mxu0 %v12425_v31  ;;  %v12964_v31 = vpop.permute.xlu0 %5162 }
 0x2b3   : > { %10416 = vrot.lane.b32.xlu0 %v17800_v58, %s17849_s4  ;;  %10421 = vrot.lane.b32.xlu1 %v17800_v58, %s17849_s4 }
 0x2b4   : > { %3988 = vmatpush2.msra.mxu1 %v12437_v7  ;;  %4287 = vmatpush2.msra.mxu0 %v12437_v7  ;;  %v17854_v7 = vld [vmem:[#allocation38_spill] sm:$0xff] }
 0x2b5   : > { %3989 = vmatprep.subr.mxu1 %v12432_v18  ;;  %4288 = vmatprep.subr.mxu0 %v12432_v18  ;;  %v12966_v18 = vpop.f32.mrf.mxu1 }
 0x2b6   : > { %3990 = vmatpush2.msra.mxu1 %v12440_v11  ;;  %4289 = vmatpush2.msra.mxu0 %v12440_v11  ;;  %v12970_v11 = vpop.f32.mrf.mxu0  ;;  %v12994_v36 = vpop.permute.xlu0 %5164 }
 0x2b7   : > { %3991 = vmatprep.subr.mxu1 %v12446_v15  ;;  %4290 = vmatprep.subr.mxu0 %v12446_v15  ;;  %v17855_v15 = vld [vmem:[#allocation39_spill] sm:$0xff] }
 0x2b8   : > { %4786 = vrot.lane.b32.xlu0 %v12706_v3, %s17849_s4  ;;  %4774 = vrot.lane.b32.xlu1 %v12777_v1, %s17849_s4  ;;  %v12988_v39 = vpop.f32.mrf.mxu0  ;;  %v3856_v3 = vld [vmem:[%s17825_s6 + $0xc8] sm:$0xff] }
 0x2b9   : > { %3992 = vmatpush2.msra.mxu1 %v12454_v23  ;;  %4291 = vmatpush2.msra.mxu0 %v12454_v23  ;;  %v17856_v23 = vld [vmem:[#allocation40_spill] sm:$0xff] }
 0x2ba   : > { %3993 = vmatprep.subr.mxu1 %v12464_v33  ;;  %4292 = vmatprep.subr.mxu0 %v12464_v33  ;;  %v12979_v33 = vpop.f32.mrf.mxu1  ;;  %v13005_v8 = vpop.f32.mrf.mxu0 }
 0x2bb   : > { %3994 = vmatpush2.msra.mxu1 %v12467_v19  ;;  %4293 = vmatpush2.msra.mxu0 %v12467_v19  ;;  %17857 = vst [vmem:[#allocation36_spill] sm:$0xff] %v12979_v33  ;;  %v17858_v19 = vld [vmem:[#allocation41_spill] sm:$0xff]  ;;  %v13018_v55 = vpop.permute.xlu0 %5060 }
 0x2bc   : > { %3995 = vmatprep.subr.mxu1 %v17850_v38  ;;  %4294 = vmatprep.subr.mxu0 %v17850_v38  ;;  %v13001_v13 = vpop.f32.mrf.mxu1  ;;  %v13025_v52 = vpop.f32.mrf.mxu0 }
 0x2bd   : > { %4780 = vrot.lane.b32.xlu0 %v12686_v45, %s17849_s4  ;;  %4720 = vrot.lane.b32.xlu1 %v4685_v60, %s17536_s22  ;;  %17860 = vst [vmem:[#allocation31_spill] sm:$0xff] %v13001_v13  ;;  %v17866_v45 = vld [vmem:[#allocation47_spill] sm:$0xff]  ;;  %v17869_v60 = vld [vmem:[#allocation49_spill] sm:$0xff] }
 0x2be   : > { %3996 = vmatpush2.msra.mxu1 %v17851_v54  ;;  %4295 = vmatpush2.msra.mxu0 %v17851_v54  ;;  %v13020_v20 = vpop.f32.mrf.mxu1  ;;  %v13047_v38 = vpop.f32.mrf.mxu0  ;;  %v17870_v54 = vld [vmem:[#allocation50_spill] sm:$0xff] }
 0x2bf   : > { %3997 = vmatprep.subr.mxu1 %v17852_v51  ;;  %4296 = vmatprep.subr.mxu0 %v17852_v51  ;;  %17865 = vst [vmem:[#allocation33_spill] sm:$0xff] %v13020_v20  ;;  %v3860_v51 = vld [vmem:[%s17825_s6 + $0xe8] sm:$0xff] }
 0x2c0   : > { %3998 = vmatpush2.msra.mxu1 %v17853_v16  ;;  %4297 = vmatpush2.msra.mxu0 %v17853_v16  ;;  %v13039_v0 = vpop.f32.mrf.mxu1  ;;  %v4678_v16 = vmul.f32 %v12952_v26, %v12736_v63  ;;  %v3859_v63 = vld [vmem:[%s17825_s6 + $0xe0] sm:$0xff]  ;;  %v17874_v26 = vld [vmem:[#allocation53_spill] sm:$0xff] }
 0x2c1   : > { %3999 = vmatprep.subr.mxu1 %v17854_v7  ;;  %4298 = vmatprep.subr.mxu0 %v17854_v7  ;;  %17868 = vst [vmem:[#allocation32_spill] sm:$0xff] %v13039_v0  ;;  %v3855_v7 = vld [vmem:[%s17825_s6 + $0xc0] sm:$0xff] }
 0x2c2   : > { %4772 = vrot.lane.b32.xlu0 %v12717_v53, %s17849_s4  ;;  %4712 = vrot.lane.b32.xlu1 %v4681_v24, %s17536_s22  ;;  %v13051_v53 = vpop.permute.xlu0 %5062  ;;  %v17871_v24 = vld [vmem:[#allocation51_spill] sm:$0xff] }
 0x2c3   : > { %4000 = vmatpush2.msra.mxu1 %v17855_v15  ;;  %4299 = vmatpush2.msra.mxu0 %v17855_v15  ;;  %v13064_v15 = vpop.f32.mrf.mxu1 }
 0x2c4   : > { %4001 = vmatprep.subr.mxu1 %v17856_v23  ;;  %4300 = vmatprep.subr.mxu0 %v17856_v23  ;;  %17872 = vst [vmem:[#allocation34_spill] sm:$0xff] %v13064_v15  ;;  %v17873_v23 = vld [vmem:[#allocation52_spill] sm:$0xff] }
 0x2c5   : > { %4002 = vmatpush2.msra.mxu1 %v17858_v19  ;;  %4301 = vmatpush2.msra.mxu0 %v17858_v19  ;;  %v13068_v19 = vpop.f32.mrf.mxu0 }
 0x2c6   : > { %3811 = vmatprep.mubr.f32.mxu1 %v17800_v58  ;;  %4003 = vmatprep.subr.mxu1 %v17859_v14 }
 0x2c7   : > { %4302 = vmatprep.subr.mxu0 %v17859_v14  ;;  %4718 = vrot.lane.b32.xlu0 %v4684_v4, %s17536_s22  ;;  %v13076_v4 = vpop.permute.xlu1 %5336  ;;  %v17875_v14 = vld [vmem:[#allocation37_spill] sm:$0xff] }
 0x2c8   : > { %4710 = vrot.lane.b32.xlu1 %v12990_v50, %s17536_s22  ;;  %10137 = vmatmul.mubr.msk.f32.gmra.mxu1 %vm3340_vm9, %v3561_v47  ;;  %v3863_v47 = vld [vmem:[%s17825_s6 + $0x100] sm:$0xff] }
 0x2c9   : > { %4004 = vmatpush2.msra.mxu1 %v17861_v27  ;;  %4303 = vmatpush2.msra.mxu0 %v17861_v27  ;;  %v13082_v27 = vpop.permute.xlu0 %5338 }
 0x2ca   : > { %4005 = vmatprep.subr.mxu1 %v17862_v35  ;;  %4304 = vmatprep.subr.mxu0 %v17862_v35  ;;  %v13084_v35 = vpop.f32.mrf.mxu1 }
 0x2cb   : > { %4006 = vmatpush2.msra.mxu1 %v17863_v46  ;;  %4305 = vmatpush2.msra.mxu0 %v17863_v46  ;;  %17876 = vst [vmem:[#allocation38_spill] sm:$0xff] %v13084_v35  ;;  %v3858_v46 = vld [vmem:[%s17825_s6 + $0xd8] sm:$0xff] }
 0x2cc   : > { %3817 = vmatprep.mubr.f32.mxu1 %v17800_v58  ;;  %4007 = vmatprep.subr.mxu1 %v17864_v12 }
 0x2cd   : > { %4716 = vrot.lane.b32.xlu0 %v12990_v50, %s17536_s22  ;;  %4708 = vrot.lane.b32.xlu1 %v4679_v48, %s17536_s22  ;;  %v17877_v48 = vld [vmem:[#allocation35_spill] sm:$0xff] }
 0x2ce   : > { %10138 = vmatmul.mubr.msk.f32.gmra.mxu1 %vm3340_vm9, %v3564_v9  ;;  %4110 = vmatprep.mubr.f32.mxu0 %v17800_v58  ;;  %v3862_v9 = vld [vmem:[%s17825_s6 + $0xf8] sm:$0xff] }
 0x2cf   : > { %4008 = vmatpush2.msra.mxu1 %v17866_v45  ;;  %3823 = vmatprep.mubr.f32.mxu1 %v17800_v58 }
 0x2d0   : > { %4009 = vmatprep.subr.mxu1 %v17867_v56  ;;  %4306 = vmatprep.subr.mxu0 %v17864_v12  ;;  %v17879_v12 = vld [vmem:[#allocation27_spill] sm:$0xff] }
 0x2d1   : > { %4010 = vmatpush2.msra.mxu1 %v17869_v60  ;;  %4714 = vrot.lane.b32.xlu0 %v4682_v57, %s17536_s22  ;;  %v1413_v57 = vadd.f32 %v12860_v61, %v12847_v62 }
 0x2d2   : > { %4011 = vmatprep.subr.mxu1 %v17870_v54  ;;  %4700 = vrot.lane.b32.xlu1 %v4675_v59, %s17536_s22  ;;  %v17880_v59 = vld [vmem:[#allocation26_spill] sm:$0xff] }
 0x2d3   : > { %10139 = vmatmul.mubr.msk.f32.gmra.mxu1 %vm3340_vm9, %v3567_v32  ;;  %10141 = vmatmul.mubr.msk.f32.gmra.mxu0 %vm3340_vm9, %v3860_v51  ;;  %v3866_v32 = vld [vmem:[%s17825_s6 + $0x118] sm:$0xff]  ;;  %v13106_v51 = vpop.f32.mrf.mxu1 }
 0x2d4   : > { %4012 = vmatpush2.msra.mxu1 %v17871_v24  ;;  %4015 = vmatprep.mubr.f32.mxu1 %v3856_v3  ;;  %v17881_v3 = vld [vmem:[#allocation28_spill] sm:$0xff]  ;;  %17882 = vst [vmem:[#allocation40_spill] sm:$0xff] %v13106_v51 }
 0x2d5   : > { %4013 = vmatprep.subr.mxu1 %v17873_v23  ;;  %4706 = vrot.lane.b32.xlu0 %v4678_v16, %s17536_s22  ;;  %v3861_v16 = vld [vmem:[%s17825_s6 + $0xf0] sm:$0xff] }
 0x2d6   : > { %4014 = vmatpush2.msra.mxu1 %v17874_v26  ;;  %4116 = vmatprep.mubr.f32.mxu0 %v17800_v58 }
 0x2d7   : > { %4363 = vmatprep.subr.mxu1 %v12213_v42  ;;  %4016 = vmatmul.mubr.f32.vlgmr.msra.gmra.mxu1 %v3855_v7  ;;  %v13092_v42 = vpop.f32.mrf.mxu0  ;;  %v17883_v7 = vld [vmem:[#allocation30_spill] sm:$0xff] }
 0x2d8   : > { %4364 = vmatpush1.msra.mxu1 %v17875_v14  ;;  %4021 = vmatprep.mubr.f32.mxu1 %v3859_v63  ;;  %17878 = vst [vmem:[#allocation39_spill] sm:$0xff] %v13092_v42  ;;  %v1265_v14 = vadd.f32 %v12843_v29, %v12832_v22 }
 0x2d9   : > { %4365 = vmatprep.subr.mxu1 %v17877_v48  ;;  %4704 = vrot.lane.b32.xlu0 %v12990_v50, %s17536_s22  ;;  %v13112_v63 = vpop.f32.mrf.mxu0 }
 0x2da   : > { %4366 = vmatpush1.msra.mxu1 %v17879_v12  ;;  %10142 = vmatmul.mubr.msk.f32.gmra.mxu0 %vm3340_vm9, %v3863_v47  ;;  %17884 = vst [vmem:[#allocation41_spill] sm:$0xff] %v13112_v63  ;;  %v3865_v47 = vld [vmem:[%s17825_s6 + $0x110] sm:$0xff]  ;;  %v1414_v12 = vadd.f32 %v1413_v57, %v12874_v41  ;;  %v1266_v57 = vadd.f32 %v1265_v14, %v12855_v44 }
 0x2db   : > { %4367 = vmatprep.subr.mxu1 %v17880_v59  ;;  %4022 = vmatmul.mubr.f32.gmra.mxu1 %v3858_v46  ;;  %v17885_v46 = vld [vmem:[#allocation29_spill] sm:$0xff]  ;;  %v1857_v59 = vadd.f32 %v13112_v63, %v13092_v42 }
 0x2dc   : > { %4368 = vmatpush1.msra.mxu1 %v17881_v3  ;;  %4027 = vmatprep.mubr.f32.mxu1 %v3862_v9  ;;  %v13128_v3 = vpop.f32.mrf.mxu1 }
 0x2dd   : > { %4369 = vmatprep.subr.mxu1 %v17883_v7  ;;  %4122 = vmatprep.mubr.f32.mxu0 %v17800_v58  ;;  %17886 = vst [vmem:[#allocation42_spill] sm:$0xff] %v13128_v3  ;;  %v3864_v7 = vld [vmem:[%s17825_s6 + $0x108] sm:$0xff] }
 0x2de   : > { %4370 = vmatpush1.msra.mxu1 %v17885_v46  ;;  %v4995_v48 = vpop.permute.xlu0 %4994  ;;  %v13121_v9 = vpop.permute.xlu1 %4988  ;;  %10143 = vmatmul.mubr.msk.f32.gmra.mxu0 %vm3340_vm9, %v3866_v32 }
 0x2df   : > { %4028 = vmatmul.mubr.f32.gmra.mxu1 %v3861_v16  ;;  %4307 = vmatpush2.msra.mxu0 %v17866_v45  ;;  %v13134_v46 = vpop.f32.mrf.mxu0  ;;  %v1561_v45 = vadd.f32 %v12954_v5, %v12937_v37  ;;  %v1415_v16 = vadd.f32 %v1414_v12, %v12887_v43  ;;  %v13149_v14 = vpop.f32.mrf.mxu1 }
 0x2e0   : > { %4033 = vmatprep.mubr.f32.mxu1 %v3865_v47  ;;  %4308 = vmatprep.subr.mxu0 %v17867_v56  ;;  %17887 = vst [vmem:[#allocation43_spill] sm:$0xff] %v13134_v46  ;;  %v1709_v56 = vadd.f32 %v12979_v33, %v12966_v18  ;;  %17889 = vst [vmem:[#allocation45_spill] sm:$0xff] %v13149_v14 }
 0x2e1   : > { %4309 = vmatpush2.msra.mxu0 %v17869_v60  ;;  %v1858_v60 = vadd.f32 %v1857_v59, %v13134_v46  ;;  %v13156_v12 = vpop.f32.mrf.mxu0  ;;  %v1416_v59 = vadd.f32 %v1415_v16, %v12901_v49  ;;  %v2005_v46 = vadd.f32 %v13149_v14, %v13128_v3  ;;  %v13168_v42 = vpop.f32.mrf.mxu1 }
 0x2e2   : > { %v4997_v32 = vpop.permute.xlu0 %4996  ;;  %4310 = vmatprep.subr.mxu0 %v17870_v54  ;;  %v4987_v47 = vpop.permute.xlu1 %4986  ;;  %v4156_v54 = vld [vmem:[%s17825_s6 + $0x130] sm:$0xff]  ;;  %17890 = vst [vmem:[#allocation46_spill] sm:$0xff] %v13156_v12  ;;  %17891 = vst [vmem:[#allocation47_spill] sm:$0xff] %v13168_v42 }
 0x2e3   : > { %4034 = vmatmul.mubr.f32.gmra.mxu1 %v3864_v7  ;;  %v13143_v63 = vsel %vm986_vm2, %v4995_v48, %v4997_v32  ;;  %4311 = vmatpush2.msra.mxu0 %v17871_v24  ;;  %v1267_v24 = vadd.f32 %v1266_v57, %v12870_v10  ;;  %v1562_v7 = vadd.f32 %v1561_v45, %v12970_v11  ;;  %v13171_v57 = vpop.f32.mrf.mxu0 }
 0x2e4   : > { %17888 = vst [vmem:[#allocation44_spill] sm:$0xff] %v13143_v63  ;;  %5512 = vmatprep.subr.mxu1 %v13143_v63  ;;  %4403 = vmatprep.mubr.f32.mxu1 %v17800_v58  ;;  %v1710_v32 = vadd.f32 %v1709_v56, %v13001_v13  ;;  %v1859_v63 = vadd.f32 %v1858_v60, %v13156_v12  ;;  %17892 = vst [vmem:[#allocation48_spill] sm:$0xff] %v13171_v57  ;;  %v13183_v12 = vpop.f32.mrf.mxu1 }
 0x2e5   : > { %4312 = vmatprep.subr.mxu0 %v17873_v23  ;;  %v1268_v16 = vadd.f32 %v1267_v24, %v12883_v34  ;;  %v1563_v56 = vadd.f32 %v1562_v7, %v12988_v39  ;;  %v1417_v60 = vadd.f32 %v1416_v59, %v12915_v40  ;;  %v2006_v3 = vadd.f32 %v2005_v46, %v13168_v42  ;;  %v13185_v13 = vpop.f32.mrf.mxu0 }
 0x2e6   : > { %4313 = vmatpush2.msra.mxu0 %v17874_v26  ;;  %v1860_v14 = vadd.f32 %v1859_v63, %v13171_v57  ;;  %17894 = vst [vmem:[#allocation50_spill] sm:$0xff] %v13183_v12  ;;  %17895 = vst [vmem:[#allocation51_spill] sm:$0xff] %v13185_v13  ;;  %v13193_v57 = vpop.f32.mrf.mxu1 }
 0x2e7   : > { %10144 = vmatmul.mubr.msk.f32.vlgmr.msra.gmra.mxu1 %vm3340_vm9, %v4156_v54  ;;  %v1711_v54 = vadd.f32 %v1710_v32, %v13020_v20  ;;  %v1564_v24 = vadd.f32 %v1563_v56, %v13005_v8  ;;  %v1418_v7 = vadd.f32 %v1417_v60, %v12931_v17  ;;  %v2007_v63 = vadd.f32 %v2006_v3, %v13183_v12  ;;  %v13199_v42 = vpop.f32.mrf.mxu0 }
 0x2e8   : > { %v4993_v23 = vpop.permute.xlu0 %4992  ;;  %4409 = vmatprep.mubr.f32.mxu1 %v17800_v58  ;;  %v4985_v45 = vpop.permute.xlu1 %4984  ;;  %v1861_v32 = vadd.f32 %v1860_v14, %v13185_v13  ;;  %17896 = vst [vmem:[#allocation52_spill] sm:$0xff] %v13193_v57  ;;  %17898 = vst [vmem:[#allocation37_spill] sm:$0xff] %v13199_v42 }
 0x2e9   : > { %v13174_v26 = vsel %vm986_vm2, %v4993_v23, %v4995_v48  ;;  %v1269_v48 = vadd.f32 %v1268_v16, %v12897_v30  ;;  %v1712_v59 = vadd.f32 %v1711_v54, %v13039_v0  ;;  %v13203_v16 = vsel %vm986_vm2, %v4987_v47, %v13121_v9 }
 0x2ea   : > { %17893 = vst [vmem:[#allocation49_spill] sm:$0xff] %v13174_v26  ;;  %5513 = vmatpush1.msra.mxu1 %v13174_v26  ;;  %17899 = vst [vmem:[#allocation35_spill] sm:$0xff] %v13203_v16  ;;  %v1565_v14 = vadd.f32 %v1564_v24, %v13025_v52  ;;  %v1419_v3 = vadd.f32 %v1418_v7, %v12945_v21  ;;  %v1862_v12 = vadd.f32 %v1861_v32, %v13199_v42 }
 0x2eb   : > { %v1270_v56 = vadd.f32 %v1269_v48, %v12911_v28  ;;  %v2008_v13 = vadd.f32 %v2007_v63, %v13193_v57  ;;  %v13218_v48 = vpop.f32.mrf.mxu0 }
 0x2ec   : > { %17902 = vst [vmem:[#allocation28_spill] sm:$0xff] %v13218_v48  ;;  %v1566_v7 = vadd.f32 %v1565_v14, %v13047_v38  ;;  %v1863_v63 = vadd.f32 %v1862_v12, %v13218_v48 }
 0x2ed   : > { %v1271_v24 = vadd.f32 %v1270_v56, %v12923_v2 }
 0x2ee   : > { %v1567_v56 = vadd.f32 %v1566_v7, %v13068_v19 }
 0x2ef   : > { %v4991_v23 = vpop.permute.xlu0 %4990  ;;  %v4977_v26 = vpop.permute.xlu1 %4976 }
 0x2f0   : > { %v13197_v46 = vsel %vm986_vm2, %v13121_v9, %v4991_v23  ;;  %v1713_v23 = vadd.f32 %v1712_v59, %v13064_v15  ;;  %v13213_v9 = vpop.f32.mrf.mxu1 }
 0x2f1   : > { %17897 = vst [vmem:[#allocation53_spill] sm:$0xff] %v13197_v46  ;;  %5514 = vmatprep.subr.mxu1 %v13197_v46  ;;  %17900 = vst [vmem:[#allocation27_spill] sm:$0xff] %v13213_v9  ;;  %v2009_v46 = vadd.f32 %v2008_v13, %v13213_v9 }
 0x2f2   : > { %5515 = vmatpush1.msra.mxu1 %v13203_v16  ;;  %v1714_v32 = vadd.f32 %v1713_v23, %v13084_v35 }
 0x2f3   : > { %v4983_v60 = vpop.permute.xlu0 %4982  ;;  %v4975_v54 = vpop.permute.xlu1 %4974 }
 0x2f4   : > { %v13216_v47 = vsel %vm986_vm2, %v4983_v60, %v4985_v45  ;;  %v13226_v45 = vpop.f32.mrf.mxu1  ;;  %v1715_v14 = vadd.f32 %v1714_v32, %v13106_v51 }
 0x2f5   : > { %17901 = vst [vmem:[#allocation26_spill] sm:$0xff] %v13216_v47  ;;  %5516 = vmatprep.subr.mxu1 %v13216_v47  ;;  %17903 = vst [vmem:[#allocation30_spill] sm:$0xff] %v13226_v45 }
 0x2f6   : > { %1420 = vadd.xlane.f32.xlu1 %v1419_v3  ;;  %v2010_v3 = vadd.f32 %v2009_v46, %v13226_v45  ;;  %v13235_v23 = vpop.f32.mrf.mxu1 }
 0x2f7   : > { %v4981_v16 = vpop.permute.xlu0 %4980  ;;  %v4895_v59 = vpop.permute.xlu1 %4894  ;;  %17905 = vst [vmem:[#allocation54_spill] sm:$0xff] %v13235_v23 }
 0x2f8   : > { %1272 = vadd.xlane.f32.xlu0 %v1271_v24  ;;  %v13229_v57 = vsel %vm986_vm2, %v4981_v16, %v4983_v60  ;;  %v13241_v16 = vsel %vm986_vm2, %v4975_v54, %v4977_v26  ;;  %v2011_v60 = vadd.f32 %v2010_v3, %v13235_v23  ;;  %v4154_v3 = vld [vmem:[%s17825_s6 + $0x120] sm:$0xff] }
 0x2f9   : > { %17904 = vst [vmem:[#allocation29_spill] sm:$0xff] %v13229_v57  ;;  %5517 = vmatpush1.msra.mxu1 %v13229_v57  ;;  %17907 = vst [vmem:[#allocation56_spill] sm:$0xff] %v13241_v16 }
 0x2fa   : > { %1864 = vadd.xlane.f32.xlu1 %v1863_v63 }
 0x2fc   : > { %1568 = vadd.xlane.f32.xlu0 %v1567_v56 }
 0x2fd   : > { %v4979_v12 = vpop.permute.xlu0 %4978  ;;  %v4887_v24 = vpop.permute.xlu1 %4886 }
 0x2fe   : > { %v13238_v13 = vsel %vm986_vm2, %v4977_v26, %v4979_v12 }
 0x2ff   : > { %17906 = vst [vmem:[#allocation55_spill] sm:$0xff] %v13238_v13  ;;  %5518 = vmatprep.subr.mxu1 %v13238_v13 }
 0x300   : > { %1716 = vadd.xlane.f32.xlu0 %v1715_v14  ;;  %5519 = vmatpush1.msra.mxu1 %v13241_v16 }
 0x302   : > { %v4893_v7 = vpop.permute.xlu0 %4892  ;;  %v4885_v32 = vpop.permute.xlu1 %4884 }
 0x303   : > { %v13247_v46 = vsel %vm945_vm1, %v4893_v7, %v4895_v59  ;;  %v4155_v59 = vld [vmem:[%s17825_s6 + $0x128] sm:$0xff] }
 0x304   : > { %17908 = vst [vmem:[#allocation57_spill] sm:$0xff] %v13247_v46  ;;  %2012 = vadd.xlane.f32.xlu0 %v2011_v60  ;;  %5520 = vmatprep.subr.mxu1 %v13247_v46  ;;  %v13266_v60 = vsel %vm945_vm1, %v4885_v32, %v4887_v24  ;;  %v4676_v46 = vmul.f32 %v12925_v6, %v12777_v1 }
 0x305   : > { %4314 = vmatprep.mubr.f32.mxu0 %v4155_v59  ;;  %17911 = vst [vmem:[#allocation60_spill] sm:$0xff] %v13266_v60 }
 0x306   : > { %4315 = vmatmul.mubr.f32.vlgmr.msra.gmra.mxu0 %v4154_v3 }
 0x307   : > { %v4891_v63 = vpop.permute.xlu0 %4890  ;;  %v4883_v56 = vpop.permute.xlu1 %4882 }
 0x308   : > { %v13251_v26 = vsel %vm945_vm1, %v4891_v63, %v4893_v7  ;;  %v4158_v7 = vld [vmem:[%s17825_s6 + $0x140] sm:$0xff]  ;;  %v4157_v63 = vld [vmem:[%s17825_s6 + $0x138] sm:$0xff] }
 0x309   : > { %17909 = vst [vmem:[#allocation58_spill] sm:$0xff] %v13251_v26  ;;  %5521 = vmatpush1.msra.mxu1 %v13251_v26  ;;  %4320 = vmatprep.mubr.f32.mxu0 %v4158_v7  ;;  %v4160_v7 = vld [vmem:[%s17825_s6 + $0x150] sm:$0xff] }
 0x30a   : > { %4321 = vmatmul.mubr.f32.gmra.mxu0 %v4157_v63  ;;  %v4164_v26 = vld [vmem:[%s17825_s6 + $0x170] sm:$0xff] }
 0x30b   : > { %4698 = vrot.lane.b32.xlu1 %v12990_v50, %s17536_s22  ;;  %v13269_v50 = vpop.f32.mrf.mxu0 }
 0x30c   : > { %v4889_v54 = vpop.permute.xlu0 %4888  ;;  %v4875_v14 = vpop.permute.xlu1 %4874  ;;  %17912 = vst [vmem:[#allocation61_spill] sm:$0xff] %v13269_v50 }
 0x30d   : > { %v13263_v12 = vsel %vm945_vm1, %v4887_v24, %v4889_v54  ;;  %v4159_v24 = vld [vmem:[%s17825_s6 + $0x148] sm:$0xff]  ;;  %v13282_v59 = vpop.f32.mrf.mxu0 }
 0x30e   : > { %17910 = vst [vmem:[#allocation59_spill] sm:$0xff] %v13263_v12  ;;  %5522 = vmatprep.subr.mxu1 %v13263_v12  ;;  %10145 = vmatmul.mubr.msk.f32.gmra.mxu1 %vm3340_vm9, %v4159_v24  ;;  %17913 = vst [vmem:[#allocation62_spill] sm:$0xff] %v13282_v59  ;;  %v4162_v24 = vld [vmem:[%s17825_s6 + $0x160] sm:$0xff] }
 0x30f   : > { %5523 = vmatpush1.msra.mxu1 %v13266_v60  ;;  %v4161_v60 = vld [vmem:[%s17825_s6 + $0x158] sm:$0xff]  ;;  %4415 = vmatprep.mubr.f32.mxu1 %v17800_v58  ;;  %v13301_v63 = vpop.f32.mrf.mxu0 }
 0x310   : > { %4326 = vmatprep.mubr.f32.mxu0 %v4161_v60  ;;  %17915 = vst [vmem:[#allocation64_spill] sm:$0xff] %v13301_v63 }
 0x311   : > { %v4881_v32 = vpop.permute.xlu0 %4880  ;;  %v4873_v54 = vpop.permute.xlu1 %4872  ;;  %4327 = vmatmul.mubr.f32.gmra.mxu0 %v4160_v7  ;;  %v4163_v7 = vld [vmem:[%s17825_s6 + $0x168] sm:$0xff] }
 0x312   : > { %v13285_v3 = vsel %vm945_vm1, %v4881_v32, %v4883_v56  ;;  %v2153_v56 = vadd.f32 %v13282_v59, %v13269_v50  ;;  %10146 = vmatmul.mubr.msk.f32.gmra.mxu1 %vm3340_vm9, %v4162_v24  ;;  %4332 = vmatprep.mubr.f32.mxu0 %v4164_v26  ;;  %v13322_v24 = vpop.f32.mrf.mxu0 }
 0x313   : > { %17914 = vst [vmem:[#allocation63_spill] sm:$0xff] %v13285_v3  ;;  %5524 = vmatprep.subr.mxu1 %v13285_v3  ;;  %4421 = vmatprep.mubr.f32.mxu1 %v17800_v58  ;;  %17917 = vst [vmem:[#allocation66_spill] sm:$0xff] %v13322_v24 }
 0x315   : > { %4333 = vmatmul.mubr.f32.gmra.mxu0 %v4163_v7 }
 0x316   : > { %v4879_v12 = vpop.permute.xlu0 %4878  ;;  %v4793_v3 = vpop.permute.xlu1 %4792  ;;  %5665 = vmatprep.mubr.f32.mxu0 %v17800_v58 }
 0x317   : > { %v13305_v60 = vsel %vm945_vm1, %v4879_v12, %v4881_v32  ;;  %v4165_v12 = vld [vmem:[%s17825_s6 + $0x178] sm:$0xff]  ;;  %v2154_v32 = vadd.f32 %v2153_v56, %v13301_v63 }
 0x318   : > { %17916 = vst [vmem:[#allocation65_spill] sm:$0xff] %v13305_v60  ;;  %5525 = vmatpush1.msra.mxu1 %v13305_v60  ;;  %v13329_v60 = vsel %vm945_vm1, %v4873_v54, %v4875_v14 }
 0x319   : > { %10147 = vmatmul.mubr.msk.f32.gmra.mxu1 %vm3340_vm9, %v4165_v12  ;;  %17919 = vst [vmem:[#allocation68_spill] sm:$0xff] %v13329_v60  ;;  %v2155_v16 = vadd.f32 %v2154_v32, %v13322_v24 }
 0x31a   : > { %4702 = vrot.lane.b32.xlu0 %v4676_v46, %s17536_s22  ;;  %v13335_v46 = vpop.f32.mrf.mxu0 }
 0x31b   : > { %v4877_v6 = vpop.permute.xlu0 %4876  ;;  %v4785_v56 = vpop.permute.xlu1 %4784  ;;  %17920 = vst [vmem:[#allocation69_spill] sm:$0xff] %v13335_v46  ;;  %v2156_v12 = vadd.f32 %v2155_v16, %v13335_v46 }
 0x31c   : > { %v13326_v26 = vsel %vm945_vm1, %v4875_v14, %v4877_v6  ;;  %v13343_v14 = vld [vmem:[%s12597_s1 + $0x30] sm:$0xff]  ;;  %v13347_v54 = vpop.f32.mrf.mxu0 }
 0x31d   : > { %17918 = vst [vmem:[#allocation67_spill] sm:$0xff] %v13326_v26  ;;  %5526 = vmatprep.subr.mxu1 %v13326_v26  ;;  %17922 = vst [vmem:[#allocation71_spill] sm:$0xff] %v13343_v14  ;;  %v2157_v32 = vadd.f32 %v2156_v12, %v13347_v54 }
 0x31e   : > { %5286 = vrot.lane.b32.xlu0 %v12650_v25, %s17792_s27  ;;  %5527 = vmatpush1.msra.mxu1 %v13329_v60  ;;  %17923 = vst [vmem:[#allocation72_spill] sm:$0xff] %v13347_v54  ;;  %v13352_v60 = vld [vmem:[%s12597_s1 + $0x20] sm:$0xff]  ;;  %v13356_v16 = vpop.f32.mrf.mxu0 }
 0x31f   : > { %17924 = vst [vmem:[#allocation73_spill] sm:$0xff] %v13352_v60  ;;  %17925 = vst [vmem:[#allocation74_spill] sm:$0xff] %v13356_v16  ;;  %v2158_v47 = vadd.f32 %v2157_v32, %v13356_v16 }
 0x320   : > { %v4791_v7 = vpop.permute.xlu0 %4790  ;;  %v4779_v25 = vpop.permute.xlu1 %4778 }
 0x321   : > { %v13340_v6 = vsel %vm903_vm7, %v4791_v7, %v4793_v3  ;;  %v13363_v12 = vpop.f32.mrf.mxu0 }
 0x322   : > { %17921 = vst [vmem:[#allocation70_spill] sm:$0xff] %v13340_v6  ;;  %5284 = vrot.lane.b32.xlu0 %v13343_v14, %s17792_s27  ;;  %5528 = vmatprep.subr.mxu1 %v13340_v6  ;;  %17927 = vst [vmem:[#allocation76_spill] sm:$0xff] %v13363_v12  ;;  %v2159_v32 = vadd.f32 %v2158_v47, %v13363_v12 }
 0x325   : > { %v10417_v26 = vpop.permute.xlu0 %10416  ;;  %v10422_v23 = vpop.permute.xlu1 %10421 }
 0x326   : > { %5278 = vrot.lane.b32.xlu0 %v13352_v60, %s17792_s27  ;;  %v10418_v3 = vunpack.i.l.bf16 %v10417_v26  ;;  %v10419_v13 = vunpack.i.h.bf16 %v10417_v26 }
 0x328   : > { %v13359_v57 = vsel %vm903_vm7, %v10418_v3, %v4791_v7  ;;  %v13372_v26 = vsel %vm903_vm7, %v10419_v13, %v4785_v56  ;;  %v13377_v7 = vsel %vm945_vm1, %v12964_v31, %v12994_v36  ;;  %v10423_v3 = vunpack.i.l.bf16 %v10422_v23 }
 0x329   : > { %17926 = vst [vmem:[#allocation75_spill] sm:$0xff] %v13359_v57  ;;  %5529 = vmatpush1.msra.mxu1 %v13359_v57  ;;  %17929 = vst [vmem:[#allocation78_spill] sm:$0xff] %v13372_v26 }
 0x32a   : > { %10431 = vrot.lane.b32.xlu0 %v17800_v58, %s17792_s27  ;;  %v4787_v6 = vpop.permute.xlu0 %4786  ;;  %v13393_v47 = vsel %vm903_vm7, %v10423_v3, %v4779_v25 }
 0x32b   : > { %v13368_v45 = vsel %vm903_vm7, %v4785_v56, %v4787_v6  ;;  %v4775_v6 = vpop.permute.xlu1 %4774  ;;  %17932 = vst [vmem:[#allocation81_spill] sm:$0xff] %v13393_v47 }
 0x32c   : > { %17928 = vst [vmem:[#allocation77_spill] sm:$0xff] %v13368_v45  ;;  %5530 = vmatprep.subr.mxu1 %v13368_v45  ;;  %v13384_v45 = vld [vmem:[%s12597_s1 + $0x38] sm:$0xff] }
 0x32d   : > { %5531 = vmatpush1.msra.mxu1 %v13372_v26  ;;  %17930 = vst [vmem:[#allocation79_spill] sm:$0xff] %v13384_v45  ;;  %v5180_v13 = vmul.f32 %v13384_v45, %v13377_v7 }
 0x32e   : > { %5268 = vrot.lane.b32.xlu0 %v12777_v1, %s17792_s27  ;;  %v10424_v1 = vunpack.i.h.bf16 %v10422_v23  ;;  %v5172_v23 = vmul.f32 0.0, %v12994_v36 }
 0x32f   : > { %2160 = vadd.xlane.f32.xlu1 %v2159_v32  ;;  %v4781_v57 = vpop.permute.xlu0 %4780  ;;  %v5179_v32 = vmul.f32 %v13343_v14, %v12964_v31  ;;  %v4721_v12 = vpop.permute.xlu1 %4720 }
 0x330   : > { %v13389_v56 = vsel %vm903_vm7, %v4779_v25, %v4781_v57 }
 0x331   : > { %17931 = vst [vmem:[#allocation80_spill] sm:$0xff] %v13389_v56  ;;  %5532 = vmatprep.subr.mxu1 %v13389_v56 }
 0x332   : > { %5214 = vrot.lane.b32.xlu0 %v5180_v13, %s17933_s26  ;;  %5533 = vmatpush1.msra.mxu1 %v13393_v47 }
 0x334   : > { %v4773_v26 = vpop.permute.xlu0 %4772 }
 0x335   : > { %v13400_v16 = vsel %vm903_vm7, %v4773_v26, %v4775_v6  ;;  %v13403_v57 = vsel %vm903_vm7, %v10424_v1, %v4773_v26  ;;  %v4713_v6 = vpop.permute.xlu1 %4712  ;;  %v13415_v26 = vld [vmem:[%s12597_s1 + $0x18] sm:$0xff] }
 0x336   : > { %17934 = vst [vmem:[#allocation82_spill] sm:$0xff] %v13400_v16  ;;  %17935 = vst [vmem:[#allocation83_spill] sm:$0xff] %v13403_v57  ;;  %5212 = vrot.lane.b32.xlu0 %v5179_v32, %s17933_s26  ;;  %5534 = vmatprep.subr.mxu1 %v13400_v16  ;;  %v5174_v13 = vmul.f32 %v13415_v26, %v13377_v7  ;;  %v13426_v32 = vld [vmem:[%s12597_s1 + $0x10] sm:$0xff]  ;;  %v13433_v16 = vld [vmem:[%s12597_s1 + $0x28] sm:$0xff] }
 0x337   : > { %5535 = vmatpush1.msra.mxu1 %v13403_v57  ;;  %17937 = vst [vmem:[#allocation85_spill] sm:$0xff] %v13415_v26  ;;  %17939 = vst [vmem:[#allocation87_spill] sm:$0xff] %v13426_v32 }
 0x338   : > { %17940 = vst [vmem:[#allocation88_spill] sm:$0xff] %v13433_v16 }
 0x339   : > { %v4719_v25 = vpop.permute.xlu0 %4718 }
 0x33a   : > { %5210 = vrot.lane.b32.xlu0 %v5172_v23, %s17933_s26  ;;  %v13411_v3 = vsel %vm884_vm0, %v4719_v25, %v4721_v12  ;;  %v5173_v12 = vmul.f32 %v13426_v32, %v12964_v31 }
 0x33b   : > { %17936 = vst [vmem:[#allocation84_spill] sm:$0xff] %v13411_v3  ;;  %5536 = vmatprep.subr.mxu1 %v13411_v3  ;;  %v4711_v3 = vpop.permute.xlu1 %4710 }
 0x33e   : > { %5202 = vrot.lane.b32.xlu0 %v5174_v13, %s17933_s26  ;;  %v5064_v13 = vsel %vm986_vm2, %v13018_v55, %v13051_v53 }
 0x33f   : > { %v4717_v1 = vpop.permute.xlu0 %4716  ;;  %v5078_v47 = vmul.f32 %v13384_v45, %v5064_v13 }
 0x340   : > { %v13421_v36 = vsel %vm884_vm0, %v4717_v1, %v4719_v25  ;;  %10426 = vrot.lane.b32.xlu1 %v17800_v58, %s17792_s27  ;;  %v13444_v1 = vsel %vm884_vm0, %v4711_v3, %v4713_v6 }
 0x341   : > { %17938 = vst [vmem:[#allocation86_spill] sm:$0xff] %v13421_v36  ;;  %5537 = vmatpush1.msra.mxu1 %v13421_v36  ;;  %17942 = vst [vmem:[#allocation90_spill] sm:$0xff] %v13444_v1 }
 0x342   : > { %5200 = vrot.lane.b32.xlu0 %v5173_v12, %s17933_s26  ;;  %v4709_v12 = vpop.permute.xlu1 %4708 }
 0x343   : > { %v4715_v57 = vpop.permute.xlu0 %4714 }
 0x344   : > { %5280 = vrot.lane.b32.xlu1 %v13433_v16, %s17792_s27  ;;  %v13438_v25 = vsel %vm884_vm0, %v4713_v6, %v4715_v57 }
 0x345   : > { %17941 = vst [vmem:[#allocation89_spill] sm:$0xff] %v13438_v25  ;;  %5538 = vmatprep.subr.mxu1 %v13438_v25  ;;  %v13468_v25 = vld [vmem:[%s12597_s1] sm:$0xff] }
 0x346   : > { %5198 = vrot.lane.b32.xlu0 %v5172_v23, %s17933_s26  ;;  %5539 = vmatpush1.msra.mxu1 %v13444_v1  ;;  %v5077_v1 = vmul.f32 %v13343_v14, %v13018_v55  ;;  %17946 = vst [vmem:[#allocation93_spill] sm:$0xff] %v13468_v25 }
 0x347   : > { %v4707_v36 = vpop.permute.xlu0 %4706 }
 0x348   : > { %5274 = vrot.lane.b32.xlu1 %v13415_v26, %s17792_s27  ;;  %v13452_v57 = vsel %vm884_vm0, %v4707_v36, %v4709_v12  ;;  %v5070_v12 = vmul.f32 0.0, %v13051_v53  ;;  %v5071_v53 = vmul.f32 %v13426_v32, %v13018_v55 }
 0x349   : > { %17943 = vst [vmem:[#allocation91_spill] sm:$0xff] %v13452_v57  ;;  %5540 = vmatprep.subr.mxu1 %v13452_v57 }
 0x34a   : > { %5112 = vrot.lane.b32.xlu0 %v5078_v47, %s17944_s30  ;;  %v5072_v47 = vmul.f32 %v13415_v26, %v5064_v13 }
 0x34b   : > { %v4705_v3 = vpop.permute.xlu0 %4704 }
 0x34c   : > { %v13458_v6 = vsel %vm884_vm0, %v4705_v3, %v4707_v36  ;;  %5272 = vrot.lane.b32.xlu1 %v13426_v32, %s17792_s27  ;;  %v5177_v36 = vmul.f32 %v13433_v16, %v13377_v7  ;;  %v13488_v3 = vsel %vm884_vm0, %v13076_v4, %v13082_v27 }
 0x34d   : > { %17945 = vst [vmem:[#allocation92_spill] sm:$0xff] %v13458_v6  ;;  %5541 = vmatpush1.msra.mxu1 %v13458_v6  ;;  %v5346_v6 = vmul.f32 0.0, %v13082_v27  ;;  %v5074_v27 = vmul.f32 %v13352_v60, %v13018_v55 }
 0x34e   : > { %5110 = vrot.lane.b32.xlu0 %v5077_v1, %s17944_s30  ;;  %v5176_v1 = vmul.f32 %v13352_v60, %v12964_v31 }
 0x350   : > { %5266 = vrot.lane.b32.xlu1 %v13468_v25, %s17792_s27 }
 0x352   : > { %5108 = vrot.lane.b32.xlu0 %v5070_v12, %s17944_s30 }
 0x354   : > { %5216 = vrot.lane.b32.xlu1 %v5172_v23, %s17933_s26 }
 0x356   : > { %5100 = vrot.lane.b32.xlu0 %v5072_v47, %s17944_s30  ;;  %v5354_v47 = vmul.f32 %v13384_v45, %v13488_v3 }
 0x358   : > { %5208 = vrot.lane.b32.xlu1 %v5177_v36, %s17933_s26  ;;  %v13496_v36 = vld [vmem:[%s12597_s1 + $0x8] sm:$0xff] }
 0x359   : > { %17948 = vst [vmem:[#allocation94_spill] sm:$0xff] %v13496_v36 }
 0x35a   : > { %5098 = vrot.lane.b32.xlu0 %v5071_v53, %s17944_s30  ;;  %v5171_v53 = vmul.f32 %v13496_v36, %v13377_v7  ;;  %v5348_v7 = vmul.f32 %v13415_v26, %v13488_v3 }
 0x35c   : > { %5206 = vrot.lane.b32.xlu1 %v5176_v1, %s17933_s26  ;;  %v5353_v1 = vmul.f32 %v13343_v14, %v13076_v4 }
 0x35e   : > { %5096 = vrot.lane.b32.xlu0 %v5070_v12, %s17944_s30 }
 0x360   : > { %5204 = vrot.lane.b32.xlu1 %v5172_v23, %s17933_s26  ;;  %v5170_v23 = vmul.f32 %v13468_v25, %v12964_v31  ;;  %v5347_v31 = vmul.f32 %v13426_v32, %v13076_v4 }
 0x362   : > { %5388 = vrot.lane.b32.xlu0 %v5354_v47, %s17947_s0  ;;  %v5075_v47 = vmul.f32 %v13433_v16, %v5064_v13 }
 0x364   : > { %5196 = vrot.lane.b32.xlu1 %v5171_v53, %s17933_s26  ;;  %v5069_v53 = vmul.f32 %v13496_v36, %v5064_v13 }
 0x366   : > { %5386 = vrot.lane.b32.xlu0 %v5353_v1, %s17947_s0  ;;  %v4701_v1 = vpop.permute.xlu1 %4700 }
 0x368   : > { %5194 = vrot.lane.b32.xlu1 %v5170_v23, %s17933_s26  ;;  %v5068_v23 = vmul.f32 %v13468_v25, %v13018_v55 }
 0x36a   : > { %5384 = vrot.lane.b32.xlu0 %v5346_v6, %s17947_s0 }
 0x36c   : > { %5114 = vrot.lane.b32.xlu1 %v5070_v12, %s17944_s30 }
 0x36e   : > { %5376 = vrot.lane.b32.xlu0 %v5348_v7, %s17947_s0 }
 0x370   : > { %5106 = vrot.lane.b32.xlu1 %v5075_v47, %s17944_s30 }
 0x372   : > { %5374 = vrot.lane.b32.xlu0 %v5347_v31, %s17947_s0 }
 0x374   : > { %5104 = vrot.lane.b32.xlu1 %v5074_v27, %s17944_s30 }
 0x376   : > { %5372 = vrot.lane.b32.xlu0 %v5346_v6, %s17947_s0 }
 0x378   : > { %5102 = vrot.lane.b32.xlu1 %v5070_v12, %s17944_s30 }
 0x37c   : > { %5094 = vrot.lane.b32.xlu1 %v5069_v53, %s17944_s30  ;;  %v5351_v53 = vmul.f32 %v13433_v16, %v13488_v3 }
 0x37f   : > { %v1421_v7 = vpop.xlane.xlu1 %1420 }
 0x380   : > { %v1422_v47 = vrot.slane %v1421_v7, 4  ;;  %5092 = vrot.lane.b32.xlu1 %v5068_v23, %s17944_s30 }
 0x381   : > { %v1273_v31 = vpop.xlane.xlu0 %1272 }
 0x382   : > { %v1423_v57 = vadd.f32 %v1422_v47, %v1421_v7  ;;  %v1274_v56 = vrot.slane %v1273_v31, 4 }
 0x383   : > { %v1865_v27 = vpop.xlane.xlu1 %1864 }
 0x384   : > { %v1275_v58 = vadd.f32 %v1274_v56, %v1273_v31  ;;  %v1866_v32 = vrot.slane %v1865_v27, 4  ;;  %5390 = vrot.lane.b32.xlu1 %v5346_v6, %s17947_s0  ;;  %v1424_v12 = vrot.slane %v1423_v57, 2  ;;  %v5350_v31 = vmul.f32 %v13352_v60, %v13076_v4 }
 0x385   : > { %v1569_v13 = vpop.xlane.xlu0 %1568 }
 0x386   : > { %v1867_v26 = vadd.f32 %v1866_v32, %v1865_v27  ;;  %v1570_v14 = vrot.slane %v1569_v13, 4  ;;  %v1276_v55 = vrot.slane %v1275_v58, 2  ;;  %v1425_v45 = vadd.f32 %v1424_v12, %v1423_v57 }
 0x388   : > { %v1571_v54 = vadd.f32 %v1570_v14, %v1569_v13  ;;  %5382 = vrot.lane.b32.xlu1 %v5351_v53, %s17947_s0  ;;  %v1277_v23 = vadd.f32 %v1276_v55, %v1275_v58  ;;  %v1426_v47 = vrot.slane %v1425_v45, 1  ;;  %v1868_v46 = vrot.slane %v1867_v26, 2  ;;  %v4699_v53 = vpop.permute.xlu1 %4698 }
 0x389   : > { %v1717_v7 = vpop.xlane.xlu0 %1716 }
 0x38a   : > { %v1718_v56 = vrot.slane %v1717_v7, 4  ;;  %v1278_v24 = vrot.slane %v1277_v23, 1  ;;  %v1572_v63 = vrot.slane %v1571_v54, 2  ;;  %v1427_v57 = vadd.f32 %v1426_v47, %v1425_v45 }
 0x38b   : > { %v1869_v14 = vadd.f32 %v1868_v46, %v1867_v26 }
 0x38c   : > { %v1719_v59 = vadd.f32 %v1718_v56, %v1717_v7  ;;  %5380 = vrot.lane.b32.xlu1 %v5350_v31, %s17947_s0  ;;  %v1279_v32 = vadd.f32 %v1278_v24, %v1277_v23  ;;  %v1573_v27 = vadd.f32 %v1572_v63, %v1571_v54  ;;  %v5345_v63 = vmul.f32 %v13496_v36, %v13488_v3 }
 0x38d   : > { %v2013_v16 = vpop.xlane.xlu0 %2012  ;;  %v1870_v7 = vrot.slane %v1869_v14, 1  ;;  %v13542_v54 = vsel %vm884_vm0, %v4699_v53, %v4701_v1 }
 0x38e   : > { %v2014_v12 = vrot.slane %v2013_v16, 4  ;;  %10243 = vpush %v1279_v32  ;;  %v1574_v58 = vrot.slane %v1573_v27, 1  ;;  %v1720_v13 = vrot.slane %v1719_v59, 2  ;;  %17950 = vst [vmem:[#allocation96_spill] sm:$0xff] %v13542_v54 }
 0x38f   : > { %10245 = vpush %v1427_v57  ;;  %v1871_v26 = vadd.f32 %v1870_v7, %v1869_v14  ;;  %v13559_v57 = vpop.f32.mrf.mxu1 }
 0x390   : > { %v2015_v55 = vadd.f32 %v2014_v12, %v2013_v16  ;;  %5378 = vrot.lane.b32.xlu1 %v5346_v6, %s17947_s0  ;;  %v1575_v60 = vadd.f32 %v1574_v58, %v1573_v27  ;;  %v1721_v50 = vadd.f32 %v1720_v13, %v1719_v59 }
 0x391   : > { %v4703_v9 = vpop.permute.xlu0 %4702  ;;  %v13565_v58 = vpop.f32.mrf.mxu1 }
 0x392   : > { %10247 = vpush %v1575_v60  ;;  %v13539_v45 = vsel %vm884_vm0, %v4701_v1, %v4703_v9  ;;  %v1722_v24 = vrot.slane %v1721_v50, 1  ;;  %v2016_v46 = vrot.slane %v2015_v55, 2  ;;  %v5344_v9 = vmul.f32 %v13468_v25, %v13076_v4  ;;  %v13557_v4 = vpop.f32.mrf.mxu0 }
 0x393   : > { %17949 = vst [vmem:[#allocation95_spill] sm:$0xff] %v13539_v45  ;;  %5542 = vmatprep.subr.mxu1 %v13539_v45 }
 0x394   : > { %5370 = vrot.lane.b32.xlu1 %v5345_v63, %s17947_s0  ;;  %5543 = vmatpush1.msra.mxu1 %v13542_v54  ;;  %v1723_v59 = vadd.f32 %v1722_v24, %v1721_v50  ;;  %v2017_v16 = vadd.f32 %v2016_v46, %v2015_v55  ;;  %v5417_v50 = vld [vmem:[%s17951_s7 + $0x8] sm:$0xff]  ;;  %v13563_v12 = vpop.f32.mrf.mxu0  ;;  %v13571_v24 = vpop.f32.mrf.mxu1 }
 0x395   : > { %v5287_v60 = vpop.permute.xlu0 %5286  ;;  %5576 = vmatprep.mubr.f32.mxu1 %v5417_v50 }
 0x396   : > { %10249 = vpush %v1723_v59  ;;  %v2018_v6 = vrot.slane %v2017_v16, 1  ;;  %v13569_v63 = vpop.f32.mrf.mxu0  ;;  %v13580_v54 = vpop.f32.mrf.mxu1 }
 0x397   : > { %10251 = vpush %v1871_v26 }
 0x398   : > { %5368 = vrot.lane.b32.xlu1 %v5344_v9, %s17947_s0  ;;  %v2019_v3 = vadd.f32 %v2018_v6, %v2017_v16  ;;  %v13578_v50 = vpop.f32.mrf.mxu0 }
 0x399   : > { %v5285_v1 = vpop.permute.xlu0 %5284 }
 0x39a   : > { %10253 = vpush %v2019_v3  ;;  %v13576_v6 = vsel %vm1087_vm6, %v5285_v1, %v5287_v60 }
 0x39b   : > { %17952 = vst [vmem:[#allocation97_spill] sm:$0xff] %v13576_v6 }
 0x39d   : > { %v5279_v23 = vpop.permute.xlu0 %5278 }
 0x3a1   : > { %v10432_v47 = vpop.permute.xlu0 %10431 }
 0x3a2   : > { %v10433_v45 = vunpack.i.l.bf16 %v10432_v47 }
 0x3a5   : > { %v5269_v56 = vpop.permute.xlu0 %5268 }
 0x3a9   : > { %v13553_v31 = vpop.permute.xlu0 %5214 }
 0x3ad   : > { %v5213_v32 = vpop.permute.xlu0 %5212 }
 0x3b1   : > { %v13555_v27 = vpop.permute.xlu0 %5210 }
 0x3b5   : > { %v13561_v14 = vpop.permute.xlu0 %5202 }
 0x3b8   : > { %v2161_v13 = vpop.xlane.xlu1 %2160 }
 0x3b9   : > { %v2162_v53 = vrot.slane %v2161_v13, 4  ;;  %v13567_v55 = vpop.permute.xlu0 %5200 }
 0x3bb   : > { %v2163_v7 = vadd.f32 %v2162_v53, %v2161_v13 }
 0x3bc   : > { %v10427_v46 = vpop.permute.xlu1 %10426 }
 0x3bd   : > { %v10429_v59 = vunpack.i.h.bf16 %v10427_v46  ;;  %v10428_v16 = vunpack.i.l.bf16 %v10427_v46  ;;  %v13573_v26 = vpop.permute.xlu0 %5198  ;;  %v2164_v9 = vrot.slane %v2163_v7, 2 }
 0x3bf   : > { %v2165_v3 = vadd.f32 %v2164_v9, %v2163_v7  ;;  %v13583_v13 = vsel %vm1087_vm6, %v5287_v60, %v10428_v16  ;;  %v13596_v60 = vpop.f32.mrf.mxu0  ;;  %v13598_v16 = vpop.f32.mrf.mxu1  ;;  %s10244_s24 = spop %10243 }
 0x3c0   : > { %17953 = vst [vmem:[#allocation98_spill] sm:$0xff] %v13583_v13  ;;  %v5281_v53 = vpop.permute.xlu1 %5280  ;;  %5544 = vmatprep.subr.mxu1 %v13583_v13  ;;  %v10434_v13 = vunpack.i.h.bf16 %v10432_v47  ;;  %s10246_s3 = spop %10245 }
 0x3c1   : > { %v2166_v25 = vrot.slane %v2165_v3, 1  ;;  %5545 = vmatpush2.msra.mxu1 %v13576_v6  ;;  %v13588_v46 = vsel %vm1087_vm6, %v5281_v53, %v10429_v59  ;;  %v13591_v1 = vsel %vm1087_vm6, %v5279_v23, %v5281_v53  ;;  %v13593_v7 = vpop.permute.xlu0 %5112  ;;  %v13605_v23 = vpop.f32.mrf.mxu0  ;;  %s1429_s22 = sadd.f32 %s10246_s3, %s10244_s24 }
 0x3c2   : > { %17954 = vst [vmem:[#allocation99_spill] sm:$0xff] %v13588_v46  ;;  %17955 = vst [vmem:[#allocation100_spill] sm:$0xff] %v13591_v1  ;;  %5546 = vmatprep.subr.mxu1 %v13588_v46  ;;  %v13607_v53 = vpop.f32.mrf.mxu1 }
 0x3c3   : > { %v2167_v9 = vadd.f32 %v2166_v25, %v2165_v3  ;;  %5547 = vmatpush2.msra.mxu1 %v13591_v1  ;;  %v13612_v3 = vsel %vm1087_vm6, %v5269_v56, %v10434_v13  ;;  %v13618_v47 = vpop.f32.mrf.mxu0  ;;  %s10248_s29 = spop %10247 }
 0x3c4   : > { %v5275_v36 = vpop.permute.xlu1 %5274  ;;  %17957 = vst [vmem:[#allocation102_spill] sm:$0xff] %v13612_v3  ;;  %17959 = vst [vmem:[#allocation104_spill] sm:$0xff] %v13618_v47  ;;  %s1577_s6 = sadd.f32 %s10248_s29, %s1429_s22 }
 0x3c5   : > { %10255 = vpush %v2167_v9  ;;  %v13602_v59 = vsel %vm1087_vm6, %v5275_v36, %v10433_v45  ;;  %v13609_v46 = vpop.permute.xlu0 %5110  ;;  %v13620_v45 = vpop.f32.mrf.mxu1 }
 0x3c6   : > { %17956 = vst [vmem:[#allocation101_spill] sm:$0xff] %v13602_v59  ;;  %5548 = vmatprep.subr.mxu1 %v13602_v59  ;;  %17960 = vst [vmem:[#allocation105_spill] sm:$0xff] %v13620_v45  ;;  %v13629_v13 = vpop.f32.mrf.mxu0  ;;  %v13691_v33 = vsel %vm969_vm3, %v13609_v46, %v13593_v7 }
 0x3c7   : > { %17962 = vst [vmem:[#allocation107_spill] sm:$0xff] %v13629_v13  ;;  %17975 = vst [vmem:[#allocation120_spill] sm:$0xff] %v13691_v33  ;;  %s10250_s28 = spop %10249 }
 0x3c8   : > { %v5273_v25 = vpop.permute.xlu1 %5272  ;;  %v3718_v47 = vpop.f32.mrf.mxu0  ;;  %s1725_s24 = sadd.f32 %s10250_s28, %s1577_s6  ;;  %s10252_s22 = spop %10251 }
 0x3c9   : > { %v13615_v1 = vsel %vm1087_vm6, %v5273_v25, %v5275_v36  ;;  %v13626_v6 = vpop.permute.xlu0 %5108  ;;  %v13631_v36 = vpop.f32.mrf.mxu1 }
 0x3ca   : > { %17958 = vst [vmem:[#allocation103_spill] sm:$0xff] %v13615_v1  ;;  %5549 = vmatpush2.msra.mxu1 %v13615_v1  ;;  %17963 = vst [vmem:[#allocation108_spill] sm:$0xff] %v13631_v36  ;;  %v3720_v13 = vpop.f32.mrf.mxu0  ;;  %s1873_s6 = sadd.f32 %s10252_s22, %s1725_s24 }
 0x3cb   : > { %5550 = vmatprep.subr.mxu1 %v13612_v3  ;;  %v3807_v45 = vpop.f32.mrf.mxu1  ;;  %v13639_v3 = vsel %vm928_vm4, %v5213_v32, %v13553_v31  ;;  %s10254_s28 = spop %10253 }
 0x3cc   : > { %v5267_v9 = vpop.permute.xlu1 %5266  ;;  %17965 = vst [vmem:[#allocation110_spill] sm:$0xff] %v13639_v3  ;;  %s2021_s3 = sadd.f32 %s10254_s28, %s1873_s6 }
 0x3cd   : > { %v13624_v59 = vsel %vm1087_vm6, %v5267_v9, %v5269_v56  ;;  %v13643_v56 = vpop.permute.xlu0 %5100 }
 0x3ce   : > { %17961 = vst [vmem:[#allocation106_spill] sm:$0xff] %v13624_v59  ;;  %5551 = vmatpush2.msra.mxu1 %v13624_v59 }
 0x3d0   : > { %v5217_v25 = vpop.permute.xlu1 %5216 }
 0x3d1   : > { %v13635_v1 = vsel %vm928_vm4, %v13553_v31, %v5217_v25  ;;  %v3809_v25 = vpop.f32.mrf.mxu1  ;;  %v3724_v31 = vpop.f32.mrf.mxu0 }
 0x3d2   : > { %17964 = vst [vmem:[#allocation109_spill] sm:$0xff] %v13635_v1  ;;  %5552 = vmatprep.subr.mxu1 %v13635_v1  ;;  %v13653_v1 = vpop.permute.xlu0 %5098  ;;  %v13682_v20 = vadd.f32 %v3809_v25, %v3720_v13 }
 0x3d3   : > { %5553 = vmatpush2.msra.mxu1 %v13639_v3  ;;  %v3813_v32 = vpop.f32.mrf.mxu1 }
 0x3d4   : > { %v5209_v9 = vpop.permute.xlu1 %5208  ;;  %17973 = vst [vmem:[#allocation118_spill] sm:$0xff] %v13682_v20  ;;  %v13699_v13 = vadd.f32 %v3813_v32, %v3724_v31 }
 0x3d5   : > { %v13647_v59 = vsel %vm928_vm4, %v5209_v9, %v13555_v27  ;;  %v3726_v27 = vpop.f32.mrf.mxu0  ;;  %v3815_v51 = vpop.f32.mrf.mxu1 }
 0x3d6   : > { %17966 = vst [vmem:[#allocation111_spill] sm:$0xff] %v13647_v59  ;;  %5554 = vmatprep.subr.mxu1 %v13647_v59  ;;  %v13663_v59 = vsel %vm928_vm4, %v13567_v55, %v13561_v14  ;;  %17976 = vst [vmem:[#allocation121_spill] sm:$0xff] %v13699_v13 }
 0x3d7   : > { %17969 = vst [vmem:[#allocation114_spill] sm:$0xff] %v13663_v59  ;;  %v3819_v35 = vpop.f32.mrf.mxu1 }
 0x3d8   : > { %v5207_v36 = vpop.permute.xlu1 %5206 }
 0x3d9   : > { %v13651_v48 = vsel %vm928_vm4, %v5207_v36, %v5209_v9  ;;  %v13667_v36 = vpop.permute.xlu0 %5096 }
 0x3da   : > { %17967 = vst [vmem:[#allocation112_spill] sm:$0xff] %v13651_v48  ;;  %5555 = vmatpush2.msra.mxu1 %v13651_v48 }
 0x3dc   : > { %v5205_v3 = vpop.permute.xlu1 %5204 }
 0x3dd   : > { %v13658_v42 = vsel %vm928_vm4, %v13561_v14, %v5205_v3  ;;  %v3730_v3 = vpop.f32.mrf.mxu0 }
 0x3de   : > { %17968 = vst [vmem:[#allocation113_spill] sm:$0xff] %v13658_v42  ;;  %5556 = vmatprep.subr.mxu1 %v13658_v42  ;;  %v3821_v42 = vpop.f32.mrf.mxu1 }
 0x3df   : > { %5557 = vmatpush2.msra.mxu1 %v13663_v59  ;;  %v3732_v55 = vpop.f32.mrf.mxu0  ;;  %v13677_v59 = vpop.permute.xlu0 %5388 }
 0x3e0   : > { %v5197_v9 = vpop.permute.xlu1 %5196 }
 0x3e1   : > { %v13671_v48 = vsel %vm928_vm4, %v5197_v9, %v13573_v26  ;;  %v13680_v26 = vadd.f32 %v3807_v45, %v3718_v47 }
 0x3e2   : > { %17970 = vst [vmem:[#allocation115_spill] sm:$0xff] %v13671_v48  ;;  %5558 = vmatprep.subr.mxu1 %v13671_v48 }
 0x3e3   : > { %17972 = vst [vmem:[#allocation117_spill] sm:$0xff] %v13680_v26  ;;  %v13695_v47 = vpop.permute.xlu0 %5386 }
 0x3e4   : > { %v5195_v15 = vpop.permute.xlu1 %5194 }
 0x3e5   : > { %v13675_v14 = vsel %vm928_vm4, %v5195_v15, %v5197_v9  ;;  %v3736_v15 = vpop.f32.mrf.mxu0  ;;  %v3825_v9 = vpop.f32.mrf.mxu1 }
 0x3e6   : > { %17971 = vst [vmem:[#allocation116_spill] sm:$0xff] %v13675_v14  ;;  %5559 = vmatpush2.msra.mxu1 %v13675_v14 }
 0x3e7   : > { %v3738_v46 = vpop.f32.mrf.mxu0  ;;  %v13720_v14 = vpop.permute.xlu0 %5384 }
 0x3e8   : > { %v5115_v0 = vpop.permute.xlu1 %5114 }
 0x3e9   : > { %v13686_v48 = vsel %vm969_vm3, %v13593_v7, %v5115_v0  ;;  %v3838_v0 = vadd.f32 %v13682_v20, %v13680_v26  ;;  %v3827_v7 = vpop.f32.mrf.mxu1  ;;  %v13715_v20 = vadd.f32 %v3815_v51, %v3726_v27 }
 0x3ea   : > { %17974 = vst [vmem:[#allocation119_spill] sm:$0xff] %v13686_v48  ;;  %5560 = vmatprep.subr.mxu1 %v13686_v48  ;;  %v13712_v48 = vadd.f32 %v13563_v12, %v13565_v58  ;;  %v13730_v58 = vadd.f32 %v3819_v35, %v3730_v3  ;;  %v13745_v35 = vadd.f32 %v13578_v50, %v13580_v54 }
 0x3eb   : > { %5561 = vmatpush2.msra.mxu1 %v13691_v33  ;;  %v13708_v33 = vadd.f32 %v13557_v4, %v13559_v57  ;;  %v3839_v32 = vadd.f32 %v3838_v0, %v13699_v13  ;;  %17980 = vst [vmem:[#allocation125_spill] sm:$0xff] %v13715_v20  ;;  %v4017_v26 = vpop.f32.mrf.mxu1  ;;  %v13727_v57 = vadd.f32 %v13569_v63, %v13571_v24  ;;  %v13748_v24 = vpop.permute.xlu0 %5376  ;;  %v18048_v13 = vld [vmem:[#allocation46_spill] sm:$0xff] }
 0x3ec   : > { %v5107_v45 = vpop.permute.xlu1 %5106  ;;  %17979 = vst [vmem:[#allocation124_spill] sm:$0xff] %v13712_v48  ;;  %17983 = vst [vmem:[#allocation128_spill] sm:$0xff] %v13730_v58 }
 0x3ed   : > { %v13703_v25 = vsel %vm969_vm3, %v5107_v45, %v13626_v6  ;;  %17978 = vst [vmem:[#allocation123_spill] sm:$0xff] %v13708_v33  ;;  %v3539_v4 = vadd.f32 %v13712_v48, %v13708_v33  ;;  %17982 = vst [vmem:[#allocation127_spill] sm:$0xff] %v13727_v57  ;;  %v3840_v12 = vadd.f32 %v3839_v32, %v13715_v20 }
 0x3ee   : > { %17977 = vst [vmem:[#allocation122_spill] sm:$0xff] %v13703_v25  ;;  %5562 = vmatprep.subr.mxu1 %v13703_v25  ;;  %v4106_v25 = vpop.f32.mrf.mxu0  ;;  %17986 = vst [vmem:[#allocation131_spill] sm:$0xff] %v13745_v35 }
 0x3ef   : > { %v3540_v63 = vadd.f32 %v3539_v4, %v13727_v57  ;;  %17987 = vst [vmem:[#allocation132_spill] sm:$0xff] %v13748_v24  ;;  %v3841_v32 = vadd.f32 %v3840_v12, %v13730_v58 }
 0x3f0   : > { %v5105_v31 = vpop.permute.xlu1 %5104  ;;  %v4108_v0 = vpop.f32.mrf.mxu0 }
 0x3f1   : > { %v13718_v6 = vsel %vm969_vm3, %v5105_v31, %v5107_v45  ;;  %v4019_v45 = vpop.f32.mrf.mxu1  ;;  %v13739_v31 = vsel %vm969_vm3, %v13653_v1, %v13643_v56  ;;  %v13753_v1 = vadd.f32 %v3821_v42, %v3732_v55  ;;  %v3541_v20 = vadd.f32 %v3540_v63, %v13745_v35  ;;  %v18052_v35 = vld [vmem:[#allocation51_spill] sm:$0xff] }
 0x3f2   : > { %17981 = vst [vmem:[#allocation126_spill] sm:$0xff] %v13718_v6  ;;  %5563 = vmatpush2.msra.mxu1 %v13718_v6  ;;  %17985 = vst [vmem:[#allocation130_spill] sm:$0xff] %v13739_v31  ;;  %v4112_v4 = vpop.f32.mrf.mxu0  ;;  %v13768_v42 = vadd.f32 %v13596_v60, %v13598_v16  ;;  %v13784_v60 = vadd.f32 %v13605_v23, %v13607_v53  ;;  %v18064_v6 = vld [vmem:[#allocation50_spill] sm:$0xff] }
 0x3f3   : > { %17988 = vst [vmem:[#allocation133_spill] sm:$0xff] %v13753_v1  ;;  %v4023_v50 = vpop.f32.mrf.mxu1  ;;  %v3842_v55 = vadd.f32 %v3841_v32, %v13753_v1  ;;  %v18046_v1 = vld [vmem:[#allocation43_spill] sm:$0xff] }
 0x3f4   : > { %v5103_v51 = vpop.permute.xlu1 %5102  ;;  %17992 = vst [vmem:[#allocation137_spill] sm:$0xff] %v13768_v42  ;;  %v13780_v63 = vadd.f32 %v3541_v20, %v13768_v42  ;;  %17997 = vst [vmem:[#allocation142_spill] sm:$0xff] %v13784_v60  ;;  %v18050_v42 = vld [vmem:[#allocation48_spill] sm:$0xff]  ;;  %v18072_v60 = vld [vmem:[#allocation62_spill] sm:$0xff] }
 0x3f5   : > { %v13734_v27 = vsel %vm969_vm3, %v13643_v56, %v5103_v51  ;;  %v13755_v56 = vadd.f32 %v4106_v25, %v4017_v26  ;;  %v13757_v51 = vadd.f32 %v4108_v0, %v4019_v45  ;;  %v13771_v26 = vadd.f32 %v3825_v9, %v3736_v15  ;;  %v4025_v12 = vpop.f32.mrf.mxu1  ;;  %v4114_v45 = vpop.f32.mrf.mxu0 }
 0x3f6   : > { %17984 = vst [vmem:[#allocation129_spill] sm:$0xff] %v13734_v27  ;;  %s10256_s29 = spop %10255  ;;  %5564 = vmatprep.subr.mxu1 %v13734_v27  ;;  %v5375_v0 = vpop.permute.xlu0 %5374  ;;  %17996 = vst [vmem:[#allocation141_spill] sm:$0xff] %v13780_v63  ;;  %v13789_v15 = vadd.f32 %v3827_v7, %v3738_v46  ;;  %v13794_v32 = vadd.f32 %v4114_v45, %v4025_v12  ;;  %v18032_v12 = vld [vmem:[#allocation33_spill] sm:$0xff]  ;;  %v18034_v45 = vld [vmem:[#allocation32_spill] sm:$0xff] }
 0x3f7   : > { %s2169_s24 = sadd.f32 %s10256_s29, %s2021_s3  ;;  %5565 = vmatpush2.msra.mxu1 %v13739_v31  ;;  %17989 = vst [vmem:[#allocation134_spill] sm:$0xff] %v13755_v56  ;;  %17990 = vst [vmem:[#allocation135_spill] sm:$0xff] %v13757_v51  ;;  %v4137_v25 = vadd.f32 %v13757_v51, %v13755_v56  ;;  %v13787_v16 = vadd.f32 %v3842_v55, %v13771_v26  ;;  %v13803_v20 = vsel %vm867_vm5, %v5375_v0, %v13748_v24  ;;  %v18028_v55 = vld [vmem:[#allocation36_spill] sm:$0xff]  ;;  %v18036_v0 = vld [vmem:[#allocation34_spill] sm:$0xff] }
 0x3f8   : > { %v13750_v3 = vpop.permute.xlu1 %5094  ;;  %17993 = vst [vmem:[#allocation138_spill] sm:$0xff] %v13771_v26  ;;  %17999 = vst [vmem:[#allocation144_spill] sm:$0xff] %v13789_v15  ;;  %v18040_v51 = vld [vmem:[#allocation40_spill] sm:$0xff]  ;;  %v18042_v56 = vld [vmem:[#allocation39_spill] sm:$0xff] }
 0x3f9   : > { %v13762_v54 = vsel %vm969_vm3, %v13750_v3, %v13667_v36  ;;  %s2172_s22 = smul.f32 1.7438617e-05, %s2169_s24  ;;  %v13775_v36 = vadd.f32 %v4112_v4, %v4023_v50  ;;  %17998 = vst [vmem:[#allocation143_spill] sm:$0xff] %v13787_v16  ;;  %18001 = vst [vmem:[#allocation146_spill] sm:$0xff] %v13794_v32  ;;  %v13799_v50 = vsel %vm867_vm5, %v13695_v47, %v13677_v59  ;;  %v18044_v26 = vld [vmem:[#allocation41_spill] sm:$0xff]  ;;  %v18066_v16 = vld [vmem:[#allocation52_spill] sm:$0xff] }
 0x3fa   : > { %17991 = vst [vmem:[#allocation136_spill] sm:$0xff] %v13762_v54  ;;  %5566 = vmatprep.subr.mxu1 %v13762_v54  ;;  %18002 = vst [vmem:[#allocation147_spill] sm:$0xff] %v13803_v20  ;;  %v18068_v15 = vld [vmem:[#allocation27_spill] sm:$0xff]  ;;  %v18070_v63 = vld [vmem:[#allocation61_spill] sm:$0xff] }
 0x3fb   : > { %17994 = vst [vmem:[#allocation139_spill] sm:$0xff] %v13775_v36  ;;  %v13777_v58 = vstv %s2172_s22  ;;  %v13792_v9 = vadd.f32 %v4137_v25, %v13775_v36  ;;  %v18030_v25 = vld [vmem:[#allocation31_spill] sm:$0xff]  ;;  %v18038_v36 = vld [vmem:[#allocation38_spill] sm:$0xff]  ;;  %v18080_v20 = vld [vmem:[#allocation72_spill] sm:$0xff] }
 0x3fc   : > { %17995 = vst [vmem:[#allocation140_spill] sm:$0xff] %v13777_v58  ;;  %v13807_v23 = vsub.f32 %v12832_v22, %v13777_v58  ;;  %v13811_v53 = vsub.f32 %v12843_v29, %v13777_v58  ;;  %v13815_v46 = vsub.f32 %v12855_v44, %v13777_v58  ;;  %v13819_v47 = vsub.f32 %v12870_v10, %v13777_v58  ;;  %v13861_v4 = vpop.permute.xlu1 %5092  ;;  %v18076_v32 = vld [vmem:[#allocation66_spill] sm:$0xff] }
 0x3fd   : > { %18000 = vst [vmem:[#allocation145_spill] sm:$0xff] %v13792_v9  ;;  %v13823_v7 = vsub.f32 %v12883_v34, %v13777_v58  ;;  %v13827_v22 = vsub.f32 %v12897_v30, %v13777_v58  ;;  %v13831_v29 = vsub.f32 %v12911_v28, %v13777_v58  ;;  %v13835_v44 = vsub.f32 %v12923_v2, %v13777_v58  ;;  %v18074_v9 = vld [vmem:[#allocation64_spill] sm:$0xff] }
 0x3fe   : > { %18003 = vst [vmem:[#allocation148_spill] sm:$0xff] %v13807_v23  ;;  %18004 = vst [vmem:[#allocation149_spill] sm:$0xff] %v13811_v53  ;;  %v13839_v10 = vsub.f32 %v12847_v62, %v13777_v58  ;;  %v13843_v34 = vsub.f32 %v12860_v61, %v13777_v58  ;;  %v13847_v30 = vsub.f32 %v12874_v41, %v13777_v58 }
 0x3ff   : > { %18005 = vst [vmem:[#allocation150_spill] sm:$0xff] %v13815_v46  ;;  %18006 = vst [vmem:[#allocation151_spill] sm:$0xff] %v13819_v47  ;;  %v13851_v28 = vsub.f32 %v12887_v43, %v13777_v58  ;;  %v13855_v2 = vsub.f32 %v12901_v49, %v13777_v58  ;;  %v13859_v62 = vsub.f32 %v12915_v40, %v13777_v58 }
 0x400   : > { %18007 = vst [vmem:[#allocation152_spill] sm:$0xff] %v13823_v7  ;;  %18008 = vst [vmem:[#allocation153_spill] sm:$0xff] %v13827_v22  ;;  %v13865_v61 = vsub.f32 %v12931_v17, %v13777_v58  ;;  %v13869_v41 = vsub.f32 %v12945_v21, %v13777_v58  ;;  %v13873_v43 = vsub.f32 %v12937_v37, %v13777_v58  ;;  %v13959_v57 = vpop.permute.xlu1 %5390 }
 0x401   : > { %18009 = vst [vmem:[#allocation154_spill] sm:$0xff] %v13831_v29  ;;  %18010 = vst [vmem:[#allocation155_spill] sm:$0xff] %v13835_v44  ;;  %v13877_v49 = vsub.f32 %v12954_v5, %v13777_v58  ;;  %v13881_v40 = vsub.f32 %v12970_v11, %v13777_v58  ;;  %v13885_v17 = vsub.f32 %v12988_v39, %v13777_v58 }
 0x402   : > { %18011 = vst [vmem:[#allocation156_spill] sm:$0xff] %v13839_v10  ;;  %18012 = vst [vmem:[#allocation157_spill] sm:$0xff] %v13843_v34  ;;  %v13889_v21 = vsub.f32 %v13005_v8, %v13777_v58  ;;  %v13893_v37 = vsub.f32 %v13025_v52, %v13777_v58  ;;  %v13897_v5 = vsub.f32 %v13047_v38, %v13777_v58 }
 0x403   : > { %18013 = vst [vmem:[#allocation158_spill] sm:$0xff] %v13847_v30  ;;  %18014 = vst [vmem:[#allocation159_spill] sm:$0xff] %v13851_v28  ;;  %v13901_v11 = vsub.f32 %v13068_v19, %v13777_v58  ;;  %v13905_v39 = vsub.f32 %v12966_v18, %v13777_v58  ;;  %v13909_v8 = vsub.f32 %v18028_v55, %v13777_v58 }
 0x404   : > { %18015 = vst [vmem:[#allocation160_spill] sm:$0xff] %v13855_v2  ;;  %18016 = vst [vmem:[#allocation161_spill] sm:$0xff] %v13859_v62  ;;  %v13913_v52 = vsub.f32 %v18030_v25, %v13777_v58  ;;  %v13917_v38 = vsub.f32 %v18032_v12, %v13777_v58  ;;  %v13921_v19 = vsub.f32 %v18034_v45, %v13777_v58 }
 0x405   : > { %18017 = vst [vmem:[#allocation162_spill] sm:$0xff] %v13865_v61  ;;  %18018 = vst [vmem:[#allocation163_spill] sm:$0xff] %v13869_v41  ;;  %v13925_v18 = vsub.f32 %v18036_v0, %v13777_v58  ;;  %v13929_v55 = vsub.f32 %v18038_v36, %v13777_v58  ;;  %v13933_v25 = vsub.f32 %v18040_v51, %v13777_v58 }
 0x406   : > { %18019 = vst [vmem:[#allocation164_spill] sm:$0xff] %v13873_v43  ;;  %18020 = vst [vmem:[#allocation165_spill] sm:$0xff] %v13877_v49  ;;  %v13937_v12 = vsub.f32 %v18042_v56, %v13777_v58  ;;  %v13941_v45 = vsub.f32 %v18044_v26, %v13777_v58  ;;  %v13945_v0 = vsub.f32 %v18046_v1, %v13777_v58  ;;  %v18054_v26 = vld [vmem:[#allocation37_spill] sm:$0xff]  ;;  %v18056_v1 = vld [vmem:[#allocation28_spill] sm:$0xff] }
 0x407   : > { %18021 = vst [vmem:[#allocation166_spill] sm:$0xff] %v13881_v40  ;;  %18022 = vst [vmem:[#allocation167_spill] sm:$0xff] %v13885_v17  ;;  %v13949_v36 = vsub.f32 %v18048_v13, %v13777_v58  ;;  %v13953_v51 = vsub.f32 %v18050_v42, %v13777_v58  ;;  %v13957_v56 = vsub.f32 %v18052_v35, %v13777_v58  ;;  %v18058_v13 = vld [vmem:[#allocation42_spill] sm:$0xff]  ;;  %v18060_v42 = vld [vmem:[#allocation45_spill] sm:$0xff] }
 0x408   : > { %18023 = vst [vmem:[#allocation168_spill] sm:$0xff] %v13889_v21  ;;  %18024 = vst [vmem:[#allocation169_spill] sm:$0xff] %v13893_v37  ;;  %v13963_v48 = vsub.f32 %v18054_v26, %v13777_v58  ;;  %v13967_v33 = vsub.f32 %v18056_v1, %v13777_v58  ;;  %v13971_v54 = vsub.f32 %v18058_v13, %v13777_v58  ;;  %v18062_v35 = vld [vmem:[#allocation47_spill] sm:$0xff] }
 0x409   : > { %18025 = vst [vmem:[#allocation170_spill] sm:$0xff] %v13897_v5  ;;  %18026 = vst [vmem:[#allocation171_spill] sm:$0xff] %v13901_v11  ;;  %v13975_v31 = vsub.f32 %v18060_v42, %v13777_v58  ;;  %v13979_v27 = vsub.f32 %v18062_v35, %v13777_v58  ;;  %v13983_v26 = vsub.f32 %v18064_v6, %v13777_v58 }
 0x40a   : > { %18027 = vst [vmem:[#allocation172_spill] sm:$0xff] %v13905_v39  ;;  %18029 = vst [vmem:[#allocation36_spill] sm:$0xff] %v13909_v8  ;;  %v13987_v1 = vsub.f32 %v18066_v16, %v13777_v58  ;;  %v13991_v13 = vsub.f32 %v18068_v15, %v13777_v58  ;;  %v13995_v42 = vsub.f32 %v18070_v63, %v13777_v58 }
 0x40b   : > { %18031 = vst [vmem:[#allocation31_spill] sm:$0xff] %v13913_v52  ;;  %18033 = vst [vmem:[#allocation33_spill] sm:$0xff] %v13917_v38  ;;  %v13999_v35 = vsub.f32 %v18072_v60, %v13777_v58  ;;  %v14003_v6 = vsub.f32 %v18074_v9, %v13777_v58  ;;  %v14007_v16 = vsub.f32 %v18076_v32, %v13777_v58 }
 0x40c   : > { %18035 = vst [vmem:[#allocation32_spill] sm:$0xff] %v13921_v19  ;;  %18037 = vst [vmem:[#allocation34_spill] sm:$0xff] %v13925_v18  ;;  %v14015_v63 = vsub.f32 %v18080_v20, %v13777_v58  ;;  %v2190_v32 = vmul.f32 %v13807_v23, %v13807_v23  ;;  %v2191_v11 = vmul.f32 %v13811_v53, %v13811_v53 }
 0x40d   : > { %18039 = vst [vmem:[#allocation38_spill] sm:$0xff] %v13929_v55  ;;  %18041 = vst [vmem:[#allocation40_spill] sm:$0xff] %v13933_v25  ;;  %v18078_v25 = vld [vmem:[#allocation69_spill] sm:$0xff]  ;;  %v18084_v55 = vld [vmem:[#allocation76_spill] sm:$0xff]  ;;  %v2193_v20 = vmul.f32 %v13819_v47, %v13819_v47  ;;  %v14043_v23 = vmul.f32 %v13831_v29, %v13831_v29  ;;  %v14047_v53 = vmul.f32 %v13835_v44, %v13835_v44 }
 0x40e   : > { %18043 = vst [vmem:[#allocation39_spill] sm:$0xff] %v13937_v12  ;;  %18045 = vst [vmem:[#allocation41_spill] sm:$0xff] %v13941_v45  ;;  %v14011_v15 = vsub.f32 %v18078_v25, %v13777_v58  ;;  %v14023_v9 = vsub.f32 %v18084_v55, %v13777_v58  ;;  %v2192_v25 = vmul.f32 %v13815_v46, %v13815_v46  ;;  %v14049_v46 = vpop.permute.xlu1 %5382 }
 0x40f   : > { %18047 = vst [vmem:[#allocation43_spill] sm:$0xff] %v13945_v0  ;;  %18049 = vst [vmem:[#allocation46_spill] sm:$0xff] %v13949_v36  ;;  %v14039_v55 = vmul.f32 %v13827_v22, %v13827_v22  ;;  %v2231_v47 = vmul.f32 %v13839_v10, %v13839_v10  ;;  %v2233_v22 = vmul.f32 %v13847_v30, %v13847_v30 }
 0x410   : > { %18051 = vst [vmem:[#allocation48_spill] sm:$0xff] %v13953_v51  ;;  %18053 = vst [vmem:[#allocation51_spill] sm:$0xff] %v13957_v56  ;;  %v2235_v29 = vmul.f32 %v13855_v2, %v13855_v2  ;;  %v14063_v44 = vmul.f32 %v13859_v62, %v13859_v62  ;;  %v2272_v30 = vmul.f32 %v13873_v43, %v13873_v43 }
 0x411   : > { %18055 = vst [vmem:[#allocation37_spill] sm:$0xff] %v13963_v48  ;;  %18057 = vst [vmem:[#allocation28_spill] sm:$0xff] %v13967_v33  ;;  %v2274_v2 = vmul.f32 %v13881_v40, %v13881_v40  ;;  %v2275_v62 = vmul.f32 %v13885_v17, %v13885_v17  ;;  %v14085_v10 = vmul.f32 %v13893_v37, %v13893_v37 }
 0x412   : > { %18059 = vst [vmem:[#allocation42_spill] sm:$0xff] %v13971_v54  ;;  %18061 = vst [vmem:[#allocation45_spill] sm:$0xff] %v13975_v31  ;;  %v2314_v43 = vmul.f32 %v13909_v8, %v13909_v8  ;;  %v2316_v40 = vmul.f32 %v13917_v38, %v13917_v38  ;;  %v2354_v17 = vmul.f32 %v13937_v12, %v13937_v12 }
 0x413   : > { %18063 = vst [vmem:[#allocation47_spill] sm:$0xff] %v13979_v27  ;;  %18065 = vst [vmem:[#allocation50_spill] sm:$0xff] %v13983_v26  ;;  %v2356_v37 = vmul.f32 %v13945_v0, %v13945_v0  ;;  %v2436_v8 = vmul.f32 %v13995_v42, %v13995_v42  ;;  %v2358_v12 = vmul.f32 %v13953_v51, %v13953_v51 }
 0x414   : > { %18067 = vst [vmem:[#allocation52_spill] sm:$0xff] %v13987_v1  ;;  %18069 = vst [vmem:[#allocation27_spill] sm:$0xff] %v13991_v13  ;;  %v18082_v13 = vld [vmem:[#allocation74_spill] sm:$0xff]  ;;  %v2396_v0 = vmul.f32 %v13975_v31, %v13975_v31  ;;  %v2198_v38 = vadd.f32 %v2191_v11, %v2190_v32  ;;  %v14122_v51 = vsel %vm969_vm3, %v13861_v4, %v13750_v3 }
 0x415   : > { %18071 = vst [vmem:[#allocation61_spill] sm:$0xff] %v13995_v42  ;;  %18073 = vst [vmem:[#allocation62_spill] sm:$0xff] %v13999_v35  ;;  %v14019_v60 = vsub.f32 %v18082_v13, %v13777_v58  ;;  %v14035_v13 = vmul.f32 %v13823_v7, %v13823_v7  ;;  %v2232_v7 = vmul.f32 %v13843_v34, %v13843_v34  ;;  %5567 = vmatpush2.msra.mxu1 %v14122_v51 }
 0x416   : > { %18075 = vst [vmem:[#allocation64_spill] sm:$0xff] %v14003_v6  ;;  %18077 = vst [vmem:[#allocation66_spill] sm:$0xff] %v14007_v16  ;;  %v14067_v58 = vmul.f32 %v13865_v61, %v13865_v61  ;;  %v14071_v34 = vmul.f32 %v13869_v41, %v13869_v41  ;;  %v2276_v61 = vmul.f32 %v13889_v21, %v13889_v21 }
 0x417   : > { %18079 = vst [vmem:[#allocation69_spill] sm:$0xff] %v14011_v15  ;;  %18081 = vst [vmem:[#allocation72_spill] sm:$0xff] %v14015_v63  ;;  %v2313_v41 = vmul.f32 %v13905_v39, %v13905_v39  ;;  %v2355_v21 = vmul.f32 %v13941_v45, %v13941_v45  ;;  %v2357_v39 = vmul.f32 %v13949_v36, %v13949_v36 }
 0x418   : > { %18083 = vst [vmem:[#allocation74_spill] sm:$0xff] %v14019_v60  ;;  %18085 = vst [vmem:[#allocation76_spill] sm:$0xff] %v14023_v9  ;;  %v2234_v9 = vmul.f32 %v13851_v28, %v13851_v28  ;;  %v2273_v28 = vmul.f32 %v13877_v49, %v13877_v49  ;;  %v2315_v49 = vmul.f32 %v13913_v52, %v13913_v52  ;;  %v14107_v60 = vpop.permute.xlu1 %5380 }
 0x419   : > { %18086 = vst [vmem:[#allocation173_spill] sm:$0xff] %v14047_v53  ;;  %18087 = vst [vmem:[#allocation174_spill] sm:$0xff] %v14071_v34  ;;  %v2437_v52 = vmul.f32 %v13999_v35, %v13999_v35  ;;  %v2395_v45 = vmul.f32 %v13971_v54, %v13971_v54  ;;  %v2438_v36 = vmul.f32 %v14003_v6, %v14003_v6 }
 0x41a   : > { %18088 = vst [vmem:[#allocation175_spill] sm:$0xff] %v14107_v60  ;;  %v2239_v33 = vadd.f32 %v2232_v7, %v2231_v47  ;;  %v2280_v42 = vadd.f32 %v2273_v28, %v2272_v30  ;;  %v2321_v24 = vadd.f32 %v2314_v43, %v2313_v41  ;;  %v2439_v35 = vmul.f32 %v14007_v16, %v14007_v16  ;;  %v18089_v30 = vld [vmem:[#allocation79_spill] sm:$0xff] }
 0x41b   : > { %v2362_v1 = vadd.f32 %v2355_v21, %v2354_v17  ;;  %v2444_v53 = vadd.f32 %v2437_v52, %v2436_v8  ;;  %v2199_v54 = vadd.f32 %v2198_v38, %v2192_v25  ;;  %v2403_v11 = vadd.f32 %v2396_v0, %v2395_v45  ;;  %5568 = vmatprep.subr.mxu1 %v18089_v30  ;;  %v18094_v8 = vld [vmem:[#allocation87_spill] sm:$0xff]  ;;  %v18095_v45 = vld [vmem:[#allocation94_spill] sm:$0xff] }
 0x41c   : > { %v2240_v34 = vadd.f32 %v2239_v33, %v2233_v22  ;;  %v2281_v31 = vadd.f32 %v2280_v42, %v2274_v2  ;;  %v2322_v60 = vadd.f32 %v2321_v24, %v2315_v49  ;;  %v14129_v28 = vsel %vm867_vm5, %v13677_v59, %v13959_v57  ;;  %v18090_v22 = vld [vmem:[#allocation71_spill] sm:$0xff]  ;;  %v5379_v24 = vpop.permute.xlu1 %5378  ;;  %v18091_v49 = vld [vmem:[#allocation88_spill] sm:$0xff] }
 0x41d   : > { %v2363_v47 = vadd.f32 %v2362_v1, %v2356_v37  ;;  %v2445_v7 = vadd.f32 %v2444_v53, %v2438_v36  ;;  %v2359_v3 = vmul.f32 %v13957_v56, %v13957_v56  ;;  %v2200_v4 = vadd.f32 %v2199_v54, %v2193_v20  ;;  %5569 = vmatpush2.msra.mxu1 %v18090_v22  ;;  %v18092_v54 = vld [vmem:[#allocation73_spill] sm:$0xff]  ;;  %v5416_v36 = vld [vmem:[%s17951_s7] sm:$0xff] }
 0x41e   : > { %v2241_v41 = vadd.f32 %v2240_v34, %v2234_v9  ;;  %v2282_v33 = vadd.f32 %v2281_v31, %v2275_v62  ;;  %v2397_v2 = vmul.f32 %v13979_v27, %v13979_v27  ;;  %5570 = vmatprep.subr.mxu1 %v18091_v49  ;;  %5625 = vmatprep.subr.mxu0 %v14129_v28  ;;  %v18093_v37 = vld [vmem:[#allocation85_spill] sm:$0xff]  ;;  %v18101_v22 = vld [vmem:[#allocation132_spill] sm:$0xff] }
 0x41f   : > { %v2364_v53 = vadd.f32 %v2363_v47, %v2357_v39  ;;  %v2446_v43 = vadd.f32 %v2445_v7, %v2439_v35  ;;  %v2323_v59 = vadd.f32 %v2322_v60, %v2316_v40  ;;  %v2201_v57 = vadd.f32 %v2200_v4, %v14035_v13  ;;  %5571 = vmatpush2.msra.mxu1 %v18092_v54  ;;  %v18096_v60 = vld [vmem:[#allocation93_spill] sm:$0xff]  ;;  %v18100_v7 = vld [vmem:[#allocation52_spill] sm:$0xff]  ;;  %v18103_v49 = vld [vmem:[#allocation74_spill] sm:$0xff] }
 0x420   : > { %v2242_v17 = vadd.f32 %v2241_v41, %v2235_v29  ;;  %v2283_v21 = vadd.f32 %v2282_v33, %v2276_v61  ;;  %v2440_v31 = vmul.f32 %v14011_v15, %v14011_v15  ;;  %v2404_v34 = vadd.f32 %v2403_v11, %v2397_v2  ;;  %5572 = vmatprep.subr.mxu1 %v18093_v37  ;;  %v5371_v9 = vpop.permute.xlu1 %5370  ;;  %v18098_v13 = vld [vmem:[#allocation174_spill] sm:$0xff]  ;;  %v18099_v11 = vld [vmem:[#allocation173_spill] sm:$0xff]  ;;  %v5419_v41 = vld [vmem:[%s17951_s7 + $0x18] sm:$0xff] }
 0x421   : > { %v2365_v62 = vadd.f32 %v2364_v53, %v2358_v12  ;;  %5626 = vmatpush1.msra.mxu0 %v13799_v50  ;;  %v2278_v39 = vmul.f32 %v13897_v5, %v13897_v5  ;;  %v2317_v40 = vmul.f32 %v13921_v19, %v13921_v19  ;;  %v2202_v29 = vadd.f32 %v2201_v57, %v14039_v55  ;;  %v18102_v53 = vld [vmem:[#allocation28_spill] sm:$0xff]  ;;  %v18105_v54 = vld [vmem:[#allocation30_spill] sm:$0xff]  ;;  %v18214_v56 = vld [vmem:[#allocation133_spill] sm:$0xff] }
 0x422   : > { %v2243_v61 = vadd.f32 %v2242_v17, %v14063_v44  ;;  %5573 = vmatpush2.msra.mxu1 %v18094_v8  ;;  %v2398_v52 = vmul.f32 %v13983_v26, %v13983_v26  ;;  %v2447_v38 = vadd.f32 %v2446_v43, %v2440_v31  ;;  %v14157_v0 = vsel %vm867_vm5, %v14049_v46, %v13720_v14  ;;  %v5423_v17 = vld [vmem:[%s17951_s7 + $0x38] sm:$0xff] }
 0x423   : > { %v2366_v12 = vadd.f32 %v2365_v62, %v2359_v3  ;;  %5574 = vmatprep.subr.mxu1 %v18095_v45  ;;  %v2324_v1 = vadd.f32 %v2323_v59, %v2317_v40  ;;  %v2284_v44 = vadd.f32 %v2283_v21, %v14085_v10  ;;  %v2203_v42 = vadd.f32 %v2202_v29, %v14043_v23  ;;  %v5420_v23 = vld [vmem:[%s17951_s7 + $0x20] sm:$0xff]  ;;  %v18097_v10 = vld [vmem:[#allocation175_spill] sm:$0xff]  ;;  %v18108_v62 = vld [vmem:[#allocation38_spill] sm:$0xff]  ;;  %v4118_v40 = vpop.f32.mrf.mxu0  ;;  %v5373_v29 = vpop.permute.xlu0 %5372 }
 0x424   : > { %v2244_v35 = vadd.f32 %v2243_v61, %v14067_v58  ;;  %5575 = vmatpush2.msra.mxu1 %v18096_v60  ;;  %v2360_v32 = vmul.f32 %v13963_v48, %v13963_v48  ;;  %v2441_v14 = vmul.f32 %v14015_v63, %v14015_v63  ;;  %v2405_v25 = vadd.f32 %v2404_v34, %v2398_v52  ;;  %v18104_v21 = vld [vmem:[#allocation140_spill] sm:$0xff]  ;;  %v18109_v61 = vld [vmem:[#allocation27_spill] sm:$0xff]  ;;  %v4029_v45 = vpop.f32.mrf.mxu1 }
 0x425   : > { %5627 = vmatprep.subr.mxu0 %v14157_v0  ;;  %5924 = vmatprep.subr.mxu1 %v14129_v28  ;;  %v2318_v58 = vmul.f32 %v13925_v18, %v13925_v18  ;;  %v14180_v20 = vsel %vm867_vm5, %v18097_v10, %v14049_v46  ;;  %v2204_v47 = vadd.f32 %v2203_v42, %v18099_v11  ;;  %v18113_v10 = vld [vmem:[#allocation146_spill] sm:$0xff]  ;;  %v18212_v48 = vld [vmem:[#allocation128_spill] sm:$0xff]  ;;  %v18218_v18 = vld [vmem:[#allocation135_spill] sm:$0xff] }
 0x426   : > { %5577 = vmatmul.mubr.f32.vlgmr.msra.gmra.mxu1 %v5416_v36  ;;  %v2245_v55 = vadd.f32 %v2244_v35, %v18098_v13  ;;  %v2399_v30 = vmul.f32 %v18100_v7, %v18100_v7  ;;  %v2448_v3 = vadd.f32 %v2447_v38, %v2441_v14  ;;  %v2367_v4 = vadd.f32 %v2366_v12, %v2360_v32  ;;  %v5422_v38 = vld [vmem:[%s17951_s7 + $0x30] sm:$0xff]  ;;  %v18111_v35 = vld [vmem:[#allocation76_spill] sm:$0xff]  ;;  %v18114_v13 = vld [vmem:[#allocation145_spill] sm:$0xff] }
 0x427   : > { %5925 = vmatpush1.msra.mxu1 %v13799_v50  ;;  %5628 = vmatpush1.msra.mxu0 %v14180_v20  ;;  %v2325_v46 = vadd.f32 %v2324_v1, %v2318_v58  ;;  %v2285_v33 = vadd.f32 %v2284_v44, %v2278_v39  ;;  %v14194_v2 = vsel %vm867_vm5, %v18101_v22, %v5379_v24  ;;  %v18107_v24 = vld [vmem:[#allocation171_spill] sm:$0xff]  ;;  %v5369_v39 = vpop.permute.xlu1 %5368  ;;  %v5426_v14 = vld [vmem:[%s17951_s7 + $0x50] sm:$0xff] }
 0x428   : > { %5926 = vmatprep.subr.mxu1 %v14157_v0  ;;  %5582 = vmatprep.mubr.f32.mxu1 %v5420_v23  ;;  %v2361_v43 = vmul.f32 %v18102_v53, %v18102_v53  ;;  %v2442_v59 = vmul.f32 %v18103_v49, %v18103_v49  ;;  %v2406_v57 = vadd.f32 %v2405_v25, %v2399_v30  ;;  %v18110_v1 = vld [vmem:[#allocation147_spill] sm:$0xff]  ;;  %v18112_v23 = vld [vmem:[#allocation40_spill] sm:$0xff] }
 0x429   : > { %5927 = vmatpush1.msra.mxu1 %v14180_v20  ;;  %2246 = vadd.xlane.f32.xlu1 %v2245_v55  ;;  %v14206_v31 = vsub.f32 %v18105_v54, %v18104_v21  ;;  %v2279_v34 = vmul.f32 %v18107_v24, %v18107_v24  ;;  %v2319_v37 = vmul.f32 %v18108_v62, %v18108_v62  ;;  %v18216_v62 = vld [vmem:[#allocation134_spill] sm:$0xff]  ;;  %v18220_v19 = vld [vmem:[#allocation139_spill] sm:$0xff] }
 0x42a   : > { %5583 = vmatmul.mubr.f32.gmra.mxu1 %v5419_v41  ;;  %2205 = vadd.xlane.f32.xlu0 %v2204_v47  ;;  %v2400_v8 = vmul.f32 %v18109_v61, %v18109_v61  ;;  %v2449_v52 = vadd.f32 %v2448_v3, %v2442_v59  ;;  %v2368_v12 = vadd.f32 %v2367_v4, %v2361_v43  ;;  %v18115_v47 = vld [vmem:[#allocation54_spill] sm:$0xff]  ;;  %v4031_v41 = vpop.f32.mrf.mxu1 }
 0x42b   : > { %18106 = vst [vmem:[#allocation79_spill] sm:$0xff] %v14206_v31  ;;  %5629 = vmatprep.subr.mxu0 %v14194_v2  ;;  %5928 = vmatprep.subr.mxu1 %v14194_v2  ;;  %v2326_v36 = vadd.f32 %v2325_v46, %v2319_v37  ;;  %v2286_v44 = vadd.f32 %v2285_v33, %v2279_v34  ;;  %v4120_v46 = vpop.f32.mrf.mxu0  ;;  %v5418_v43 = vld [vmem:[%s17951_s7 + $0x10] sm:$0xff]  ;;  %v18119_v34 = vld [vmem:[#allocation105_spill] sm:$0xff]  ;;  %v18120_v37 = vld [vmem:[#allocation104_spill] sm:$0xff] }
 0x42c   : > { %5588 = vmatprep.mubr.f32.mxu1 %v5423_v17  ;;  %5630 = vmatpush1.msra.mxu0 %v18110_v1  ;;  %v14221_v42 = vsel %vm867_vm5, %v5371_v9, %v5373_v29  ;;  %v2443_v60 = vmul.f32 %v18111_v35, %v18111_v35  ;;  %v2407_v32 = vadd.f32 %v2406_v57, %v2400_v8  ;;  %v18117_v59 = vld [vmem:[#allocation142_spill] sm:$0xff]  ;;  %v18118_v57 = vld [vmem:[#allocation141_spill] sm:$0xff]  ;;  %v18121_v29 = vld [vmem:[#allocation144_spill] sm:$0xff] }
 0x42d   : > { %5929 = vmatpush1.msra.mxu1 %v18110_v1  ;;  %2369 = vadd.xlane.f32.xlu1 %v2368_v12  ;;  %v14230_v25 = vsel %vm867_vm5, %v5369_v39, %v5371_v9  ;;  %v2320_v58 = vmul.f32 %v18112_v23, %v18112_v23  ;;  %v4139_v55 = vadd.f32 %v18114_v13, %v18113_v10  ;;  %v5425_v9 = vld [vmem:[%s17951_s7 + $0x48] sm:$0xff]  ;;  %v18122_v8 = vld [vmem:[#allocation143_spill] sm:$0xff]  ;;  %v18124_v12 = vmov 0.0   ;;  %v18215_v23 = vld [vmem:[#allocation138_spill] sm:$0xff] }
 0x42e   : > { %5589 = vmatmul.mubr.f32.gmra.mxu1 %v5422_v38  ;;  %2287 = vadd.xlane.f32.xlu0 %v2286_v44  ;;  %v14236_v11 = vadd.f32 %v4118_v40, %v4029_v45  ;;  %v14240_v30 = vsub.f32 %v18115_v47, %v18104_v21  ;;  %v2401_v3 = vmul.f32 %v14206_v31, %v14206_v31  ;;  %v18123_v38 = vld [vmem:[#allocation44_spill] sm:$0xff]  ;;  %v5717_v45 = vld [vmem:[%s17951_s7 + $0x70] sm:$0xff]  ;;  %v4124_v44 = vpop.f32.mrf.mxu0 }
 0x42f   : > { %5631 = vmatprep.subr.mxu0 %v14221_v42  ;;  %5930 = vmatprep.subr.mxu1 %v14221_v42  ;;  %v2450_v4 = vadd.f32 %v2449_v52, %v2443_v60  ;;  %v2327_v33 = vadd.f32 %v2326_v36, %v2320_v58  ;;  %v3543_v17 = vadd.f32 %v18118_v57, %v18117_v59  ;;  %v4035_v36 = vpop.f32.mrf.mxu1  ;;  %v18125_v60 = vld [vmem:[#allocation49_spill] sm:$0xff]  ;;  %v18127_v47 = vld [vmem:[#allocation108_spill] sm:$0xff] }
 0x430   : > { %18116 = vst [vmem:[#allocation71_spill] sm:$0xff] %v14240_v30  ;;  %5594 = vmatprep.mubr.f32.mxu1 %v5426_v14  ;;  %5632 = vmatpush1.msra.mxu0 %v14230_v25  ;;  %v2408_v22 = vadd.f32 %v2407_v32, %v2401_v3  ;;  %v4140_v21 = vadd.f32 %v4139_v55, %v14236_v11  ;;  %v18126_v58 = vld [vmem:[#allocation53_spill] sm:$0xff]  ;;  %v18128_v3 = vld [vmem:[#allocation107_spill] sm:$0xff] }
 0x431   : > { %2451 = vadd.xlane.f32.xlu1 %v2450_v4  ;;  %5931 = vmatpush1.msra.mxu1 %v14230_v25  ;;  %v14257_v54 = vadd.f32 %v4120_v46, %v4031_v41  ;;  %v14261_v39 = vadd.f32 %v18120_v37, %v18119_v34  ;;  %v2402_v40 = vmul.f32 %v14240_v30, %v14240_v30  ;;  %v4037_v4 = vpop.f32.mrf.mxu1  ;;  %v4126_v41 = vpop.f32.mrf.mxu0  ;;  %v18129_v46 = vld [vmem:[#allocation35_spill] sm:$0xff]  ;;  %v18133_v34 = vld [vmem:[#allocation56_spill] sm:$0xff] }
 0x432   : > { %5595 = vmatmul.mubr.f32.gmra.mxu1 %v5425_v9  ;;  %2328 = vadd.xlane.f32.xlu0 %v2327_v33  ;;  %v3844_v52 = vadd.f32 %v18122_v8, %v18121_v29  ;;  %v14278_v13 = vadd.f32 %v4124_v44, %v4035_v36  ;;  %v14283_v9 = vadd.f32 %v18128_v3, %v18127_v47  ;;  %v18130_v33 = vld [vmem:[#allocation26_spill] sm:$0xff]  ;;  %v18139_v36 = vld [vmem:[#allocation65_spill] sm:$0xff]  ;;  %v18140_v44 = vld [vmem:[#allocation67_spill] sm:$0xff] }
 0x433   : > { %5811 = vmatprep.subr.mxu0 %v18123_v38  ;;  %5964 = vmatprep.mubr.f32.mxu1 %v18124_v12  ;;  %v2409_v32 = vadd.f32 %v2408_v22, %v2402_v40  ;;  %v4141_v14 = vadd.f32 %v4140_v21, %v14257_v54  ;;  %v3544_v55 = vadd.f32 %v3543_v17, %v14261_v39  ;;  %v18132_v21 = vld [vmem:[#allocation55_spill] sm:$0xff]  ;;  %v18134_v40 = vld [vmem:[#allocation57_spill] sm:$0xff]  ;;  %v18135_v8 = vld [vmem:[#allocation58_spill] sm:$0xff] }
 0x434   : > { %6110 = vmatprep.subr.mxu1 %v18123_v38  ;;  %10151 = vmatmul.mubr.msk.f32.vlgmr.msra.gmra.mxu0 %vm3340_vm9, %v5418_v43  ;;  %v18131_v43 = vld [vmem:[#allocation29_spill] sm:$0xff]  ;;  %v14293_v57 = vadd.f32 %v4126_v41, %v4037_v4  ;;  %v18137_v38 = vld [vmem:[#allocation60_spill] sm:$0xff]  ;;  %v4316_v4 = vpop.f32.mrf.mxu0  ;;  %v4405_v41 = vpop.f32.mrf.mxu1 }
 0x435   : > { %5812 = vmatpush1.msra.mxu0 %v18125_v60  ;;  %3845 = vadd.xlane.f32.xlu1 %v3844_v52  ;;  %v4142_v22 = vadd.f32 %v4141_v14, %v14278_v13  ;;  %v3545_v17 = vadd.f32 %v3544_v55, %v14283_v9  ;;  %v18136_v52 = vld [vmem:[#allocation59_spill] sm:$0xff]  ;;  %v18145_v55 = vld [vmem:[#allocation78_spill] sm:$0xff]  ;;  %v18146_v47 = vld [vmem:[#allocation80_spill] sm:$0xff] }
 0x436   : > { %10155 = vmatmul.mubr.msk.f32.vlgmr.msra.gmra.mxu1 %vm3340_vm9, %v5717_v45  ;;  %5813 = vmatprep.subr.mxu0 %v18126_v58  ;;  %v18138_v45 = vld [vmem:[#allocation63_spill] sm:$0xff]  ;;  %v18147_v3 = vld [vmem:[#allocation81_spill] sm:$0xff] }
 0x437   : > { %6111 = vmatpush1.msra.mxu1 %v18125_v60  ;;  %2410 = vadd.xlane.f32.xlu0 %v2409_v32  ;;  %v4143_v37 = vadd.f32 %v4142_v22, %v14293_v57  ;;  %v18141_v60 = vld [vmem:[#allocation68_spill] sm:$0xff]  ;;  %v18142_v32 = vld [vmem:[#allocation70_spill] sm:$0xff]  ;;  %v18143_v14 = vld [vmem:[#allocation75_spill] sm:$0xff] }
 0x438   : > { %6112 = vmatprep.subr.mxu1 %v18126_v58  ;;  %5814 = vmatpush1.msra.mxu0 %v18129_v46  ;;  %v18144_v58 = vld [vmem:[#allocation77_spill] sm:$0xff]  ;;  %v18150_v22 = vld [vmem:[#allocation84_spill] sm:$0xff] }
 0x439   : > { %6113 = vmatpush1.msra.mxu1 %v18129_v46  ;;  %5815 = vmatprep.subr.mxu0 %v18130_v33  ;;  %v18148_v46 = vld [vmem:[#allocation82_spill] sm:$0xff] }
 0x43a   : > { %6114 = vmatprep.subr.mxu1 %v18130_v33  ;;  %5816 = vmatpush1.msra.mxu0 %v18131_v43  ;;  %v18149_v33 = vld [vmem:[#allocation83_spill] sm:$0xff] }
 0x43b   : > { %6115 = vmatpush1.msra.mxu1 %v18131_v43  ;;  %5817 = vmatprep.subr.mxu0 %v18132_v21  ;;  %v18151_v43 = vld [vmem:[#allocation86_spill] sm:$0xff] }
 0x43c   : > { %6116 = vmatprep.subr.mxu1 %v18132_v21  ;;  %5818 = vmatpush1.msra.mxu0 %v18133_v34  ;;  %v4407_v21 = vpop.f32.mrf.mxu1 }
 0x43d   : > { %6117 = vmatpush1.msra.mxu1 %v18133_v34  ;;  %3546 = vadd.xlane.f32.xlu0 %v3545_v17  ;;  %v4318_v17 = vpop.f32.mrf.mxu0  ;;  %v18152_v34 = vld [vmem:[#allocation89_spill] sm:$0xff] }
 0x43e   : > { %5819 = vmatprep.subr.mxu0 %v18134_v40  ;;  %6118 = vmatprep.subr.mxu1 %v18134_v40  ;;  %v18154_v40 = vld [vmem:[#allocation91_spill] sm:$0xff] }
 0x43f   : > { %5820 = vmatpush1.msra.mxu0 %v18135_v8  ;;  %6119 = vmatpush1.msra.mxu1 %v18135_v8  ;;  %v14343_v8 = vadd.f32 %v4405_v41, %v4316_v4  ;;  %v18160_v4 = vld [vmem:[#allocation99_spill] sm:$0xff]  ;;  %v18161_v41 = vld [vmem:[#allocation100_spill] sm:$0xff] }
 0x440   : > { %5821 = vmatprep.subr.mxu0 %v18136_v52  ;;  %6120 = vmatprep.subr.mxu1 %v18136_v52  ;;  %v14345_v52 = vadd.f32 %v4407_v21, %v4318_v17 }
 0x441   : > { %5822 = vmatpush1.msra.mxu0 %v18137_v38  ;;  %6121 = vmatpush1.msra.mxu1 %v18137_v38  ;;  %v18155_v38 = vld [vmem:[#allocation92_spill] sm:$0xff] }
 0x442   : > { %4144 = vadd.xlane.f32.xlu0 %v4143_v37  ;;  %5823 = vmatprep.subr.mxu0 %v18138_v45  ;;  %v18153_v37 = vld [vmem:[#allocation90_spill] sm:$0xff] }
 0x443   : > { %6122 = vmatprep.subr.mxu1 %v18138_v45  ;;  %5824 = vmatpush1.msra.mxu0 %v18139_v36  ;;  %v4322_v45 = vpop.f32.mrf.mxu0 }
 0x444   : > { %6123 = vmatpush1.msra.mxu1 %v18139_v36  ;;  %5825 = vmatprep.subr.mxu0 %v18140_v44  ;;  %v4411_v36 = vpop.f32.mrf.mxu1 }
 0x445   : > { %6124 = vmatprep.subr.mxu1 %v18140_v44  ;;  %5826 = vmatpush1.msra.mxu0 %v18141_v60  ;;  %v18156_v44 = vld [vmem:[#allocation95_spill] sm:$0xff] }
 0x446   : > { %6125 = vmatpush1.msra.mxu1 %v18141_v60  ;;  %5827 = vmatprep.subr.mxu0 %v18142_v32  ;;  %v18157_v60 = vld [vmem:[#allocation96_spill] sm:$0xff] }
 0x447   : > { %6126 = vmatprep.subr.mxu1 %v18142_v32  ;;  %5828 = vmatpush1.msra.mxu0 %v18143_v14  ;;  %v18158_v32 = vld [vmem:[#allocation98_spill] sm:$0xff] }
 0x448   : > { %6127 = vmatpush1.msra.mxu1 %v18143_v14  ;;  %5829 = vmatprep.subr.mxu0 %v18144_v58  ;;  %v4436_v14 = vadd.f32 %v14345_v52, %v14343_v8 }
 0x449   : > { %6128 = vmatprep.subr.mxu1 %v18144_v58  ;;  %5830 = vmatpush1.msra.mxu0 %v18145_v55  ;;  %v14357_v58 = vadd.f32 %v4411_v36, %v4322_v45  ;;  %v18167_v36 = vld [vmem:[#allocation110_spill] sm:$0xff] }
 0x44a   : > { %6129 = vmatpush1.msra.mxu1 %v18145_v55  ;;  %5831 = vmatprep.subr.mxu0 %v18146_v47  ;;  %v18159_v55 = vld [vmem:[#allocation97_spill] sm:$0xff] }
 0x44b   : > { %6130 = vmatprep.subr.mxu1 %v18146_v47  ;;  %5832 = vmatpush1.msra.mxu0 %v18147_v3  ;;  %v4324_v47 = vpop.f32.mrf.mxu0 }
 0x44c   : > { %6131 = vmatpush1.msra.mxu1 %v18147_v3  ;;  %5833 = vmatprep.subr.mxu0 %v18148_v46  ;;  %v4413_v3 = vpop.f32.mrf.mxu1 }
 0x44d   : > { %6132 = vmatprep.subr.mxu1 %v18148_v46  ;;  %5834 = vmatpush1.msra.mxu0 %v18149_v33  ;;  %v18162_v46 = vld [vmem:[#allocation101_spill] sm:$0xff]  ;;  %v4328_v17 = vpop.f32.mrf.mxu0 }
 0x44e   : > { %6133 = vmatpush1.msra.mxu1 %v18149_v33  ;;  %5835 = vmatprep.subr.mxu0 %v18150_v22  ;;  %v4437_v33 = vadd.f32 %v4436_v14, %v14357_v58  ;;  %v4417_v21 = vpop.f32.mrf.mxu1  ;;  %v18169_v14 = vld [vmem:[#allocation112_spill] sm:$0xff] }
 0x44f   : > { %6134 = vmatprep.subr.mxu1 %v18150_v22  ;;  %5836 = vmatpush1.msra.mxu0 %v18151_v43  ;;  %v14368_v22 = vadd.f32 %v4413_v3, %v4324_v47  ;;  %v14379_v45 = vadd.f32 %v4417_v21, %v4328_v17  ;;  %v18174_v17 = vld [vmem:[#allocation119_spill] sm:$0xff] }
 0x450   : > { %6135 = vmatpush1.msra.mxu1 %v18151_v43  ;;  %5837 = vmatprep.subr.mxu0 %v18152_v34  ;;  %v18163_v43 = vld [vmem:[#allocation103_spill] sm:$0xff] }
 0x451   : > { %6136 = vmatprep.subr.mxu1 %v18152_v34  ;;  %5838 = vmatpush1.msra.mxu0 %v18153_v37  ;;  %v18164_v34 = vld [vmem:[#allocation102_spill] sm:$0xff] }
 0x452   : > { %6137 = vmatpush1.msra.mxu1 %v18153_v37  ;;  %5839 = vmatprep.subr.mxu0 %v18154_v40  ;;  %v18165_v37 = vld [vmem:[#allocation106_spill] sm:$0xff] }
 0x453   : > { %6138 = vmatprep.subr.mxu1 %v18154_v40  ;;  %5840 = vmatpush1.msra.mxu0 %v18155_v38  ;;  %v18166_v40 = vld [vmem:[#allocation109_spill] sm:$0xff] }
 0x454   : > { %6139 = vmatpush1.msra.mxu1 %v18155_v38  ;;  %5841 = vmatprep.subr.mxu0 %v18156_v44  ;;  %v4438_v38 = vadd.f32 %v4437_v33, %v14368_v22  ;;  %v18172_v33 = vld [vmem:[#allocation115_spill] sm:$0xff] }
 0x455   : > { %6140 = vmatprep.subr.mxu1 %v18156_v44  ;;  %5842 = vmatpush1.msra.mxu0 %v18157_v60  ;;  %v4330_v44 = vpop.f32.mrf.mxu0 }
 0x456   : > { %6141 = vmatpush1.msra.mxu1 %v18157_v60  ;;  %5843 = vmatprep.subr.mxu0 %v18158_v32  ;;  %v4419_v60 = vpop.f32.mrf.mxu1  ;;  %v4439_v47 = vadd.f32 %v4438_v38, %v14379_v45 }
 0x457   : > { %6142 = vmatprep.subr.mxu1 %v18158_v32  ;;  %5844 = vmatpush2.msra.mxu0 %v18159_v55  ;;  %v18168_v32 = vld [vmem:[#allocation111_spill] sm:$0xff]  ;;  %v14390_v3 = vadd.f32 %v4419_v60, %v4330_v44  ;;  %v18177_v44 = vld [vmem:[#allocation126_spill] sm:$0xff]  ;;  %v5421_v60 = vld [vmem:[%s17951_s7 + $0x28] sm:$0xff] }
 0x458   : > { %6143 = vmatpush2.msra.mxu1 %v18159_v55  ;;  %5845 = vmatprep.subr.mxu0 %v18160_v4  ;;  %v18170_v55 = vld [vmem:[#allocation113_spill] sm:$0xff] }
 0x459   : > { %6144 = vmatprep.subr.mxu1 %v18160_v4  ;;  %5846 = vmatpush2.msra.mxu0 %v18161_v41  ;;  %v18171_v4 = vld [vmem:[#allocation114_spill] sm:$0xff]  ;;  %v4440_v21 = vadd.f32 %v4439_v47, %v14390_v3 }
 0x45a   : > { %6145 = vmatpush2.msra.mxu1 %v18161_v41  ;;  %5847 = vmatprep.subr.mxu0 %v18162_v46  ;;  %v4334_v41 = vpop.f32.mrf.mxu0  ;;  %v18179_v47 = vld [vmem:[#allocation130_spill] sm:$0xff] }
 0x45b   : > { %6146 = vmatprep.subr.mxu1 %v18162_v46  ;;  %5848 = vmatpush2.msra.mxu0 %v18163_v43  ;;  %v4423_v46 = vpop.f32.mrf.mxu1 }
 0x45c   : > { %6147 = vmatpush2.msra.mxu1 %v18163_v43  ;;  %5849 = vmatprep.subr.mxu0 %v18164_v34  ;;  %v18173_v43 = vld [vmem:[#allocation116_spill] sm:$0xff] }
 0x45d   : > { %6148 = vmatprep.subr.mxu1 %v18164_v34  ;;  %5850 = vmatpush2.msra.mxu0 %v18165_v37  ;;  %v14401_v34 = vadd.f32 %v4423_v46, %v4334_v41  ;;  %v4425_v38 = vpop.f32.mrf.mxu1  ;;  %v5424_v41 = vld [vmem:[%s17951_s7 + $0x40] sm:$0xff] }
 0x45e   : > { %6149 = vmatpush2.msra.mxu1 %v18165_v37  ;;  %5851 = vmatprep.subr.mxu0 %v18166_v40  ;;  %v18175_v37 = vld [vmem:[#allocation120_spill] sm:$0xff] }
 0x45f   : > { %6150 = vmatprep.subr.mxu1 %v18166_v40  ;;  %5852 = vmatpush2.msra.mxu0 %v18167_v36  ;;  %v4336_v40 = vpop.f32.mrf.mxu0 }
 0x460   : > { %6151 = vmatpush2.msra.mxu1 %v18167_v36  ;;  %5853 = vmatprep.subr.mxu0 %v18168_v32  ;;  %v18176_v36 = vld [vmem:[#allocation122_spill] sm:$0xff] }
 0x461   : > { %6152 = vmatprep.subr.mxu1 %v18168_v32  ;;  %5854 = vmatpush2.msra.mxu0 %v18169_v14  ;;  %v4441_v32 = vadd.f32 %v4440_v21, %v14401_v34  ;;  %v10711_v21 = vld [vmem:[%s12597_s1 + $0x28] sm:$0xff] }
 0x462   : > { %6153 = vmatpush2.msra.mxu1 %v18169_v14  ;;  %5855 = vmatprep.subr.mxu0 %v18170_v55  ;;  %v14415_v14 = vadd.f32 %v4425_v38, %v4336_v40  ;;  %v5720_v40 = vld [vmem:[%s17951_s7 + $0x88] sm:$0xff]  ;;  %v10713_v38 = vld [vmem:[%s12597_s1 + $0x18] sm:$0xff] }
 0x463   : > { %6154 = vmatprep.subr.mxu1 %v18170_v55  ;;  %5856 = vmatpush2.msra.mxu0 %v18171_v4  ;;  %v18178_v55 = vld [vmem:[#allocation129_spill] sm:$0xff] }
 0x464   : > { %6155 = vmatpush2.msra.mxu1 %v18171_v4  ;;  %5857 = vmatprep.subr.mxu0 %v18172_v33  ;;  %v18180_v4 = vld [vmem:[#allocation136_spill] sm:$0xff]  ;;  %v4442_v46 = vadd.f32 %v4441_v32, %v14415_v14 }
 0x465   : > { %6156 = vmatprep.subr.mxu1 %v18172_v33  ;;  %5858 = vmatpush2.msra.mxu0 %v18173_v43  ;;  %v10709_v33 = vld [vmem:[%s12597_s1 + $0x38] sm:$0xff]  ;;  %v5719_v32 = vld [vmem:[%s17951_s7 + $0x80] sm:$0xff] }
 0x466   : > { %6157 = vmatpush2.msra.mxu1 %v18173_v43  ;;  %5859 = vmatprep.subr.mxu0 %v18174_v17  ;;  %v10710_v43 = vld [vmem:[%s12597_s1 + $0x30] sm:$0xff] }
 0x467   : > { %6158 = vmatprep.subr.mxu1 %v18174_v17  ;;  %5860 = vmatpush2.msra.mxu0 %v18175_v37  ;;  %v5427_v17 = vld [vmem:[%s17951_s7 + $0x58] sm:$0xff] }
 0x468   : > { %6159 = vmatpush2.msra.mxu1 %v18175_v37  ;;  %5861 = vmatprep.subr.mxu0 %v18176_v36  ;;  %v10712_v37 = vld [vmem:[%s12597_s1 + $0x20] sm:$0xff] }
 0x469   : > { %6160 = vmatprep.subr.mxu1 %v18176_v36  ;;  %5862 = vmatpush2.msra.mxu0 %v18177_v44  ;;  %v10714_v36 = vld [vmem:[%s12597_s1 + $0x10] sm:$0xff] }
 0x46a   : > { %6161 = vmatpush2.msra.mxu1 %v18177_v44  ;;  %5671 = vmatprep.mubr.f32.mxu0 %v18124_v12  ;;  %v5715_v44 = vld [vmem:[%s17951_s7 + $0x60] sm:$0xff] }
 0x46b   : > { %5863 = vmatprep.subr.mxu0 %v18178_v55  ;;  %6162 = vmatprep.subr.mxu1 %v18178_v55  ;;  %v10716_v55 = vld [vmem:[%s12597_s1] sm:$0xff] }
 0x46c   : > { %10152 = vmatmul.mubr.msk.f32.gmra.mxu0 %vm3340_vm9, %v5421_v60  ;;  %6163 = vmatpush2.msra.mxu1 %v18179_v47  ;;  %v10715_v60 = vld [vmem:[%s12597_s1 + $0x8] sm:$0xff] }
 0x46d   : > { %5864 = vmatpush2.msra.mxu0 %v18179_v47  ;;  %6164 = vmatprep.subr.mxu1 %v18180_v4  ;;  %v5723_v47 = vld [vmem:[%s17951_s7 + $0xa0] sm:$0xff] }
 0x46e   : > { %5865 = vmatprep.subr.mxu0 %v18180_v4  ;;  %6165 = vmatpush2.msra.mxu1 %v14122_v51  ;;  %v5718_v4 = vld [vmem:[%s17951_s7 + $0x78] sm:$0xff] }
 0x46f   : > { %5866 = vmatpush2.msra.mxu0 %v14122_v51  ;;  %5677 = vmatprep.mubr.f32.mxu0 %v18124_v12  ;;  %v5716_v51 = vld [vmem:[%s17951_s7 + $0x68] sm:$0xff] }
 0x470   : > { %5867 = vmatprep.subr.mxu0 %v10709_v33  ;;  %10153 = vmatmul.mubr.msk.f32.gmra.mxu0 %vm3340_vm9, %v5424_v41  ;;  %v5722_v41 = vld [vmem:[%s17951_s7 + $0x98] sm:$0xff] }
 0x471   : > { %5868 = vmatpush2.msra.mxu0 %v10710_v43  ;;  %5683 = vmatprep.mubr.f32.mxu0 %v18124_v12 }
 0x472   : > { %5869 = vmatprep.subr.mxu0 %v10711_v21  ;;  %4443 = vadd.xlane.f32.xlu1 %v4442_v46  ;;  %v6017_v46 = vld [vmem:[%s17951_s7 + $0xd8] sm:$0xff] }
 0x473   : > { %5870 = vmatpush2.msra.mxu0 %v10712_v37  ;;  %5970 = vmatprep.mubr.f32.mxu1 %v18124_v12 }
 0x474   : > { %5871 = vmatprep.subr.mxu0 %v10713_v38  ;;  %10154 = vmatmul.mubr.msk.f32.gmra.mxu0 %vm3340_vm9, %v5427_v17  ;;  %v6020_v17 = vld [vmem:[%s17951_s7 + $0xf0] sm:$0xff] }
 0x475   : > { %5872 = vmatpush2.msra.mxu0 %v10714_v36  ;;  %5875 = vmatprep.mubr.f32.mxu0 %v5716_v51  ;;  %v6024_v51 = vld [vmem:[%s17951_s7 + $0x110] sm:$0xff] }
 0x476   : > { %5873 = vmatprep.subr.mxu0 %v10715_v60  ;;  %10156 = vmatmul.mubr.msk.f32.gmra.mxu1 %vm3340_vm9, %v5720_v40  ;;  %v6025_v40 = vld [vmem:[%s17951_s7 + $0x118] sm:$0xff] }
 0x477   : > { %5874 = vmatpush2.msra.mxu0 %v10716_v55  ;;  %5976 = vmatprep.mubr.f32.mxu1 %v18124_v12 }
 0x478   : > { %6223 = vmatprep.subr.mxu0 %v14129_v28  ;;  %5876 = vmatmul.mubr.f32.vlgmr.msra.gmra.mxu0 %v5715_v44  ;;  %v5721_v28 = vld [vmem:[%s17951_s7 + $0x90] sm:$0xff] }
 0x479   : > { %6224 = vmatpush1.msra.mxu0 %v13799_v50  ;;  %5881 = vmatprep.mubr.f32.mxu0 %v5719_v32  ;;  %v5726_v50 = vld [vmem:[%s17951_s7 + $0xb8] sm:$0xff] }
 0x47a   : > { %6225 = vmatprep.subr.mxu0 %v14157_v0  ;;  %10157 = vmatmul.mubr.msk.f32.gmra.mxu1 %vm3340_vm9, %v5723_v47  ;;  %v5725_v0 = vld [vmem:[%s17951_s7 + $0xb0] sm:$0xff] }
 0x47b   : > { %6226 = vmatpush1.msra.mxu0 %v14180_v20  ;;  %5982 = vmatprep.mubr.f32.mxu1 %v18124_v12  ;;  %v6015_v20 = vld [vmem:[%s17951_s7 + $0xc8] sm:$0xff] }
 0x47c   : > { %6227 = vmatprep.subr.mxu0 %v14194_v2  ;;  %5882 = vmatmul.mubr.f32.gmra.mxu0 %v5718_v4  ;;  %v5724_v2 = vld [vmem:[%s17951_s7 + $0xa8] sm:$0xff] }
 0x47d   : > { %6228 = vmatpush1.msra.mxu0 %v18110_v1  ;;  %5887 = vmatprep.mubr.f32.mxu0 %v5722_v41  ;;  %v6014_v1 = vld [vmem:[%s17951_s7 + $0xc0] sm:$0xff] }
 0x47e   : > { %6229 = vmatprep.subr.mxu0 %v14221_v42  ;;  %10158 = vmatmul.mubr.msk.f32.gmra.mxu1 %vm3340_vm9, %v5726_v50  ;;  %v6016_v42 = vld [vmem:[%s17951_s7 + $0xd0] sm:$0xff] }
 0x47f   : > { %6230 = vmatpush1.msra.mxu0 %v14230_v25  ;;  %6166 = vmatprep.subr.mxu1 %v10709_v33  ;;  %v6018_v25 = vld [vmem:[%s17951_s7 + $0xe0] sm:$0xff]  ;;  %v6019_v33 = vld [vmem:[%s17951_s7 + $0xe8] sm:$0xff] }
 0x480   : > { %5888 = vmatmul.mubr.f32.gmra.mxu0 %v5721_v28  ;;  %6167 = vmatpush2.msra.mxu1 %v10710_v43  ;;  %v6021_v43 = vld [vmem:[%s17951_s7 + $0xf8] sm:$0xff] }
 0x481   : > { %5893 = vmatprep.mubr.f32.mxu0 %v5725_v0  ;;  %6168 = vmatprep.subr.mxu1 %v10711_v21  ;;  %v6022_v21 = vld [vmem:[%s17951_s7 + $0x100] sm:$0xff] }
 0x482   : > { %6169 = vmatpush2.msra.mxu1 %v10712_v37  ;;  %6174 = vmatprep.mubr.f32.mxu1 %v6015_v20  ;;  %v6023_v37 = vld [vmem:[%s17951_s7 + $0x108] sm:$0xff] }
 0x483   : > { %6170 = vmatprep.subr.mxu1 %v10713_v38 }
 0x484   : > { %5894 = vmatmul.mubr.f32.gmra.mxu0 %v5724_v2  ;;  %6171 = vmatpush2.msra.mxu1 %v10714_v36 }
 0x485   : > { %6172 = vmatprep.subr.mxu1 %v10715_v60  ;;  %6263 = vmatprep.mubr.f32.mxu0 %v18124_v12 }
 0x486   : > { %6173 = vmatpush2.msra.mxu1 %v10716_v55 }
 0x487   : > { %6175 = vmatmul.mubr.f32.vlgmr.msra.gmra.mxu1 %v6014_v1 }
 0x488   : > { %10159 = vmatmul.mubr.msk.f32.vlgmr.msra.gmra.mxu0 %vm3340_vm9, %v6016_v42  ;;  %6180 = vmatprep.mubr.f32.mxu1 %v6018_v25 }
 0x489   : > { %6269 = vmatprep.mubr.f32.mxu0 %v18124_v12 }
 0x48b   : > { %6181 = vmatmul.mubr.f32.gmra.mxu1 %v6017_v46 }
 0x48c   : > { %10160 = vmatmul.mubr.msk.f32.gmra.mxu0 %vm3340_vm9, %v6019_v33  ;;  %6186 = vmatprep.mubr.f32.mxu1 %v6021_v43 }
 0x48d   : > { %6275 = vmatprep.mubr.f32.mxu0 %v18124_v12 }
 0x48f   : > { %6187 = vmatmul.mubr.f32.gmra.mxu1 %v6020_v17 }
 0x490   : > { %10161 = vmatmul.mubr.msk.f32.gmra.mxu0 %vm3340_vm9, %v6022_v21  ;;  %6192 = vmatprep.mubr.f32.mxu1 %v6024_v51 }
 0x491   : > { %6281 = vmatprep.mubr.f32.mxu0 %v18124_v12 }
 0x493   : > { %6193 = vmatmul.mubr.f32.gmra.mxu1 %v6023_v37 }
 0x494   : > { %10162 = vmatmul.mubr.msk.f32.gmra.mxu0 %vm3340_vm9, %v6025_v40 }
 0x495   : > { %7494 = vmatprep.mubr.f32.mxu0 %v18124_v12 }
 0x4b2   : > { %v2247_v38 = vpop.xlane.xlu1 %2246 }
 0x4b3   : > { %v2206_v36 = vpop.xlane.xlu0 %2205  ;;  %v2248_v44 = vrot.slane %v2247_v38, 4 }
 0x4b4   : > { %v2207_v60 = vrot.slane %v2206_v36, 4 }
 0x4b5   : > { %v2249_v32 = vadd.f32 %v2248_v44, %v2247_v38 }
 0x4b6   : > { %v2208_v55 = vadd.f32 %v2207_v60, %v2206_v36  ;;  %v2370_v47 = vpop.xlane.xlu1 %2369 }
 0x4b7   : > { %v2288_v4 = vpop.xlane.xlu0 %2287  ;;  %v2371_v41 = vrot.slane %v2370_v47, 4  ;;  %v2250_v50 = vrot.slane %v2249_v32, 2 }
 0x4b8   : > { %v2289_v28 = vrot.slane %v2288_v4, 4  ;;  %v2209_v0 = vrot.slane %v2208_v55, 2 }
 0x4b9   : > { %v2372_v20 = vadd.f32 %v2371_v41, %v2370_v47  ;;  %v2251_v2 = vadd.f32 %v2250_v50, %v2249_v32 }
 0x4ba   : > { %v2290_v1 = vadd.f32 %v2289_v28, %v2288_v4  ;;  %v2452_v42 = vpop.xlane.xlu1 %2451  ;;  %v2210_v25 = vadd.f32 %v2209_v0, %v2208_v55 }
 0x4bb   : > { %v2329_v46 = vpop.xlane.xlu0 %2328  ;;  %v2453_v33 = vrot.slane %v2452_v42, 4  ;;  %v2252_v43 = vrot.slane %v2251_v2, 1  ;;  %v2373_v17 = vrot.slane %v2372_v20, 2 }
 0x4bc   : > { %v2330_v21 = vrot.slane %v2329_v46, 4  ;;  %v2211_v51 = vrot.slane %v2210_v25, 1  ;;  %v2291_v37 = vrot.slane %v2290_v1, 2 }
 0x4bd   : > { %v2454_v40 = vadd.f32 %v2453_v33, %v2452_v42  ;;  %v2253_v38 = vadd.f32 %v2252_v43, %v2251_v2  ;;  %v2374_v35 = vadd.f32 %v2373_v17, %v2372_v20 }
 0x4be   : > { %v2331_v36 = vadd.f32 %v2330_v21, %v2329_v46  ;;  %v2212_v44 = vadd.f32 %v2211_v51, %v2210_v25  ;;  %v2292_v60 = vadd.f32 %v2291_v37, %v2290_v1 }
 0x4bf   : > { %v2455_v4 = vrot.slane %v2454_v40, 2  ;;  %v2375_v0 = vrot.slane %v2374_v35, 1 }
 0x4c0   : > { %v2411_v49 = vpop.xlane.xlu0 %2410  ;;  %10257 = vpush %v2212_v44  ;;  %v2293_v47 = vrot.slane %v2292_v60, 1  ;;  %v2332_v32 = vrot.slane %v2331_v36, 2 }
 0x4c1   : > { %v2412_v41 = vrot.slane %v2411_v49, 4  ;;  %10259 = vpush %v2253_v38  ;;  %v2456_v15 = vadd.f32 %v2455_v4, %v2454_v40  ;;  %v2376_v46 = vadd.f32 %v2375_v0, %v2374_v35 }
 0x4c2   : > { %v2294_v55 = vadd.f32 %v2293_v47, %v2292_v60  ;;  %v2333_v50 = vadd.f32 %v2332_v32, %v2331_v36 }
 0x4c3   : > { %v2413_v28 = vadd.f32 %v2412_v41, %v2411_v49  ;;  %v2457_v20 = vrot.slane %v2456_v15, 1 }
 0x4c4   : > { %10261 = vpush %v2294_v55  ;;  %v2334_v63 = vrot.slane %v2333_v50, 1 }
 0x4c5   : > { %v2414_v42 = vrot.slane %v2413_v28, 2  ;;  %v2458_v43 = vadd.f32 %v2457_v20, %v2456_v15 }
 0x4c6   : > { %v2335_v2 = vadd.f32 %v2334_v63, %v2333_v50  ;;  %v3547_v49 = vpop.xlane.xlu0 %3546  ;;  %v3846_v63 = vpop.xlane.xlu1 %3845 }
 0x4c7   : > { %v2415_v25 = vadd.f32 %v2414_v42, %v2413_v28  ;;  %v3548_v17 = vrot.slane %v3547_v49, 4  ;;  %v3847_v21 = vrot.slane %v3846_v63, 4 }
 0x4c8   : > { %10263 = vpush %v2335_v2 }
 0x4c9   : > { %10265 = vpush %v2376_v46  ;;  %v2416_v1 = vrot.slane %v2415_v25, 1  ;;  %v3549_v40 = vadd.f32 %v3548_v17, %v3547_v49  ;;  %v3848_v38 = vadd.f32 %v3847_v21, %v3846_v63 }
 0x4cb   : > { %v2417_v33 = vadd.f32 %v2416_v1, %v2415_v25  ;;  %v4145_v35 = vpop.xlane.xlu0 %4144  ;;  %v3550_v47 = vrot.slane %v3549_v40, 2  ;;  %v3849_v32 = vrot.slane %v3848_v38, 2 }
 0x4cc   : > { %v4146_v51 = vrot.slane %v4145_v35, 4 }
 0x4cd   : > { %10267 = vpush %v2417_v33  ;;  %v3551_v55 = vadd.f32 %v3550_v47, %v3549_v40  ;;  %v3850_v50 = vadd.f32 %v3849_v32, %v3848_v38 }
 0x4ce   : > { %10269 = vpush %v2458_v43  ;;  %v4147_v36 = vadd.f32 %v4146_v51, %v4145_v35 }
 0x4cf   : > { %v3552_v42 = vrot.slane %v3551_v55, 1  ;;  %v3851_v2 = vrot.slane %v3850_v50, 1 }
 0x4d0   : > { %v4148_v4 = vrot.slane %v4147_v36, 2 }
 0x4d1   : > { %v3553_v1 = vadd.f32 %v3552_v42, %v3551_v55  ;;  %v3852_v33 = vadd.f32 %v3851_v2, %v3850_v50 }
 0x4d2   : > { %v4149_v28 = vadd.f32 %v4148_v4, %v4147_v36 }
 0x4d4   : > { %v4150_v46 = vrot.slane %v4149_v28, 1 }
 0x4d6   : > { %v4151_v43 = vadd.f32 %v4150_v46, %v4149_v28 }
 0x4e6   : > { %v5578_v63 = vpop.f32.mrf.mxu1 }
 0x4e8   : > { %v5580_v17 = vpop.f32.mrf.mxu1 }
 0x4ea   : > { %v5584_v21 = vpop.f32.mrf.mxu1 }
 0x4f1   : > { %s10258_s9 = spop %10257 }
 0x4f2   : > { %s10260_s22 = spop %10259 }
 0x4f3   : > { %s2255_s28 = sadd.f32 %s10260_s22, %s10258_s9 }
 0x4f4   : > { %v5667_v35 = vpop.f32.mrf.mxu0 }
 0x4f5   : > { %s10262_s6 = spop %10261 }
 0x4f6   : > { %s2296_s3 = sadd.f32 %s10262_s6, %s2255_s28 }
 0x4f9   : > { %s10264_s29 = spop %10263 }
 0x4fa   : > { %s2337_s8 = sadd.f32 %s10264_s29, %s2296_s3  ;;  %s10266_s24 = spop %10265 }
 0x4fb   : > { %v4444_v15 = vpop.xlane.xlu1 %4443  ;;  %s18242_s3 = smov 17  }
 0x4fc   : > { %s2378_s7 = sadd.f32 %s10266_s24, %s2337_s8  ;;  %v4445_v37 = vrot.slane %v4444_v15, 4 }
 0x4fe   : > { %s10268_s10 = spop %10267  ;;  %v4446_v60 = vadd.f32 %v4445_v37, %v4444_v15  ;;  %v5669_v15 = vpop.f32.mrf.mxu0  ;;  %v5586_v37 = vpop.f32.mrf.mxu1 }
 0x4ff   : > { %s2419_s16 = sadd.f32 %s10268_s10, %s2378_s7  ;;  %s10270_s17 = spop %10269  ;;  %v14553_v16 = vadd.f32 %v5669_v15, %v5580_v17 }
 0x500   : > { %v4447_v41 = vrot.slane %v4446_v60, 2  ;;  %v5590_v38 = vpop.f32.mrf.mxu1 }
 0x501   : > { %s2460_s18 = sadd.f32 %s10270_s17, %s2419_s16  ;;  %18184 = vst [vmem:[#allocation87_spill] sm:$0xff] %v14553_v16 }
 0x502   : > { %v4448_v0 = vadd.f32 %v4447_v41, %v4446_v60 }
 0x503   : > { %s2463_s2 = smul.f32 1.7438617e-05, %s2460_s18 }
 0x504   : > { %v4449_v25 = vrot.slane %v4448_v0, 1 }
 0x505   : > { %s2464_s9 = sadd.f32 1e-05, %s2463_s2 }
 0x506   : > { %v4450_v49 = vadd.f32 %v4449_v25, %v4448_v0 }
 0x507   : > { %v2465_v44 = vstv %s2464_s9 }
 0x508   : > { %10475 = vrsqrt.f32 %v2465_v44  ;;  %v5592_v44 = vpop.f32.mrf.mxu1 }
 0x50a   : > { %v14537_v47 = vpop.f32.mrf.mxu1 }
 0x50c   : > { %v14541_v4 = vpop.f32.mrf.mxu1 }
 0x50e   : > { %v5966_v50 = vpop.f32.mrf.mxu1 }
 0x510   : > { %v5968_v0 = vpop.f32.mrf.mxu1 }
 0x515   : > { %v10476_v20 = vpop.eup %10475 }
 0x516   : > { %10271 = vpush %v10476_v20 }
 0x517   : > { %10273 = vpush %v3553_v1 }
 0x518   : > { %10275 = vpush %v3852_v33 }
 0x519   : > { %10277 = vpush %v4151_v43 }
 0x51a   : > { %10279 = vpush %v4450_v49  ;;  %v14551_v49 = vadd.f32 %v5667_v35, %v5578_v63 }
 0x51c   : > { %18183 = vst [vmem:[#allocation85_spill] sm:$0xff] %v14551_v49 }
 0x52c   : > { %v5673_v51 = vpop.f32.mrf.mxu0 }
 0x52e   : > { %v5675_v40 = vpop.f32.mrf.mxu0 }
 0x52f   : > { %v14567_v15 = vadd.f32 %v5675_v40, %v5586_v37 }
 0x530   : > { %v5679_v36 = vpop.f32.mrf.mxu0 }
 0x531   : > { %18188 = vst [vmem:[#allocation174_spill] sm:$0xff] %v14567_v15 }
 0x532   : > { %v5681_v60 = vpop.f32.mrf.mxu0 }
 0x534   : > { %v14539_v32 = vpop.f32.mrf.mxu0 }
 0x536   : > { %v14543_v41 = vpop.f32.mrf.mxu0  ;;  %v5972_v2 = vpop.f32.mrf.mxu1 }
 0x538   : > { %v5877_v55 = vpop.f32.mrf.mxu0  ;;  %v5974_v25 = vpop.f32.mrf.mxu1 }
 0x539   : > { %v14547_v33 = vadd.f32 %v5966_v50, %v5877_v55  ;;  %v5698_v55 = vadd.f32 %v14553_v16, %v14551_v49  ;;  %v14561_v50 = vadd.f32 %v5673_v51, %v5584_v21 }
 0x53a   : > { %v5879_v28 = vpop.f32.mrf.mxu0  ;;  %v5978_v1 = vpop.f32.mrf.mxu1 }
 0x53b   : > { %18181 = vst [vmem:[#allocation88_spill] sm:$0xff] %v14547_v33  ;;  %v14549_v43 = vadd.f32 %v5968_v0, %v5879_v28  ;;  %18186 = vst [vmem:[#allocation93_spill] sm:$0xff] %v14561_v50  ;;  %v5699_v17 = vadd.f32 %v5698_v55, %v14561_v50 }
 0x53c   : > { %v5883_v42 = vpop.f32.mrf.mxu0  ;;  %v5980_v30 = vpop.f32.mrf.mxu1 }
 0x53d   : > { %18182 = vst [vmem:[#allocation73_spill] sm:$0xff] %v14549_v43  ;;  %v5997_v31 = vadd.f32 %v14549_v43, %v14547_v33  ;;  %v14557_v61 = vadd.f32 %v5972_v2, %v5883_v42 }
 0x53e   : > { %v5885_v46 = vpop.f32.mrf.mxu0  ;;  %v5984_v0 = vpop.f32.mrf.mxu1 }
 0x53f   : > { %18185 = vst [vmem:[#allocation94_spill] sm:$0xff] %v14557_v61  ;;  %v5998_v63 = vadd.f32 %v5997_v31, %v14557_v61  ;;  %v14564_v35 = vadd.f32 %v5974_v25, %v5885_v46  ;;  %v5700_v31 = vadd.f32 %v5699_v17, %v14567_v15  ;;  %v14577_v46 = vadd.f32 %v5679_v36, %v5590_v38 }
 0x540   : > { %v5889_v20 = vpop.f32.mrf.mxu0  ;;  %v14571_v2 = vpop.f32.mrf.mxu1 }
 0x541   : > { %18187 = vst [vmem:[#allocation175_spill] sm:$0xff] %v14564_v35  ;;  %v5999_v7 = vadd.f32 %v5998_v63, %v14564_v35  ;;  %v14574_v21 = vadd.f32 %v5978_v1, %v5889_v20  ;;  %18190 = vst [vmem:[#allocation132_spill] sm:$0xff] %v14577_v46  ;;  %v14585_v53 = vadd.f32 %v5700_v31, %v14577_v46  ;;  %v18199_v31 = vld [vmem:[#allocation131_spill] sm:$0xff] }
 0x542   : > { %v5891_v6 = vpop.f32.mrf.mxu0  ;;  %v14587_v20 = vadd.f32 %v5681_v60, %v5592_v44  ;;  %v18197_v44 = vld [vmem:[#allocation127_spill] sm:$0xff] }
 0x543   : > { %18189 = vst [vmem:[#allocation173_spill] sm:$0xff] %v14574_v21  ;;  %v6000_v25 = vadd.f32 %v5999_v7, %v14574_v21  ;;  %v14580_v55 = vadd.f32 %v5980_v30, %v5891_v6  ;;  %v18193_v6 = vld [vmem:[#allocation123_spill] sm:$0xff]  ;;  %v18195_v30 = vld [vmem:[#allocation124_spill] sm:$0xff] }
 0x544   : > { %v5895_v28 = vpop.f32.mrf.mxu0 }
 0x545   : > { %18191 = vst [vmem:[#allocation140_spill] sm:$0xff] %v14580_v55  ;;  %v14590_v1 = vadd.f32 %v6000_v25, %v14580_v55  ;;  %v14592_v63 = vadd.f32 %v5984_v0, %v5895_v28 }
 0x546   : > { %v14569_v42 = vpop.f32.mrf.mxu0 }
 0x547   : > { %s14545_s7 = spop %10271  ;;  %v6176_v51 = vpop.f32.mrf.mxu1 }
 0x548   : > { %s10274_s10 = spop %10273  ;;  %v6265_v26 = vpop.f32.mrf.mxu0 }
 0x549   : > { %s10276_s16 = spop %10275  ;;  %v6178_v37 = vpop.f32.mrf.mxu1  ;;  %v14594_v38 = vadd.f32 %v6265_v26, %v6176_v51  ;;  %v18201_v26 = vld [vmem:[#allocation137_spill] sm:$0xff] }
 0x54a   : > { %s3854_s17 = sadd.f32 %s10276_s16, %s10274_s10  ;;  %s10278_s18 = spop %10277  ;;  %v6267_v40 = vpop.f32.mrf.mxu0 }
 0x54b   : > { %s10280_s22 = spop %10279  ;;  %v14596_v36 = vadd.f32 %v6267_v40, %v6178_v37  ;;  %v18204_v40 = vld [vmem:[#allocation117_spill] sm:$0xff]  ;;  %v6182_v46 = vpop.f32.mrf.mxu1 }
 0x54c   : > { %s4153_s2 = sadd.f32 %s10278_s18, %s3854_s17  ;;  %v6271_v15 = vpop.f32.mrf.mxu0 }
 0x54d   : > { %18192 = vst [vmem:[#allocation30_spill] sm:$0xff] %v14596_v36  ;;  %v6184_v49 = vpop.f32.mrf.mxu1  ;;  %v6296_v43 = vadd.f32 %v14596_v36, %v14594_v38  ;;  %v6699_v36 = vld [vmem:[%s17317_s13 + $0x50] sm:$0xff] }
 0x54e   : > { %s4452_s6 = sadd.f32 %s10280_s22, %s4153_s2  ;;  %s18240_s22 = smov 15  }
 0x54f   : > { %v6188_v5 = vpop.f32.mrf.mxu1 }
 0x550   : > { %s4455_s28 = smul.f32 3.0517578e-05, %s4452_s6 }
 0x552   : > { %v14582_v27 = vstv %s4455_s28 }
 0x553   : > { %v14600_v7 = vsub.f32 %v18193_v6, %v14582_v27  ;;  %v14604_v17 = vsub.f32 %v18195_v30, %v14582_v27  ;;  %v14608_v60 = vsub.f32 %v18197_v44, %v14582_v27  ;;  %v14612_v28 = vsub.f32 %v18199_v31, %v14582_v27  ;;  %v18206_v30 = vld [vmem:[#allocation118_spill] sm:$0xff]  ;;  %v18208_v31 = vld [vmem:[#allocation121_spill] sm:$0xff] }
 0x554   : > { %v14616_v0 = vsub.f32 %v18201_v26, %v14582_v27  ;;  %v14620_v51 = vsub.f32 %v18117_v59, %v14582_v27  ;;  %v14624_v25 = vsub.f32 %v14261_v39, %v14582_v27  ;;  %v14628_v37 = vsub.f32 %v14283_v9, %v14582_v27  ;;  %v18210_v26 = vld [vmem:[#allocation125_spill] sm:$0xff] }
 0x555   : > { %18194 = vst [vmem:[#allocation147_spill] sm:$0xff] %v14600_v7  ;;  %18196 = vst [vmem:[#allocation146_spill] sm:$0xff] %v14604_v17  ;;  %v14632_v6 = vsub.f32 %v18204_v40, %v14582_v27  ;;  %v14636_v44 = vsub.f32 %v18206_v30, %v14582_v27  ;;  %v14640_v59 = vsub.f32 %v18208_v31, %v14582_v27 }
 0x556   : > { %18198 = vst [vmem:[#allocation145_spill] sm:$0xff] %v14608_v60  ;;  %18200 = vst [vmem:[#allocation54_spill] sm:$0xff] %v14612_v28  ;;  %v14644_v39 = vsub.f32 %v18210_v26, %v14582_v27  ;;  %v14648_v9 = vsub.f32 %v18212_v48, %v14582_v27  ;;  %v14652_v40 = vsub.f32 %v18214_v56, %v14582_v27 }
 0x557   : > { %18202 = vst [vmem:[#allocation142_spill] sm:$0xff] %v14616_v0  ;;  %18203 = vst [vmem:[#allocation141_spill] sm:$0xff] %v14620_v51  ;;  %v14656_v30 = vsub.f32 %v18215_v23, %v14582_v27  ;;  %v14660_v31 = vsub.f32 %v18121_v29, %v14582_v27  ;;  %v14664_v26 = vsub.f32 %v18216_v62, %v14582_v27 }
 0x558   : > { %18205 = vst [vmem:[#allocation105_spill] sm:$0xff] %v14632_v6  ;;  %18207 = vst [vmem:[#allocation104_spill] sm:$0xff] %v14636_v44  ;;  %v14668_v48 = vsub.f32 %v18218_v18, %v14582_v27  ;;  %v14672_v56 = vsub.f32 %v18220_v19, %v14582_v27  ;;  %v14676_v23 = vsub.f32 %v18113_v10, %v14582_v27 }
 0x559   : > { %18209 = vst [vmem:[#allocation144_spill] sm:$0xff] %v14640_v59  ;;  %18211 = vst [vmem:[#allocation143_spill] sm:$0xff] %v14644_v39  ;;  %v14680_v29 = vsub.f32 %v14236_v11, %v14582_v27  ;;  %v14684_v62 = vsub.f32 %v14257_v54, %v14582_v27  ;;  %v14688_v18 = vsub.f32 %v14278_v13, %v14582_v27 }
 0x55a   : > { %18213 = vst [vmem:[#allocation44_spill] sm:$0xff] %v14648_v9  ;;  %18217 = vst [vmem:[#allocation49_spill] sm:$0xff] %v14664_v26  ;;  %v14692_v19 = vsub.f32 %v14343_v8, %v14582_v27  ;;  %v14696_v10 = vsub.f32 %v14345_v52, %v14582_v27  ;;  %v14700_v11 = vsub.f32 %v14357_v58, %v14582_v27 }
 0x55b   : > { %18219 = vst [vmem:[#allocation53_spill] sm:$0xff] %v14668_v48  ;;  %18221 = vst [vmem:[#allocation108_spill] sm:$0xff] %v14672_v56  ;;  %v14704_v54 = vsub.f32 %v14368_v22, %v14582_v27  ;;  %v14708_v13 = vsub.f32 %v14379_v45, %v14582_v27  ;;  %v14712_v8 = vsub.f32 %v14390_v3, %v14582_v27 }
 0x55c   : > { %18222 = vst [vmem:[#allocation107_spill] sm:$0xff] %v14676_v23  ;;  %18223 = vst [vmem:[#allocation35_spill] sm:$0xff] %v14680_v29  ;;  %v14716_v52 = vsub.f32 %v14401_v34, %v14582_v27  ;;  %v4473_v58 = vmul.f32 %v14600_v7, %v14600_v7  ;;  %v4474_v22 = vmul.f32 %v14604_v17, %v14604_v17 }
 0x55d   : > { %18224 = vst [vmem:[#allocation26_spill] sm:$0xff] %v14692_v19  ;;  %18225 = vst [vmem:[#allocation29_spill] sm:$0xff] %v14696_v10  ;;  %v4514_v45 = vmul.f32 %v14632_v6, %v14632_v6  ;;  %v4515_v55 = vmul.f32 %v14636_v44, %v14636_v44  ;;  %v4555_v3 = vmul.f32 %v14664_v26, %v14664_v26 }
 0x55e   : > { %18226 = vst [vmem:[#allocation55_spill] sm:$0xff] %v14700_v11  ;;  %18227 = vst [vmem:[#allocation56_spill] sm:$0xff] %v14704_v54  ;;  %v4556_v50 = vmul.f32 %v14668_v48, %v14668_v48  ;;  %v4475_v34 = vmul.f32 %v14608_v60, %v14608_v60  ;;  %v4476_v7 = vmul.f32 %v14612_v28, %v14612_v28  ;;  %v6273_v28 = vpop.f32.mrf.mxu0 }
 0x55f   : > { %18228 = vst [vmem:[#allocation57_spill] sm:$0xff] %v14708_v13  ;;  %18229 = vst [vmem:[#allocation58_spill] sm:$0xff] %v14712_v8  ;;  %v4477_v17 = vmul.f32 %v14616_v0, %v14616_v0  ;;  %v4478_v6 = vmul.f32 %v14620_v51, %v14620_v51  ;;  %v4516_v44 = vmul.f32 %v14640_v59, %v14640_v59 }
 0x560   : > { %18230 = vst [vmem:[#allocation59_spill] sm:$0xff] %v14716_v52  ;;  %v4517_v26 = vmul.f32 %v14644_v39, %v14644_v39  ;;  %v4596_v48 = vmul.f32 %v14692_v19, %v14692_v19  ;;  %v4597_v16 = vmul.f32 %v14696_v10, %v14696_v10  ;;  %v4518_v0 = vmul.f32 %v14648_v9, %v14648_v9 }
 0x561   : > { %v4557_v21 = vmul.f32 %v14672_v56, %v14672_v56  ;;  %v4558_v59 = vmul.f32 %v14676_v23, %v14676_v23  ;;  %v4598_v39 = vmul.f32 %v14700_v11, %v14700_v11  ;;  %v4481_v60 = vadd.f32 %v4474_v22, %v4473_v58  ;;  %v6277_v11 = vpop.f32.mrf.mxu0 }
 0x562   : > { %v4522_v35 = vadd.f32 %v4515_v55, %v4514_v45  ;;  %v4563_v19 = vadd.f32 %v4556_v50, %v4555_v3  ;;  %v4604_v61 = vadd.f32 %v4597_v16, %v4596_v48  ;;  %v4599_v10 = vmul.f32 %v14704_v54, %v14704_v54 }
 0x563   : > { %v14758_v9 = vadd.f32 %v6271_v15, %v6182_v46  ;;  %v14760_v33 = vadd.f32 %v6273_v28, %v6184_v49  ;;  %v4482_v56 = vadd.f32 %v4481_v60, %v4475_v34  ;;  %v4519_v50 = vmul.f32 %v14652_v40, %v14652_v40 }
 0x564   : > { %v4523_v51 = vadd.f32 %v4522_v35, %v4516_v44  ;;  %v4564_v23 = vadd.f32 %v4563_v19, %v4557_v21  ;;  %v4605_v24 = vadd.f32 %v4604_v61, %v4598_v39  ;;  %v4559_v16 = vmul.f32 %v14680_v29, %v14680_v29 }
 0x565   : > { %18231 = vst [vmem:[#allocation60_spill] sm:$0xff] %v14758_v9  ;;  %18232 = vst [vmem:[#allocation63_spill] sm:$0xff] %v14760_v33  ;;  %v4600_v55 = vmul.f32 %v14708_v13, %v14708_v13  ;;  %v6297_v15 = vadd.f32 %v6296_v43, %v14758_v9  ;;  %v4483_v46 = vadd.f32 %v4482_v56, %v4476_v7  ;;  %v18265_v13 = vld [vmem:[#allocation167_spill] sm:$0xff] }
 0x566   : > { %v4524_v49 = vadd.f32 %v4523_v51, %v4517_v26  ;;  %v4565_v28 = vadd.f32 %v4564_v23, %v4558_v59  ;;  %v4606_v60 = vadd.f32 %v4605_v24, %v4599_v10  ;;  %v4560_v61 = vmul.f32 %v14684_v62, %v14684_v62  ;;  %v6279_v59 = vpop.f32.mrf.mxu0 }
 0x567   : > { %v4601_v35 = vmul.f32 %v14712_v8, %v14712_v8  ;;  %v6298_v21 = vadd.f32 %v6297_v15, %v14760_v33  ;;  %v14774_v44 = vadd.f32 %v6277_v11, %v6188_v5  ;;  %v4484_v39 = vadd.f32 %v4483_v46, %v4477_v17  ;;  %v6190_v5 = vpop.f32.mrf.mxu1  ;;  %v6809_v8 = vld [vmem:[%s17315_s11 + $0x80] sm:$0xff]  ;;  %v6811_v33 = vld [vmem:[%s17315_s11 + $0x90] sm:$0xff] }
 0x568   : > { %v4525_v48 = vadd.f32 %v4524_v49, %v4518_v0  ;;  %v4566_v19 = vadd.f32 %v4565_v28, %v4559_v16  ;;  %v4607_v58 = vadd.f32 %v4606_v60, %v4600_v55  ;;  %v14778_v43 = vsub.f32 %v14293_v57, %v14582_v27 }
 0x569   : > { %18233 = vst [vmem:[#allocation65_spill] sm:$0xff] %v14774_v44  ;;  %v14782_v24 = vsub.f32 %v14415_v14, %v14582_v27  ;;  %v4479_v7 = vmul.f32 %v14624_v25, %v14624_v25  ;;  %v4520_v51 = vmul.f32 %v14656_v30, %v14656_v30  ;;  %v4485_v17 = vadd.f32 %v4484_v39, %v4478_v6  ;;  %v6194_v34 = vpop.f32.mrf.mxu1 }
 0x56a   : > { %v4526_v0 = vadd.f32 %v4525_v48, %v4519_v50  ;;  %v4567_v26 = vadd.f32 %v4566_v19, %v4560_v61  ;;  %v4608_v56 = vadd.f32 %v4607_v58, %v4601_v35  ;;  %v4480_v57 = vmul.f32 %v14628_v37, %v14628_v37  ;;  %v6283_v50 = vpop.f32.mrf.mxu0 }
 0x56b   : > { %18234 = vst [vmem:[#allocation67_spill] sm:$0xff] %v14782_v24  ;;  %v4521_v23 = vmul.f32 %v14660_v31, %v14660_v31  ;;  %v4561_v27 = vmul.f32 %v14688_v18, %v14688_v18  ;;  %v4602_v14 = vmul.f32 %v14716_v52, %v14716_v52  ;;  %v4486_v11 = vadd.f32 %v4485_v17, %v4479_v7  ;;  %v6196_v61 = vpop.f32.mrf.mxu1 }
 0x56c   : > { %v4527_v10 = vadd.f32 %v4526_v0, %v4520_v51  ;;  %v6299_v22 = vadd.f32 %v6298_v21, %v14774_v44  ;;  %v14797_v6 = vadd.f32 %v6279_v59, %v6190_v5  ;;  %v5702_v45 = vadd.f32 %v14585_v53, %v14587_v20  ;;  %v6285_v35 = vpop.f32.mrf.mxu0  ;;  %v7668_v5 = vld [vmem:[%s17789_s5] ss:$4 sm:$0x3]  ;;  %v6810_v44 = vld [vmem:[%s17315_s11 + $0x88] sm:$0xff] }
 0x56d   : > { %v14803_v3 = vadd.f32 %v14539_v32, %v14537_v47  ;;  %v4487_v55 = vadd.f32 %v4486_v11, %v4480_v57  ;;  %v4609_v15 = vadd.f32 %v4608_v56, %v4602_v14  ;;  %v4568_v46 = vadd.f32 %v4567_v26, %v4561_v27  ;;  %v18239_v59 = vld [vmem:[#allocation24_spill] sm:$0xff] }
 0x56e   : > { %18235 = vst [vmem:[#allocation68_spill] sm:$0xff] %v14797_v6  ;;  %v4528_v16 = vadd.f32 %v4527_v10, %v4521_v23  ;;  %v4562_v49 = vmul.f32 %v14778_v43, %v14778_v43  ;;  %v6002_v28 = vadd.f32 %v14590_v1, %v14592_v63  ;;  %v14811_v60 = vadd.f32 %v14571_v2, %v14569_v42  ;;  %v8184_v0 = vld [vmem:[%s17789_s5] ss:$4 sm:$0x3] }
 0x56f   : > { %v4603_v53 = vmul.f32 %v14782_v24, %v14782_v24  ;;  %4488 = vadd.xlane.f32.xlu0 %v4487_v55  ;;  %v6300_v47 = vadd.f32 %v6299_v22, %v14797_v6  ;;  %v14816_v32 = vadd.f32 %v6283_v50, %v6194_v34  ;;  %v5703_v21 = vadd.f32 %v5702_v45, %v14803_v3  ;;  %v8588_v57 = vld [vmem:[%s17789_s5] ss:$4 sm:$0x3]  ;;  %v10203_v14 = vld [vmem:[%s17789_s5 + $0x2] ss:$4 sm:$0x3] }
 0x570   : > { %4529 = vadd.xlane.f32.xlu1 %v4528_v16  ;;  %v14821_v1 = vadd.f32 %v14543_v41, %v14541_v4  ;;  %v4569_v42 = vadd.f32 %v4568_v46, %v4562_v49  ;;  %v6003_v2 = vadd.f32 %v6002_v28, %v14811_v60  ;;  %v14825_v19 = vadd.f32 %v6285_v35, %v6196_v61  ;;  %v10204_v4 = vld [vmem:[%s17789_s5 + $0x2] ss:$4 sm:$0x3]  ;;  %v18238_v41 = vld [vmem:[#allocation25_spill] sm:$0xff]  ;;  %v18264_v24 = vld [vmem:[#allocation166_spill] sm:$0xff] }
 0x571   : > { %18236 = vst [vmem:[#allocation70_spill] sm:$0xff] %v14816_v32  ;;  %v4610_v39 = vadd.f32 %v4609_v15, %v4603_v53  ;;  %v6301_v48 = vadd.f32 %v6300_v47, %v14816_v32  ;;  %v8411_v51 = vrot.slane %v10204_v4, %v18238_v41  ;;  %v7673_v17 = vrot.slane %v7668_v5, %v18239_v59 }
 0x572   : > { %18237 = vst [vmem:[#allocation75_spill] sm:$0xff] %v14825_v19  ;;  %v5704_v58 = vadd.f32 %v5703_v21, %v14821_v1  ;;  %v8189_v26 = vrot.slane %v8184_v0, %v18239_v59  ;;  %v8407_v56 = vrot.slane %v10204_v4, %v18239_v59  ;;  %v8593_v23 = vrot.slane %v8588_v57, %v18239_v59 }
 0x573   : > { %4570 = vadd.xlane.f32.xlu0 %v4569_v42  ;;  %v6302_v7 = vadd.f32 %v6301_v48, %v14825_v19  ;;  %v7677_v27 = vrot.slane %v7668_v5, %v18238_v41  ;;  %v8003_v10 = vrot.slane %v10203_v14, %v18239_v59  ;;  %v8193_v11 = vrot.slane %v8184_v0, %v18238_v41  ;;  %v6644_v19 = vld [vmem:[%s17315_s11 + $0x58] sm:$0xff] }
 0x574   : > { %4611 = vadd.xlane.f32.xlu1 %v4610_v39  ;;  %v8597_v22 = vrot.slane %v8588_v57, %v18238_v41  ;;  %v8007_v45 = vrot.slane %v10203_v14, %v18238_v41  ;;  %v10205_v57 = vld [vmem:[%s17789_s5 + $0x2] ss:$4 sm:$0x3] }
 0x577   : > { %5705 = vadd.xlane.f32.xlu0 %v5704_v58 }
 0x578   : > { %6004 = vadd.xlane.f32.xlu1 %v6003_v2 }
 0x57b   : > { %6303 = vadd.xlane.f32.xlu0 %v6302_v7 }
 0x589   : > { %8414 = vrot.lane.b32.xlu1 %v8411_v51, %s17827_s23 }
 0x58d   : > { %7678 = vrot.lane.b32.xlu1 %v7673_v17, %s17947_s0 }
 0x591   : > { %8194 = vrot.lane.b32.xlu1 %v8189_v26, %s17944_s30  ;;  %8412 = vrot.lane.b32.xlu0 %v8407_v56, %s17827_s23 }
 0x595   : > { %8598 = vrot.lane.b32.xlu1 %v8593_v23, %s18240_s22  ;;  %7680 = vrot.lane.b32.xlu0 %v7677_v27, %s17947_s0 }
 0x599   : > { %8008 = vrot.lane.b32.xlu1 %v8003_v10, %s17933_s26  ;;  %8196 = vrot.lane.b32.xlu0 %v8193_v11, %s17944_s30  ;;  %v8927_v10 = vrot.slane %v10205_v57, %v18238_v41  ;;  %v8923_v11 = vrot.slane %v10205_v57, %v18239_v59  ;;  %v18246_v57 = vld [vmem:[#allocation148_spill] sm:$0xff] }
 0x59d   : > { %8600 = vrot.lane.b32.xlu0 %v8597_v22, %s18240_s22 }
 0x5a1   : > { %8010 = vrot.lane.b32.xlu0 %v8007_v45, %s17933_s26 }
 0x5f8   : > { %v4489_v50 = vpop.xlane.xlu0 %4488 }
 0x5f9   : > { %v4530_v34 = vpop.xlane.xlu1 %4529  ;;  %v4490_v55 = vrot.slane %v4489_v50, 4 }
 0x5fa   : > { %v4531_v16 = vrot.slane %v4530_v34, 4 }
 0x5fb   : > { %v4491_v46 = vadd.f32 %v4490_v55, %v4489_v50 }
 0x5fc   : > { %v4532_v15 = vadd.f32 %v4531_v16, %v4530_v34  ;;  %v4571_v28 = vpop.xlane.xlu0 %4570 }
 0x5fd   : > { %v4612_v49 = vpop.xlane.xlu1 %4611  ;;  %v4572_v47 = vrot.slane %v4571_v28, 4  ;;  %v4492_v61 = vrot.slane %v4491_v46, 2 }
 0x5fe   : > { %v4613_v53 = vrot.slane %v4612_v49, 4  ;;  %v4533_v35 = vrot.slane %v4532_v15, 2 }
 0x5ff   : > { %v4573_v39 = vadd.f32 %v4572_v47, %v4571_v28  ;;  %v4493_v42 = vadd.f32 %v4492_v61, %v4491_v46 }
 0x600   : > { %v4614_v21 = vadd.f32 %v4613_v53, %v4612_v49  ;;  %v4534_v2 = vadd.f32 %v4533_v35, %v4532_v15  ;;  %v5706_v16 = vpop.xlane.xlu0 %5705 }
 0x601   : > { %v14864_v48 = vpop.xlane.xlu1 %6004  ;;  %v4494_v58 = vrot.slane %v4493_v42, 1  ;;  %v4574_v4 = vrot.slane %v4573_v39, 2  ;;  %v5707_v55 = vrot.slane %v5706_v16, 4 }
 0x602   : > { %v4535_v7 = vrot.slane %v4534_v2, 1  ;;  %v4615_v51 = vrot.slane %v4614_v21, 2  ;;  %v6006_v15 = vrot.slane %v14864_v48, 4 }
 0x603   : > { %v4495_v5 = vadd.f32 %v4494_v58, %v4493_v42  ;;  %v4575_v0 = vadd.f32 %v4574_v4, %v4573_v39  ;;  %v5708_v28 = vadd.f32 %v5707_v55, %v5706_v16  ;;  %v18250_v16 = vld [vmem:[#allocation152_spill] sm:$0xff] }
 0x604   : > { %v4536_v17 = vadd.f32 %v4535_v7, %v4534_v2  ;;  %v4616_v26 = vadd.f32 %v4615_v51, %v4614_v21  ;;  %v6304_v46 = vpop.xlane.xlu0 %6303  ;;  %v6007_v53 = vadd.f32 %v6006_v15, %v14864_v48  ;;  %v18251_v15 = vld [vmem:[#allocation153_spill] sm:$0xff] }
 0x605   : > { %v14866_v56 = vpop.permute.xlu1 %8414  ;;  %10281 = vpush %v4495_v5  ;;  %v4576_v27 = vrot.slane %v4575_v0, 1  ;;  %v6305_v49 = vrot.slane %v6304_v46, 4  ;;  %v5709_v35 = vrot.slane %v5708_v28, 2 }
 0x606   : > { %18241 = vst [vmem:[#allocation77_spill] sm:$0xff] %v14866_v56  ;;  %v8422_v23 = vmul.f32 0.0, %v14866_v56  ;;  %10283 = vpush %v4536_v17  ;;  %v4617_v14 = vrot.slane %v4616_v26, 1  ;;  %v6008_v21 = vrot.slane %v6007_v53, 2 }
 0x607   : > { %v4577_v22 = vadd.f32 %v4576_v27, %v4575_v0  ;;  %v6306_v61 = vadd.f32 %v6305_v49, %v6304_v46  ;;  %v5710_v42 = vadd.f32 %v5709_v35, %v5708_v28  ;;  %v18247_v27 = vld [vmem:[#allocation149_spill] sm:$0xff]  ;;  %v18252_v49 = vld [vmem:[#allocation154_spill] sm:$0xff]  ;;  %v18253_v35 = vld [vmem:[#allocation155_spill] sm:$0xff] }
 0x608   : > { %8514 = vrot.lane.b32.xlu0 %v8422_v23, %s17944_s30  ;;  %8508 = vrot.lane.b32.xlu1 %v8422_v23, %s17944_s30  ;;  %v4618_v45 = vadd.f32 %v4617_v14, %v4616_v26  ;;  %v6009_v2 = vadd.f32 %v6008_v21, %v6007_v53  ;;  %v14931_v26 = vstv %s14545_s7  ;;  %v6473_v53 = vld [vmem:[%s17315_s11 + $0x8] sm:$0xff] }
 0x609   : > { %10285 = vpush %v4577_v22  ;;  %v14886_v41 = vpop.permute.xlu1 %7678  ;;  %v6307_v39 = vrot.slane %v6306_v61, 2  ;;  %v5711_v7 = vrot.slane %v5710_v42, 1  ;;  %18245 = vst [vmem:[#allocation81_spill] sm:$0xff] %v14931_v26  ;;  %v6465_v14 = vmul.f32 %v14931_v26, %v18247_v27  ;;  %v6472_v22 = vld [vmem:[%s17315_s11] sm:$0xff]  ;;  %v6468_v55 = vmul.f32 %v14931_v26, %v18250_v16  ;;  %v18260_v16 = vld [vmem:[#allocation162_spill] sm:$0xff] }
 0x60a   : > { %10287 = vpush %v4618_v45  ;;  %18243 = vst [vmem:[#allocation78_spill] sm:$0xff] %v14886_v41  ;;  %v7686_v59 = vmul.f32 0.0, %v14886_v41  ;;  %v6010_v4 = vrot.slane %v6009_v2, 1  ;;  %v18249_v45 = vld [vmem:[#allocation151_spill] sm:$0xff]  ;;  %v6469_v46 = vmul.f32 %v14931_v26, %v18251_v15  ;;  %v6470_v28 = vmul.f32 %v14931_v26, %v18252_v49 }
 0x60b   : > { %v6308_v58 = vadd.f32 %v6307_v39, %v6306_v61  ;;  %v5712_v5 = vadd.f32 %v5711_v7, %v5710_v42  ;;  %v6475_v61 = vld [vmem:[%s17315_s11 + $0x18] sm:$0xff]  ;;  %v6471_v21 = vmul.f32 %v14931_v26, %v18253_v35  ;;  %v18254_v39 = vld [vmem:[#allocation156_spill] sm:$0xff]  ;;  %v18256_v7 = vld [vmem:[#allocation158_spill] sm:$0xff]  ;;  %v6639_v15 = vmul.f32 %v14931_v26, %v18260_v16 }
 0x60c   : > { %8930 = vrot.lane.b32.xlu0 %v8927_v10, %s18242_s3  ;;  %8928 = vrot.lane.b32.xlu1 %v8923_v11, %s18242_s3  ;;  %v6011_v17 = vadd.f32 %v6010_v4, %v6009_v2  ;;  %v18248_v10 = vld [vmem:[#allocation150_spill] sm:$0xff]  ;;  %v6633_v42 = vmul.f32 %v14931_v26, %v18254_v39  ;;  %v18255_v2 = vld [vmem:[#allocation157_spill] sm:$0xff]  ;;  %v6635_v4 = vmul.f32 %v14931_v26, %v18256_v7  ;;  %v6479_v49 = vld [vmem:[%s17315_s11 + $0x38] sm:$0xff] }
 0x60d   : > { %v14901_v34 = vpop.permute.xlu1 %8194  ;;  %v6309_v51 = vrot.slane %v6308_v58, 1  ;;  %v6466_v11 = vmul.f32 %v14931_v26, %v18248_v10  ;;  %v18259_v10 = vld [vmem:[#allocation161_spill] sm:$0xff]  ;;  %v6641_v35 = vld [vmem:[%s17315_s11 + $0x40] sm:$0xff]  ;;  %v6803_v52 = vmul.f32 %v14931_v26, %v18264_v24  ;;  %v18268_v41 = vld [vmem:[#allocation171_spill] sm:$0xff] }
 0x60e   : > { %18244 = vst [vmem:[#allocation80_spill] sm:$0xff] %v14901_v34  ;;  %v14907_v50 = vmul.f32 0.0, %v14901_v34  ;;  %v6642_v39 = vld [vmem:[%s17315_s11 + $0x48] sm:$0xff]  ;;  %v15028_v56 = vmul.f32 %v14931_v26, %v18268_v41  ;;  %v15068_v9 = vmul.f32 %v6641_v35, %v6633_v42  ;;  %v6664_v42 = vld [vmem:[%s17316_s12 + $0x78] sm:$0xff] }
 0x60f   : > { %v6310_v0 = vadd.f32 %v6309_v51, %v6308_v58  ;;  %v6634_v58 = vmul.f32 %v14931_v26, %v18255_v2  ;;  %v6476_v51 = vld [vmem:[%s17315_s11 + $0x20] sm:$0xff]  ;;  %v18261_v2 = vld [vmem:[#allocation163_spill] sm:$0xff]  ;;  %v18266_v24 = vld [vmem:[#allocation169_spill] sm:$0xff] }
 0x610   : > { %8502 = vrot.lane.b32.xlu0 %v8422_v23, %s17944_s30  ;;  %10436 = vrot.lane.b32.xlu1 %v18124_v12, %s17849_s4  ;;  %v6640_v7 = vmul.f32 %v14931_v26, %v18261_v2  ;;  %v6643_v2 = vld [vmem:[%s17315_s11 + $0x50] sm:$0xff]  ;;  %v15020_v54 = vmul.f32 %v14931_v26, %v18266_v24  ;;  %v6648_v24 = vld [vmem:[%s17315_s11 + $0x78] sm:$0xff] }
 0x614   : > { %8496 = vrot.lane.b32.xlu0 %v8422_v23, %s17944_s30  ;;  %8490 = vrot.lane.b32.xlu1 %v8422_v23, %s17944_s30 }
 0x618   : > { %10441 = vrot.lane.b32.xlu0 %v18124_v12, %s17849_s4  ;;  %8484 = vrot.lane.b32.xlu1 %v8422_v23, %s17944_s30 }
 0x61c   : > { %8478 = vrot.lane.b32.xlu0 %v8422_v23, %s17944_s30  ;;  %10446 = vrot.lane.b32.xlu1 %v18124_v12, %s17849_s4 }
 0x620   : > { %8472 = vrot.lane.b32.xlu0 %v8422_v23, %s17944_s30  ;;  %7776 = vrot.lane.b32.xlu1 %v7686_v59, %s18242_s3  ;;  %v6464_v23 = vmul.f32 %v14931_v26, %v18246_v57  ;;  %v18258_v57 = vld [vmem:[#allocation160_spill] sm:$0xff] }
 0x621   : > { %v6637_v27 = vmul.f32 %v14931_v26, %v18258_v57 }
 0x622   : > { %v15039_v32 = vmul.f32 %v6472_v22, %v6464_v23  ;;  %v6647_v23 = vld [vmem:[%s17315_s11 + $0x70] sm:$0xff]  ;;  %v15055_v22 = vmul.f32 %v6476_v51, %v6468_v55  ;;  %v15070_v55 = vmul.f32 %v6642_v39, %v6634_v58  ;;  %v15078_v51 = vmul.f32 %v6643_v2, %v6635_v4 }
 0x623   : > { %v15087_v58 = vmul.f32 %v6647_v23, %v6639_v15  ;;  %v15093_v39 = vmul.f32 %v6811_v33, %v6803_v52  ;;  %v18271_v52 = vld [vmem:[#allocation141_spill] sm:$0xff]  ;;  %v18272_v15 = vld [vmem:[#allocation88_spill] sm:$0xff]  ;;  %v18278_v23 = vld [vmem:[#allocation175_spill] sm:$0xff] }
 0x624   : > { %10451 = vrot.lane.b32.xlu0 %v18124_v12, %s17849_s4  ;;  %7764 = vrot.lane.b32.xlu1 %v7686_v59, %s18242_s3 }
 0x628   : > { %7770 = vrot.lane.b32.xlu0 %v7686_v59, %s18242_s3  ;;  %7752 = vrot.lane.b32.xlu1 %v7686_v59, %s18242_s3 }
 0x62c   : > { %7758 = vrot.lane.b32.xlu0 %v7686_v59, %s18242_s3  ;;  %7740 = vrot.lane.b32.xlu1 %v7686_v59, %s18242_s3 }
 0x630   : > { %7746 = vrot.lane.b32.xlu0 %v7686_v59, %s18242_s3  ;;  %10461 = vrot.lane.b32.xlu1 %v18124_v12, %s17792_s27 }
 0x634   : > { %10456 = vrot.lane.b32.xlu0 %v18124_v12, %s17792_s27  ;;  %8286 = vrot.lane.b32.xlu1 %v14907_v50, %s17827_s23 }
 0x636   : > { %s10282_s29 = spop %10281 }
 0x637   : > { %s10284_s8 = spop %10283 }
 0x638   : > { %7734 = vrot.lane.b32.xlu0 %v7686_v59, %s18242_s3  ;;  %8280 = vrot.lane.b32.xlu1 %v14907_v50, %s17827_s23  ;;  %s4538_s24 = sadd.f32 %s10284_s8, %s10282_s29  ;;  %v6467_v59 = vmul.f32 %v14931_v26, %v18249_v45  ;;  %v6638_v45 = vmul.f32 %v14931_v26, %v18259_v10  ;;  %v18263_v10 = vld [vmem:[#allocation165_spill] sm:$0xff] }
 0x639   : > { %v6802_v16 = vmul.f32 %v14931_v26, %v18263_v10  ;;  %v15016_v10 = vmul.f32 %v14931_v26, %v18265_v13  ;;  %v6645_v13 = vld [vmem:[%s17315_s11 + $0x60] sm:$0xff] }
 0x63a   : > { %s10286_s9 = spop %10285  ;;  %v15043_v41 = vmul.f32 %v6475_v61, %v6467_v59  ;;  %v6487_v59 = vmul.f32 %v6479_v49, %v6471_v21  ;;  %v6495_v61 = vld [vmem:[%s17316_s12 + $0x38] sm:$0xff]  ;;  %v6662_v21 = vld [vmem:[%s17316_s12 + $0x68] sm:$0xff]  ;;  %v6656_v49 = vmul.f32 %v6648_v24, %v6640_v7 }
 0x63b   : > { %s4579_s10 = sadd.f32 %s10286_s9, %s4538_s24  ;;  %s10288_s16 = spop %10287  ;;  %v15091_v35 = vmul.f32 %v6810_v44, %v6802_v16  ;;  %v6534_v24 = vld [vmem:[%s17317_s13 + $0x28] sm:$0xff] }
 0x63c   : > { %8292 = vrot.lane.b32.xlu0 %v14907_v50, %s17827_s23  ;;  %10471 = vrot.lane.b32.xlu1 %v18124_v12, %s17792_s27 }
 0x63d   : > { %s4620_s17 = sadd.f32 %s10288_s16, %s4579_s10  ;;  %s15519_s16 = scalar_lea.vmem %s17324_s20, %s11327_s25 }
 0x63f   : > { %s4623_s18 = smul.f32 3.0517578e-05, %s4620_s17 }
 0x640   : > { %10466 = vrot.lane.b32.xlu0 %v18124_v12, %s17792_s27  ;;  %8262 = vrot.lane.b32.xlu1 %v14907_v50, %s17827_s23  ;;  %v18267_v12 = vld [vmem:[#allocation170_spill] sm:$0xff] }
 0x641   : > { %s4624_s2 = sadd.f32 1e-05, %s4623_s18  ;;  %v15024_v34 = vmul.f32 %v14931_v26, %v18267_v12  ;;  %v15041_v12 = vmul.f32 %v6473_v53, %v6465_v14  ;;  %v6490_v53 = vld [vmem:[%s17316_s12 + $0x10] sm:$0xff] }
 0x642   : > { %s18304_s18 = sld [smem:[#allocation189_spill]] }
 0x643   : > { %v4625_v47 = vstv %s4624_s2 }
 0x644   : > { %8274 = vrot.lane.b32.xlu0 %v14907_v50, %s17827_s23  ;;  %10477 = vrsqrt.f32 %v4625_v47  ;;  %v6474_v47 = vld [vmem:[%s17315_s11 + $0x10] sm:$0xff] }
 0x645   : > { %v6482_v6 = vmul.f32 %v6474_v47, %v6466_v11  ;;  %v6493_v47 = vld [vmem:[%s17316_s12 + $0x28] sm:$0xff] }
 0x647   : > { %v15095_v4 = vadd.f32 %v6490_v53, %v6482_v6  ;;  %v6672_v6 = vadd.f32 %v6664_v42, %v6656_v49  ;;  %v6702_v42 = vld [vmem:[%s17317_s13 + $0x68] sm:$0xff] }
 0x648   : > { %8268 = vrot.lane.b32.xlu0 %v14907_v50, %s17827_s23 }
 0x651   : > { %v10478_v48 = vpop.eup %10477 }
 0x652   : > { %10289 = vpush %v10478_v48  ;;  %v6477_v48 = vld [vmem:[%s17315_s11 + $0x28] sm:$0xff] }
 0x653   : > { %10291 = vpush %v5712_v5  ;;  %v6478_v5 = vld [vmem:[%s17315_s11 + $0x30] sm:$0xff]  ;;  %v6485_v14 = vmul.f32 %v6477_v48, %v6469_v46 }
 0x654   : > { %10293 = vpush %v6011_v17  ;;  %v18257_v17 = vld [vmem:[#allocation159_spill] sm:$0xff]  ;;  %v15057_v11 = vmul.f32 %v6478_v5, %v6470_v28  ;;  %v15082_v5 = vmul.f32 %v6645_v13, %v6637_v27 }
 0x655   : > { %10295 = vpush %v6310_v0  ;;  %v6636_v0 = vmul.f32 %v14931_v26, %v18257_v17  ;;  %v18262_v17 = vld [vmem:[#allocation164_spill] sm:$0xff] }
 0x656   : > { %v6801_v57 = vmul.f32 %v14931_v26, %v18262_v17  ;;  %v6646_v17 = vld [vmem:[%s17315_s11 + $0x68] sm:$0xff] }
 0x657   : > { %v6654_v46 = vmul.f32 %v6646_v17, %v6638_v45  ;;  %v15080_v48 = vmul.f32 %v6644_v19, %v6636_v0  ;;  %v15097_v19 = vadd.f32 %v6493_v47, %v6485_v14  ;;  %v6503_v0 = vadd.f32 %v6495_v61, %v6487_v59  ;;  %v18276_v17 = vld [vmem:[#allocation94_spill] sm:$0xff]  ;;  %v18280_v47 = vld [vmem:[#allocation145_spill] sm:$0xff] }
 0x658   : > { %v15089_v45 = vmul.f32 %v6809_v8, %v6801_v57  ;;  %v6536_v8 = vld [vmem:[%s17317_s13 + $0x38] sm:$0xff] }
 0x659   : > { %v15101_v7 = vadd.f32 %v6662_v21, %v6654_v46 }
 0x65a   : > { %18270 = vst [vmem:[#allocation83_spill] sm:$0xff] %v15089_v45 }
 0x683   : > { %s14984_s7 = spop %10289 }
 0x684   : > { %s15003_s17 = spop %10291  ;;  %v15073_v28 = vstv %s14984_s7 }
 0x685   : > { %s10294_s24 = spop %10293  ;;  %18269 = vst [vmem:[#allocation82_spill] sm:$0xff] %v15073_v28  ;;  %v6528_v27 = vmul.f32 %v15073_v28, %v14628_v37  ;;  %v6696_v33 = vmul.f32 %v15073_v28, %v14660_v31  ;;  %v6526_v44 = vmul.f32 %v15073_v28, %v18271_v52  ;;  %v18274_v37 = vld [vmem:[#allocation73_spill] sm:$0xff]  ;;  %v6704_v31 = vld [vmem:[%s17317_s13 + $0x78] sm:$0xff]  ;;  %v15136_v59 = vmul.f32 %v15073_v28, %v14778_v43  ;;  %v6531_v43 = vld [vmem:[%s17317_s13 + $0x10] sm:$0xff] }
 0x686   : > { %s6013_s28 = sadd.f32 %s10294_s24, %s15003_s17  ;;  %s10296_s2 = spop %10295  ;;  %v6694_v53 = vmul.f32 %v15073_v28, %v14652_v40  ;;  %v6523_v61 = vmul.f32 %v15073_v28, %v18280_v47  ;;  %v18281_v52 = vld [vmem:[#allocation144_spill] sm:$0xff]  ;;  %v18283_v47 = vld [vmem:[#allocation85_spill] sm:$0xff] }
 0x687   : > { %v6544_v49 = vmul.f32 %v6536_v8, %v6528_v27  ;;  %v6691_v40 = vmul.f32 %v15073_v28, %v18281_v52  ;;  %v6542_v27 = vmul.f32 %v6534_v24, %v6526_v44  ;;  %v18287_v52 = vld [vmem:[#allocation93_spill] sm:$0xff]  ;;  %v18289_v44 = vld [vmem:[#allocation140_spill] sm:$0xff]  ;;  %s15459_s17 = scalar_lea.vmem %s18304_s18, %s11327_s25 }
 0x688   : > { %s6312_s10 = sadd.f32 %s10296_s2, %s6013_s28  ;;  %v6710_v24 = vmul.f32 %v6702_v42, %v6694_v53  ;;  %v6718_v53 = vld [vmem:[%s17318_s14 + $0x68] sm:$0xff] }
 0x68a   : > { %s6315_s7 = smul.f32 4.0690105e-05, %s6312_s10 }
 0x68c   : > { %v15103_v2 = vstv %s6315_s7 }
 0x68d   : > { %v15114_v57 = vsub.f32 %v18272_v15, %v15103_v2  ;;  %v15118_v16 = vsub.f32 %v18274_v37, %v15103_v2  ;;  %v15122_v13 = vsub.f32 %v18276_v17, %v15103_v2  ;;  %v15132_v14 = vsub.f32 %v18278_v23, %v15103_v2  ;;  %v18282_v15 = vld [vmem:[#allocation173_spill] sm:$0xff] }
 0x68e   : > { %v15156_v37 = vsub.f32 %v18282_v15, %v15103_v2  ;;  %v6712_v23 = vmul.f32 %v6704_v31, %v6696_v33  ;;  %v15170_v26 = vsub.f32 %v18287_v52, %v15103_v2  ;;  %v6552_v15 = vld [vmem:[%s17318_s14 + $0x38] sm:$0xff]  ;;  %v15180_v31 = vsub.f32 %v18289_v44, %v15103_v2  ;;  %v6550_v44 = vld [vmem:[%s17318_s14 + $0x28] sm:$0xff] }
 0x68f   : > { %18273 = vst [vmem:[#allocation84_spill] sm:$0xff] %v15114_v57  ;;  %18275 = vst [vmem:[#allocation86_spill] sm:$0xff] %v15118_v16  ;;  %v6374_v46 = vmul.f32 %v15114_v57, %v15114_v57  ;;  %v6375_v21 = vmul.f32 %v15118_v16, %v15118_v16  ;;  %v6376_v17 = vmul.f32 %v15122_v13, %v15122_v13  ;;  %v18285_v16 = vld [vmem:[#allocation87_spill] sm:$0xff] }
 0x690   : > { %18277 = vst [vmem:[#allocation89_spill] sm:$0xff] %v15122_v13  ;;  %18279 = vst [vmem:[#allocation90_spill] sm:$0xff] %v15132_v14  ;;  %v15162_v57 = vsub.f32 %v18283_v47, %v15103_v2  ;;  %v15166_v45 = vsub.f32 %v18285_v16, %v15103_v2  ;;  %v6720_v33 = vld [vmem:[%s17318_s14 + $0x78] sm:$0xff]  ;;  %v6377_v16 = vmul.f32 %v15132_v14, %v15132_v14  ;;  %v18290_v47 = vld [vmem:[#allocation174_spill] sm:$0xff] }
 0x691   : > { %v6382_v8 = vadd.f32 %v6375_v21, %v6374_v46  ;;  %18288 = vst [vmem:[#allocation95_spill] sm:$0xff] %v15170_v26  ;;  %v6539_v46 = vmul.f32 %v6531_v43, %v6523_v61  ;;  %v15186_v52 = vsub.f32 %v18290_v47, %v15103_v2  ;;  %v15200_v61 = vsub.f32 %v14592_v63, %v15103_v2  ;;  %v18291_v47 = vld [vmem:[#allocation132_spill] sm:$0xff] }
 0x692   : > { %18284 = vst [vmem:[#allocation91_spill] sm:$0xff] %v15162_v57  ;;  %18286 = vst [vmem:[#allocation92_spill] sm:$0xff] %v15166_v45  ;;  %v6333_v13 = vmul.f32 %v15162_v57, %v15162_v57  ;;  %v6334_v29 = vmul.f32 %v15166_v45, %v15166_v45  ;;  %v6378_v42 = vmul.f32 %v15156_v37, %v15156_v37 }
 0x693   : > { %v6383_v21 = vadd.f32 %v6382_v8, %v6376_v17  ;;  %v6560_v43 = vadd.f32 %v6552_v15, %v6544_v49  ;;  %v6728_v17 = vadd.f32 %v6720_v33, %v6712_v23  ;;  %v15206_v57 = vsub.f32 %v18291_v47, %v15103_v2 }
 0x694   : > { %v6335_v45 = vmul.f32 %v15170_v26, %v15170_v26  ;;  %v6341_v14 = vadd.f32 %v6334_v29, %v6333_v13  ;;  %v15215_v63 = vsub.f32 %v14811_v60, %v15103_v2  ;;  %v6379_v49 = vmul.f32 %v15180_v31, %v15180_v31 }
 0x695   : > { %v6384_v8 = vadd.f32 %v6383_v21, %v6377_v16  ;;  %v6558_v23 = vadd.f32 %v6550_v44, %v6542_v27  ;;  %v6726_v15 = vadd.f32 %v6718_v53, %v6710_v24  ;;  %v15221_v16 = vsub.f32 %v14587_v20, %v15103_v2  ;;  %v6547_v21 = vld [vmem:[%s17318_s14 + $0x10] sm:$0xff] }
 0x696   : > { %v6336_v29 = vmul.f32 %v15186_v52, %v15186_v52  ;;  %v6342_v13 = vadd.f32 %v6341_v14, %v6335_v45  ;;  %v6380_v60 = vmul.f32 %v15200_v61, %v15200_v61  ;;  %v6568_v47 = vadd.f32 %v6560_v43, %v6503_v0  ;;  %v6659_v24 = vld [vmem:[%s17316_s12 + $0x50] sm:$0xff] }
 0x697   : > { %v6385_v33 = vadd.f32 %v6384_v8, %v6378_v42  ;;  %v6736_v26 = vadd.f32 %v6728_v17, %v6672_v6  ;;  %v6707_v27 = vmul.f32 %v6699_v36, %v6691_v40  ;;  %v15235_v44 = vsub.f32 %v14803_v3, %v15103_v2  ;;  %v6715_v53 = vld [vmem:[%s17318_s14 + $0x50] sm:$0xff]  ;;  %v6872_v8 = vld [vmem:[%s17317_s13 + $0xb8] sm:$0xff] }
 0x698   : > { %v6337_v45 = vmul.f32 %v15206_v57, %v15206_v57  ;;  %v6343_v14 = vadd.f32 %v6342_v13, %v6336_v29  ;;  %v6381_v36 = vmul.f32 %v15215_v63, %v15215_v63  ;;  %v6566_v0 = vadd.f32 %v6558_v23, %v15097_v19  ;;  %v6870_v29 = vld [vmem:[%s17317_s13 + $0xa8] sm:$0xff]  ;;  %v6812_v13 = vld [vmem:[%s17315_s11 + $0x98] sm:$0xff] }
 0x699   : > { %v6386_v20 = vadd.f32 %v6385_v33, %v6379_v49  ;;  %v6734_v6 = vadd.f32 %v6726_v15, %v15101_v7  ;;  %v6555_v40 = vadd.f32 %v6547_v21, %v6539_v46  ;;  %v15248_v3 = vsub.f32 %v14821_v1, %v15103_v2 }
 0x69a   : > { %v6338_v43 = vmul.f32 %v15221_v16, %v15221_v16  ;;  %v6344_v17 = vadd.f32 %v6343_v14, %v6337_v45  ;;  %v6667_v49 = vadd.f32 %v6659_v24, %v15078_v51  ;;  %v10170_v33 = vmul.f32 -1.442695, %v6568_v47  ;;  %v6816_v51 = vld [vmem:[%s17315_s11 + $0xb8] sm:$0xff]  ;;  %v6815_v47 = vld [vmem:[%s17315_s11 + $0xb0] sm:$0xff] }
 0x69b   : > { %v6387_v42 = vadd.f32 %v6386_v20, %v6380_v60  ;;  %v6862_v19 = vmul.f32 %v15073_v28, %v14684_v62  ;;  %v6723_v7 = vadd.f32 %v6715_v53, %v6707_v27  ;;  %v6339_v1 = vmul.f32 %v15235_v44, %v15235_v44  ;;  %v18292_v53 = vld [vmem:[#allocation108_spill] sm:$0xff] }
 0x69c   : > { %v6345_v23 = vadd.f32 %v6344_v17, %v6338_v43  ;;  %v10178_v15 = vmul.f32 -1.442695, %v6736_v26  ;;  %10479 = vpow2.f32 %v10170_v33  ;;  %v6880_v62 = vmul.f32 %v6872_v8, %v15136_v59  ;;  %v6814_v26 = vld [vmem:[%s17315_s11 + $0xa8] sm:$0xff]  ;;  %v6888_v59 = vld [vmem:[%s17318_s14 + $0xb8] sm:$0xff] }
 0x69d   : > { %v6388_v46 = vadd.f32 %v6387_v42, %v6381_v36  ;;  %v10168_v21 = vmul.f32 -1.442695, %v6566_v0  ;;  %v10176_v60 = vmul.f32 -1.442695, %v6734_v6  ;;  %v6340_v27 = vmul.f32 %v15248_v3, %v15248_v3  ;;  %v6867_v0 = vld [vmem:[%s17317_s13 + $0x90] sm:$0xff]  ;;  %v6488_v6 = vld [vmem:[%s17316_s12] sm:$0xff] }
 0x69e   : > { %v6346_v24 = vadd.f32 %v6345_v23, %v6339_v1  ;;  %10481 = vpow2.f32 %v10178_v15  ;;  %v6563_v20 = vadd.f32 %v6555_v40, %v15095_v4  ;;  %v6878_v45 = vmul.f32 %v6870_v29, %v6862_v19  ;;  %v6489_v4 = vld [vmem:[%s17316_s12 + $0x8] sm:$0xff]  ;;  %v6832_v8 = vld [vmem:[%s17316_s12 + $0xb8] sm:$0xff]  ;;  %v18294_v15 = vld [vmem:[#allocation146_spill] sm:$0xff] }
 0x69f   : > { %6389 = vadd.xlane.f32.xlu0 %v6388_v46  ;;  %10483 = vpow2.f32 %v10168_v21  ;;  %v6731_v14 = vadd.f32 %v6723_v7, %v6667_v49  ;;  %v6859_v36 = vmul.f32 %v15073_v28, %v18292_v53  ;;  %v15294_v40 = vmul.f32 %v6812_v13, %v15016_v10  ;;  %v6886_v17 = vld [vmem:[%s17318_s14 + $0xa8] sm:$0xff]  ;;  %v15313_v46 = vpop.permute.xlu0 %8412  ;;  %v18295_v29 = vld [vmem:[#allocation104_spill] sm:$0xff]  ;;  %v6827_v21 = vld [vmem:[%s17316_s12 + $0x90] sm:$0xff] }
 0x6a0   : > { %v6824_v42 = vmul.f32 %v6816_v51, %v15028_v56  ;;  %v6347_v43 = vadd.f32 %v6346_v24, %v6340_v27  ;;  %10485 = vpow2.f32 %v10176_v60  ;;  %v6822_v49 = vmul.f32 %v6814_v26, %v15020_v54  ;;  %v6883_v56 = vld [vmem:[%s17318_s14 + $0x90] sm:$0xff]  ;;  %v6830_v7 = vld [vmem:[%s17316_s12 + $0xa8] sm:$0xff]  ;;  %18293 = vst [vmem:[#allocation96_spill] sm:$0xff] %v15313_v46 }
 0x6a1   : > { %v15305_v33 = vmul.f32 %v6815_v47, %v15024_v34  ;;  %v10165_v19 = vmul.f32 -1.442695, %v6563_v20  ;;  %v10173_v10 = vmul.f32 -1.442695, %v6731_v14  ;;  %v6896_v1 = vadd.f32 %v6888_v59, %v6880_v62  ;;  %v6530_v34 = vld [vmem:[%s17317_s13 + $0x8] sm:$0xff]  ;;  %v6535_v26 = vld [vmem:[%s17317_s13 + $0x30] sm:$0xff] }
 0x6a2   : > { %6348 = vadd.xlane.f32.xlu1 %v6347_v43  ;;  %v6875_v23 = vmul.f32 %v6867_v0, %v6859_v36  ;;  %v6522_v54 = vmul.f32 %v15073_v28, %v18294_v15  ;;  %v6690_v13 = vmul.f32 %v15073_v28, %v18295_v29  ;;  %v6698_v51 = vld [vmem:[%s17317_s13 + $0x48] sm:$0xff]  ;;  %v6894_v62 = vadd.f32 %v6886_v17, %v6878_v45  ;;  %v6703_v27 = vld [vmem:[%s17317_s13 + $0x70] sm:$0xff]  ;;  %v6491_v14 = vld [vmem:[%s17316_s12 + $0x18] sm:$0xff] }
 0x6a3   : > { %10487 = vpow2.f32 %v10165_v19  ;;  %v6527_v60 = vmul.f32 %v15073_v28, %v14624_v25  ;;  %v6695_v47 = vmul.f32 %v15073_v28, %v14656_v30  ;;  %v6658_v24 = vld [vmem:[%s17316_s12 + $0x48] sm:$0xff]  ;;  %v15342_v20 = vadd.f32 %v6488_v6, %v15039_v32  ;;  %v6551_v6 = vld [vmem:[%s17318_s14 + $0x30] sm:$0xff]  ;;  %v6492_v43 = vld [vmem:[%s17316_s12 + $0x20] sm:$0xff] }
 0x6a4   : > { %v6840_v59 = vadd.f32 %v6832_v8, %v6824_v42  ;;  %10489 = vpow2.f32 %v10173_v10  ;;  %v6891_v25 = vadd.f32 %v6883_v56, %v6875_v23  ;;  %v6546_v45 = vld [vmem:[%s17318_s14 + $0x8] sm:$0xff]  ;;  %v6497_v53 = vadd.f32 %v6489_v4, %v15041_v12  ;;  %v6719_v42 = vld [vmem:[%s17318_s14 + $0x70] sm:$0xff]  ;;  %v15367_v4 = vpop.permute.xlu0 %7680 }
 0x6a5   : > { %v6714_v30 = vld [vmem:[%s17318_s14 + $0x48] sm:$0xff]  ;;  %v6838_v36 = vadd.f32 %v6830_v7, %v6822_v49  ;;  %v6538_v32 = vmul.f32 %v6530_v34, %v6522_v54  ;;  %v6706_v0 = vmul.f32 %v6698_v51, %v6690_v13  ;;  %v6494_v17 = vld [vmem:[%s17316_s12 + $0x30] sm:$0xff]  ;;  %v6835_v12 = vadd.f32 %v6827_v21, %v15093_v39  ;;  %18296 = vst [vmem:[#allocation98_spill] sm:$0xff] %v15367_v4  ;;  %v6660_v54 = vld [vmem:[%s17316_s12 + $0x58] sm:$0xff] }
 0x6a6   : > { %v6904_v8 = vadd.f32 %v6896_v1, %v6840_v59  ;;  %v6543_v49 = vmul.f32 %v6535_v26, %v6527_v60  ;;  %v6711_v19 = vmul.f32 %v6703_v27, %v6695_v47  ;;  %v6663_v10 = vld [vmem:[%s17316_s12 + $0x70] sm:$0xff]  ;;  %v6666_v56 = vadd.f32 %v6658_v24, %v15070_v55 }
 0x6a7   : > { %v6902_v7 = vadd.f32 %v6894_v62, %v6838_v36  ;;  %v6554_v23 = vadd.f32 %v6546_v45, %v6538_v32  ;;  %v6722_v15 = vadd.f32 %v6714_v30, %v6706_v0  ;;  %v6499_v39 = vadd.f32 %v6491_v14, %v15043_v41  ;;  %v18298_v47 = vld [vmem:[#allocation54_spill] sm:$0xff]  ;;  %v18299_v41 = vld [vmem:[#allocation143_spill] sm:$0xff] }
 0x6a8   : > { %v6899_v34 = vadd.f32 %v6891_v25, %v6835_v12  ;;  %v6559_v29 = vadd.f32 %v6551_v6, %v6543_v49  ;;  %v6727_v1 = vadd.f32 %v6719_v42, %v6711_v19  ;;  %v15378_v13 = vadd.f32 %v6492_v43, %v15055_v22  ;;  %v15382_v26 = vpop.permute.xlu0 %8196  ;;  %v6700_v30 = vld [vmem:[%s17317_s13 + $0x58] sm:$0xff] }
 0x6a9   : > { %v6502_v51 = vadd.f32 %v6494_v17, %v15057_v11  ;;  %v6562_v21 = vadd.f32 %v6554_v23, %v6497_v53  ;;  %v6730_v60 = vadd.f32 %v6722_v15, %v6666_v56  ;;  %v10480_v55 = vpop.eup %10479  ;;  %v6671_v62 = vadd.f32 %v6663_v10, %v15087_v58  ;;  %18297 = vst [vmem:[#allocation97_spill] sm:$0xff] %v15382_v26  ;;  %v18300_v11 = vld [vmem:[#allocation53_spill] sm:$0xff]  ;;  %v6532_v58 = vld [vmem:[%s17317_s13 + $0x18] sm:$0xff]  ;;  %v6529_v15 = vld [vmem:[%s17317_s13] sm:$0xff] }
 0x6aa   : > { %10491 = vtanh.f32 %v6904_v8  ;;  %v6524_v27 = vmul.f32 %v15073_v28, %v18298_v47  ;;  %v6692_v24 = vmul.f32 %v15073_v28, %v18299_v41  ;;  %v6668_v22 = vadd.f32 %v6660_v54, %v15080_v48  ;;  %v6866_v48 = vld [vmem:[%s17317_s13 + $0x88] sm:$0xff]  ;;  %v6548_v17 = vld [vmem:[%s17318_s14 + $0x18] sm:$0xff] }
 0x6ab   : > { %v10482_v59 = vpop.eup %10481  ;;  %v6600_v25 = vadd.f32 1.0, %v10480_v55  ;;  %10493 = vtanh.f32 %v6902_v7  ;;  %v6858_v45 = vmul.f32 %v15073_v28, %v18300_v11  ;;  %v6567_v36 = vadd.f32 %v6559_v29, %v6502_v51  ;;  %v6716_v10 = vld [vmem:[%s17318_s14 + $0x58] sm:$0xff]  ;;  %v18302_v54 = vld [vmem:[#allocation105_spill] sm:$0xff]  ;;  %v6697_v55 = vld [vmem:[%s17317_s13 + $0x40] sm:$0xff] }
 0x6ac   : > { %v10484_v14 = vpop.eup %10483  ;;  %v6768_v53 = vadd.f32 1.0, %v10482_v59  ;;  %10495 = vtanh.f32 %v6899_v34  ;;  %v6735_v32 = vadd.f32 %v6727_v1, %v6671_v62  ;;  %v10164_v42 = vmul.f32 -1.442695, %v6562_v21  ;;  %v15403_v12 = vpop.permute.xlu0 %8600  ;;  %v18301_v7 = vld [vmem:[#allocation147_spill] sm:$0xff]  ;;  %v6657_v1 = vld [vmem:[%s17316_s12 + $0x40] sm:$0xff] }
 0x6ad   : > { %v10486_v0 = vpop.eup %10485  ;;  %10497 = vrcp.f32 %v6600_v25  ;;  %v6598_v6 = vadd.f32 1.0, %v10484_v14  ;;  %v10172_v43 = vmul.f32 -1.442695, %v6730_v60  ;;  %v6540_v49 = vmul.f32 %v6532_v58, %v6524_v27  ;;  %v6661_v59 = vld [vmem:[%s17316_s12 + $0x60] sm:$0xff]  ;;  %v15430_v25 = vpop.permute.xlu1 %8598 }
 0x6ae   : > { %10499 = vrcp.f32 %v6768_v53  ;;  %v6766_v8 = vadd.f32 1.0, %v10486_v0  ;;  %v6708_v19 = vmul.f32 %v6700_v30, %v6692_v24  ;;  %v15409_v56 = vmul.f32 0.0, %v15403_v12  ;;  %v6545_v24 = vld [vmem:[%s17318_s14] sm:$0xff]  ;;  %18303 = vst [vmem:[#allocation99_spill] sm:$0xff] %v15430_v25  ;;  %v6882_v53 = vld [vmem:[%s17318_s14 + $0x88] sm:$0xff] }
 0x6af   : > { %10501 = vrcp.f32 %v6598_v6  ;;  %v6521_v23 = vmul.f32 %v15073_v28, %v18301_v7  ;;  %v6689_v34 = vmul.f32 %v15073_v28, %v18302_v54  ;;  %v6874_v51 = vmul.f32 %v6866_v48, %v6858_v45  ;;  %v6713_v30 = vld [vmem:[%s17318_s14 + $0x40] sm:$0xff]  ;;  %v6828_v7 = vld [vmem:[%s17316_s12 + $0x98] sm:$0xff] }
 0x6b0   : > { %v10488_v29 = vpop.eup %10487  ;;  %10503 = vrcp.f32 %v6766_v8  ;;  %v10169_v21 = vmul.f32 -1.442695, %v6567_v36  ;;  %v6556_v60 = vadd.f32 %v6548_v17, %v6540_v49  ;;  %v10177_v27 = vmul.f32 -1.442695, %v6735_v32  ;;  %v6533_v17 = vld [vmem:[%s17317_s13 + $0x20] sm:$0xff]  ;;  %v18305_v8 = vld [vmem:[#allocation142_spill] sm:$0xff] }
 0x6b1   : > { %v10490_v62 = vpop.eup %10489  ;;  %v6595_v47 = vadd.f32 1.0, %v10488_v29  ;;  %10505 = vpow2.f32 %v10164_v42  ;;  %v6724_v41 = vadd.f32 %v6716_v10, %v6708_v19  ;;  %v6537_v58 = vmul.f32 %v6529_v15, %v6521_v23  ;;  %v6701_v19 = vld [vmem:[%s17317_s13 + $0x60] sm:$0xff]  ;;  %v18306_v15 = vld [vmem:[#allocation107_spill] sm:$0xff] }
 0x6b2   : > { %v6763_v11 = vadd.f32 1.0, %v10490_v62  ;;  %10507 = vpow2.f32 %v10172_v43  ;;  %v6564_v45 = vadd.f32 %v6556_v60, %v6499_v39  ;;  %v6665_v14 = vadd.f32 %v6657_v1, %v15068_v9  ;;  %v6826_v39 = vld [vmem:[%s17316_s12 + $0x88] sm:$0xff]  ;;  %v18307_v29 = vld [vmem:[#allocation44_spill] sm:$0xff] }
 0x6b3   : > { %8256 = vrot.lane.b32.xlu1 %v14907_v50, %s17827_s23  ;;  %10509 = vrcp.f32 %v6595_v47  ;;  %v6732_v48 = vadd.f32 %v6724_v41, %v6668_v22  ;;  %v6705_v36 = vmul.f32 %v6697_v55, %v6689_v34  ;;  %v6863_v9 = vmul.f32 %v15073_v28, %v14688_v18  ;;  %v6871_v22 = vld [vmem:[%s17317_s13 + $0xb0] sm:$0xff]  ;;  %v6549_v34 = vld [vmem:[%s17318_s14 + $0x20] sm:$0xff]  ;;  %v6920_v41 = vld [vmem:[%s15459_s17 + $0x38] sm:$0xff] }
 0x6b4   : > { %10511 = vrcp.f32 %v6763_v11  ;;  %v10166_v32 = vmul.f32 -1.442695, %v6564_v45  ;;  %v6553_v0 = vadd.f32 %v6545_v24, %v6537_v58  ;;  %v6669_v6 = vadd.f32 %v6661_v59, %v15082_v5  ;;  %v6717_v62 = vld [vmem:[%s17318_s14 + $0x60] sm:$0xff]  ;;  %v6887_v24 = vld [vmem:[%s17318_s14 + $0xb0] sm:$0xff] }
 0x6b5   : > { %8700 = vrot.lane.b32.xlu0 %v15409_v56, %s17933_s26  ;;  %10513 = vpow2.f32 %v10169_v21  ;;  %v10174_v42 = vmul.f32 -1.442695, %v6732_v48  ;;  %v6721_v43 = vadd.f32 %v6713_v30, %v6705_v36  ;;  %v6890_v18 = vadd.f32 %v6882_v53, %v6874_v51  ;;  %v15480_v21 = vpop.permute.xlu1 %8008  ;;  %v6831_v58 = vld [vmem:[%s17316_s12 + $0xb0] sm:$0xff]  ;;  %v18308_v53 = vld [vmem:[#allocation49_spill] sm:$0xff] }
 0x6b6   : > { %10515 = vpow2.f32 %v10177_v27  ;;  %v6561_v5 = vadd.f32 %v6553_v0, %v15342_v20  ;;  %v6525_v49 = vmul.f32 %v15073_v28, %v18305_v8  ;;  %v6834_v23 = vadd.f32 %v6826_v39, %v15091_v35 }
 0x6b7   : > { %v10492_v10 = vpop.eup %10491  ;;  %8250 = vrot.lane.b32.xlu1 %v14907_v50, %s17827_s23  ;;  %v6860_v20 = vmul.f32 %v15073_v28, %v18306_v15  ;;  %v6729_v54 = vadd.f32 %v6721_v43, %v6665_v14  ;;  %v6693_v1 = vmul.f32 %v15073_v28, %v18307_v29  ;;  %v6879_v35 = vmul.f32 %v6871_v22, %v6863_v9  ;;  %v6868_v50 = vld [vmem:[%s17317_s13 + $0x98] sm:$0xff]  ;;  %v6865_v22 = vld [vmem:[%s17317_s13 + $0x80] sm:$0xff]  ;;  %v15528_v29 = vpop.permute.xlu0 %8010 }
 0x6b8   : > { %v10494_v51 = vpop.eup %10493  ;;  %10517 = vpow2.f32 %v10166_v32  ;;  %v10163_v60 = vmul.f32 -1.442695, %v6561_v5  ;;  %v6541_v55 = vmul.f32 %v6533_v17, %v6525_v49  ;;  %v15491_v27 = vmul.f32 0.0, %v15480_v21  ;;  %v6918_v32 = vld [vmem:[%s15459_s17 + $0x28] sm:$0xff]  ;;  %18310 = vst [vmem:[#allocation101_spill] sm:$0xff] %v15528_v29 }
 0x6b9   : > { %8694 = vrot.lane.b32.xlu0 %v15409_v56, %s17933_s26  ;;  %v10496_v47 = vpop.eup %10495  ;;  %10519 = vpow2.f32 %v10174_v42  ;;  %v10171_v59 = vmul.f32 -1.442695, %v6729_v54  ;;  %v6709_v11 = vmul.f32 %v6701_v19, %v6693_v1  ;;  %v6836_v30 = vadd.f32 %v6828_v7, %v15294_v40 }
 0x6ba   : > { %v10498_v45 = vpop.eup %10497  ;;  %v6898_v14 = vadd.f32 %v6890_v18, %v6834_v23  ;;  %v6857_v48 = vmul.f32 %v15073_v28, %v18308_v53  ;;  %v6557_v36 = vadd.f32 %v6549_v34, %v6541_v55  ;;  %v6876_v0 = vmul.f32 %v6868_v50, %v6860_v20  ;;  %v6884_v18 = vld [vmem:[%s17318_s14 + $0x98] sm:$0xff] }
 0x6bb   : > { %v10500_v39 = vpop.eup %10499  ;;  %8106 = vrot.lane.b32.xlu1 %v15491_v27, %s18240_s22  ;;  %v6936_v9 = vmul.f32 %v10498_v45, %v10492_v10  ;;  %10521 = vpow2.f32 %v10163_v60  ;;  %v6725_v42 = vadd.f32 %v6717_v62, %v6709_v11  ;;  %v6895_v17 = vadd.f32 %v6887_v24, %v6879_v35  ;;  %v18311_v24 = vld [vmem:[#allocation30_spill] sm:$0xff]  ;;  %v18313_v45 = vld [vmem:[#allocation35_spill] sm:$0xff] }
 0x6bc   : > { %v10502_v40 = vpop.eup %10501  ;;  %v6928_v43 = vmul.f32 %v10500_v39, %v6920_v41  ;;  %10523 = vpow2.f32 %v10171_v59  ;;  %v6565_v5 = vadd.f32 %v6557_v36, %v15378_v13  ;;  %v6839_v49 = vadd.f32 %v6831_v58, %v15305_v33  ;;  %v6915_v33 = vld [vmem:[%s15459_s17 + $0x10] sm:$0xff]  ;;  %v6825_v41 = vld [vmem:[%s17316_s12 + $0x80] sm:$0xff] }
 0x6bd   : > { %8688 = vrot.lane.b32.xlu0 %v15409_v56, %s17933_s26  ;;  %v10504_v8 = vpop.eup %10503  ;;  %v15524_v19 = vsub.f32 %v14594_v38, %v15103_v2  ;;  %v6934_v10 = vmul.f32 %v10502_v40, %v10494_v51  ;;  %v6733_v7 = vadd.f32 %v6725_v42, %v6669_v6  ;;  %v6873_v13 = vmul.f32 %v6865_v22, %v6857_v48  ;;  %v6881_v6 = vld [vmem:[%s17318_s14 + $0x80] sm:$0xff]  ;;  %v18316_v40 = vld [vmem:[#allocation83_spill] sm:$0xff] }
 0x6be   : > { %v10506_v23 = vpop.eup %10505  ;;  %v15526_v15 = vadd.f32 %v6936_v9, %v6928_v43  ;;  %v6926_v20 = vmul.f32 %v10504_v8, %v6918_v32  ;;  %v10167_v54 = vmul.f32 -1.442695, %v6565_v5  ;;  %10525 = vtanh.f32 %v6898_v14  ;;  %v6869_v36 = vld [vmem:[%s17317_s13 + $0xa0] sm:$0xff]  ;;  %v18315_v32 = vld [vmem:[#allocation81_spill] sm:$0xff]  ;;  %v15566_v8 = vpop.permute.xlu0 %8514 }
 0x6bf   : > { %18309 = vst [vmem:[#allocation100_spill] sm:$0xff] %v15524_v19  ;;  %v10508_v34 = vpop.eup %10507  ;;  %8100 = vrot.lane.b32.xlu1 %v15491_v27, %s18240_s22  ;;  %v6594_v1 = vadd.f32 1.0, %v10506_v23  ;;  %v6892_v38 = vadd.f32 %v6884_v18, %v6876_v0  ;;  %v10175_v51 = vmul.f32 -1.442695, %v6733_v7  ;;  %v6903_v55 = vadd.f32 %v6895_v17, %v6839_v49  ;;  %v18314_v9 = vld [vmem:[#allocation168_spill] sm:$0xff]  ;;  %18317 = vst [vmem:[#allocation102_spill] sm:$0xff] %v15566_v8 }
 0x6c0   : > { %v10510_v35 = vpop.eup %10509  ;;  %7401 = vst [vmem:[%s15519_s16 + $0x38] sm:$0xff] %v15526_v15  ;;  %v15540_v50 = vadd.f32 %v6934_v10, %v6926_v20  ;;  %v6762_v60 = vadd.f32 1.0, %v10508_v34  ;;  %10527 = vpow2.f32 %v10167_v54  ;;  %v15547_v59 = vsub.f32 %v18311_v24, %v15103_v2  ;;  %v6813_v42 = vld [vmem:[%s17315_s11 + $0xa0] sm:$0xff]  ;;  %v7123_v8 = vld [vmem:[%s17315_s11 + $0x108] sm:$0xff] }
 0x6c1   : > { %8682 = vrot.lane.b32.xlu0 %v15409_v56, %s17933_s26  ;;  %v10512_v62 = vpop.eup %10511  ;;  %v6931_v11 = vmul.f32 %v10510_v35, %v10496_v47  ;;  %10529 = vrcp.f32 %v6594_v1  ;;  %v6861_v58 = vmul.f32 %v15073_v28, %v18313_v45  ;;  %v6889_v48 = vadd.f32 %v6881_v6, %v6873_v13  ;;  %v6885_v13 = vld [vmem:[%s17318_s14 + $0xa0] sm:$0xff]  ;;  %v18351_v28 = vld [vmem:[#allocation78_spill] sm:$0xff] }
 0x6c2   : > { %18312 = vst [vmem:[#allocation103_spill] sm:$0xff] %v15547_v59  ;;  %v10514_v14 = vpop.eup %10513  ;;  %7399 = vst [vmem:[%s15519_s16 + $0x28] sm:$0xff] %v15540_v50  ;;  %v6923_v53 = vmul.f32 %v10512_v62, %v6915_v33  ;;  %10531 = vrcp.f32 %v6762_v60  ;;  %v6805_v0 = vmul.f32 %v18315_v32, %v18314_v9  ;;  %v6900_v47 = vadd.f32 %v6892_v38, %v6836_v30  ;;  %v18318_v34 = vld [vmem:[#allocation60_spill] sm:$0xff]  ;;  %v15586_v24 = vpop.permute.xlu0 %8930 }
 0x6c3   : > { %v10516_v39 = vpop.eup %10515  ;;  %v6599_v22 = vadd.f32 1.0, %v10514_v14  ;;  %10533 = vpow2.f32 %v10175_v51  ;;  %v6833_v43 = vadd.f32 %v6825_v41, %v18316_v40  ;;  %v6415_v30 = vmul.f32 %v15524_v19, %v15524_v19  ;;  %v6829_v6 = vld [vmem:[%s17316_s12 + $0xa0] sm:$0xff]  ;;  %v7279_v19 = vld [vmem:[%s17315_s11 + $0x168] sm:$0xff] }
 0x6c4   : > { %v15564_v17 = vadd.f32 %v6931_v11, %v6923_v53  ;;  %v6767_v18 = vadd.f32 1.0, %v10516_v39  ;;  %10535 = vtanh.f32 %v6903_v55  ;;  %v6416_v49 = vmul.f32 %v15547_v59, %v15547_v59  ;;  %v18319_v11 = vld [vmem:[#allocation63_spill] sm:$0xff] }
 0x6c5   : > { %8676 = vrot.lane.b32.xlu0 %v15409_v56, %s17933_s26  ;;  %v10518_v5 = vpop.eup %10517  ;;  %10537 = vrcp.f32 %v6599_v22  ;;  %v6877_v10 = vmul.f32 %v6869_v36, %v6861_v58  ;;  %v6897_v20 = vadd.f32 %v6889_v48, %v6833_v43  ;;  %v6821_v54 = vmul.f32 %v6813_v42, %v6805_v0  ;;  %v6914_v36 = vld [vmem:[%s15459_s17 + $0x8] sm:$0xff] }
 0x6c6   : > { %v10520_v7 = vpop.eup %10519  ;;  %7396 = vst [vmem:[%s15519_s16 + $0x10] sm:$0xff] %v15564_v17  ;;  %10539 = vrcp.f32 %v6767_v18  ;;  %v6596_v23 = vadd.f32 1.0, %v10518_v5  ;;  %v15579_v33 = vsub.f32 %v18318_v34, %v15103_v2  ;;  %v6423_v35 = vadd.f32 %v6416_v49, %v6415_v30 }
 0x6c7   : > { %v6764_v1 = vadd.f32 1.0, %v10520_v7  ;;  %10541 = vtanh.f32 %v6900_v47  ;;  %v6893_v55 = vadd.f32 %v6885_v13, %v6877_v10  ;;  %v6837_v41 = vadd.f32 %v6829_v6, %v6821_v54  ;;  %v18320_v47 = vld [vmem:[#allocation65_spill] sm:$0xff]  ;;  %v15608_v10 = vpop.permute.xlu0 %8502 }
 0x6c8   : > { %v10522_v38 = vpop.eup %10521  ;;  %10543 = vrcp.f32 %v6596_v23  ;;  %v15590_v45 = vsub.f32 %v18319_v11, %v15103_v2  ;;  %v6417_v58 = vmul.f32 %v15579_v33, %v15579_v33  ;;  %v15599_v42 = vsub.f32 %v18320_v47, %v15103_v2  ;;  %18322 = vst [vmem:[#allocation109_spill] sm:$0xff] %v15608_v10  ;;  %v6919_v23 = vld [vmem:[%s15459_s17 + $0x30] sm:$0xff] }
 0x6c9   : > { %8670 = vrot.lane.b32.xlu0 %v15409_v56, %s17933_s26  ;;  %v10524_v51 = vpop.eup %10523  ;;  %10545 = vrcp.f32 %v6764_v1  ;;  %v6593_v60 = vadd.f32 1.0, %v10522_v38  ;;  %v6901_v39 = vadd.f32 %v6893_v55, %v6837_v41  ;;  %v15604_v5 = vmul.f32 0.0, %v15586_v24  ;;  %v18323_v1 = vld [vmem:[#allocation68_spill] sm:$0xff] }
 0x6ca   : > { %v6761_v62 = vadd.f32 1.0, %v10524_v51  ;;  %10547 = vtanh.f32 %v6897_v20  ;;  %v6424_v48 = vadd.f32 %v6423_v35, %v6417_v58  ;;  %v6418_v40 = vmul.f32 %v15590_v45, %v15590_v45 }
 0x6cb   : > { %10549 = vrcp.f32 %v6593_v60  ;;  %v10526_v14 = vpop.eup %10525  ;;  %18321 = vst [vmem:[#allocation106_spill] sm:$0xff] %v15604_v5  ;;  %v15615_v38 = vsub.f32 %v18323_v1, %v15103_v2  ;;  %v6916_v60 = vld [vmem:[%s15459_s17 + $0x18] sm:$0xff] }
 0x6cc   : > { %10551 = vrcp.f32 %v6761_v62  ;;  %v6425_v7 = vadd.f32 %v6424_v48, %v6418_v40  ;;  %v15624_v62 = vpop.permute.xlu1 %8508  ;;  %v15628_v48 = vpop.permute.xlu0 %8496 }
 0x6cd   : > { %8664 = vrot.lane.b32.xlu0 %v15409_v56, %s17933_s26  ;;  %v10528_v53 = vpop.eup %10527  ;;  %18324 = vst [vmem:[#allocation110_spill] sm:$0xff] %v15624_v62  ;;  %18325 = vst [vmem:[#allocation111_spill] sm:$0xff] %v15628_v48  ;;  %v18442_v48 = vld [vmem:[#allocation43_spill] sm:$0xff]  ;;  %v7122_v62 = vld [vmem:[%s17315_s11 + $0x100] sm:$0xff] }
 0x6ce   : > { %v10530_v9 = vpop.eup %10529  ;;  %v6597_v0 = vadd.f32 1.0, %v10528_v53  ;;  %v7116_v10 = vmul.f32 %v18315_v32, %v18442_v48  ;;  %v18444_v48 = vld [vmem:[#allocation48_spill] sm:$0xff] }
 0x6cf   : > { %v10532_v22 = vpop.eup %10531  ;;  %v6930_v43 = vmul.f32 %v10530_v9, %v10526_v14  ;;  %v6420_v9 = vmul.f32 %v15615_v38, %v15615_v38 }
 0x6d0   : > { %v10534_v18 = vpop.eup %10533  ;;  %v6922_v30 = vmul.f32 %v10532_v22, %v6914_v36  ;;  %10553 = vrcp.f32 %v6597_v0  ;;  %v18326_v36 = vld [vmem:[#allocation70_spill] sm:$0xff]  ;;  %v6913_v22 = vld [vmem:[%s15459_s17] sm:$0xff] }
 0x6d1   : > { %8658 = vrot.lane.b32.xlu0 %v15409_v56, %s17933_s26  ;;  %v10536_v49 = vpop.eup %10535  ;;  %v6765_v20 = vadd.f32 1.0, %v10534_v18  ;;  %10555 = vtanh.f32 %v6901_v39  ;;  %v6419_v56 = vmul.f32 %v15599_v42, %v15599_v42  ;;  %v15632_v39 = vsub.f32 %v18326_v36, %v15103_v2 }
 0x6d2   : > { %v10538_v13 = vpop.eup %10537  ;;  %v15611_v54 = vadd.f32 %v6930_v43, %v6922_v30 }
 0x6d3   : > { %v10540_v34 = vpop.eup %10539  ;;  %v6935_v6 = vmul.f32 %v10538_v13, %v10536_v49  ;;  %10557 = vrcp.f32 %v6765_v20  ;;  %v6426_v41 = vadd.f32 %v6425_v7, %v6419_v56  ;;  %v15643_v7 = vpop.permute.xlu1 %8928  ;;  %v6421_v13 = vmul.f32 %v15632_v39, %v15632_v39 }
 0x6d4   : > { %v10542_v51 = vpop.eup %10541  ;;  %7395 = vst [vmem:[%s15519_s16 + $0x8] sm:$0xff] %v15611_v54  ;;  %v6927_v35 = vmul.f32 %v10540_v34, %v6919_v23  ;;  %18327 = vst [vmem:[#allocation112_spill] sm:$0xff] %v15643_v7  ;;  %v18328_v23 = vld [vmem:[#allocation75_spill] sm:$0xff]  ;;  %v15657_v56 = vpop.permute.xlu0 %10441 }
 0x6d5   : > { %9030 = vrot.lane.b32.xlu0 %v15604_v5, %s17947_s0  ;;  %v10544_v55 = vpop.eup %10543  ;;  %v6427_v43 = vadd.f32 %v6426_v41, %v6420_v9  ;;  %v15647_v20 = vsub.f32 %v18328_v23, %v15103_v2  ;;  %18329 = vst [vmem:[#allocation113_spill] sm:$0xff] %v15657_v56  ;;  %v6917_v2 = vld [vmem:[%s15459_s17 + $0x20] sm:$0xff]  ;;  %v18451_v56 = vld [vmem:[#allocation50_spill] sm:$0xff] }
 0x6d6   : > { %v10546_v11 = vpop.eup %10545  ;;  %v15626_v58 = vadd.f32 %v6935_v6, %v6927_v35  ;;  %v6932_v14 = vmul.f32 %v10544_v55, %v10542_v51 }
 0x6d7   : > { %v10548_v53 = vpop.eup %10547  ;;  %v6924_v0 = vmul.f32 %v10546_v11, %v6916_v60  ;;  %v6428_v6 = vadd.f32 %v6427_v43, %v6421_v13  ;;  %v6422_v35 = vmul.f32 %v15647_v20, %v15647_v20  ;;  %v15666_v41 = vpop.permute.xlu1 %10436 }
 0x6d8   : > { %v10550_v47 = vpop.eup %10549  ;;  %7400 = vst [vmem:[%s15519_s16 + $0x30] sm:$0xff] %v15626_v58  ;;  %18330 = vst [vmem:[#allocation114_spill] sm:$0xff] %v15666_v41  ;;  %v7124_v41 = vld [vmem:[%s17315_s11 + $0x110] sm:$0xff] }
 0x6d9   : > { %9024 = vrot.lane.b32.xlu0 %v15604_v5, %s17947_s0  ;;  %v10552_v40 = vpop.eup %10551  ;;  %v15641_v18 = vadd.f32 %v6932_v14, %v6924_v0  ;;  %v6929_v30 = vmul.f32 %v10550_v47, %v10548_v53  ;;  %v6429_v11 = vadd.f32 %v6428_v6, %v6422_v35  ;;  %v15668_v53 = vpop.permute.xlu0 %8478 }
 0x6da   : > { %v6921_v49 = vmul.f32 %v10552_v40, %v6913_v22  ;;  %18331 = vst [vmem:[#allocation115_spill] sm:$0xff] %v15668_v53 }
 0x6db   : > { %7397 = vst [vmem:[%s15519_s16 + $0x18] sm:$0xff] %v15641_v18  ;;  %v15676_v9 = vpop.permute.xlu1 %8490 }
 0x6dc   : > { %v15655_v34 = vadd.f32 %v6929_v30, %v6921_v49  ;;  %18332 = vst [vmem:[#allocation116_spill] sm:$0xff] %v15676_v9 }
 0x6dd   : > { %9018 = vrot.lane.b32.xlu0 %v15604_v5, %s17947_s0  ;;  %v10554_v1 = vpop.eup %10553  ;;  %v15680_v0 = vpop.permute.xlu0 %8472 }
 0x6de   : > { %v10556_v51 = vpop.eup %10555  ;;  %7394 = vst [vmem:[%s15519_s16] sm:$0xff] %v15655_v34  ;;  %18333 = vst [vmem:[#allocation119_spill] sm:$0xff] %v15680_v0 }
 0x6df   : > { %v6933_v60 = vmul.f32 %v10556_v51, %v10554_v1  ;;  %v15684_v22 = vpop.permute.xlu1 %8484  ;;  %v18342_v1 = vld [vmem:[#allocation77_spill] sm:$0xff] }
 0x6e0   : > { %v10558_v55 = vpop.eup %10557  ;;  %18334 = vst [vmem:[#allocation120_spill] sm:$0xff] %v15684_v22  ;;  %v15721_v6 = vsel %vm986_vm2, %v15313_v46, %v18342_v1  ;;  %v8423_v1 = vmul.f32 %v15313_v46, %v15564_v17  ;;  %v18433_v22 = vld [vmem:[#allocation31_spill] sm:$0xff] }
 0x6e1   : > { %9006 = vrot.lane.b32.xlu0 %v15604_v5, %s17947_s0  ;;  %v6925_v14 = vmul.f32 %v10558_v55, %v6917_v2  ;;  %v15686_v47 = vpop.permute.xlu0 %10451  ;;  %18343 = vst [vmem:[#allocation127_spill] sm:$0xff] %v15721_v6  ;;  %v8430_v51 = vmul.f32 %v15721_v6, %v15526_v15  ;;  %v8427_v35 = vmul.f32 %v15721_v6, %v15540_v50 }
 0x6e2   : > { %18335 = vst [vmem:[#allocation122_spill] sm:$0xff] %v15686_v47  ;;  %v18446_v47 = vld [vmem:[#allocation37_spill] sm:$0xff] }
 0x6e3   : > { %6430 = vadd.xlane.f32.xlu1 %v6429_v11  ;;  %v15670_v36 = vadd.f32 %v6933_v60, %v6925_v14  ;;  %v15690_v40 = vpop.permute.xlu1 %10446 }
 0x6e4   : > { %18336 = vst [vmem:[#allocation126_spill] sm:$0xff] %v15690_v40  ;;  %v18448_v40 = vld [vmem:[#allocation28_spill] sm:$0xff] }
 0x6e5   : > { %7900 = vrot.lane.b32.xlu0 %v15526_v15, %s17849_s4  ;;  %7398 = vst [vmem:[%s15519_s16 + $0x20] sm:$0xff] %v15670_v36  ;;  %v15696_v43 = vpop.permute.xlu0 %7770  ;;  %v8426_v11 = vmul.f32 %v15313_v46, %v15670_v36 }
 0x6e6   : > { %18337 = vst [vmem:[#allocation129_spill] sm:$0xff] %v15696_v43 }
 0x6e7   : > { %v15698_v30 = vpop.permute.xlu1 %7776 }
 0x6e8   : > { %18338 = vst [vmem:[#allocation130_spill] sm:$0xff] %v15698_v30 }
 0x6e9   : > { %7894 = vrot.lane.b32.xlu0 %v15540_v50, %s17849_s4  ;;  %v15704_v49 = vpop.permute.xlu0 %7758 }
 0x6ea   : > { %18339 = vst [vmem:[#allocation136_spill] sm:$0xff] %v15704_v49 }
 0x6eb   : > { %v15710_v23 = vpop.permute.xlu1 %7764 }
 0x6ec   : > { %18340 = vst [vmem:[#allocation123_spill] sm:$0xff] %v15710_v23  ;;  %v8204_v23 = vmul.f32 %v15382_v26, %v15611_v54 }
 0x6ed   : > { %7886 = vrot.lane.b32.xlu0 %v15564_v17, %s17849_s4  ;;  %v15716_v13 = vpop.permute.xlu0 %7746 }
 0x6ee   : > { %18341 = vst [vmem:[#allocation124_spill] sm:$0xff] %v15716_v13 }
 0x6ef   : > { %v15725_v2 = vpop.permute.xlu1 %7752 }
 0x6f0   : > { %18344 = vst [vmem:[#allocation131_spill] sm:$0xff] %v15725_v2 }
 0x6f1   : > { %7882 = vrot.lane.b32.xlu0 %v15611_v54, %s17849_s4  ;;  %v15732_v60 = vpop.permute.xlu0 %10456 }
 0x6f2   : > { %18345 = vst [vmem:[#allocation137_spill] sm:$0xff] %v15732_v60 }
 0x6f3   : > { %v15737_v55 = vpop.permute.xlu1 %7740 }
 0x6f4   : > { %8094 = vrot.lane.b32.xlu1 %v15491_v27, %s18240_s22  ;;  %18346 = vst [vmem:[#allocation117_spill] sm:$0xff] %v15737_v55 }
 0x6f5   : > { %8816 = vrot.lane.b32.xlu0 %v15626_v58, %s17792_s27  ;;  %v15744_v14 = vpop.permute.xlu0 %7734 }
 0x6f6   : > { %18347 = vst [vmem:[#allocation118_spill] sm:$0xff] %v15744_v14 }
 0x6f8   : > { %8088 = vrot.lane.b32.xlu1 %v15491_v27, %s18240_s22 }
 0x6f9   : > { %8806 = vrot.lane.b32.xlu0 %v15641_v18, %s17792_s27 }
 0x6fc   : > { %8082 = vrot.lane.b32.xlu1 %v15491_v27, %s18240_s22 }
 0x6fd   : > { %8800 = vrot.lane.b32.xlu0 %v15611_v54, %s17792_s27 }
 0x700   : > { %8076 = vrot.lane.b32.xlu1 %v15491_v27, %s18240_s22 }
 0x701   : > { %8798 = vrot.lane.b32.xlu0 %v15655_v34, %s17792_s27 }
 0x704   : > { %8070 = vrot.lane.b32.xlu1 %v15491_v27, %s18240_s22 }
 0x705   : > { %8488 = vrot.lane.b32.xlu0 %v8430_v51, %s17944_s30  ;;  %v15748_v51 = vpop.permute.xlu1 %10461 }
 0x706   : > { %18348 = vst [vmem:[#allocation121_spill] sm:$0xff] %v15748_v51  ;;  %v15765_v51 = vsel %vm867_vm5, %v18351_v28, %v15367_v4 }
 0x707   : > { %18352 = vst [vmem:[#allocation133_spill] sm:$0xff] %v15765_v51 }
 0x708   : > { %8064 = vrot.lane.b32.xlu1 %v15491_v27, %s18240_s22  ;;  %v15753_v27 = vpop.permute.xlu0 %8292 }
 0x709   : > { %8482 = vrot.lane.b32.xlu0 %v8427_v35, %s17944_s30  ;;  %18349 = vst [vmem:[#allocation125_spill] sm:$0xff] %v15753_v27  ;;  %v7697_v35 = vmul.f32 %v15367_v4, %v15526_v15 }
 0x70c   : > { %9012 = vrot.lane.b32.xlu1 %v15604_v5, %s17947_s0  ;;  %v15769_v14 = vpop.permute.xlu0 %10466 }
 0x70d   : > { %8480 = vrot.lane.b32.xlu0 %v8426_v11, %s17944_s30  ;;  %v15760_v11 = vpop.permute.xlu1 %8286  ;;  %18353 = vst [vmem:[#allocation138_spill] sm:$0xff] %v15769_v14  ;;  %v7688_v14 = vmul.f32 %v15367_v4, %v15611_v54 }
 0x70e   : > { %18350 = vst [vmem:[#allocation128_spill] sm:$0xff] %v15760_v11  ;;  %v18357_v11 = vld [vmem:[#allocation80_spill] sm:$0xff] }
 0x710   : > { %9000 = vrot.lane.b32.xlu1 %v15604_v5, %s17947_s0  ;;  %v15781_v28 = vpop.permute.xlu0 %8274  ;;  %v18449_v5 = vld [vmem:[#allocation47_spill] sm:$0xff] }
 0x711   : > { %8474 = vrot.lane.b32.xlu0 %v8423_v1, %s17944_s30  ;;  %v7693_v1 = vmul.f32 %v15765_v51, %v15670_v36  ;;  %v15776_v27 = vpop.permute.xlu1 %8280  ;;  %18355 = vst [vmem:[#allocation135_spill] sm:$0xff] %v15781_v28 }
 0x712   : > { %18354 = vst [vmem:[#allocation134_spill] sm:$0xff] %v15776_v27  ;;  %v15793_v27 = vsel %vm969_vm3, %v18357_v11, %v15382_v26 }
 0x713   : > { %18358 = vst [vmem:[#allocation25_spill] sm:$0xff] %v15793_v27 }
 0x714   : > { %7898 = vrot.lane.b32.xlu1 %v15626_v58, %s17849_s4  ;;  %v15797_v55 = vpop.permute.xlu0 %8268 }
 0x715   : > { %7756 = vrot.lane.b32.xlu0 %v7697_v35, %s18242_s3  ;;  %v7691_v35 = vmul.f32 %v15367_v4, %v15641_v18  ;;  %18359 = vst [vmem:[#allocation24_spill] sm:$0xff] %v15797_v55  ;;  %v8207_v55 = vmul.f32 %v15382_v26, %v15641_v18 }
 0x718   : > { %7892 = vrot.lane.b32.xlu1 %v15670_v36, %s17849_s4 }
 0x719   : > { %7748 = vrot.lane.b32.xlu0 %v7693_v1, %s18242_s3  ;;  %v15788_v1 = vpop.permute.xlu1 %10471 }
 0x71a   : > { %18356 = vst [vmem:[#allocation139_spill] sm:$0xff] %v15788_v1 }
 0x71c   : > { %7888 = vrot.lane.b32.xlu1 %v15641_v18, %s17849_s4 }
 0x71d   : > { %7744 = vrot.lane.b32.xlu0 %v7691_v35, %s18242_s3  ;;  %v8212_v35 = vmul.f32 %v15793_v27, %v15626_v58  ;;  %v15804_v28 = vpop.permute.xlu1 %8262 }
 0x71e   : > { %18360 = vst [vmem:[#allocation148_spill] sm:$0xff] %v15804_v28 }
 0x720   : > { %7880 = vrot.lane.b32.xlu1 %v15655_v34, %s17849_s4 }
 0x721   : > { %7738 = vrot.lane.b32.xlu0 %v7688_v14, %s18242_s3  ;;  %v8209_v14 = vmul.f32 %v15793_v27, %v15670_v36 }
 0x724   : > { %8818 = vrot.lane.b32.xlu1 %v15526_v15, %s17792_s27 }
 0x725   : > { %8270 = vrot.lane.b32.xlu0 %v8212_v35, %s17827_s23 }
 0x728   : > { %v6390_v1 = vpop.xlane.xlu0 %6389  ;;  %8812 = vrot.lane.b32.xlu1 %v15540_v50, %s17792_s27 }
 0x729   : > { %v6391_v11 = vrot.slane %v6390_v1, 4  ;;  %8264 = vrot.lane.b32.xlu0 %v8209_v14, %s17827_s23 }
 0x72b   : > { %v6392_v60 = vadd.f32 %v6391_v11, %v6390_v1  ;;  %v6349_v13 = vpop.xlane.xlu1 %6348 }
 0x72c   : > { %v15811_v2 = vpop.permute.xlu0 %8700  ;;  %v6350_v35 = vrot.slane %v6349_v13, 4  ;;  %8810 = vrot.lane.b32.xlu1 %v15670_v36, %s17792_s27 }
 0x72d   : > { %18361 = vst [vmem:[#allocation149_spill] sm:$0xff] %v15811_v2  ;;  %8260 = vrot.lane.b32.xlu0 %v8207_v55, %s17827_s23  ;;  %v6393_v28 = vrot.slane %v6392_v60, 2  ;;  %v8429_v2 = vmul.f32 %v15313_v46, %v15626_v58 }
 0x72e   : > { %v6351_v49 = vadd.f32 %v6350_v35, %v6349_v13  ;;  %v8615_v13 = vmul.f32 %v15430_v25, %v15626_v58 }
 0x72f   : > { %v6394_v43 = vadd.f32 %v6393_v28, %v6392_v60 }
 0x730   : > { %v15818_v14 = vpop.permute.xlu0 %8694  ;;  %8804 = vrot.lane.b32.xlu1 %v15564_v17, %s17792_s27  ;;  %v6352_v1 = vrot.slane %v6351_v49, 2 }
 0x731   : > { %18362 = vst [vmem:[#allocation150_spill] sm:$0xff] %v15818_v14  ;;  %8254 = vrot.lane.b32.xlu0 %v8204_v23, %s17827_s23  ;;  %v6395_v11 = vrot.slane %v6394_v43, 1  ;;  %v8424_v23 = vmul.f32 %v15721_v6, %v15641_v18  ;;  %v8612_v14 = vmul.f32 %v15430_v25, %v15670_v36 }
 0x732   : > { %v6353_v0 = vadd.f32 %v6352_v1, %v6351_v49  ;;  %v8421_v49 = vmul.f32 %v15721_v6, %v15611_v54  ;;  %v8609_v1 = vmul.f32 %v15430_v25, %v15564_v17  ;;  %v7278_v6 = vld [vmem:[%s17315_s11 + $0x160] sm:$0xff] }
 0x733   : > { %v6396_v28 = vadd.f32 %v6395_v11, %v6394_v43  ;;  %v7696_v11 = vmul.f32 %v15765_v51, %v15626_v58 }
 0x734   : > { %v15827_v55 = vpop.permute.xlu0 %8688  ;;  %8486 = vrot.lane.b32.xlu1 %v8429_v2, %s17944_s30  ;;  %v6354_v60 = vrot.slane %v6353_v0, 1  ;;  %v8420_v2 = vmul.f32 %v15313_v46, %v15655_v34  ;;  %v7277_v46 = vld [vmem:[%s17315_s11 + $0x158] sm:$0xff] }
 0x735   : > { %18363 = vst [vmem:[#allocation151_spill] sm:$0xff] %v15827_v55  ;;  %8672 = vrot.lane.b32.xlu0 %v8615_v13, %s17933_s26  ;;  %v8024_v13 = vmul.f32 %v15528_v29, %v15540_v50 }
 0x736   : > { %v6355_v35 = vadd.f32 %v6354_v60, %v6353_v0  ;;  %v8027_v0 = vmul.f32 %v15528_v29, %v15526_v15 }
 0x738   : > { %v15835_v53 = vpop.permute.xlu0 %8682  ;;  %10297 = vpush %v6355_v35  ;;  %8476 = vrot.lane.b32.xlu1 %v8424_v23, %s17944_s30  ;;  %v8606_v35 = vmul.f32 %v15430_v25, %v15655_v34 }
 0x739   : > { %18364 = vst [vmem:[#allocation152_spill] sm:$0xff] %v15835_v53  ;;  %8666 = vrot.lane.b32.xlu0 %v8612_v14, %s17933_s26  ;;  %10299 = vpush %v6396_v28  ;;  %v7694_v28 = vmul.f32 %v15367_v4, %v15540_v50 }
 0x73c   : > { %v15843_v43 = vpop.permute.xlu0 %8676  ;;  %8470 = vrot.lane.b32.xlu1 %v8421_v49, %s17944_s30  ;;  %v7690_v49 = vmul.f32 %v15765_v51, %v15564_v17 }
 0x73d   : > { %18365 = vst [vmem:[#allocation153_spill] sm:$0xff] %v15843_v43  ;;  %8086 = vrot.lane.b32.xlu0 %v8027_v0, %s18240_s22  ;;  %v8021_v0 = vmul.f32 %v15528_v29, %v15641_v18 }
 0x740   : > { %v15851_v14 = vpop.permute.xlu0 %8670  ;;  %8468 = vrot.lane.b32.xlu1 %v8420_v2, %s17944_s30 }
 0x741   : > { %18366 = vst [vmem:[#allocation154_spill] sm:$0xff] %v15851_v14  ;;  %8660 = vrot.lane.b32.xlu0 %v8609_v1, %s17933_s26  ;;  %v7687_v1 = vmul.f32 %v15765_v51, %v15655_v34 }
 0x744   : > { %v15859_v60 = vpop.permute.xlu0 %8664  ;;  %7754 = vrot.lane.b32.xlu1 %v7696_v11, %s18242_s3  ;;  %v8018_v11 = vmul.f32 %v15528_v29, %v15611_v54 }
 0x745   : > { %18367 = vst [vmem:[#allocation155_spill] sm:$0xff] %v15859_v60  ;;  %8080 = vrot.lane.b32.xlu0 %v8024_v13, %s18240_s22 }
 0x748   : > { %v15867_v23 = vpop.permute.xlu0 %8658  ;;  %7750 = vrot.lane.b32.xlu1 %v7694_v28, %s18242_s3  ;;  %v15888_v28 = vsel %vm884_vm0, %v15643_v7, %v15586_v24  ;;  %v8210_v24 = vmul.f32 %v15382_v26, %v15540_v50 }
 0x749   : > { %18368 = vst [vmem:[#allocation156_spill] sm:$0xff] %v15867_v23  ;;  %8654 = vrot.lane.b32.xlu0 %v8606_v35, %s17933_s26  ;;  %18371 = vst [vmem:[#allocation159_spill] sm:$0xff] %v15888_v28  ;;  %v8213_v35 = vmul.f32 %v15382_v26, %v15526_v15  ;;  %v6988_v26 = vld [vmem:[%s17316_s12 + $0xd8] sm:$0xff] }
 0x74c   : > { %v15875_v2 = vpop.permute.xlu0 %9030  ;;  %7742 = vrot.lane.b32.xlu1 %v7690_v49, %s18242_s3  ;;  %v8943_v49 = vmul.f32 %v15888_v28, %v15540_v50 }
 0x74d   : > { %18369 = vst [vmem:[#allocation157_spill] sm:$0xff] %v15875_v2  ;;  %8074 = vrot.lane.b32.xlu0 %v8021_v0, %s18240_s22  ;;  %v8203_v2 = vmul.f32 %v15793_v27, %v15655_v34 }
 0x750   : > { %v15883_v13 = vpop.permute.xlu0 %9024  ;;  %7736 = vrot.lane.b32.xlu1 %v7687_v1, %s18242_s3  ;;  %v8942_v1 = vmul.f32 %v15643_v7, %v15670_v36 }
 0x751   : > { %18370 = vst [vmem:[#allocation158_spill] sm:$0xff] %v15883_v13  ;;  %8068 = vrot.lane.b32.xlu0 %v8018_v11, %s18240_s22  ;;  %v15900_v13 = vpop.permute.xlu1 %8256 }
 0x752   : > { %18373 = vst [vmem:[#allocation161_spill] sm:$0xff] %v15900_v13 }
 0x754   : > { %v15896_v0 = vpop.permute.xlu0 %9018  ;;  %8272 = vrot.lane.b32.xlu1 %v8213_v35, %s17827_s23 }
 0x755   : > { %18372 = vst [vmem:[#allocation160_spill] sm:$0xff] %v15896_v0  ;;  %8998 = vrot.lane.b32.xlu0 %v8943_v49, %s17947_s0  ;;  %v8206_v0 = vmul.f32 %v15793_v27, %v15564_v17  ;;  %v15912_v35 = vpop.permute.xlu1 %8250  ;;  %v7127_v27 = vld [vmem:[%s17315_s11 + $0x128] sm:$0xff] }
 0x756   : > { %18375 = vst [vmem:[#allocation163_spill] sm:$0xff] %v15912_v35 }
 0x758   : > { %8266 = vrot.lane.b32.xlu1 %v8210_v24, %s17827_s23  ;;  %v15907_v11 = vpop.permute.xlu0 %9006  ;;  %v15923_v24 = vsel %vm945_vm1, %v15430_v25, %v15403_v12 }
 0x759   : > { %18374 = vst [vmem:[#allocation162_spill] sm:$0xff] %v15907_v11  ;;  %8996 = vrot.lane.b32.xlu0 %v8942_v1, %s17947_s0  ;;  %18377 = vst [vmem:[#allocation165_spill] sm:$0xff] %v15923_v24  ;;  %v15925_v1 = vpop.permute.xlu1 %8106  ;;  %v8616_v11 = vmul.f32 %v15923_v24, %v15526_v15 }
 0x75a   : > { %18378 = vst [vmem:[#allocation166_spill] sm:$0xff] %v15925_v1 }
 0x75c   : > { %8258 = vrot.lane.b32.xlu1 %v8206_v0, %s17827_s23  ;;  %v15915_v49 = vpop.permute.xlu0 %7900  ;;  %v8613_v0 = vmul.f32 %v15923_v24, %v15540_v50  ;;  %v8610_v50 = vmul.f32 %v15923_v24, %v15641_v18  ;;  %v8607_v18 = vmul.f32 %v15923_v24, %v15611_v54 }
 0x75d   : > { %18376 = vst [vmem:[#allocation164_spill] sm:$0xff] %v15915_v49  ;;  %v15939_v60 = vpop.permute.xlu1 %8100  ;;  %v6974_v49 = vld [vmem:[%s17315_s11 + $0xe8] sm:$0xff] }
 0x75e   : > { %18381 = vst [vmem:[#allocation170_spill] sm:$0xff] %v15939_v60 }
 0x760   : > { %8252 = vrot.lane.b32.xlu1 %v8203_v2, %s17827_s23  ;;  %v15929_v23 = vpop.permute.xlu0 %7894  ;;  %v15937_v2 = vsel %vm928_vm4, %v15480_v21, %v15528_v29 }
 0x761   : > { %18379 = vst [vmem:[#allocation167_spill] sm:$0xff] %v15929_v23  ;;  %18380 = vst [vmem:[#allocation169_spill] sm:$0xff] %v15937_v2  ;;  %v8026_v14 = vmul.f32 %v15937_v2, %v15626_v58  ;;  %v8023_v60 = vmul.f32 %v15937_v2, %v15670_v36  ;;  %v8020_v36 = vmul.f32 %v15937_v2, %v15564_v17 }
 0x762   : > { %v8945_v17 = vmul.f32 %v15643_v7, %v15626_v58 }
 0x764   : > { %8674 = vrot.lane.b32.xlu1 %v8616_v11, %s17933_s26  ;;  %v15942_v12 = vpop.permute.xlu0 %7886 }
 0x765   : > { %18382 = vst [vmem:[#allocation171_spill] sm:$0xff] %v15942_v12  ;;  %v18445_v12 = vld [vmem:[#allocation51_spill] sm:$0xff] }
 0x768   : > { %8668 = vrot.lane.b32.xlu1 %v8613_v0, %s17933_s26  ;;  %v15949_v55 = vpop.permute.xlu0 %7882 }
 0x769   : > { %18383 = vst [vmem:[#allocation141_spill] sm:$0xff] %v15949_v55  ;;  %s10298_s17 = spop %10297  ;;  %v7118_v55 = vmul.f32 %v18315_v32, %v18444_v48  ;;  %v6976_v48 = vld [vmem:[%s17315_s11 + $0xf8] sm:$0xff] }
 0x76a   : > { %s10300_s7 = spop %10299 }
 0x76b   : > { %s6398_s28 = sadd.f32 %s10300_s7, %s10298_s17  ;;  %s16451_s7 = scalar_lea.vmem %s17325_s21, %s11327_s25 }
 0x76c   : > { %v6431_v43 = vpop.xlane.xlu1 %6430  ;;  %8084 = vrot.lane.b32.xlu1 %v8026_v14, %s18240_s22  ;;  %v15959_v13 = vpop.permute.xlu0 %8816 }
 0x76d   : > { %v6432_v11 = vrot.slane %v6431_v43, 4  ;;  %18386 = vst [vmem:[#allocation94_spill] sm:$0xff] %v15959_v13 }
 0x76f   : > { %v6433_v53 = vadd.f32 %v6432_v11, %v6431_v43 }
 0x770   : > { %v15951_v21 = vpop.permute.xlu1 %8094  ;;  %8662 = vrot.lane.b32.xlu1 %v8610_v50, %s17933_s26 }
 0x771   : > { %18384 = vst [vmem:[#allocation88_spill] sm:$0xff] %v15951_v21  ;;  %v6434_v0 = vrot.slane %v6433_v53, 2 }
 0x773   : > { %v6435_v1 = vadd.f32 %v6434_v0, %v6433_v53  ;;  %v15968_v53 = vpop.permute.xlu0 %8806 }
 0x774   : > { %v15956_v35 = vpop.permute.xlu1 %8088  ;;  %8078 = vrot.lane.b32.xlu1 %v8023_v60, %s18240_s22  ;;  %18388 = vst [vmem:[#allocation145_spill] sm:$0xff] %v15968_v53  ;;  %v8017_v60 = vmul.f32 %v15937_v2, %v15655_v34  ;;  %v7125_v2 = vld [vmem:[%s17315_s11 + $0x118] sm:$0xff] }
 0x775   : > { %18385 = vst [vmem:[#allocation73_spill] sm:$0xff] %v15956_v35  ;;  %v6436_v14 = vrot.slane %v6435_v1, 1 }
 0x777   : > { %v6437_v43 = vadd.f32 %v6436_v14, %v6435_v1  ;;  %v15978_v54 = vpop.permute.xlu0 %8800  ;;  %v8946_v1 = vmul.f32 %v15888_v28, %v15526_v15  ;;  %v7269_v28 = vmul.f32 %v18315_v32, %v18451_v56  ;;  %v18454_v56 = vld [vmem:[#allocation27_spill] sm:$0xff] }
 0x778   : > { %v15963_v11 = vpop.permute.xlu1 %8082  ;;  %8656 = vrot.lane.b32.xlu1 %v8607_v18, %s17933_s26  ;;  %18391 = vst [vmem:[#allocation85_spill] sm:$0xff] %v15978_v54  ;;  %v7271_v24 = vmul.f32 %v18315_v32, %v18454_v56  ;;  %v7129_v56 = vld [vmem:[%s17315_s11 + $0x138] sm:$0xff] }
 0x779   : > { %18387 = vst [vmem:[#allocation175_spill] sm:$0xff] %v15963_v11  ;;  %10301 = vpush %v6437_v43 }
 0x77b   : > { %v15987_v18 = vpop.permute.xlu0 %8798 }
 0x77c   : > { %v15970_v50 = vpop.permute.xlu1 %8076  ;;  %8072 = vrot.lane.b32.xlu1 %v8020_v36, %s18240_s22  ;;  %18393 = vst [vmem:[#allocation93_spill] sm:$0xff] %v15987_v18 }
 0x77d   : > { %18389 = vst [vmem:[#allocation144_spill] sm:$0xff] %v15970_v50 }
 0x77f   : > { %v15994_v36 = vpop.permute.xlu0 %8488 }
 0x780   : > { %v15975_v0 = vpop.permute.xlu1 %8070  ;;  %8066 = vrot.lane.b32.xlu1 %v8017_v60, %s18240_s22  ;;  %18396 = vst [vmem:[#allocation132_spill] sm:$0xff] %v15994_v36 }
 0x781   : > { %18390 = vst [vmem:[#allocation173_spill] sm:$0xff] %v15975_v0 }
 0x783   : > { %v15998_v15 = vpop.permute.xlu0 %8482 }
 0x784   : > { %v15982_v14 = vpop.permute.xlu1 %8064  ;;  %9004 = vrot.lane.b32.xlu1 %v8946_v1, %s17947_s0  ;;  %18398 = vst [vmem:[#allocation146_spill] sm:$0xff] %v15998_v15  ;;  %v18431_v15 = vld [vmem:[#allocation172_spill] sm:$0xff] }
 0x785   : > { %18392 = vst [vmem:[#allocation87_spill] sm:$0xff] %v15982_v14 }
 0x787   : > { %v16004_v0 = vpop.permute.xlu0 %8480 }
 0x788   : > { %v15989_v43 = vpop.permute.xlu1 %9012  ;;  %9002 = vrot.lane.b32.xlu1 %v8945_v17, %s17947_s0  ;;  %18401 = vst [vmem:[#allocation143_spill] sm:$0xff] %v16004_v0 }
 0x789   : > { %18394 = vst [vmem:[#allocation140_spill] sm:$0xff] %v15989_v43 }
 0x78b   : > { %v16008_v50 = vpop.permute.xlu0 %8474 }
 0x78c   : > { %v15992_v34 = vpop.permute.xlu1 %9000  ;;  %18403 = vst [vmem:[#allocation147_spill] sm:$0xff] %v16008_v50 }
 0x78d   : > { %18395 = vst [vmem:[#allocation174_spill] sm:$0xff] %v15992_v34 }
 0x78f   : > { %v16014_v34 = vpop.permute.xlu0 %7756 }
 0x790   : > { %v15996_v60 = vpop.permute.xlu1 %7898  ;;  %18406 = vst [vmem:[#allocation107_spill] sm:$0xff] %v16014_v34 }
 0x791   : > { %18397 = vst [vmem:[#allocation108_spill] sm:$0xff] %v15996_v60 }
 0x793   : > { %v16018_v35 = vpop.permute.xlu0 %7748 }
 0x794   : > { %v16000_v14 = vpop.permute.xlu1 %7892  ;;  %18408 = vst [vmem:[#allocation49_spill] sm:$0xff] %v16018_v35 }
 0x795   : > { %18399 = vst [vmem:[#allocation104_spill] sm:$0xff] %v16000_v14  ;;  %v7120_v14 = vmul.f32 %v18315_v32, %v18446_v47  ;;  %v16140_v47 = vmul.f32 %v18315_v32, %v18449_v5  ;;  %v7126_v5 = vld [vmem:[%s17315_s11 + $0x120] sm:$0xff] }
 0x797   : > { %v16024_v53 = vpop.permute.xlu0 %7744  ;;  %18450 = vst [vmem:[#allocation31_spill] sm:$0xff] %v16140_v47 }
 0x798   : > { %v16002_v1 = vpop.permute.xlu1 %7888  ;;  %18411 = vst [vmem:[#allocation168_spill] sm:$0xff] %v16024_v53 }
 0x799   : > { %18400 = vst [vmem:[#allocation54_spill] sm:$0xff] %v16002_v1  ;;  %v7119_v1 = vmul.f32 %v18315_v32, %v18445_v12  ;;  %v7121_v12 = vmul.f32 %v18315_v32, %v18448_v40  ;;  %v18453_v40 = vld [vmem:[#allocation52_spill] sm:$0xff] }
 0x79a   : > { %v7270_v29 = vmul.f32 %v18315_v32, %v18453_v40  ;;  %v7128_v40 = vld [vmem:[%s17315_s11 + $0x130] sm:$0xff] }
 0x79b   : > { %v16028_v13 = vpop.permute.xlu0 %7738 }
 0x79c   : > { %v16006_v58 = vpop.permute.xlu1 %7880  ;;  %18413 = vst [vmem:[#allocation60_spill] sm:$0xff] %v16028_v13 }
 0x79d   : > { %18402 = vst [vmem:[#allocation53_spill] sm:$0xff] %v16006_v58 }
 0x79f   : > { %v16034_v34 = vpop.permute.xlu0 %8270 }
 0x7a0   : > { %v16010_v43 = vpop.permute.xlu1 %8818  ;;  %18416 = vst [vmem:[#allocation68_spill] sm:$0xff] %v16034_v34 }
 0x7a1   : > { %18404 = vst [vmem:[#allocation105_spill] sm:$0xff] %v16010_v43 }
 0x7a3   : > { %v16038_v50 = vpop.permute.xlu0 %8264 }
 0x7a4   : > { %v16012_v17 = vpop.permute.xlu1 %8812  ;;  %18418 = vst [vmem:[#allocation75_spill] sm:$0xff] %v16038_v50 }
 0x7a5   : > { %18405 = vst [vmem:[#allocation142_spill] sm:$0xff] %v16012_v17 }
 0x7a8   : > { %v16016_v11 = vpop.permute.xlu1 %8810 }
 0x7a9   : > { %18407 = vst [vmem:[#allocation44_spill] sm:$0xff] %v16016_v11 }
 0x7aa   : > { %s10302_s2 = spop %10301 }
 0x7ab   : > { %s6439_s6 = sadd.f32 %s10302_s2, %s6398_s28 }
 0x7ac   : > { %v16020_v21 = vpop.permute.xlu1 %8804 }
 0x7ad   : > { %18409 = vst [vmem:[#allocation30_spill] sm:$0xff] %v16020_v21  ;;  %s6442_s29 = smul.f32 4.0690105e-05, %s6439_s6 }
 0x7af   : > { %s6443_s8 = sadd.f32 1e-05, %s6442_s29 }
 0x7b0   : > { %v16022_v18 = vpop.permute.xlu1 %8486 }
 0x7b1   : > { %18410 = vst [vmem:[#allocation35_spill] sm:$0xff] %v16022_v18  ;;  %v6444_v54 = vstv %s6443_s8  ;;  %v6963_v18 = vmul.f32 %v18315_v32, %v18433_v22  ;;  %v6969_v22 = vld [vmem:[%s17315_s11 + $0xc0] sm:$0xff] }
 0x7b2   : > { %10559 = vrsqrt.f32 %v6444_v54  ;;  %v8261_v54 = vpop.permute.xlu0 %8260 }
 0x7b4   : > { %v16026_v17 = vpop.permute.xlu1 %8476 }
 0x7b5   : > { %18412 = vst [vmem:[#allocation83_spill] sm:$0xff] %v16026_v17 }
 0x7b6   : > { %v8255_v13 = vpop.permute.xlu0 %8254 }
 0x7b8   : > { %v16030_v11 = vpop.permute.xlu1 %8470 }
 0x7b9   : > { %18414 = vst [vmem:[#allocation63_spill] sm:$0xff] %v16030_v11 }
 0x7bc   : > { %v16032_v43 = vpop.permute.xlu1 %8468 }
 0x7bd   : > { %18415 = vst [vmem:[#allocation65_spill] sm:$0xff] %v16032_v43  ;;  %v8673_v43 = vpop.permute.xlu0 %8672 }
 0x7bf   : > { %v10560_v35 = vpop.eup %10559 }
 0x7c0   : > { %v16036_v21 = vpop.permute.xlu1 %7754  ;;  %10303 = vpush %v10560_v35 }
 0x7c1   : > { %18417 = vst [vmem:[#allocation70_spill] sm:$0xff] %v16036_v21  ;;  %v8667_v50 = vpop.permute.xlu0 %8666 }
 0x7c4   : > { %v16040_v30 = vpop.permute.xlu1 %7750 }
 0x7c5   : > { %18419 = vst [vmem:[#allocation77_spill] sm:$0xff] %v16040_v30 }
 0x7c8   : > { %v16042_v53 = vpop.permute.xlu1 %7742 }
 0x7c9   : > { %18420 = vst [vmem:[#allocation78_spill] sm:$0xff] %v16042_v53 }
 0x7cc   : > { %v16044_v17 = vpop.permute.xlu1 %7736 }
 0x7cd   : > { %18421 = vst [vmem:[#allocation80_spill] sm:$0xff] %v16044_v17 }
 0x7d0   : > { %v16046_v0 = vpop.permute.xlu1 %8272 }
 0x7d1   : > { %18422 = vst [vmem:[#allocation176_spill] sm:$0xff] %v16046_v0 }
 0x7d4   : > { %v16048_v11 = vpop.permute.xlu1 %8266 }
 0x7d5   : > { %18423 = vst [vmem:[#allocation177_spill] sm:$0xff] %v16048_v11  ;;  %v8087_v11 = vpop.permute.xlu0 %8086 }
 0x7d8   : > { %v16050_v34 = vpop.permute.xlu1 %8258 }
 0x7d9   : > { %18424 = vst [vmem:[#allocation178_spill] sm:$0xff] %v16050_v34  ;;  %v16054_v35 = vsel %vm986_vm2, %v16050_v34, %v8261_v54  ;;  %v6961_v54 = vmul.f32 %v18315_v32, %v18431_v15  ;;  %v18438_v15 = vld [vmem:[#allocation38_spill] sm:$0xff]  ;;  %v8661_v23 = vpop.permute.xlu0 %8660 }
 0x7da   : > { %18425 = vst [vmem:[#allocation179_spill] sm:$0xff] %v16054_v35  ;;  %v18432_v35 = vld [vmem:[#allocation36_spill] sm:$0xff]  ;;  %v6967_v9 = vmul.f32 %v18315_v32, %v18438_v15 }
 0x7db   : > { %v6962_v34 = vmul.f32 %v18315_v32, %v18432_v35  ;;  %v18439_v35 = vld [vmem:[#allocation40_spill] sm:$0xff] }
 0x7dc   : > { %v16056_v21 = vpop.permute.xlu1 %8252 }
 0x7dd   : > { %18426 = vst [vmem:[#allocation180_spill] sm:$0xff] %v16056_v21  ;;  %v16060_v53 = vsel %vm986_vm2, %v16056_v21, %v8255_v13  ;;  %v18437_v21 = vld [vmem:[#allocation34_spill] sm:$0xff] }
 0x7de   : > { %18427 = vst [vmem:[#allocation181_spill] sm:$0xff] %v16060_v53  ;;  %v18435_v53 = vld [vmem:[#allocation33_spill] sm:$0xff]  ;;  %v6966_v36 = vmul.f32 %v18315_v32, %v18437_v21 }
 0x7e0   : > { %v16062_v17 = vpop.permute.xlu1 %8674 }
 0x7e1   : > { %18428 = vst [vmem:[#allocation182_spill] sm:$0xff] %v16062_v17  ;;  %v16066_v0 = vsel %vm928_vm4, %v8673_v43, %v16062_v17  ;;  %v6964_v43 = vmul.f32 %v18315_v32, %v18435_v53  ;;  %v6971_v53 = vld [vmem:[%s17315_s11 + $0xd0] sm:$0xff] }
 0x7e2   : > { %18429 = vst [vmem:[#allocation183_spill] sm:$0xff] %v16066_v0  ;;  %v18436_v0 = vld [vmem:[#allocation32_spill] sm:$0xff] }
 0x7e3   : > { %v6965_v17 = vmul.f32 %v18315_v32, %v18436_v0  ;;  %v6968_v0 = vmul.f32 %v18315_v32, %v18439_v35  ;;  %v6972_v35 = vld [vmem:[%s17315_s11 + $0xd8] sm:$0xff] }
 0x7e4   : > { %v16068_v30 = vpop.permute.xlu1 %8668  ;;  %v6980_v4 = vmul.f32 %v6972_v35, %v6964_v43  ;;  %v7280_v43 = vld [vmem:[%s17315_s11 + $0x170] sm:$0xff] }
 0x7e5   : > { %18430 = vst [vmem:[#allocation184_spill] sm:$0xff] %v16068_v30  ;;  %v16078_v13 = vsel %vm928_vm4, %v8667_v50, %v16068_v30  ;;  %v6970_v50 = vld [vmem:[%s17315_s11 + $0xc8] sm:$0xff] }
 0x7e6   : > { %18434 = vst [vmem:[#allocation172_spill] sm:$0xff] %v16078_v13  ;;  %v18440_v13 = vld [vmem:[#allocation39_spill] sm:$0xff]  ;;  %v18441_v30 = vld [vmem:[#allocation41_spill] sm:$0xff]  ;;  %v16179_v51 = vmul.f32 %v6970_v50, %v6962_v34  ;;  %v6984_v34 = vmul.f32 %v6976_v48, %v6968_v0  ;;  %v6991_v0 = vld [vmem:[%s17316_s12 + $0xf0] sm:$0xff]  ;;  %v16233_v48 = vmul.f32 %v7127_v27, %v7119_v1 }
 0x7e7   : > { %v7114_v21 = vmul.f32 %v18315_v32, %v18440_v13  ;;  %v7115_v15 = vmul.f32 %v18315_v32, %v18441_v30  ;;  %v6973_v13 = vld [vmem:[%s17315_s11 + $0xe0] sm:$0xff]  ;;  %v18443_v30 = vld [vmem:[#allocation46_spill] sm:$0xff]  ;;  %v7321_v27 = vld [vmem:[%s17319_s15 + $0xb8] sm:$0xff] }
 0x7e8   : > { %v7117_v58 = vmul.f32 %v18315_v32, %v18443_v30  ;;  %v16125_v60 = vpop.permute.xlu1 %8084  ;;  %v6975_v30 = vld [vmem:[%s17315_s11 + $0xf0] sm:$0xff] }
 0x7e9   : > { %18447 = vst [vmem:[#allocation36_spill] sm:$0xff] %v16125_v60  ;;  %v16146_v7 = vsel %vm945_vm1, %v16125_v60, %v8087_v11  ;;  %v18455_v11 = vld [vmem:[#allocation79_spill] sm:$0xff]  ;;  %v16203_v35 = vmul.f32 %v7122_v62, %v7114_v21  ;;  %v16222_v21 = vmul.f32 %v7126_v5, %v7118_v55  ;;  %v16237_v55 = vmul.f32 %v7278_v6, %v7270_v29 }
 0x7ea   : > { %18452 = vst [vmem:[#allocation33_spill] sm:$0xff] %v16146_v7  ;;  %v7272_v7 = vmul.f32 %v18315_v32, %v18455_v11  ;;  %v18456_v60 = vld [vmem:[#allocation71_spill] sm:$0xff]  ;;  %v16177_v11 = vmul.f32 %v6969_v22, %v6961_v54  ;;  %v6982_v54 = vmul.f32 %v6974_v49, %v6966_v36  ;;  %v6983_v22 = vmul.f32 %v6975_v30, %v6967_v9  ;;  %v6990_v36 = vld [vmem:[%s17316_s12 + $0xe8] sm:$0xff] }
 0x7eb   : > { %v7273_v25 = vmul.f32 %v18315_v32, %v18456_v60  ;;  %v16181_v60 = vmul.f32 %v6971_v53, %v6963_v18  ;;  %v6981_v32 = vmul.f32 %v6973_v13, %v6965_v17  ;;  %v6989_v18 = vld [vmem:[%s17316_s12 + $0xe0] sm:$0xff]  ;;  %v7281_v53 = vld [vmem:[%s17315_s11 + $0x178] sm:$0xff]  ;;  %18458 = vst [vmem:[#allocation34_spill] sm:$0xff] %v16203_v35  ;;  %v16205_v17 = vmul.f32 %v7123_v8, %v7115_v15  ;;  %v8081_v15 = vpop.permute.xlu0 %8080  ;;  %v7144_v13 = vld [vmem:[%s17316_s12 + $0x130] sm:$0xff] }
 0x7ec   : > { %v16192_v50 = vpop.permute.xlu1 %8662  ;;  %v16207_v9 = vmul.f32 %v7124_v41, %v7116_v10  ;;  %v6992_v62 = vld [vmem:[%s17316_s12 + $0xf8] sm:$0xff]  ;;  %v7133_v8 = vmul.f32 %v7125_v2, %v7117_v58  ;;  %v7136_v10 = vmul.f32 %v7128_v40, %v7120_v14  ;;  %v7137_v41 = vmul.f32 %v7129_v56, %v7121_v12 }
 0x7ed   : > { %18457 = vst [vmem:[#allocation32_spill] sm:$0xff] %v16192_v50  ;;  %v16211_v49 = vsel %vm928_vm4, %v8661_v23, %v16192_v50  ;;  %v7141_v23 = vld [vmem:[%s17316_s12 + $0x118] sm:$0xff]  ;;  %v16235_v2 = vmul.f32 %v7277_v46, %v7269_v28  ;;  %v16239_v14 = vmul.f32 %v7279_v19, %v7271_v24  ;;  %v7288_v58 = vmul.f32 %v7280_v43, %v7272_v7  ;;  %v7016_v28 = vld [vmem:[%s17319_s15 + $0x30] sm:$0xff] }
 0x7ee   : > { %18459 = vst [vmem:[#allocation38_spill] sm:$0xff] %v16211_v49  ;;  %v7145_v30 = vld [vmem:[%s17316_s12 + $0x138] sm:$0xff]  ;;  %v16241_v12 = vmul.f32 %v7281_v53, %v7273_v25  ;;  %v16243_v5 = vadd.f32 %v6988_v26, %v6980_v4  ;;  %v16245_v40 = vadd.f32 %v6989_v18, %v6981_v32  ;;  %v6998_v49 = vadd.f32 %v6990_v36, %v6982_v54  ;;  %v7320_v18 = vld [vmem:[%s17319_s15 + $0xb0] sm:$0xff] }
 0x7ef   : > { %v6999_v50 = vadd.f32 %v6991_v0, %v6983_v22  ;;  %v7000_v59 = vadd.f32 %v6992_v62, %v6984_v34  ;;  %v7017_v46 = vld [vmem:[%s17319_s15 + $0x38] sm:$0xff]  ;;  %v16259_v26 = vadd.f32 %v7141_v23, %v7133_v8  ;;  %v7152_v25 = vadd.f32 %v7144_v13, %v7136_v10  ;;  %v7168_v34 = vld [vmem:[%s17319_s15 + $0x70] sm:$0xff]  ;;  %v8655_v43 = vpop.permute.xlu0 %8654  ;;  %v7167_v8 = vld [vmem:[%s17319_s15 + $0x68] sm:$0xff] }
 0x7f0   : > { %v16247_v56 = vpop.permute.xlu1 %8078  ;;  %v7169_v19 = vld [vmem:[%s17319_s15 + $0x78] sm:$0xff]  ;;  %v7153_v29 = vadd.f32 %v7145_v30, %v7137_v41  ;;  %v7184_v23 = vld [vmem:[#allocation14 + $0x70] sm:$0xff] }
 0x7f1   : > { %18460 = vst [vmem:[#allocation40_spill] sm:$0xff] %v16247_v56  ;;  %s10304_s24 = spop %10303  ;;  %v16257_v4 = vsel %vm945_vm1, %v16247_v56, %v8081_v15  ;;  %v7033_v7 = vld [vmem:[#allocation14 + $0x38] sm:$0xff]  ;;  %v7336_v13 = vld [vmem:[#allocation14 + $0xb0] sm:$0xff] }
 0x7f2   : > { %18461 = vst [vmem:[#allocation39_spill] sm:$0xff] %v16257_v4  ;;  %v16261_v32 = vstv %s10304_s24  ;;  %v7185_v6 = vld [vmem:[#allocation14 + $0x78] sm:$0xff] }
 0x7f3   : > { %v7009_v24 = vmul.f32 %v16261_v32, %v15248_v3  ;;  %v7161_v1 = vmul.f32 %v16261_v32, %v15215_v63  ;;  %v7313_v54 = vmul.f32 %v16261_v32, %v15647_v20  ;;  %v7008_v22 = vmul.f32 %v16261_v32, %v15235_v44  ;;  %v7015_v3 = vld [vmem:[%s17319_s15 + $0x28] sm:$0xff]  ;;  %v7337_v53 = vld [vmem:[#allocation14 + $0xb8] sm:$0xff]  ;;  %v7032_v20 = vld [vmem:[#allocation14 + $0x30] sm:$0xff] }
 0x7f4   : > { %v16286_v63 = vpop.permute.xlu1 %8656  ;;  %v7160_v44 = vmul.f32 %v16261_v32, %v15200_v61  ;;  %v7312_v36 = vmul.f32 %v16261_v32, %v15632_v39  ;;  %v7007_v0 = vmul.f32 %v16261_v32, %v15221_v16  ;;  %v7159_v62 = vmul.f32 %v16261_v32, %v15180_v31  ;;  %v7031_v39 = vld [vmem:[#allocation14 + $0x28] sm:$0xff]  ;;  %v7296_v31 = vld [vmem:[%s17316_s12 + $0x170] sm:$0xff] }
 0x7f5   : > { %18462 = vst [vmem:[#allocation41_spill] sm:$0xff] %v16286_v63  ;;  %v16301_v10 = vsel %vm928_vm4, %v8655_v43, %v16286_v63  ;;  %v7025_v41 = vmul.f32 %v7017_v46, %v7009_v24  ;;  %v7177_v15 = vmul.f32 %v7169_v19, %v7161_v1  ;;  %v7329_v61 = vmul.f32 %v7321_v27, %v7313_v54  ;;  %v7143_v16 = vld [vmem:[%s17316_s12 + $0x128] sm:$0xff]  ;;  %v7297_v46 = vld [vmem:[%s17316_s12 + $0x178] sm:$0xff] }
 0x7f6   : > { %18463 = vst [vmem:[#allocation43_spill] sm:$0xff] %v16301_v10  ;;  %v7024_v30 = vmul.f32 %v7016_v28, %v7008_v22  ;;  %v7176_v4 = vmul.f32 %v7168_v34, %v7160_v44  ;;  %v7328_v56 = vmul.f32 %v7320_v18, %v7312_v36  ;;  %v7023_v47 = vmul.f32 %v7015_v3, %v7007_v0  ;;  %v7295_v54 = vld [vmem:[%s17316_s12 + $0x168] sm:$0xff] }
 0x7f7   : > { %v7041_v19 = vadd.f32 %v7033_v7, %v7025_v41  ;;  %v7193_v27 = vadd.f32 %v7185_v6, %v7177_v15  ;;  %v7345_v24 = vadd.f32 %v7337_v53, %v7329_v61  ;;  %v7175_v1 = vmul.f32 %v7167_v8, %v7159_v62  ;;  %v7183_v28 = vld [vmem:[#allocation14 + $0x68] sm:$0xff]  ;;  %v7030_v61 = vld [vmem:[#allocation14 + $0x20] sm:$0xff] }
 0x7f8   : > { %v7040_v43 = vadd.f32 %v7032_v20, %v7024_v30  ;;  %v7192_v10 = vadd.f32 %v7184_v23, %v7176_v4  ;;  %v7344_v63 = vadd.f32 %v7336_v13, %v7328_v56  ;;  %v7039_v35 = vadd.f32 %v7031_v39, %v7023_v47  ;;  %v7182_v23 = vld [vmem:[#allocation14 + $0x60] sm:$0xff]  ;;  %v7029_v39 = vld [vmem:[#allocation14 + $0x18] sm:$0xff] }
 0x7f9   : > { %v7151_v22 = vadd.f32 %v7143_v16, %v16233_v48  ;;  %v7304_v34 = vadd.f32 %v7296_v31, %v7288_v58  ;;  %v7049_v18 = vadd.f32 %v7041_v19, %v7000_v59  ;;  %v7201_v3 = vadd.f32 %v7193_v27, %v7153_v29  ;;  %v7319_v48 = vld [vmem:[%s17319_s15 + $0xa8] sm:$0xff]  ;;  %v7165_v16 = vld [vmem:[%s17319_s15 + $0x58] sm:$0xff]  ;;  %v7334_v30 = vld [vmem:[#allocation14 + $0xa0] sm:$0xff] }
 0x7fa   : > { %v7305_v44 = vadd.f32 %v7297_v46, %v16241_v12  ;;  %v7048_v7 = vadd.f32 %v7040_v43, %v6999_v50  ;;  %v7200_v6 = vadd.f32 %v7192_v10, %v7152_v25  ;;  %v7047_v53 = vadd.f32 %v7039_v35, %v6998_v49  ;;  %v7014_v35 = vld [vmem:[%s17319_s15 + $0x20] sm:$0xff]  ;;  %v7335_v12 = vld [vmem:[#allocation14 + $0xa8] sm:$0xff]  ;;  %v18464_v19 = vld [vmem:[#allocation90_spill] sm:$0xff] }
 0x7fb   : > { %v7303_v36 = vadd.f32 %v7295_v54, %v16239_v14  ;;  %v10186_v0 = vmul.f32 -1.442695, %v7049_v18  ;;  %v10194_v62 = vmul.f32 -1.442695, %v7201_v3  ;;  %v7191_v8 = vadd.f32 %v7183_v28, %v7175_v1  ;;  %v7166_v49 = vld [vmem:[%s17319_s15 + $0x60] sm:$0xff]  ;;  %v7181_v43 = vld [vmem:[#allocation14 + $0x58] sm:$0xff] }
 0x7fc   : > { %v7353_v20 = vadd.f32 %v7345_v24, %v7305_v44  ;;  %v10185_v4 = vmul.f32 -1.442695, %v7048_v7  ;;  %v10193_v56 = vmul.f32 -1.442695, %v7200_v6  ;;  %v7352_v47 = vadd.f32 %v7344_v63, %v7304_v34  ;;  %v7318_v14 = vld [vmem:[%s17319_s15 + $0xa0] sm:$0xff]  ;;  %v7013_v63 = vld [vmem:[%s17319_s15 + $0x18] sm:$0xff] }
 0x7fd   : > { %10561 = vpow2.f32 %v10186_v0  ;;  %v10184_v59 = vmul.f32 -1.442695, %v7047_v53  ;;  %v7199_v58 = vadd.f32 %v7191_v8, %v7151_v22  ;;  %v7311_v50 = vmul.f32 %v16261_v32, %v15615_v38  ;;  %v7142_v10 = vld [vmem:[%s17316_s12 + $0x120] sm:$0xff]  ;;  %v18465_v7 = vld [vmem:[#allocation95_spill] sm:$0xff]  ;;  %v7012_v53 = vld [vmem:[%s17319_s15 + $0x10] sm:$0xff] }
 0x7fe   : > { %10563 = vpow2.f32 %v10194_v62  ;;  %v7006_v25 = vmul.f32 %v16261_v32, %v15206_v57  ;;  %v7158_v38 = vmul.f32 %v16261_v32, %v15156_v37  ;;  %v7310_v29 = vmul.f32 %v16261_v32, %v15599_v42 }
 0x7ff   : > { %10565 = vpow2.f32 %v10185_v4  ;;  %v10192_v41 = vmul.f32 -1.442695, %v7199_v58  ;;  %v7327_v15 = vmul.f32 %v7319_v48, %v7311_v50  ;;  %v7005_v57 = vmul.f32 %v16261_v32, %v15186_v52  ;;  %v7294_v52 = vld [vmem:[%s17316_s12 + $0x160] sm:$0xff]  ;;  %v7028_v4 = vld [vmem:[#allocation14 + $0x10] sm:$0xff]  ;;  %v18466_v58 = vld [vmem:[#allocation89_spill] sm:$0xff] }
 0x800   : > { %10567 = vpow2.f32 %v10193_v56  ;;  %v7022_v37 = vmul.f32 %v7014_v35, %v7006_v25  ;;  %v7174_v13 = vmul.f32 %v7166_v49, %v7158_v38  ;;  %v7326_v42 = vmul.f32 %v7318_v14, %v7310_v29  ;;  %v7164_v56 = vld [vmem:[%s17319_s15 + $0x50] sm:$0xff]  ;;  %v7011_v50 = vld [vmem:[%s17319_s15 + $0x8] sm:$0xff] }
 0x801   : > { %10569 = vpow2.f32 %v10184_v59  ;;  %v7343_v31 = vadd.f32 %v7335_v12, %v7327_v15  ;;  %v7021_v46 = vmul.f32 %v7013_v63, %v7005_v57  ;;  %v7157_v27 = vmul.f32 %v16261_v32, %v18464_v19  ;;  %v7140_v48 = vld [vmem:[%s17316_s12 + $0x110] sm:$0xff]  ;;  %v18467_v12 = vld [vmem:[#allocation92_spill] sm:$0xff]  ;;  %v6986_v25 = vld [vmem:[%s17316_s12 + $0xc8] sm:$0xff] }
 0x802   : > { %v7150_v24 = vadd.f32 %v7142_v10, %v16222_v21  ;;  %10571 = vpow2.f32 %v10192_v41  ;;  %v7038_v1 = vadd.f32 %v7030_v61, %v7022_v37  ;;  %v7190_v54 = vadd.f32 %v7182_v23, %v7174_v13  ;;  %v6987_v21 = vld [vmem:[%s17316_s12 + $0xd0] sm:$0xff]  ;;  %v7027_v10 = vld [vmem:[#allocation14 + $0x8] sm:$0xff]  ;;  %v7333_v13 = vld [vmem:[#allocation14 + $0x98] sm:$0xff] }
 0x803   : > { %10573 = vtanh.f32 %v7353_v20  ;;  %v7351_v28 = vadd.f32 %v7343_v31, %v7303_v36  ;;  %v7037_v22 = vadd.f32 %v7029_v39, %v7021_v46  ;;  %v7173_v34 = vmul.f32 %v7165_v16, %v7157_v27  ;;  %v7180_v14 = vld [vmem:[#allocation14 + $0x50] sm:$0xff] }
 0x804   : > { %v7046_v18 = vadd.f32 %v7038_v1, %v16245_v40  ;;  %v7198_v3 = vadd.f32 %v7190_v54, %v7150_v24  ;;  %v7342_v44 = vadd.f32 %v7334_v30, %v7326_v42  ;;  %v7004_v6 = vmul.f32 %v16261_v32, %v18465_v7 }
 0x805   : > { %v7302_v0 = vadd.f32 %v7294_v52, %v16237_v55  ;;  %10575 = vtanh.f32 %v7352_v47  ;;  %v7045_v36 = vadd.f32 %v7037_v22, %v16243_v5  ;;  %v7189_v62 = vadd.f32 %v7181_v43, %v7173_v34  ;;  %v7317_v5 = vld [vmem:[%s17319_s15 + $0x98] sm:$0xff] }
 0x806   : > { %10577 = vtanh.f32 %v7351_v28  ;;  %v10183_v40 = vmul.f32 -1.442695, %v7046_v18  ;;  %v10191_v8 = vmul.f32 -1.442695, %v7198_v3  ;;  %v7309_v20 = vmul.f32 %v16261_v32, %v15590_v45  ;;  %v7163_v28 = vld [vmem:[%s17319_s15 + $0x48] sm:$0xff]  ;;  %v18468_v18 = vld [vmem:[#allocation86_spill] sm:$0xff] }
 0x807   : > { %v10182_v55 = vmul.f32 -1.442695, %v7045_v36  ;;  %v7197_v47 = vadd.f32 %v7189_v62, %v16259_v26  ;;  %v7020_v59 = vmul.f32 %v7012_v53, %v7004_v6  ;;  %v7156_v45 = vmul.f32 %v16261_v32, %v18466_v58  ;;  %v7162_v36 = vld [vmem:[%s17319_s15 + $0x40] sm:$0xff] }
 0x808   : > { %v6995_v35 = vadd.f32 %v6987_v21, %v16181_v60  ;;  %10579 = vpow2.f32 %v10183_v40  ;;  %v7350_v49 = vadd.f32 %v7342_v44, %v7302_v0  ;;  %v7003_v26 = vmul.f32 %v16261_v32, %v18467_v12  ;;  %v7293_v60 = vld [vmem:[%s17316_s12 + $0x158] sm:$0xff]  ;;  %v7179_v21 = vld [vmem:[#allocation14 + $0x48] sm:$0xff]  ;;  %v7010_v0 = vld [vmem:[%s17319_s15] sm:$0xff] }
 0x809   : > { %10581 = vpow2.f32 %v10191_v8  ;;  %v10190_v38 = vmul.f32 -1.442695, %v7197_v47  ;;  %v7036_v29 = vadd.f32 %v7028_v4, %v7020_v59  ;;  %v7172_v63 = vmul.f32 %v7164_v56, %v7156_v45  ;;  %v6985_v62 = vld [vmem:[%s17316_s12 + $0xc0] sm:$0xff] }
 0x80a   : > { %v10562_v41 = vpop.eup %10561  ;;  %v7148_v15 = vadd.f32 %v7140_v48, %v16207_v9  ;;  %10583 = vpow2.f32 %v10182_v55  ;;  %v7325_v61 = vmul.f32 %v7317_v5, %v7309_v20  ;;  %v7019_v23 = vmul.f32 %v7011_v50, %v7003_v26  ;;  %v7138_v40 = vld [vmem:[%s17316_s12 + $0x100] sm:$0xff]  ;;  %v7316_v5 = vld [vmem:[%s17319_s15 + $0x90] sm:$0xff] }
 0x80b   : > { %v10564_v57 = vpop.eup %10563  ;;  %v7081_v37 = vadd.f32 1.0, %v10562_v41  ;;  %10585 = vpow2.f32 %v10190_v38  ;;  %v7044_v42 = vadd.f32 %v7036_v29, %v6995_v35  ;;  %v7188_v39 = vadd.f32 %v7180_v14, %v7172_v63  ;;  %v18470_v4 = vld [vmem:[#allocation84_spill] sm:$0xff]  ;;  %v7276_v35 = vld [vmem:[%s17315_s11 + $0x150] sm:$0xff] }
 0x80c   : > { %v10566_v16 = vpop.eup %10565  ;;  %v6994_v31 = vadd.f32 %v6986_v25, %v16179_v51  ;;  %v7233_v30 = vadd.f32 1.0, %v10564_v57  ;;  %10587 = vtanh.f32 %v7350_v49  ;;  %v7035_v46 = vadd.f32 %v7027_v10, %v7019_v23  ;;  %v7139_v51 = vld [vmem:[%s17316_s12 + $0x108] sm:$0xff]  ;;  %v7026_v58 = vld [vmem:[#allocation14] sm:$0xff]  ;;  %v18471_v26 = vld [vmem:[#allocation34_spill] sm:$0xff] }
 0x80d   : > { %v10568_v19 = vpop.eup %10567  ;;  %v7301_v27 = vadd.f32 %v7293_v60, %v16235_v2  ;;  %10589 = vrcp.f32 %v7081_v37  ;;  %v7080_v9 = vadd.f32 1.0, %v10566_v16  ;;  %v7196_v52 = vadd.f32 %v7188_v39, %v7148_v15  ;;  %v7178_v45 = vld [vmem:[#allocation14 + $0x40] sm:$0xff]  ;;  %v18472_v15 = vld [vmem:[#allocation31_spill] sm:$0xff]  ;;  %v7332_v57 = vld [vmem:[#allocation14 + $0x90] sm:$0xff] }
 0x80e   : > { %v10570_v24 = vpop.eup %10569  ;;  %10591 = vrcp.f32 %v7233_v30  ;;  %v7232_v1 = vadd.f32 1.0, %v10568_v19  ;;  %v7341_v54 = vadd.f32 %v7333_v13, %v7325_v61  ;;  %v7043_v43 = vadd.f32 %v7035_v46, %v6994_v31  ;;  %v7292_v16 = vld [vmem:[%s17316_s12 + $0x150] sm:$0xff]  ;;  %v7369_v19 = vld [vmem:[%s12597_s1 + $0x38] sm:$0xff] }
 0x80f   : > { %v10572_v22 = vpop.eup %10571  ;;  %10593 = vrcp.f32 %v7080_v9  ;;  %v7079_v34 = vadd.f32 1.0, %v10570_v24  ;;  %v10181_v2 = vmul.f32 -1.442695, %v7044_v42  ;;  %v7155_v3 = vmul.f32 %v16261_v32, %v18468_v18  ;;  %v18473_v24 = vld [vmem:[#allocation103_spill] sm:$0xff] }
 0x810   : > { %v10574_v44 = vpop.eup %10573  ;;  %10595 = vrcp.f32 %v7232_v1  ;;  %v7231_v7 = vadd.f32 1.0, %v10572_v22  ;;  %v10189_v6 = vmul.f32 -1.442695, %v7196_v52  ;;  %v7308_v53 = vmul.f32 %v16261_v32, %v15579_v33  ;;  %v18469_v33 = vld [vmem:[#allocation91_spill] sm:$0xff] }
 0x811   : > { %10597 = vrcp.f32 %v7079_v34  ;;  %v7171_v8 = vmul.f32 %v7163_v28, %v7155_v3  ;;  %v7002_v20 = vmul.f32 %v16261_v32, %v18469_v33  ;;  %v7154_v56 = vmul.f32 %v16261_v32, %v18470_v4  ;;  %v7315_v34 = vld [vmem:[%s17319_s15 + $0x88] sm:$0xff] }
 0x812   : > { %v10576_v48 = vpop.eup %10575  ;;  %v7147_v55 = vadd.f32 %v7139_v51, %v16205_v17  ;;  %10599 = vrcp.f32 %v7231_v7  ;;  %v7349_v47 = vadd.f32 %v7341_v54, %v7301_v27  ;;  %v10180_v59 = vmul.f32 -1.442695, %v7043_v43  ;;  %v7368_v51 = vld [vmem:[%s12597_s1 + $0x30] sm:$0xff]  ;;  %v18474_v3 = vld [vmem:[#allocation45_spill] sm:$0xff] }
 0x813   : > { %v16425_v50 = vpop.eup %10577  ;;  %10601 = vpow2.f32 %v10181_v2  ;;  %v7187_v49 = vadd.f32 %v7179_v21, %v7171_v8  ;;  %v7018_v14 = vmul.f32 %v7010_v0, %v7002_v20  ;;  %v7170_v12 = vmul.f32 %v7162_v36, %v7154_v56  ;;  %v18475_v7 = vld [vmem:[#allocation81_spill] sm:$0xff] }
 0x814   : > { %v6993_v17 = vadd.f32 %v6985_v62, %v16177_v11  ;;  %v7146_v25 = vadd.f32 %v7138_v40, %v18471_v26  ;;  %10603 = vpow2.f32 %v10189_v6  ;;  %v7324_v29 = vmul.f32 %v7316_v5, %v7308_v53  ;;  %v7367_v36 = vld [vmem:[%s12597_s1 + $0x28] sm:$0xff]  ;;  %v18476_v40 = vld [vmem:[#allocation100_spill] sm:$0xff]  ;;  %v18477_v5 = vld [vmem:[#allocation42_spill] sm:$0xff] }
 0x815   : > { %v10580_v38 = vpop.eup %10579  ;;  %v7195_v63 = vadd.f32 %v7187_v49, %v7147_v55  ;;  %v7034_v10 = vadd.f32 %v7026_v58, %v7018_v14  ;;  %v7186_v41 = vadd.f32 %v7178_v45, %v7170_v12  ;;  %v7284_v61 = vmul.f32 %v7276_v35, %v18472_v15  ;;  %v7314_v55 = vld [vmem:[%s17319_s15 + $0x80] sm:$0xff]  ;;  %v7331_v58 = vld [vmem:[#allocation14 + $0x88] sm:$0xff] }
 0x816   : > { %v10582_v60 = vpop.eup %10581  ;;  %v7078_v23 = vadd.f32 1.0, %v10580_v38  ;;  %10605 = vpow2.f32 %v10180_v59  ;;  %v7340_v9 = vadd.f32 %v7332_v57, %v7324_v29  ;;  %v7307_v1 = vmul.f32 %v16261_v32, %v18473_v24  ;;  %v7274_v45 = vld [vmem:[%s17315_s11 + $0x140] sm:$0xff]  ;;  %v7291_v12 = vld [vmem:[%s17316_s12 + $0x148] sm:$0xff] }
 0x817   : > { %v10584_v37 = vpop.eup %10583  ;;  %v7230_v13 = vadd.f32 1.0, %v10582_v60  ;;  %10607 = vtanh.f32 %v7349_v47  ;;  %v7042_v42 = vadd.f32 %v7034_v10, %v6993_v17  ;;  %v7194_v11 = vadd.f32 %v7186_v41, %v7146_v25  ;;  %v7290_v15 = vld [vmem:[%s17316_s12 + $0x140] sm:$0xff] }
 0x818   : > { %v10586_v39 = vpop.eup %10585  ;;  %10609 = vrcp.f32 %v7078_v23  ;;  %v7077_v31 = vadd.f32 1.0, %v10584_v37  ;;  %v10188_v30 = vmul.f32 -1.442695, %v7195_v63  ;;  %v7300_v28 = vadd.f32 %v7292_v16, %v7284_v61  ;;  %v7330_v63 = vld [vmem:[#allocation14 + $0x80] sm:$0xff] }
 0x819   : > { %v16436_v46 = vpop.eup %10587  ;;  %10611 = vrcp.f32 %v7230_v13  ;;  %v7229_v27 = vadd.f32 1.0, %v10586_v39  ;;  %v10179_v54 = vmul.f32 -1.442695, %v7042_v42  ;;  %v10187_v2 = vmul.f32 -1.442695, %v7194_v11  ;;  %v7366_v23 = vld [vmem:[%s12597_s1 + $0x20] sm:$0xff] }
 0x81a   : > { %v10590_v52 = vpop.eup %10589  ;;  %10613 = vrcp.f32 %v7077_v31  ;;  %v7267_v6 = vmul.f32 %v18475_v7, %v18474_v3  ;;  %v7348_v62 = vadd.f32 %v7340_v9, %v7300_v28  ;;  %v7306_v8 = vmul.f32 %v16261_v32, %v18476_v40  ;;  %v7365_v39 = vld [vmem:[%s12597_s1 + $0x18] sm:$0xff] }
 0x81b   : > { %v10592_v43 = vpop.eup %10591  ;;  %v7385_v22 = vmul.f32 %v10590_v52, %v10574_v44  ;;  %10615 = vrcp.f32 %v7229_v27  ;;  %v7275_v44 = vld [vmem:[%s17315_s11 + $0x148] sm:$0xff]  ;;  %v7323_v56 = vmul.f32 %v7315_v34, %v7307_v1 }
 0x81c   : > { %v10594_v18 = vpop.eup %10593  ;;  %v7377_v53 = vmul.f32 %v10592_v43, %v7369_v19  ;;  %10617 = vpow2.f32 %v10188_v30  ;;  %v7283_v35 = vmul.f32 %v7275_v44, %v7267_v6  ;;  %v7322_v26 = vmul.f32 %v7314_v55, %v7306_v8 }
 0x81d   : > { %v10596_v21 = vpop.eup %10595  ;;  %v7384_v0 = vmul.f32 %v10594_v18, %v10576_v48  ;;  %10619 = vpow2.f32 %v10179_v54  ;;  %v7266_v48 = vmul.f32 %v18475_v7, %v18477_v5  ;;  %v7339_v29 = vadd.f32 %v7331_v58, %v7323_v56  ;;  %v7364_v18 = vld [vmem:[%s12597_s1 + $0x10] sm:$0xff]  ;;  %v7362_v56 = vld [vmem:[%s12597_s1] sm:$0xff] }
 0x81e   : > { %v10598_v33 = vpop.eup %10597  ;;  %v16459_v20 = vadd.f32 %v7385_v22, %v7377_v53  ;;  %v7376_v4 = vmul.f32 %v10596_v21, %v7368_v51  ;;  %10621 = vpow2.f32 %v10187_v2  ;;  %v7299_v61 = vadd.f32 %v7291_v12, %v7283_v35  ;;  %v16542_v35 = vld [vmem:[%s15519_s16 + $0x30] sm:$0xff] }
 0x81f   : > { %v10600_v47 = vpop.eup %10599  ;;  %v7383_v59 = vmul.f32 %v10598_v33, %v16425_v50  ;;  %10623 = vtanh.f32 %v7348_v62  ;;  %v7282_v41 = vmul.f32 %v7274_v45, %v7266_v48  ;;  %v7338_v13 = vadd.f32 %v7330_v63, %v7322_v26  ;;  %v7363_v62 = vld [vmem:[%s12597_s1 + $0x8] sm:$0xff]  ;;  %v16537_v45 = vld [vmem:[%s15519_s16 + $0x38] sm:$0xff] }
 0x820   : > { %v10602_v32 = vpop.eup %10601  ;;  %7924 = vrot.lane.b32.xlu0 %v16459_v20, %s17849_s4  ;;  %7409 = vst [vmem:[%s16451_s7 + $0x38] sm:$0xff] %v16459_v20  ;;  %7454 = vmatprep.subr.mxu0 %v16459_v20  ;;  %v16475_v49 = vadd.f32 %v7384_v0, %v7376_v4  ;;  %v7375_v14 = vmul.f32 %v10600_v47, %v7367_v36  ;;  %v18478_v12 = vmov 0.0   ;;  %v16559_v26 = vld [vmem:[%s15519_s16 + $0x18] sm:$0xff]  ;;  %v16570_v63 = vld [vmem:[%s15519_s16 + $0x8] sm:$0xff] }
 0x821   : > { %v10604_v50 = vpop.eup %10603  ;;  %v7076_v17 = vadd.f32 1.0, %v10602_v32  ;;  %v7347_v16 = vadd.f32 %v7339_v29, %v7299_v61  ;;  %v7298_v30 = vadd.f32 %v7290_v15, %v7282_v41  ;;  %v7414_v32 = vld [vmem:[#allocation13] sm:$0xff]  ;;  %v7416_v29 = vld [vmem:[#allocation13 + $0x10] sm:$0xff]  ;;  %v7417_v41 = vld [vmem:[#allocation13 + $0x18] sm:$0xff] }
 0x822   : > { %7922 = vrot.lane.b32.xlu1 %v16475_v49, %s17849_s4  ;;  %7408 = vst [vmem:[%s16451_s7 + $0x30] sm:$0xff] %v16475_v49  ;;  %7455 = vmatpush1.msra.mxu0 %v16475_v49  ;;  %v16485_v25 = vadd.f32 %v7383_v59, %v7375_v14  ;;  %v7228_v38 = vadd.f32 1.0, %v10604_v50  ;;  %v7415_v14 = vld [vmem:[#allocation13 + $0x8] sm:$0xff]  ;;  %v18479_v15 = vld [vmem:[#allocation127_spill] sm:$0xff] }
 0x823   : > { %v10606_v10 = vpop.eup %10605  ;;  %10625 = vrcp.f32 %v7076_v17  ;;  %v7346_v54 = vadd.f32 %v7338_v13, %v7298_v30  ;;  %v16548_v50 = vld [vmem:[%s15519_s16 + $0x28] sm:$0xff]  ;;  %v16553_v17 = vld [vmem:[%s15519_s16 + $0x20] sm:$0xff]  ;;  %v8442_v61 = vmul.f32 %v18479_v15, %v16459_v20  ;;  %v18481_v30 = vld [vmem:[#allocation98_spill] sm:$0xff] }
 0x824   : > { %v10608_v60 = vpop.eup %10607  ;;  %7407 = vst [vmem:[%s16451_s7 + $0x28] sm:$0xff] %v16485_v25  ;;  %7456 = vmatprep.subr.mxu0 %v16485_v25  ;;  %7918 = vrot.lane.b32.xlu0 %v16485_v25, %s17849_s4  ;;  %10627 = vrcp.f32 %v7228_v38  ;;  %v7075_v57 = vadd.f32 1.0, %v10606_v10  ;;  %v16564_v38 = vld [vmem:[%s15519_s16 + $0x10] sm:$0xff]  ;;  %v16575_v10 = vld [vmem:[%s15519_s16] sm:$0xff]  ;;  %s819_s16 = scalar_lea.vmem %s17323_s19, %s11327_s25 }
 0x825   : > { %v10610_v37 = vpop.eup %10609 }
 0x826   : > { %v10612_v42 = vpop.eup %10611  ;;  %v7382_v11 = vmul.f32 %v10610_v37, %v16436_v46  ;;  %10629 = vrcp.f32 %v7075_v57  ;;  %v18480_v57 = vld [vmem:[#allocation96_spill] sm:$0xff] }
 0x827   : > { %v10614_v31 = vpop.eup %10613  ;;  %v7374_v19 = vmul.f32 %v10612_v42, %v7366_v23  ;;  %10631 = vtanh.f32 %v7347_v16  ;;  %v8439_v23 = vmul.f32 %v18479_v15, %v16485_v25  ;;  %v8441_v37 = vmul.f32 %v18480_v57, %v16475_v49  ;;  %v7411_v42 = vld [vmem:[#allocation11 + $0x8] sm:$0xff]  ;;  %v7412_v16 = vld [vmem:[#allocation11 + $0x10] sm:$0xff] }
 0x828   : > { %v10616_v27 = vpop.eup %10615  ;;  %v7381_v9 = vmul.f32 %v10614_v31, %v10608_v60  ;;  %v7410_v60 = vld [vmem:[#allocation11] sm:$0xff] }
 0x829   : > { %v10618_v52 = vpop.eup %10617  ;;  %v16498_v24 = vadd.f32 %v7382_v11, %v7374_v19  ;;  %v7373_v1 = vmul.f32 %v10616_v27, %v7365_v39  ;;  %v7709_v19 = vmul.f32 %v18481_v30, %v16459_v20  ;;  %v7413_v27 = vld [vmem:[#allocation11 + $0x18] sm:$0xff] }
 0x82a   : > { %v7227_v43 = vadd.f32 1.0, %v10618_v52  ;;  %v10620_v28 = vpop.eup %10619  ;;  %v18482_v52 = vld [vmem:[#allocation133_spill] sm:$0xff] }
 0x82b   : > { %7406 = vst [vmem:[%s16451_s7 + $0x20] sm:$0xff] %v16498_v24  ;;  %7457 = vmatpush1.msra.mxu0 %v16498_v24  ;;  %7916 = vrot.lane.b32.xlu1 %v16498_v24, %s17849_s4  ;;  %v16505_v46 = vadd.f32 %v7381_v9, %v7373_v1  ;;  %v10622_v22 = vpop.eup %10621  ;;  %v7074_v51 = vadd.f32 1.0, %v10620_v28  ;;  %v8438_v13 = vmul.f32 %v18480_v57, %v16498_v24 }
 0x82c   : > { %10633 = vrcp.f32 %v7227_v43  ;;  %v7226_v34 = vadd.f32 1.0, %v10622_v22  ;;  %v10624_v2 = vpop.eup %10623  ;;  %v7705_v1 = vmul.f32 %v18482_v52, %v16498_v24  ;;  %v7706_v28 = vmul.f32 %v18481_v30, %v16485_v25 }
 0x82d   : > { %7405 = vst [vmem:[%s16451_s7 + $0x18] sm:$0xff] %v16505_v46  ;;  %7458 = vmatprep.subr.mxu0 %v16505_v46  ;;  %10635 = vtanh.f32 %v7346_v54  ;;  %v8436_v11 = vmul.f32 %v18479_v15, %v16505_v46  ;;  %v7708_v54 = vmul.f32 %v18482_v52, %v16475_v49  ;;  %v7703_v43 = vmul.f32 %v18481_v30, %v16505_v46 }
 0x82e   : > { %10637 = vrcp.f32 %v7074_v51 }
 0x82f   : > { %10639 = vrcp.f32 %v7226_v34  ;;  %7912 = vrot.lane.b32.xlu1 %v16505_v46, %s17849_s4  ;;  %v18483_v34 = vld [vmem:[#allocation25_spill] sm:$0xff] }
 0x830   : > { %v10626_v3 = vpop.eup %10625 }
 0x831   : > { %v10628_v6 = vpop.eup %10627  ;;  %v7380_v53 = vmul.f32 %v10626_v3, %v10624_v2  ;;  %v8224_v2 = vmul.f32 %v18483_v34, %v16475_v49  ;;  %v8221_v3 = vmul.f32 %v18483_v34, %v16498_v24 }
 0x832   : > { %v7372_v21 = vmul.f32 %v10628_v6, %v7364_v18  ;;  %v18484_v6 = vld [vmem:[#allocation97_spill] sm:$0xff] }
 0x833   : > { %v10630_v0 = vpop.eup %10629 }
 0x834   : > { %v16513_v44 = vadd.f32 %v7380_v53, %v7372_v21  ;;  %v10632_v36 = vpop.eup %10631  ;;  %v8225_v53 = vmul.f32 %v18484_v6, %v16459_v20  ;;  %v8219_v21 = vmul.f32 %v18484_v6, %v16505_v46 }
 0x835   : > { %v7379_v40 = vmul.f32 %v10632_v36, %v10630_v0  ;;  %v8222_v0 = vmul.f32 %v18484_v6, %v16485_v25 }
 0x836   : > { %7404 = vst [vmem:[%s16451_s7 + $0x10] sm:$0xff] %v16513_v44  ;;  %7459 = vmatpush1.msra.mxu0 %v16513_v44  ;;  %7910 = vrot.lane.b32.xlu0 %v16513_v44, %s17849_s4  ;;  %v8435_v39 = vmul.f32 %v18480_v57, %v16513_v44  ;;  %v7702_v51 = vmul.f32 %v18482_v52, %v16513_v44 }
 0x839   : > { %v10634_v8 = vpop.eup %10633 }
 0x83a   : > { %v10636_v33 = vpop.eup %10635  ;;  %v7371_v4 = vmul.f32 %v10634_v8, %v7363_v62  ;;  %v16664_v62 = vpop.permute.xlu0 %8074 }
 0x83b   : > { %v10638_v55 = vpop.eup %10637  ;;  %v16669_v8 = vpop.permute.xlu1 %8072 }
 0x83c   : > { %v10640_v47 = vpop.eup %10639  ;;  %v16522_v5 = vadd.f32 %v7379_v40, %v7371_v4  ;;  %v7378_v48 = vmul.f32 %v10638_v55, %v10636_v33  ;;  %v8218_v40 = vmul.f32 %v18483_v34, %v16513_v44  ;;  %v18485_v33 = vld [vmem:[#allocation99_spill] sm:$0xff] }
 0x83d   : > { %v7370_v59 = vmul.f32 %v10640_v47, %v7362_v56  ;;  %v8627_v4 = vmul.f32 %v18485_v33, %v16475_v49  ;;  %v8624_v47 = vmul.f32 %v18485_v33, %v16498_v24 }
 0x83e   : > { %7403 = vst [vmem:[%s16451_s7 + $0x8] sm:$0xff] %v16522_v5  ;;  %7460 = vmatprep.subr.mxu0 %v16522_v5  ;;  %7906 = vrot.lane.b32.xlu1 %v16522_v5, %s17849_s4  ;;  %v8433_v31 = vmul.f32 %v18479_v15, %v16522_v5  ;;  %v7700_v18 = vmul.f32 %v18481_v30, %v16522_v5  ;;  %v16677_v55 = vpop.permute.xlu0 %8068 }
 0x83f   : > { %v16529_v58 = vadd.f32 %v7378_v48, %v7370_v59  ;;  %v8216_v36 = vmul.f32 %v18484_v6, %v16522_v5  ;;  %v16682_v48 = vpop.permute.xlu1 %8066  ;;  %v18486_v59 = vld [vmem:[#allocation165_spill] sm:$0xff]  ;;  %v18490_v6 = vld [vmem:[#allocation112_spill] sm:$0xff] }
 0x841   : > { %7402 = vst [vmem:[%s16451_s7] sm:$0xff] %v16529_v58  ;;  %7461 = vmatpush1.msra.mxu0 %v16529_v58  ;;  %7904 = vrot.lane.b32.xlu0 %v16529_v58, %s17849_s4  ;;  %v8432_v9 = vmul.f32 %v18480_v57, %v16529_v58  ;;  %v7699_v22 = vmul.f32 %v18482_v52, %v16529_v58 }
 0x842   : > { %7555 = vmatprep.subr.mxu0 %v16537_v45  ;;  %10195 = vmatmul.mubr.msk.f32.vlgmr.msra.gmra.mxu0 %vm3340_vm9, %v7414_v32  ;;  %v8215_v56 = vmul.f32 %v18483_v34, %v16529_v58  ;;  %v8628_v32 = vmul.f32 %v18486_v59, %v16459_v20  ;;  %v8618_v30 = vmul.f32 %v18485_v33, %v16529_v58 }
 0x843   : > { %7556 = vmatpush1.msra.mxu0 %v16542_v35  ;;  %8842 = vrot.lane.b32.xlu1 %v16459_v20, %s17792_s27  ;;  %v16695_v15 = vpop.permute.xlu1 %9004 }
 0x844   : > { %7557 = vmatprep.subr.mxu0 %v16548_v50  ;;  %7500 = vmatprep.mubr.f32.mxu0 %v18478_v12 }
 0x845   : > { %7558 = vmatpush1.msra.mxu0 %v16553_v17  ;;  %8840 = vrot.lane.b32.xlu0 %v16475_v49, %s17792_s27 }
 0x846   : > { %7559 = vmatprep.subr.mxu0 %v16559_v26  ;;  %10196 = vmatmul.mubr.msk.f32.gmra.mxu0 %vm3340_vm9, %v7415_v14  ;;  %v18487_v14 = vld [vmem:[#allocation101_spill] sm:$0xff] }
 0x847   : > { %7560 = vmatpush1.msra.mxu0 %v16564_v38  ;;  %8836 = vrot.lane.b32.xlu1 %v16485_v25, %s17792_s27 }
 0x848   : > { %7561 = vmatprep.subr.mxu0 %v16570_v63  ;;  %7506 = vmatprep.mubr.f32.mxu0 %v18478_v12 }
 0x849   : > { %7562 = vmatpush1.msra.mxu0 %v16575_v10  ;;  %8830 = vrot.lane.b32.xlu0 %v16505_v46, %s17792_s27 }
 0x84a   : > { %10197 = vmatmul.mubr.msk.f32.gmra.mxu0 %vm3340_vm9, %v7416_v29  ;;  %v8039_v29 = vmul.f32 %v18487_v14, %v16459_v20 }
 0x84b   : > { %8834 = vrot.lane.b32.xlu1 %v16498_v24, %s17792_s27  ;;  %7512 = vmatprep.mubr.f32.mxu0 %v18478_v12 }
 0x84d   : > { %8824 = vrot.lane.b32.xlu0 %v16522_v5, %s17792_s27 }
 0x84e   : > { %10198 = vmatmul.mubr.msk.f32.gmra.mxu0 %vm3340_vm9, %v7417_v41  ;;  %v16690_v41 = vpop.permute.xlu0 %8998 }
 0x84f   : > { %8828 = vrot.lane.b32.xlu1 %v16513_v44, %s17792_s27  ;;  %7595 = vmatprep.mubr.f32.mxu0 %v18478_v12 }
 0x851   : > { %8822 = vrot.lane.b32.xlu0 %v16529_v58, %s17792_s27 }
 0x852   : > { %10199 = vmatmul.mubr.msk.f32.vlgmr.msra.gmra.mxu0 %vm3340_vm9, %v7410_v60  ;;  %v8625_v60 = vmul.f32 %v18486_v59, %v16485_v25 }
 0x853   : > { %8512 = vrot.lane.b32.xlu1 %v8442_v61, %s17944_s30  ;;  %7601 = vmatprep.mubr.f32.mxu0 %v18478_v12  ;;  %v8621_v61 = vmul.f32 %v18485_v33, %v16513_v44 }
 0x855   : > { %8506 = vrot.lane.b32.xlu0 %v8439_v23, %s17944_s30  ;;  %v18488_v23 = vld [vmem:[#allocation169_spill] sm:$0xff] }
 0x856   : > { %10200 = vmatmul.mubr.msk.f32.gmra.mxu0 %vm3340_vm9, %v7411_v42  ;;  %v8038_v57 = vmul.f32 %v18488_v23, %v16475_v49  ;;  %v16708_v42 = vpop.permute.xlu1 %9002  ;;  %v8032_v34 = vmul.f32 %v18488_v23, %v16513_v44 }
 0x857   : > { %8510 = vrot.lane.b32.xlu1 %v8441_v37, %s17944_s30  ;;  %7607 = vmatprep.mubr.f32.mxu0 %v18478_v12  ;;  %v16703_v37 = vpop.permute.xlu0 %8996 }
 0x859   : > { %8504 = vrot.lane.b32.xlu0 %v8438_v13, %s17944_s30  ;;  %v8036_v13 = vmul.f32 %v18487_v14, %v16485_v25 }
 0x85a   : > { %10201 = vmatmul.mubr.msk.f32.gmra.mxu0 %vm3340_vm9, %v7412_v16  ;;  %v18489_v16 = vld [vmem:[#allocation114_spill] sm:$0xff] }
 0x85b   : > { %8500 = vrot.lane.b32.xlu1 %v8436_v11, %s17944_s30  ;;  %7613 = vmatprep.mubr.f32.mxu0 %v18478_v12  ;;  %v8622_v11 = vmul.f32 %v18486_v59, %v16505_v46 }
 0x85d   : > { %8498 = vrot.lane.b32.xlu0 %v8435_v39, %s17944_s30 }
 0x85e   : > { %10202 = vmatmul.mubr.msk.f32.gmra.mxu0 %vm3340_vm9, %v7413_v27  ;;  %v8035_v27 = vmul.f32 %v18488_v23, %v16498_v24 }
 0x85f   : > { %8494 = vrot.lane.b32.xlu1 %v8433_v31, %s17944_s30  ;;  %v10438_v31 = vunpack.i.l.bf16 %v18489_v16 }
 0x861   : > { %7780 = vrot.lane.b32.xlu0 %v7709_v19, %s18242_s3 }
 0x863   : > { %8492 = vrot.lane.b32.xlu1 %v8432_v9, %s17944_s30 }
 0x865   : > { %7772 = vrot.lane.b32.xlu0 %v7705_v1, %s18242_s3  ;;  %v8033_v1 = vmul.f32 %v18487_v14, %v16505_v46 }
 0x867   : > { %7778 = vrot.lane.b32.xlu1 %v7708_v54, %s18242_s3  ;;  %v8619_v54 = vmul.f32 %v18486_v59, %v16522_v5 }
 0x869   : > { %7768 = vrot.lane.b32.xlu0 %v7703_v43, %s18242_s3  ;;  %v8030_v43 = vmul.f32 %v18487_v14, %v16522_v5 }
 0x86b   : > { %7774 = vrot.lane.b32.xlu1 %v7706_v28, %s18242_s3 }
 0x86d   : > { %7760 = vrot.lane.b32.xlu0 %v7699_v22, %s18242_s3  ;;  %v9083_v22 = vld [vmem:[#allocation9 + $0x18] sm:$0xff] }
 0x86e   : > { %9410 = vmatprep.mubr.f32.mxu0 %v9083_v22 }
 0x86f   : > { %7766 = vrot.lane.b32.xlu1 %v7702_v51, %s18242_s3  ;;  %v10439_v51 = vunpack.i.h.bf16 %v18489_v16 }
 0x871   : > { %8294 = vrot.lane.b32.xlu0 %v8224_v2, %s17827_s23 }
 0x873   : > { %7762 = vrot.lane.b32.xlu1 %v7700_v18, %s18242_s3 }
 0x875   : > { %8288 = vrot.lane.b32.xlu0 %v8221_v3, %s17827_s23 }
 0x877   : > { %8296 = vrot.lane.b32.xlu1 %v8225_v53, %s17827_s23  ;;  %v8957_v53 = vmul.f32 %v18490_v6, %v16475_v49 }
 0x879   : > { %8284 = vrot.lane.b32.xlu0 %v8219_v21, %s17827_s23  ;;  %v9081_v21 = vld [vmem:[#allocation9 + $0x8] sm:$0xff] }
 0x87a   : > { %9321 = vmatprep.mubr.f32.mxu1 %v9081_v21  ;;  %v18499_v21 = vld [vmem:[#allocation122_spill] sm:$0xff] }
 0x87b   : > { %8290 = vrot.lane.b32.xlu1 %v8222_v0, %s17827_s23  ;;  %v8029_v0 = vmul.f32 %v18488_v23, %v16529_v58 }
 0x87d   : > { %8278 = vrot.lane.b32.xlu0 %v8216_v36, %s17827_s23  ;;  %v8954_v36 = vmul.f32 %v18490_v6, %v16498_v24 }
 0x87f   : > { %8282 = vrot.lane.b32.xlu1 %v8218_v40, %s17827_s23  ;;  %v18491_v40 = vld [vmem:[#allocation159_spill] sm:$0xff] }
 0x880   : > { %v8958_v33 = vmul.f32 %v18491_v40, %v16459_v20  ;;  %v8955_v14 = vmul.f32 %v18491_v40, %v16485_v25  ;;  %v8952_v23 = vmul.f32 %v18491_v40, %v16505_v46 }
 0x881   : > { %8696 = vrot.lane.b32.xlu0 %v8627_v4, %s17933_s26 }
 0x883   : > { %8276 = vrot.lane.b32.xlu1 %v8215_v56, %s17827_s23  ;;  %v18492_v56 = vld [vmem:[#allocation113_spill] sm:$0xff] }
 0x885   : > { %8690 = vrot.lane.b32.xlu0 %v8624_v47, %s17933_s26  ;;  %v10443_v47 = vunpack.i.l.bf16 %v18492_v56 }
 0x887   : > { %8698 = vrot.lane.b32.xlu1 %v8628_v32, %s17933_s26  ;;  %v18493_v32 = vld [vmem:[#allocation106_spill] sm:$0xff] }
 0x889   : > { %8110 = vrot.lane.b32.xlu0 %v8039_v29, %s18240_s22 }
 0x88b   : > { %8692 = vrot.lane.b32.xlu1 %v8625_v60, %s17933_s26 }
 0x88d   : > { %8684 = vrot.lane.b32.xlu0 %v8621_v61, %s17933_s26  ;;  %v8949_v61 = vmul.f32 %v18491_v40, %v16522_v5 }
 0x88f   : > { %8108 = vrot.lane.b32.xlu1 %v8038_v57, %s18240_s22  ;;  %v8948_v57 = vmul.f32 %v18490_v6, %v16529_v58 }
 0x891   : > { %8104 = vrot.lane.b32.xlu0 %v8036_v13, %s18240_s22 }
 0x892   : > { %v7925_v39 = vpop.permute.xlu0 %7924 }
 0x893   : > { %8686 = vrot.lane.b32.xlu1 %v8622_v11, %s17933_s26  ;;  %v8951_v11 = vmul.f32 %v18490_v6, %v16513_v44 }
 0x894   : > { %v7923_v19 = vpop.permute.xlu1 %7922 }
 0x895   : > { %8678 = vrot.lane.b32.xlu0 %v8618_v30, %s17933_s26  ;;  %v7940_v9 = vsel %vm903_vm7, %v10438_v31, %v7923_v19  ;;  %v7941_v52 = vsel %vm903_vm7, %v7923_v19, %v7925_v39  ;;  %v10444_v39 = vunpack.i.h.bf16 %v18492_v56  ;;  %v8937_v31 = vmul.f32 %v16570_v63, %v18491_v40  ;;  %v18501_v56 = vld [vmem:[#allocation171_spill] sm:$0xff] }
 0x896   : > { %9257 = vmatprep.subr.mxu1 %v7941_v52  ;;  %v7919_v28 = vpop.permute.xlu0 %7918 }
 0x897   : > { %8102 = vrot.lane.b32.xlu1 %v8035_v27, %s18240_s22  ;;  %9258 = vmatpush1.msra.mxu1 %v7940_v9  ;;  %v18494_v27 = vld [vmem:[#allocation126_spill] sm:$0xff] }
 0x898   : > { %v10448_v9 = vunpack.i.l.bf16 %v18494_v27  ;;  %v10449_v22 = vunpack.i.h.bf16 %v18494_v27 }
 0x899   : > { %8098 = vrot.lane.b32.xlu0 %v8033_v1, %s18240_s22  ;;  %v8940_v1 = vmul.f32 %v16559_v26, %v18491_v40 }
 0x89b   : > { %8680 = vrot.lane.b32.xlu1 %v8619_v54, %s17933_s26  ;;  %v18495_v54 = vld [vmem:[#allocation164_spill] sm:$0xff] }
 0x89d   : > { %8092 = vrot.lane.b32.xlu0 %v8030_v43, %s18240_s22  ;;  %v7917_v2 = vpop.permute.xlu1 %7916  ;;  %v18496_v43 = vld [vmem:[#allocation108_spill] sm:$0xff] }
 0x89e   : > { %v7938_v18 = vsel %vm903_vm7, %v10439_v51, %v7917_v2  ;;  %v7939_v3 = vsel %vm903_vm7, %v7917_v2, %v7919_v28  ;;  %v7933_v28 = vsel %vm903_vm7, %v18496_v43, %v18495_v54  ;;  %v8936_v2 = vmul.f32 %v16575_v10, %v18490_v6  ;;  %v18505_v54 = vld [vmem:[#allocation110_spill] sm:$0xff] }
 0x89f   : > { %8096 = vrot.lane.b32.xlu1 %v8032_v34, %s18240_s22  ;;  %9259 = vmatprep.subr.mxu1 %v7939_v3  ;;  %v7932_v34 = vsel %vm903_vm7, %v10448_v9, %v18496_v43  ;;  %v18498_v3 = vld [vmem:[#allocation104_spill] sm:$0xff] }
 0x8a0   : > { %9260 = vmatpush1.msra.mxu1 %v7938_v18  ;;  %v18497_v18 = vld [vmem:[#allocation167_spill] sm:$0xff] }
 0x8a1   : > { %9026 = vrot.lane.b32.xlu0 %v8957_v53, %s17947_s0  ;;  %v7913_v4 = vpop.permute.xlu1 %7912  ;;  %v7931_v53 = vsel %vm903_vm7, %v18498_v3, %v18497_v18 }
 0x8a3   : > { %8090 = vrot.lane.b32.xlu1 %v8029_v0, %s18240_s22  ;;  %v10453_v0 = vunpack.i.l.bf16 %v18499_v21 }
 0x8a5   : > { %9020 = vrot.lane.b32.xlu0 %v8954_v36, %s17947_s0  ;;  %v7930_v36 = vsel %vm903_vm7, %v10449_v22, %v18498_v3  ;;  %v18506_v22 = vld [vmem:[#allocation109_spill] sm:$0xff] }
 0x8a7   : > { %9028 = vrot.lane.b32.xlu1 %v8958_v33, %s17947_s0  ;;  %v8939_v33 = vmul.f32 %v16564_v38, %v18490_v6 }
 0x8a8   : > { %v7911_v59 = vpop.permute.xlu0 %7910 }
 0x8a9   : > { %8994 = vrot.lane.b32.xlu0 %v18493_v32, %s17947_s0  ;;  %v7936_v29 = vsel %vm903_vm7, %v10443_v47, %v7911_v59  ;;  %v7937_v60 = vsel %vm903_vm7, %v7911_v59, %v7913_v4  ;;  %v18500_v4 = vld [vmem:[#allocation54_spill] sm:$0xff]  ;;  %v10454_v59 = vunpack.i.h.bf16 %v18499_v21 }
 0x8aa   : > { %9261 = vmatprep.subr.mxu1 %v7937_v60  ;;  %v7929_v47 = vsel %vm903_vm7, %v18501_v56, %v18500_v4  ;;  %v18502_v60 = vld [vmem:[#allocation141_spill] sm:$0xff] }
 0x8ab   : > { %9022 = vrot.lane.b32.xlu1 %v8955_v14, %s17947_s0  ;;  %9262 = vmatpush1.msra.mxu1 %v7936_v29  ;;  %v7928_v29 = vsel %vm903_vm7, %v10453_v0, %v18501_v56  ;;  %v18508_v56 = vld [vmem:[#allocation116_spill] sm:$0xff] }
 0x8ad   : > { %9010 = vrot.lane.b32.xlu0 %v8949_v61, %s17947_s0  ;;  %v18503_v61 = vld [vmem:[#allocation53_spill] sm:$0xff] }
 0x8ae   : > { %v7927_v6 = vsel %vm903_vm7, %v18503_v61, %v18502_v60 }
 0x8af   : > { %9016 = vrot.lane.b32.xlu1 %v8952_v23, %s17947_s0  ;;  %v7926_v23 = vsel %vm903_vm7, %v10454_v59, %v18503_v61 }
 0x8b0   : > { %v7907_v13 = vpop.permute.xlu1 %7906 }
 0x8b1   : > { %9008 = vrot.lane.b32.xlu0 %v8948_v57, %s17947_s0 }
 0x8b3   : > { %v7905_v16 = vpop.permute.xlu0 %7904  ;;  %9014 = vrot.lane.b32.xlu1 %v8951_v11, %s17947_s0 }
 0x8b4   : > { %v7934_v30 = vsel %vm903_vm7, %v10444_v39, %v7905_v16  ;;  %v7935_v19 = vsel %vm903_vm7, %v7905_v16, %v7907_v13 }
 0x8b5   : > { %8986 = vrot.lane.b32.xlu0 %v8937_v31, %s17947_s0  ;;  %9263 = vmatprep.subr.mxu1 %v7935_v19  ;;  %v16777_v52 = vpop.permute.xlu1 %8842  ;;  %v18504_v31 = vld [vmem:[#allocation102_spill] sm:$0xff] }
 0x8b6   : > { %9264 = vmatpush1.msra.mxu1 %v7934_v30 }
 0x8b7   : > { %v16785_v51 = vpop.permute.xlu0 %8840  ;;  %9265 = vmatprep.subr.mxu1 %v7933_v28  ;;  %8992 = vrot.lane.b32.xlu1 %v8940_v1, %s17947_s0 }
 0x8b8   : > { %9266 = vmatpush1.msra.mxu1 %v7932_v34 }
 0x8b9   : > { %8984 = vrot.lane.b32.xlu0 %v8936_v2, %s17947_s0  ;;  %9267 = vmatprep.subr.mxu1 %v7931_v53  ;;  %v16799_v40 = vpop.permute.xlu1 %8836  ;;  %v18507_v53 = vld [vmem:[#allocation111_spill] sm:$0xff] }
 0x8ba   : > { %9268 = vmatpush1.msra.mxu1 %v7930_v36 }
 0x8bb   : > { %v16807_v14 = vpop.permute.xlu0 %8830  ;;  %9269 = vmatprep.subr.mxu1 %v7929_v47  ;;  %8990 = vrot.lane.b32.xlu1 %v8939_v33, %s17947_s0  ;;  %v18509_v47 = vld [vmem:[#allocation132_spill] sm:$0xff] }
 0x8bc   : > { %9270 = vmatpush1.msra.mxu1 %v7928_v29  ;;  %v8523_v59 = vsel %vm969_vm3, %v18509_v47, %v18508_v56  ;;  %v18510_v29 = vld [vmem:[#allocation35_spill] sm:$0xff] }
 0x8bd   : > { %9271 = vmatprep.subr.mxu1 %v7927_v6  ;;  %v16817_v57 = vpop.permute.xlu1 %8834  ;;  %v8522_v60 = vsel %vm969_vm3, %v18510_v29, %v18509_v47  ;;  %v18511_v6 = vld [vmem:[#allocation120_spill] sm:$0xff] }
 0x8be   : > { %9272 = vmatpush1.msra.mxu1 %v7926_v23  ;;  %v18512_v23 = vld [vmem:[#allocation146_spill] sm:$0xff] }
 0x8bf   : > { %v16819_v13 = vpop.permute.xlu0 %8824  ;;  %8988 = vrot.lane.b32.xlu1 %v18493_v32, %s17947_s0 }
 0x8c1   : > { %v16823_v11 = vpop.permute.xlu1 %8828 }
 0x8c3   : > { %v16825_v39 = vpop.permute.xlu0 %8822 }
 0x8c5   : > { %v8513_v16 = vpop.permute.xlu1 %8512 }
 0x8c6   : > { %v8531_v30 = vsel %vm969_vm3, %v8513_v16, %v18504_v31  ;;  %v18513_v31 = vld [vmem:[#allocation143_spill] sm:$0xff] }
 0x8c7   : > { %v8507_v19 = vpop.permute.xlu0 %8506  ;;  %9346 = vmatprep.subr.mxu0 %v8531_v30  ;;  %v8520_v30 = vsel %vm969_vm3, %v18513_v31, %v18512_v23  ;;  %v18527_v31 = vld [vmem:[#allocation77_spill] sm:$0xff] }
 0x8c8   : > { %v8529_v43 = vsel %vm969_vm3, %v8507_v19, %v18505_v54  ;;  %v18515_v54 = vld [vmem:[#allocation115_spill] sm:$0xff] }
 0x8c9   : > { %v8511_v27 = vpop.permute.xlu1 %8510 }
 0x8ca   : > { %v8530_v9 = vsel %vm969_vm3, %v8511_v27, %v8513_v16  ;;  %v8521_v16 = vsel %vm969_vm3, %v18512_v23, %v18511_v6  ;;  %v18525_v23 = vld [vmem:[#allocation70_spill] sm:$0xff] }
 0x8cb   : > { %v8505_v1 = vpop.permute.xlu0 %8504  ;;  %9347 = vmatpush1.msra.mxu0 %v8530_v9 }
 0x8cc   : > { %v8528_v32 = vsel %vm969_vm3, %v8505_v1, %v8507_v19  ;;  %9348 = vmatprep.subr.mxu0 %v8529_v43  ;;  %v18514_v19 = vld [vmem:[#allocation130_spill] sm:$0xff]  ;;  %v18516_v43 = vld [vmem:[#allocation83_spill] sm:$0xff] }
 0x8cd   : > { %v8501_v28 = vpop.permute.xlu1 %8500  ;;  %9349 = vmatpush1.msra.mxu0 %v8528_v32  ;;  %v8519_v32 = vsel %vm969_vm3, %v18516_v43, %v18515_v54 }
 0x8ce   : > { %v8527_v34 = vsel %vm969_vm3, %v8501_v28, %v18506_v22 }
 0x8cf   : > { %v8499_v2 = vpop.permute.xlu0 %8498  ;;  %9350 = vmatprep.subr.mxu0 %v8527_v34 }
 0x8d0   : > { %v8526_v18 = vsel %vm969_vm3, %v8499_v2, %v8501_v28  ;;  %v18517_v28 = vld [vmem:[#allocation147_spill] sm:$0xff] }
 0x8d1   : > { %9351 = vmatpush1.msra.mxu0 %v8526_v18  ;;  %v8495_v3 = vpop.permute.xlu1 %8494  ;;  %v8518_v22 = vsel %vm969_vm3, %v18517_v28, %v18516_v43  ;;  %v18518_v2 = vld [vmem:[#allocation119_spill] sm:$0xff]  ;;  %v18534_v28 = vld [vmem:[#allocation60_spill] sm:$0xff] }
 0x8d2   : > { %v8525_v21 = vsel %vm969_vm3, %v8495_v3, %v18507_v53  ;;  %v18519_v18 = vld [vmem:[#allocation63_spill] sm:$0xff]  ;;  %v18520_v53 = vld [vmem:[#allocation65_spill] sm:$0xff] }
 0x8d3   : > { %v7781_v0 = vpop.permute.xlu0 %7780  ;;  %9352 = vmatprep.subr.mxu0 %v8525_v21  ;;  %v8516_v21 = vsel %vm969_vm3, %v18520_v53, %v18519_v18 }
 0x8d5   : > { %v8493_v36 = vpop.permute.xlu1 %8492 }
 0x8d6   : > { %v8524_v33 = vsel %vm969_vm3, %v8493_v36, %v8495_v3  ;;  %v8517_v3 = vsel %vm969_vm3, %v18519_v18, %v18518_v2  ;;  %v18521_v36 = vld [vmem:[#allocation129_spill] sm:$0xff] }
 0x8d7   : > { %v7773_v4 = vpop.permute.xlu0 %7772  ;;  %9353 = vmatpush1.msra.mxu0 %v8524_v33 }
 0x8d8   : > { %9354 = vmatprep.subr.mxu0 %v8523_v59  ;;  %v7794_v33 = vsel %vm884_vm0, %v18521_v36, %v7773_v4  ;;  %v18522_v59 = vld [vmem:[#allocation123_spill] sm:$0xff]  ;;  %v18538_v36 = vld [vmem:[#allocation125_spill] sm:$0xff] }
 0x8d9   : > { %v7779_v61 = vpop.permute.xlu1 %7778  ;;  %9355 = vmatpush1.msra.mxu0 %v8522_v60 }
 0x8da   : > { %v7796_v27 = vsel %vm884_vm0, %v18514_v19, %v7779_v61  ;;  %9356 = vmatprep.subr.mxu0 %v8521_v16  ;;  %v7797_v9 = vsel %vm884_vm0, %v7779_v61, %v7781_v0  ;;  %v18529_v19 = vld [vmem:[#allocation124_spill] sm:$0xff] }
 0x8db   : > { %v7769_v1 = vpop.permute.xlu0 %7768  ;;  %9273 = vmatprep.subr.mxu1 %v7797_v9  ;;  %9357 = vmatpush1.msra.mxu0 %v8520_v30  ;;  %v18531_v9 = vld [vmem:[#allocation78_spill] sm:$0xff] }
 0x8dc   : > { %9274 = vmatpush1.msra.mxu1 %v7796_v27  ;;  %9358 = vmatprep.subr.mxu0 %v8519_v32  ;;  %v18530_v27 = vld [vmem:[#allocation168_spill] sm:$0xff]  ;;  %v18533_v32 = vld [vmem:[#allocation117_spill] sm:$0xff] }
 0x8dd   : > { %v7775_v34 = vpop.permute.xlu1 %7774  ;;  %9359 = vmatpush1.msra.mxu0 %v8518_v22  ;;  %v18535_v22 = vld [vmem:[#allocation80_spill] sm:$0xff] }
 0x8de   : > { %9360 = vmatprep.subr.mxu0 %v8517_v3  ;;  %v7795_v0 = vsel %vm884_vm0, %v7773_v4, %v7775_v34 }
 0x8df   : > { %v7761_v56 = vpop.permute.xlu0 %7760  ;;  %9275 = vmatprep.subr.mxu1 %v7795_v0  ;;  %9361 = vmatpush1.msra.mxu0 %v8516_v21  ;;  %v18537_v21 = vld [vmem:[#allocation121_spill] sm:$0xff] }
 0x8e0   : > { %9276 = vmatpush1.msra.mxu1 %v7794_v33  ;;  %9362 = vmatprep.subr.mxu0 %v16459_v20  ;;  %v10463_v0 = vunpack.i.l.bf16 %v18537_v21 }
 0x8e1   : > { %v7767_v47 = vpop.permute.xlu1 %7766  ;;  %9363 = vmatpush1.msra.mxu0 %v16475_v49  ;;  %v18523_v49 = vld [vmem:[#allocation136_spill] sm:$0xff] }
 0x8e2   : > { %v7792_v29 = vsel %vm884_vm0, %v18522_v59, %v7767_v47  ;;  %9364 = vmatprep.subr.mxu0 %v16485_v25  ;;  %v7793_v60 = vsel %vm884_vm0, %v7767_v47, %v7769_v1  ;;  %v7790_v6 = vsel %vm884_vm0, %v18523_v49, %v7761_v56  ;;  %v7785_v1 = vsel %vm884_vm0, %v18531_v9, %v18530_v27  ;;  %v18539_v59 = vld [vmem:[#allocation128_spill] sm:$0xff]  ;;  %v18541_v49 = vld [vmem:[#allocation134_spill] sm:$0xff] }
 0x8e3   : > { %v8295_v61 = vpop.permute.xlu0 %8294  ;;  %9277 = vmatprep.subr.mxu1 %v7793_v60  ;;  %9365 = vmatpush1.msra.mxu0 %v16498_v24  ;;  %v18524_v24 = vld [vmem:[#allocation107_spill] sm:$0xff]  ;;  %v8858_v47 = vsel %vm1087_vm6, %v16817_v57, %v16799_v40  ;;  %v18540_v57 = vld [vmem:[#allocation138_spill] sm:$0xff]  ;;  %v18548_v27 = vld [vmem:[#allocation24_spill] sm:$0xff] }
 0x8e4   : > { %9278 = vmatpush1.msra.mxu1 %v7792_v29  ;;  %9366 = vmatprep.subr.mxu0 %v16505_v46  ;;  %v7789_v46 = vsel %vm884_vm0, %v18525_v23, %v18524_v24 }
 0x8e5   : > { %v7763_v4 = vpop.permute.xlu1 %7762  ;;  %9367 = vmatpush1.msra.mxu0 %v16513_v44  ;;  %v18526_v44 = vld [vmem:[#allocation131_spill] sm:$0xff] }
 0x8e6   : > { %9368 = vmatprep.subr.mxu0 %v16522_v5  ;;  %v7791_v20 = vsel %vm884_vm0, %v7761_v56, %v7763_v4  ;;  %v7788_v5 = vsel %vm884_vm0, %v18526_v44, %v18525_v23  ;;  %v8856_v4 = vsel %vm1087_vm6, %v16823_v11, %v16807_v14  ;;  %v8854_v23 = vsel %vm1087_vm6, %v16825_v39, %v16819_v13  ;;  %v18546_v39 = vld [vmem:[#allocation94_spill] sm:$0xff] }
 0x8e7   : > { %v8289_v25 = vpop.permute.xlu0 %8288  ;;  %9279 = vmatprep.subr.mxu1 %v7791_v20  ;;  %9369 = vmatpush1.msra.mxu0 %v16529_v58  ;;  %v18528_v58 = vld [vmem:[#allocation49_spill] sm:$0xff]  ;;  %v10468_v20 = vunpack.i.l.bf16 %v18540_v57 }
 0x8e8   : > { %9280 = vmatpush1.msra.mxu1 %v7790_v6  ;;  %9370 = vmatprep.subr.mxu0 %v16537_v45  ;;  %v7787_v30 = vsel %vm884_vm0, %v18528_v58, %v18527_v31  ;;  %v8310_v29 = vsel %vm986_vm2, %v18539_v59, %v8289_v25  ;;  %v18561_v59 = vld [vmem:[#allocation180_spill] sm:$0xff] }
 0x8e9   : > { %v8297_v16 = vpop.permute.xlu1 %8296  ;;  %9371 = vmatpush1.msra.mxu0 %v16542_v35  ;;  %9281 = vmatprep.subr.mxu1 %v7789_v46  ;;  %v7786_v35 = vsel %vm884_vm0, %v18529_v19, %v18528_v58  ;;  %v18544_v58 = vld [vmem:[#allocation176_spill] sm:$0xff]  ;;  %v18547_v19 = vld [vmem:[#allocation139_spill] sm:$0xff] }
 0x8ea   : > { %9282 = vmatpush1.msra.mxu1 %v7788_v5  ;;  %9372 = vmatprep.subr.mxu0 %v16548_v50  ;;  %v18532_v50 = vld [vmem:[#allocation137_spill] sm:$0xff]  ;;  %v8313_v53 = vsel %vm986_vm2, %v8295_v61, %v8297_v16  ;;  %v10469_v16 = vunpack.i.h.bf16 %v18540_v57 }
 0x8eb   : > { %v8285_v45 = vpop.permute.xlu0 %8284  ;;  %9283 = vmatprep.subr.mxu1 %v7787_v30  ;;  %9373 = vmatpush1.msra.mxu0 %v16553_v17  ;;  %v10458_v54 = vunpack.i.l.bf16 %v18532_v50  ;;  %v7784_v17 = vsel %vm884_vm0, %v18533_v32, %v18531_v9  ;;  %v10459_v34 = vunpack.i.h.bf16 %v18532_v50  ;;  %v18543_v5 = vld [vmem:[#allocation105_spill] sm:$0xff]  ;;  %v18545_v30 = vld [vmem:[#allocation68_spill] sm:$0xff]  ;;  %v18549_v50 = vld [vmem:[#allocation142_spill] sm:$0xff] }
 0x8ec   : > { %9284 = vmatpush1.msra.mxu1 %v7786_v35  ;;  %9374 = vmatprep.subr.mxu0 %v16559_v26  ;;  %v7783_v26 = vsel %vm884_vm0, %v18535_v22, %v18534_v28  ;;  %v8853_v31 = vsel %vm1087_vm6, %v18543_v5, %v10468_v20  ;;  %v10473_v35 = vunpack.i.l.bf16 %v18547_v19  ;;  %v8304_v9 = vsel %vm986_vm2, %v18548_v27, %v18545_v30  ;;  %v18552_v28 = vld [vmem:[#allocation75_spill] sm:$0xff]  ;;  %v18564_v57 = vld [vmem:[#allocation149_spill] sm:$0xff] }
 0x8ed   : > { %v8291_v43 = vpop.permute.xlu1 %8290  ;;  %9375 = vmatpush1.msra.mxu0 %v16564_v38  ;;  %9285 = vmatprep.subr.mxu1 %v7785_v1  ;;  %v18536_v38 = vld [vmem:[#allocation118_spill] sm:$0xff]  ;;  %v8861_v3 = vsel %vm1087_vm6, %v16777_v52, %v10458_v54  ;;  %v8859_v56 = vsel %vm1087_vm6, %v16799_v40, %v10459_v34  ;;  %v8851_v54 = vsel %vm1087_vm6, %v18549_v50, %v10469_v16  ;;  %v18553_v34 = vld [vmem:[#allocation148_spill] sm:$0xff] }
 0x8ee   : > { %9286 = vmatpush1.msra.mxu1 %v7784_v17  ;;  %9376 = vmatprep.subr.mxu0 %v16570_v63  ;;  %v7782_v18 = vsel %vm884_vm0, %v18536_v38, %v18535_v22  ;;  %v8860_v63 = vsel %vm1087_vm6, %v16785_v51, %v16777_v52  ;;  %v8311_v52 = vsel %vm986_vm2, %v8289_v25, %v8291_v43  ;;  %v10464_v51 = vunpack.i.h.bf16 %v18537_v21  ;;  %v18550_v43 = vld [vmem:[#allocation44_spill] sm:$0xff]  ;;  %v18551_v17 = vld [vmem:[#allocation177_spill] sm:$0xff]  ;;  %v18556_v21 = vld [vmem:[#allocation178_spill] sm:$0xff] }
 0x8ef   : > { %v8279_v2 = vpop.permute.xlu0 %8278  ;;  %9287 = vmatprep.subr.mxu1 %v7783_v26  ;;  %9377 = vmatpush1.msra.mxu0 %v16575_v10  ;;  %v8312_v10 = vsel %vm986_vm2, %v18538_v36, %v8295_v61  ;;  %v8857_v61 = vsel %vm1087_vm6, %v16807_v14, %v10463_v0  ;;  %v18542_v14 = vld [vmem:[#allocation135_spill] sm:$0xff]  ;;  %v8850_v32 = vsel %vm1087_vm6, %v18550_v43, %v18549_v50  ;;  %v10474_v26 = vunpack.i.h.bf16 %v18547_v19  ;;  %v18557_v0 = vld [vmem:[#allocation161_spill] sm:$0xff] }
 0x8f0   : > { %9288 = vmatpush1.msra.mxu1 %v7782_v18  ;;  %9378 = vmatprep.subr.mxu0 %v8861_v3  ;;  %v8855_v24 = vsel %vm1087_vm6, %v16819_v13, %v10464_v51  ;;  %v8305_v13 = vsel %vm986_vm2, %v18545_v30, %v18544_v58  ;;  %v8303_v22 = vsel %vm986_vm2, %v18552_v28, %v18551_v17  ;;  %v18554_v18 = vld [vmem:[#allocation145_spill] sm:$0xff]  ;;  %v18567_v30 = vld [vmem:[#allocation151_spill] sm:$0xff]  ;;  %v18569_v17 = vld [vmem:[#allocation152_spill] sm:$0xff] }
 0x8f1   : > { %v8283_v33 = vpop.permute.xlu1 %8282  ;;  %9289 = vmatprep.subr.mxu1 %v8313_v53  ;;  %9379 = vmatpush2.msra.mxu0 %v8860_v63  ;;  %v8849_v3 = vsel %vm1087_vm6, %v18554_v18, %v10473_v35  ;;  %v18555_v63 = vld [vmem:[#allocation30_spill] sm:$0xff]  ;;  %v8300_v36 = vsel %vm986_vm2, %v18557_v0, %v18556_v21  ;;  %v18573_v21 = vld [vmem:[#allocation183_spill] sm:$0xff] }
 0x8f2   : > { %9290 = vmatpush2.msra.mxu1 %v8312_v10  ;;  %9380 = vmatprep.subr.mxu0 %v8859_v56  ;;  %v8309_v40 = vsel %vm986_vm2, %v8283_v33, %v8285_v45  ;;  %v8308_v6 = vsel %vm986_vm2, %v18541_v49, %v8283_v33  ;;  %v8852_v45 = vsel %vm1087_vm6, %v18546_v39, %v18543_v5  ;;  %v18558_v33 = vld [vmem:[#allocation179_spill] sm:$0xff]  ;;  %v18559_v56 = vld [vmem:[#allocation85_spill] sm:$0xff]  ;;  %v18568_v35 = vld [vmem:[#allocation170_spill] sm:$0xff] }
 0x8f3   : > { %v8697_v60 = vpop.permute.xlu0 %8696  ;;  %9291 = vmatprep.subr.mxu1 %v8311_v52  ;;  %9381 = vmatpush2.msra.mxu0 %v8858_v47  ;;  %v8848_v53 = vsel %vm1087_vm6, %v18555_v63, %v18554_v18  ;;  %v8847_v47 = vsel %vm1087_vm6, %v18559_v56, %v10474_v26  ;;  %v18560_v52 = vld [vmem:[#allocation93_spill] sm:$0xff]  ;;  %v18572_v63 = vld [vmem:[#allocation88_spill] sm:$0xff] }
 0x8f4   : > { %9292 = vmatpush2.msra.mxu1 %v8310_v29  ;;  %9382 = vmatprep.subr.mxu0 %v8857_v61  ;;  %v8846_v51 = vsel %vm1087_vm6, %v18560_v52, %v18559_v56  ;;  %v18562_v29 = vld [vmem:[#allocation163_spill] sm:$0xff] }
 0x8f5   : > { %v8277_v25 = vpop.permute.xlu1 %8276  ;;  %9293 = vmatprep.subr.mxu1 %v8309_v40  ;;  %9383 = vmatpush2.msra.mxu0 %v8856_v4  ;;  %v8298_v61 = vsel %vm986_vm2, %v18562_v29, %v18561_v59  ;;  %v18563_v40 = vld [vmem:[#allocation181_spill] sm:$0xff]  ;;  %v18577_v59 = vld [vmem:[#allocation155_spill] sm:$0xff]  ;;  %v18578_v29 = vld [vmem:[#allocation32_spill] sm:$0xff] }
 0x8f6   : > { %v8306_v11 = vsel %vm986_vm2, %v18542_v14, %v8277_v25  ;;  %9294 = vmatpush2.msra.mxu1 %v8308_v6  ;;  %9384 = vmatprep.subr.mxu0 %v8855_v24  ;;  %v8307_v46 = vsel %vm986_vm2, %v8277_v25, %v8279_v2  ;;  %v8302_v2 = vsel %vm986_vm2, %v18553_v34, %v18552_v28  ;;  %v18565_v25 = vld [vmem:[#allocation150_spill] sm:$0xff]  ;;  %v18570_v34 = vld [vmem:[#allocation153_spill] sm:$0xff] }
 0x8f7   : > { %v8691_v44 = vpop.permute.xlu0 %8690  ;;  %9295 = vmatprep.subr.mxu1 %v8307_v46  ;;  %9385 = vmatpush2.msra.mxu0 %v8854_v23  ;;  %v18566_v14 = vld [vmem:[#allocation166_spill] sm:$0xff] }
 0x8f8   : > { %9296 = vmatpush2.msra.mxu1 %v8306_v11  ;;  %9386 = vmatprep.subr.mxu0 %v8853_v31 }
 0x8f9   : > { %v8699_v1 = vpop.permute.xlu1 %8698  ;;  %9297 = vmatprep.subr.mxu1 %v8305_v13  ;;  %9387 = vmatpush2.msra.mxu0 %v8852_v45 }
 0x8fa   : > { %9298 = vmatpush2.msra.mxu1 %v8304_v9  ;;  %9388 = vmatprep.subr.mxu0 %v8851_v54  ;;  %v8717_v20 = vsel %vm928_vm4, %v8699_v1, %v18564_v57  ;;  %v8716_v49 = vsel %vm928_vm4, %v8697_v60, %v8699_v1 }
 0x8fb   : > { %v8111_v38 = vpop.permute.xlu0 %8110  ;;  %9299 = vmatprep.subr.mxu1 %v8303_v22  ;;  %9389 = vmatpush2.msra.mxu0 %v8850_v32 }
 0x8fc   : > { %9300 = vmatpush2.msra.mxu1 %v8302_v2  ;;  %9390 = vmatprep.subr.mxu0 %v8849_v3  ;;  %v18571_v2 = vld [vmem:[#allocation182_spill] sm:$0xff] }
 0x8fd   : > { %v8693_v10 = vpop.permute.xlu1 %8692  ;;  %9301 = vmatprep.subr.mxu1 %v18558_v33  ;;  %9391 = vmatpush2.msra.mxu0 %v8848_v53 }
 0x8fe   : > { %9302 = vmatpush2.msra.mxu1 %v8300_v36  ;;  %9392 = vmatprep.subr.mxu0 %v8847_v47  ;;  %v8715_v24 = vsel %vm928_vm4, %v8693_v10, %v18565_v25  ;;  %v8714_v23 = vsel %vm928_vm4, %v8691_v44, %v8693_v10  ;;  %v18574_v36 = vld [vmem:[#allocation154_spill] sm:$0xff]  ;;  %v18575_v10 = vld [vmem:[#allocation184_spill] sm:$0xff] }
 0x8ff   : > { %v8685_v4 = vpop.permute.xlu0 %8684  ;;  %9303 = vmatprep.subr.mxu1 %v18563_v40  ;;  %9393 = vmatpush2.msra.mxu0 %v8846_v51  ;;  %v8707_v33 = vsel %vm928_vm4, %v18575_v10, %v18574_v36  ;;  %v18576_v51 = vld [vmem:[#allocation172_spill] sm:$0xff]  ;;  %v18592_v10 = vld [vmem:[#allocation158_spill] sm:$0xff] }
 0x900   : > { %9304 = vmatpush2.msra.mxu1 %v8298_v61  ;;  %9394 = vmatprep.subr.mxu0 %v8717_v20  ;;  %v8705_v61 = vsel %vm928_vm4, %v18578_v29, %v18577_v59  ;;  %v18579_v20 = vld [vmem:[#allocation73_spill] sm:$0xff] }
 0x901   : > { %v8109_v6 = vpop.permute.xlu1 %8108  ;;  %9395 = vmatpush2.msra.mxu0 %v8716_v49 }
 0x902   : > { %v8126_v11 = vsel %vm945_vm1, %v18566_v14, %v8109_v6  ;;  %9396 = vmatprep.subr.mxu0 %v8715_v24  ;;  %v8127_v46 = vsel %vm945_vm1, %v8109_v6, %v8111_v38  ;;  %v7496_v16 = vpop.f32.mrf.mxu0  ;;  %v8709_v38 = vsel %vm928_vm4, %v18571_v2, %v18570_v34  ;;  %v18580_v6 = vld [vmem:[#allocation38_spill] sm:$0xff]  ;;  %v18581_v24 = vld [vmem:[#allocation156_spill] sm:$0xff]  ;;  %v9093_v34 = vld [vmem:[#allocation9 + $0x68] sm:$0xff] }
 0x903   : > { %v8105_v5 = vpop.permute.xlu0 %8104  ;;  %9305 = vmatprep.subr.mxu1 %v8127_v46  ;;  %9397 = vmatpush2.msra.mxu0 %v8714_v23  ;;  %v18582_v23 = vld [vmem:[#allocation41_spill] sm:$0xff] }
 0x904   : > { %9306 = vmatpush2.msra.mxu1 %v8126_v11  ;;  %v7498_v60 = vpop.f32.mrf.mxu0  ;;  %v8703_v14 = vsel %vm928_vm4, %v18582_v23, %v18581_v24  ;;  %v9082_v11 = vld [vmem:[#allocation9 + $0x10] sm:$0xff]  ;;  %v18598_v23 = vld [vmem:[#allocation140_spill] sm:$0xff] }
 0x905   : > { %v8687_v31 = vpop.permute.xlu1 %8686 }
 0x906   : > { %v8712_v58 = vsel %vm928_vm4, %v8685_v4, %v8687_v31  ;;  %v8713_v13 = vsel %vm928_vm4, %v8687_v31, %v18567_v30  ;;  %v7502_v39 = vpop.f32.mrf.mxu0  ;;  %v18585_v31 = vld [vmem:[#allocation175_spill] sm:$0xff] }
 0x907   : > { %v8679_v44 = vpop.permute.xlu0 %8678  ;;  %9398 = vmatprep.subr.mxu0 %v8713_v13  ;;  %v18586_v13 = vld [vmem:[#allocation33_spill] sm:$0xff] }
 0x908   : > { %9399 = vmatpush2.msra.mxu0 %v8712_v58  ;;  %v17007_v45 = vpop.f32.mrf.mxu0 }
 0x909   : > { %v8103_v19 = vpop.permute.xlu1 %8102 }
 0x90a   : > { %v8124_v27 = vsel %vm945_vm1, %v18568_v35, %v8103_v19  ;;  %v8125_v9 = vsel %vm945_vm1, %v8103_v19, %v8105_v5  ;;  %v17012_v1 = vpop.f32.mrf.mxu0  ;;  %v18583_v5 = vld [vmem:[#allocation43_spill] sm:$0xff]  ;;  %v18587_v35 = vld [vmem:[#allocation157_spill] sm:$0xff] }
 0x90b   : > { %v8099_v50 = vpop.permute.xlu0 %8098  ;;  %9307 = vmatprep.subr.mxu1 %v8125_v9  ;;  %v9087_v9 = vld [vmem:[#allocation9 + $0x38] sm:$0xff] }
 0x90c   : > { %9308 = vmatpush2.msra.mxu1 %v8124_v27  ;;  %v17014_v54 = vpop.f32.mrf.mxu0 }
 0x90d   : > { %v8681_v43 = vpop.permute.xlu1 %8680 }
 0x90e   : > { %v8710_v32 = vsel %vm928_vm4, %v8679_v44, %v8681_v43  ;;  %v8711_v28 = vsel %vm928_vm4, %v8681_v43, %v18569_v17  ;;  %v17019_v22 = vpop.f32.mrf.mxu0  ;;  %v18588_v43 = vld [vmem:[#allocation40_spill] sm:$0xff] }
 0x90f   : > { %v8093_v26 = vpop.permute.xlu0 %8092  ;;  %9400 = vmatprep.subr.mxu0 %v8711_v28 }
 0x910   : > { %9401 = vmatpush2.msra.mxu0 %v8710_v32  ;;  %v17024_v18 = vpop.f32.mrf.mxu0  ;;  %v18589_v32 = vld [vmem:[#allocation144_spill] sm:$0xff] }
 0x911   : > { %v8097_v3 = vpop.permute.xlu1 %8096  ;;  %9402 = vmatprep.subr.mxu0 %v8709_v38  ;;  %v8116_v17 = vsel %vm945_vm1, %v18589_v32, %v18588_v43  ;;  %v8115_v38 = vsel %vm945_vm1, %v16669_v8, %v16664_v62  ;;  %v9084_v43 = vld [vmem:[#allocation9 + $0x20] sm:$0xff]  ;;  %v9089_v32 = vld [vmem:[#allocation9 + $0x48] sm:$0xff] }
 0x912   : > { %v8122_v53 = vsel %vm945_vm1, %v18572_v63, %v8097_v3  ;;  %9403 = vmatpush2.msra.mxu0 %v18573_v21  ;;  %v8123_v0 = vsel %vm945_vm1, %v8097_v3, %v8099_v50  ;;  %v7597_v56 = vpop.f32.mrf.mxu0  ;;  %v18591_v3 = vld [vmem:[#allocation173_spill] sm:$0xff]  ;;  %v8113_v21 = vsel %vm945_vm1, %v16682_v48, %v16677_v55  ;;  %v9086_v55 = vld [vmem:[#allocation9 + $0x30] sm:$0xff] }
 0x913   : > { %v9027_v47 = vpop.permute.xlu0 %9026  ;;  %9309 = vmatprep.subr.mxu1 %v8123_v0  ;;  %9404 = vmatprep.subr.mxu0 %v8707_v33  ;;  %v17033_v52 = vadd.f32 %v7597_v56, %v7496_v16  ;;  %v9088_v16 = vld [vmem:[#allocation9 + $0x40] sm:$0xff]  ;;  %v8114_v63 = vsel %vm945_vm1, %v18591_v3, %v16669_v8  ;;  %v18594_v8 = vld [vmem:[#allocation87_spill] sm:$0xff] }
 0x914   : > { %9310 = vmatpush2.msra.mxu1 %v8122_v53  ;;  %9405 = vmatpush2.msra.mxu0 %v18576_v51  ;;  %v7599_v4 = vpop.f32.mrf.mxu0  ;;  %v8112_v56 = vsel %vm945_vm1, %v18594_v8, %v16682_v48  ;;  %v9085_v48 = vld [vmem:[#allocation9 + $0x28] sm:$0xff] }
 0x915   : > { %v8091_v40 = vpop.permute.xlu1 %8090  ;;  %9406 = vmatprep.subr.mxu0 %v8705_v61  ;;  %v17039_v57 = vadd.f32 %v7599_v4, %v7498_v60  ;;  %v18584_v60 = vld [vmem:[#allocation36_spill] sm:$0xff] }
 0x916   : > { %v8120_v49 = vsel %vm945_vm1, %v18579_v20, %v8091_v40  ;;  %9407 = vmatpush2.msra.mxu0 %v18580_v6  ;;  %v8121_v25 = vsel %vm945_vm1, %v8091_v40, %v8093_v26  ;;  %v8118_v58 = vsel %vm945_vm1, %v18585_v31, %v18584_v60  ;;  %v7603_v44 = vpop.f32.mrf.mxu0  ;;  %v18590_v26 = vld [vmem:[#allocation39_spill] sm:$0xff]  ;;  %v9092_v61 = vld [vmem:[#allocation9 + $0x60] sm:$0xff]  ;;  %v9098_v6 = vld [vmem:[#allocation9 + $0x90] sm:$0xff]  ;;  %v9038_v60 = vsel %vm867_vm5, %v16708_v42, %v16695_v15 }
 0x917   : > { %v9021_v46 = vpop.permute.xlu0 %9020  ;;  %9311 = vmatprep.subr.mxu1 %v8121_v25  ;;  %9408 = vmatprep.subr.mxu0 %v8703_v14  ;;  %v17056_v50 = vadd.f32 %v7603_v44, %v7502_v39  ;;  %v18596_v4 = vld [vmem:[#allocation160_spill] sm:$0xff] }
 0x918   : > { %9312 = vmatpush2.msra.mxu1 %v8120_v49  ;;  %9409 = vmatpush2.msra.mxu0 %v18583_v5  ;;  %v7605_v2 = vpop.f32.mrf.mxu0  ;;  %v9091_v49 = vld [vmem:[#allocation9 + $0x58] sm:$0xff]  ;;  %v9090_v5 = vld [vmem:[#allocation9 + $0x50] sm:$0xff]  ;;  %v9096_v44 = vld [vmem:[#allocation9 + $0x80] sm:$0xff] }
 0x919   : > { %v9029_v30 = vpop.permute.xlu1 %9028  ;;  %9313 = vmatprep.subr.mxu1 %v18586_v13  ;;  %9411 = vmatmul.mubr.f32.vlgmr.msra.gmra.mxu0 %v9082_v11  ;;  %v17068_v39 = vadd.f32 %v7605_v2, %v17007_v45  ;;  %v9080_v45 = vld [vmem:[#allocation9] sm:$0xff]  ;;  %v9036_v13 = vsel %vm867_vm5, %v16703_v37, %v16690_v41 }
 0x91a   : > { %v9046_v19 = vsel %vm867_vm5, %v9027_v47, %v9029_v30  ;;  %9314 = vmatpush2.msra.mxu1 %v8118_v58  ;;  %v9047_v27 = vsel %vm867_vm5, %v9029_v30, %v18587_v35  ;;  %9416 = vmatprep.mubr.f32.mxu0 %v9088_v16  ;;  %v7609_v0 = vpop.f32.mrf.mxu0  ;;  %v18600_v58 = vld [vmem:[#allocation174_spill] sm:$0xff]  ;;  %v9095_v35 = vld [vmem:[#allocation9 + $0x78] sm:$0xff] }
 0x91b   : > { %v17061_v28 = vpop.permute.xlu0 %8994  ;;  %9315 = vmatprep.subr.mxu1 %v18590_v26  ;;  %9451 = vmatprep.subr.mxu0 %v9047_v27  ;;  %v17080_v33 = vadd.f32 %v7609_v0, %v17012_v1  ;;  %v9037_v30 = vsel %vm867_vm5, %v16690_v41, %v18600_v58  ;;  %v9099_v26 = vld [vmem:[#allocation9 + $0x98] sm:$0xff] }
 0x91c   : > { %9316 = vmatpush2.msra.mxu1 %v8116_v17  ;;  %9452 = vmatpush1.msra.mxu0 %v9046_v19  ;;  %v7611_v51 = vpop.f32.mrf.mxu0 }
 0x91d   : > { %v9023_v53 = vpop.permute.xlu1 %9022  ;;  %9317 = vmatprep.subr.mxu1 %v8115_v38  ;;  %9417 = vmatmul.mubr.f32.gmra.mxu0 %v9087_v9  ;;  %18593 = vst [vmem:[#allocation46_spill] sm:$0xff] %v17080_v33  ;;  %v17086_v59 = vadd.f32 %v7611_v51, %v17014_v54  ;;  %v9611_v33 = vld [vmem:[#allocation16 + $0x8] sm:$0xff] }
 0x91e   : > { %v9044_v36 = vsel %vm867_vm5, %v9021_v46, %v9023_v53  ;;  %9318 = vmatpush2.msra.mxu1 %v8114_v63  ;;  %v9045_v62 = vsel %vm867_vm5, %v9023_v53, %v18592_v10  ;;  %9422 = vmatprep.mubr.f32.mxu0 %v9093_v34  ;;  %v7615_v1 = vpop.f32.mrf.mxu0  ;;  %v18599_v46 = vld [vmem:[#allocation162_spill] sm:$0xff] }
 0x91f   : > { %v9011_v47 = vpop.permute.xlu0 %9010  ;;  %9319 = vmatprep.subr.mxu1 %v8113_v21  ;;  %9453 = vmatprep.subr.mxu0 %v9045_v62  ;;  %18595 = vst [vmem:[#allocation48_spill] sm:$0xff] %v17086_v59  ;;  %v17091_v20 = vadd.f32 %v7615_v1, %v17019_v22  ;;  %v9039_v16 = vsel %vm867_vm5, %v16695_v15, %v18599_v46 }
 0x920   : > { %9320 = vmatpush2.msra.mxu1 %v8112_v56  ;;  %9454 = vmatpush1.msra.mxu0 %v9044_v36  ;;  %v9041_v22 = vsel %vm867_vm5, %v9011_v47, %v18598_v23  ;;  %v17118_v34 = vpop.f32.mrf.mxu0 }
 0x921   : > { %v9017_v29 = vpop.permute.xlu1 %9016  ;;  %10227 = vmatprep.subr.mxu1 %v9047_v27  ;;  %9322 = vmatmul.mubr.f32.vlgmr.msra.gmra.mxu1 %v9080_v45  ;;  %18597 = vst [vmem:[#allocation51_spill] sm:$0xff] %v17091_v20  ;;  %v9097_v27 = vld [vmem:[#allocation9 + $0x88] sm:$0xff]  ;;  %18601 = vst [vmem:[#allocation37_spill] sm:$0xff] %v17118_v34  ;;  %v9610_v20 = vld [vmem:[#allocation16] sm:$0xff] }
 0x922   : > { %10235 = vmatpush1.msra.mxu1 %v9046_v19  ;;  %v9043_v40 = vsel %vm867_vm5, %v9017_v29, %v18596_v4  ;;  %9327 = vmatprep.mubr.f32.mxu1 %v9086_v55  ;;  %v9612_v34 = vld [vmem:[#allocation16 + $0x10] sm:$0xff] }
 0x923   : > { %10228 = vmatprep.subr.mxu1 %v9045_v62  ;;  %9455 = vmatprep.subr.mxu0 %v9043_v40  ;;  %v9009_v54 = vpop.permute.xlu0 %9008 }
 0x924   : > { %10236 = vmatpush1.msra.mxu1 %v9044_v36  ;;  %9423 = vmatmul.mubr.f32.gmra.mxu0 %v9092_v61  ;;  %v9040_v14 = vsel %vm867_vm5, %v9009_v54, %v9011_v47 }
 0x925   : > { %v9015_v25 = vpop.permute.xlu1 %9014  ;;  %10229 = vmatprep.subr.mxu1 %v9043_v40  ;;  %9328 = vmatmul.mubr.f32.gmra.mxu1 %v9085_v48 }
 0x926   : > { %v9042_v24 = vsel %vm867_vm5, %v9015_v25, %v9017_v29  ;;  %9333 = vmatprep.mubr.f32.mxu1 %v9091_v49  ;;  %9428 = vmatprep.mubr.f32.mxu0 %v9098_v6 }
 0x927   : > { %9456 = vmatpush1.msra.mxu0 %v9042_v24  ;;  %10237 = vmatpush1.msra.mxu1 %v9042_v24  ;;  %v8987_v31 = vpop.permute.xlu0 %8986 }
 0x928   : > { %9457 = vmatprep.subr.mxu0 %v9041_v22  ;;  %10230 = vmatprep.subr.mxu1 %v9041_v22 }
 0x929   : > { %v8993_v11 = vpop.permute.xlu1 %8992  ;;  %9458 = vmatpush1.msra.mxu0 %v9040_v14  ;;  %10238 = vmatpush1.msra.mxu1 %v9040_v14 }
 0x92a   : > { %9459 = vmatprep.subr.mxu0 %v9039_v16  ;;  %10231 = vmatprep.subr.mxu1 %v9039_v16  ;;  %v9035_v15 = vsel %vm867_vm5, %v8993_v11, %v17061_v28  ;;  %v9094_v28 = vld [vmem:[#allocation9 + $0x70] sm:$0xff] }
 0x92b   : > { %9460 = vmatpush1.msra.mxu0 %v9038_v60  ;;  %10239 = vmatpush1.msra.mxu1 %v9038_v60  ;;  %v8985_v9 = vpop.permute.xlu0 %8984 }
 0x92c   : > { %9334 = vmatmul.mubr.f32.gmra.mxu1 %v9090_v5  ;;  %9461 = vmatprep.subr.mxu0 %v9037_v30  ;;  %v9032_v17 = vsel %vm867_vm5, %v8985_v9, %v8987_v31 }
 0x92d   : > { %10232 = vmatprep.subr.mxu1 %v9037_v30  ;;  %v8991_v19 = vpop.permute.xlu1 %8990  ;;  %9462 = vmatpush1.msra.mxu0 %v9036_v13 }
 0x92e   : > { %v9034_v42 = vsel %vm867_vm5, %v8991_v19, %v8993_v11  ;;  %10240 = vmatpush1.msra.mxu1 %v9036_v13  ;;  %9463 = vmatprep.subr.mxu0 %v9035_v15 }
 0x92f   : > { %10233 = vmatprep.subr.mxu1 %v9035_v15  ;;  %9339 = vmatprep.mubr.f32.mxu1 %v9096_v44 }
 0x930   : > { %9464 = vmatpush1.msra.mxu0 %v9034_v42  ;;  %10241 = vmatpush1.msra.mxu1 %v9034_v42 }
 0x931   : > { %9340 = vmatmul.mubr.f32.gmra.mxu1 %v9095_v35  ;;  %9429 = vmatmul.mubr.f32.gmra.mxu0 %v9097_v27  ;;  %v8989_v41 = vpop.permute.xlu1 %8988 }
 0x932   : > { %v9033_v37 = vsel %vm867_vm5, %v8987_v31, %v8989_v41  ;;  %9499 = vmatprep.mubr.f32.mxu0 %v18478_v12  ;;  %9505 = vmatprep.mubr.f32.mxu1 %v18478_v12 }
 0x933   : > { %9465 = vmatprep.subr.mxu0 %v9033_v37  ;;  %10234 = vmatprep.subr.mxu1 %v9033_v37 }
 0x934   : > { %9466 = vmatpush1.msra.mxu0 %v9032_v17  ;;  %10242 = vmatpush1.msra.mxu1 %v9032_v17 }
 0x935   : > { %10206 = vmatmul.mubr.msk.f32.vlgmr.msra.gmra.mxu0 %vm9244_vm10, %v9084_v43  ;;  %10207 = vmatmul.mubr.msk.f32.vlgmr.msra.gmra.mxu1 %vm9244_vm10, %v9089_v32 }
 0x936   : > { %9511 = vmatprep.mubr.f32.mxu1 %v18478_v12 }
 0x939   : > { %10208 = vmatmul.mubr.msk.f32.gmra.mxu1 %vm9244_vm10, %v9094_v28 }
 0x93a   : > { %9517 = vmatprep.mubr.f32.mxu1 %v18478_v12 }
 0x93d   : > { %10209 = vmatmul.mubr.msk.f32.gmra.mxu1 %vm9244_vm10, %v9099_v26 }
 0x9d9   : > { %v9412_v2 = vpop.f32.mrf.mxu0 }
 0x9db   : > { %v9414_v38 = vpop.f32.mrf.mxu0 }
 0x9dd   : > { %v9418_v63 = vpop.f32.mrf.mxu0 }
 0x9df   : > { %v9420_v0 = vpop.f32.mrf.mxu0 }
 0x9e1   : > { %v9323_v3 = vpop.f32.mrf.mxu1 }
 0x9e2   : > { %v9413_v61 = vadd.f32 %v9412_v2, %v9323_v3 }
 0x9e3   : > { %v9325_v53 = vpop.f32.mrf.mxu1 }
 0x9e4   : > { %v9424_v10 = vpop.f32.mrf.mxu0  ;;  %v9415_v1 = vadd.f32 %v9414_v38, %v9325_v53 }
 0x9e5   : > { %v9329_v21 = vpop.f32.mrf.mxu1 }
 0x9e6   : > { %v9426_v45 = vpop.f32.mrf.mxu0  ;;  %v9419_v48 = vadd.f32 %v9418_v63, %v9329_v21 }
 0x9e7   : > { %v9331_v36 = vpop.f32.mrf.mxu1 }
 0x9e8   : > { %v9421_v25 = vadd.f32 %v9420_v0, %v9331_v36 }
 0x9ec   : > { %v9335_v62 = vpop.f32.mrf.mxu1 }
 0x9ed   : > { %v9425_v14 = vadd.f32 %v9424_v10, %v9335_v62 }
 0x9ee   : > { %v9337_v8 = vpop.f32.mrf.mxu1 }
 0x9ef   : > { %v9427_v5 = vadd.f32 %v9426_v45, %v9337_v8 }
 0x9f1   : > { %v9341_v56 = vpop.f32.mrf.mxu1  ;;  %v9430_v47 = vpop.f32.mrf.mxu0 }
 0x9f2   : > { %v9431_v58 = vadd.f32 %v9430_v47, %v9341_v56 }
 0x9f3   : > { %v9343_v55 = vpop.f32.mrf.mxu1  ;;  %v9432_v12 = vpop.f32.mrf.mxu0 }
 0x9f4   : > { %v9433_v19 = vadd.f32 %v9432_v12, %v9343_v55 }
 0x9f5   : > { %v9501_v51 = vpop.f32.mrf.mxu0  ;;  %v9507_v29 = vpop.f32.mrf.mxu1 }
 0x9f6   : > { %v9502_v49 = vadd.f32 %v9501_v51, %v9413_v61  ;;  %v9508_v24 = vadd.f32 %v9507_v29, %v9419_v48 }
 0x9f7   : > { %v9503_v4 = vpop.f32.mrf.mxu0  ;;  %v9509_v40 = vpop.f32.mrf.mxu1 }
 0x9f8   : > { %v9504_v6 = vadd.f32 %v9503_v4, %v9415_v1  ;;  %v9510_v11 = vadd.f32 %v9509_v40, %v9421_v25 }
 0x9f9   : > { %v9513_v54 = vpop.f32.mrf.mxu1 }
 0x9fa   : > { %v9532_v23 = vadd.f32 %v9504_v6, %v9502_v49  ;;  %v9514_v31 = vadd.f32 %v9513_v54, %v9425_v14 }
 0x9fb   : > { %v9515_v22 = vpop.f32.mrf.mxu1 }
 0x9fc   : > { %v9533_v46 = vadd.f32 %v9532_v23, %v9508_v24  ;;  %v9516_v13 = vadd.f32 %v9515_v22, %v9427_v5  ;;  %v18602_v5 = vld [vmem:[#allocation26_spill] sm:$0xff] }
 0x9fd   : > { %v9519_v16 = vpop.f32.mrf.mxu1 }
 0x9fe   : > { %v9534_v60 = vadd.f32 %v9533_v46, %v9510_v11  ;;  %v9520_v42 = vadd.f32 %v9519_v16, %v9431_v58  ;;  %v9666_v16 = vld [vmem:[%s17315_s11 + $0x180] sm:$0xff]  ;;  %v18604_v58 = vld [vmem:[#allocation29_spill] sm:$0xff] }
 0x9ff   : > { %v9521_v44 = vpop.f32.mrf.mxu1 }
 0xa00   : > { %v9535_v30 = vadd.f32 %v9534_v60, %v9514_v31  ;;  %v9522_v27 = vadd.f32 %v9521_v44, %v9433_v19  ;;  %v18603_v60 = vld [vmem:[#allocation82_spill] sm:$0xff]  ;;  %v18606_v19 = vld [vmem:[#allocation56_spill] sm:$0xff] }
 0xa02   : > { %v9536_v15 = vadd.f32 %v9535_v30, %v9516_v13  ;;  %v9715_v30 = vmul.f32 %v18603_v60, %v18604_v58  ;;  %v9682_v58 = vld [vmem:[%s17316_s12 + $0x180] sm:$0xff] }
 0xa04   : > { %v9537_v35 = vadd.f32 %v9536_v15, %v9520_v42  ;;  %v9717_v15 = vmul.f32 %v18603_v60, %v18606_v19  ;;  %v9729_v19 = vld [vmem:[%s17317_s13 + $0xf8] sm:$0xff] }
 0xa06   : > { %v9538_v9 = vadd.f32 %v9537_v35, %v9522_v27  ;;  %v9667_v35 = vld [vmem:[%s17315_s11 + $0x188] sm:$0xff] }
 0xa08   : > { %9539 = vadd.xlane.f32.xlu1 %v9538_v9  ;;  %v9669_v9 = vld [vmem:[%s17315_s11 + $0x198] sm:$0xff] }
 0xa91   : > { %v9540_v41 = vpop.xlane.xlu1 %9539 }
 0xa92   : > { %v9541_v37 = vrot.slane %v9540_v41, 4 }
 0xa94   : > { %v9542_v43 = vadd.f32 %v9541_v37, %v9540_v41  ;;  %v18607_v41 = vld [vmem:[#allocation61_spill] sm:$0xff] }
 0xa95   : > { %v9658_v37 = vmul.f32 %v18475_v7, %v18607_v41 }
 0xa96   : > { %v9543_v32 = vrot.slane %v9542_v43, 2 }
 0xa98   : > { %v9544_v17 = vadd.f32 %v9543_v32, %v9542_v43  ;;  %v18608_v43 = vld [vmem:[#allocation57_spill] sm:$0xff] }
 0xa99   : > { %v9718_v32 = vmul.f32 %v18603_v60, %v18608_v43 }
 0xa9a   : > { %v9545_v28 = vrot.slane %v9544_v17, 1 }
 0xa9c   : > { %v9546_v26 = vadd.f32 %v9545_v28, %v9544_v17  ;;  %v18609_v17 = vld [vmem:[#allocation58_spill] sm:$0xff] }
 0xa9d   : > { %v9719_v28 = vmul.f32 %v18603_v60, %v18609_v17 }
 0xa9e   : > { %10305 = vpush %v9546_v26  ;;  %v18610_v26 = vld [vmem:[#allocation59_spill] sm:$0xff] }
 0xacf   : > { %s10306_s27 = spop %10305 }
 0xad0   : > { %s9551_s23 = smul.f32 0.00012207031, %s10306_s27 }
 0xad2   : > { %v9560_v2 = vstv %s9551_s23 }
 0xad3   : > { %v17120_v38 = vsub.f32 %v9502_v49, %v9560_v2  ;;  %v17122_v3 = vsub.f32 %v9504_v6, %v9560_v2  ;;  %v17124_v63 = vsub.f32 %v9508_v24, %v9560_v2  ;;  %v17126_v53 = vsub.f32 %v9510_v11, %v9560_v2 }
 0xad4   : > { %v17132_v36 = vsub.f32 %v9514_v31, %v9560_v2  ;;  %v17136_v45 = vsub.f32 %v9516_v13, %v9560_v2  ;;  %v17140_v47 = vsub.f32 %v9520_v42, %v9560_v2  ;;  %v17144_v51 = vsub.f32 %v9522_v27, %v9560_v2  ;;  %v18605_v13 = vld [vmem:[#allocation55_spill] sm:$0xff]  ;;  %v9722_v42 = vld [vmem:[%s17317_s13 + $0xc0] sm:$0xff]  ;;  %v9668_v27 = vld [vmem:[%s17315_s11 + $0x190] sm:$0xff] }
 0xad5   : > { %v9569_v21 = vmul.f32 %v17120_v38, %v17120_v38  ;;  %v9570_v0 = vmul.f32 %v17122_v3, %v17122_v3  ;;  %v9571_v10 = vmul.f32 %v17124_v63, %v17124_v63  ;;  %v9572_v8 = vmul.f32 %v17126_v53, %v17126_v53 }
 0xad6   : > { %v9573_v55 = vmul.f32 %v17132_v36, %v17132_v36  ;;  %v9574_v29 = vmul.f32 %v17136_v45, %v17136_v45  ;;  %v9575_v1 = vmul.f32 %v17140_v47, %v17140_v47  ;;  %v9576_v40 = vmul.f32 %v17144_v51, %v17144_v51 }
 0xad7   : > { %v9577_v62 = vadd.f32 %v9570_v0, %v9569_v21  ;;  %v9714_v31 = vmul.f32 %v18603_v60, %v18602_v5  ;;  %v9716_v44 = vmul.f32 %v18603_v60, %v18605_v13  ;;  %v9720_v2 = vmul.f32 %v18603_v60, %v18610_v26  ;;  %v9723_v21 = vld [vmem:[%s17317_s13 + $0xc8] sm:$0xff]  ;;  %v9724_v0 = vld [vmem:[%s17317_s13 + $0xd0] sm:$0xff]  ;;  %v9673_v13 = vld [vmem:[%s17315_s11 + $0x1b8] sm:$0xff] }
 0xad8   : > { %v9731_v43 = vmul.f32 %v9723_v21, %v9715_v30  ;;  %v9740_v30 = vld [vmem:[%s17318_s14 + $0xd0] sm:$0xff] }
 0xad9   : > { %v9578_v56 = vadd.f32 %v9577_v62, %v9571_v10  ;;  %v9725_v10 = vld [vmem:[%s17317_s13 + $0xd8] sm:$0xff]  ;;  %v18611_v62 = vld [vmem:[#allocation62_spill] sm:$0xff]  ;;  %v9730_v41 = vmul.f32 %v9722_v42, %v9714_v31  ;;  %v9732_v17 = vmul.f32 %v9724_v0, %v9716_v44  ;;  %v9739_v31 = vld [vmem:[%s17318_s14 + $0xc8] sm:$0xff] }
 0xada   : > { %v9733_v26 = vmul.f32 %v9725_v10, %v9717_v15  ;;  %v9741_v44 = vld [vmem:[%s17318_s14 + $0xd8] sm:$0xff] }
 0xadb   : > { %v9579_v12 = vadd.f32 %v9578_v56, %v9572_v8  ;;  %v9659_v8 = vmul.f32 %v18475_v7, %v18611_v62  ;;  %v18612_v56 = vld [vmem:[#allocation64_spill] sm:$0xff]  ;;  %v9684_v62 = vld [vmem:[%s17316_s12 + $0x190] sm:$0xff] }
 0xadd   : > { %v9580_v61 = vadd.f32 %v9579_v12, %v9573_v55  ;;  %v9660_v55 = vmul.f32 %v18475_v7, %v18612_v56  ;;  %v18613_v12 = vld [vmem:[#allocation66_spill] sm:$0xff]  ;;  %v9674_v56 = vmul.f32 %v9666_v16, %v9658_v37  ;;  %v9675_v15 = vmul.f32 %v9667_v35, %v9659_v8  ;;  %v9742_v16 = vld [vmem:[%s17318_s14 + $0xe0] sm:$0xff]  ;;  %v9743_v37 = vld [vmem:[%s17318_s14 + $0xe8] sm:$0xff] }
 0xade   : > { %v9686_v35 = vld [vmem:[%s17316_s12 + $0x1a0] sm:$0xff] }
 0xadf   : > { %v9581_v4 = vadd.f32 %v9580_v61, %v9574_v29  ;;  %v9661_v29 = vmul.f32 %v18475_v7, %v18613_v12  ;;  %v18614_v61 = vld [vmem:[#allocation69_spill] sm:$0xff]  ;;  %v9676_v42 = vmul.f32 %v9668_v27, %v9660_v55  ;;  %v9688_v55 = vld [vmem:[%s17316_s12 + $0x1b0] sm:$0xff] }
 0xae0   : > { %v9687_v27 = vld [vmem:[%s17316_s12 + $0x1a8] sm:$0xff] }
 0xae1   : > { %v9582_v48 = vadd.f32 %v9581_v4, %v9575_v1  ;;  %v9662_v1 = vmul.f32 %v18475_v7, %v18614_v61  ;;  %v9726_v4 = vld [vmem:[%s17317_s13 + $0xe0] sm:$0xff]  ;;  %v9677_v21 = vmul.f32 %v9669_v9, %v9661_v29  ;;  %v9689_v29 = vld [vmem:[%s17316_s12 + $0x1b8] sm:$0xff] }
 0xae2   : > { %v9734_v12 = vmul.f32 %v9726_v4, %v9718_v32  ;;  %v9744_v32 = vld [vmem:[%s17318_s14 + $0xf0] sm:$0xff] }
 0xae3   : > { %v9583_v49 = vadd.f32 %v9582_v48, %v9576_v40  ;;  %v9727_v40 = vld [vmem:[%s17317_s13 + $0xe8] sm:$0xff]  ;;  %v9728_v48 = vld [vmem:[%s17317_s13 + $0xf0] sm:$0xff] }
 0xae4   : > { %v9735_v61 = vmul.f32 %v9727_v40, %v9719_v28  ;;  %v9685_v28 = vld [vmem:[%s17316_s12 + $0x198] sm:$0xff]  ;;  %v9747_v40 = vadd.f32 %v9739_v31, %v9731_v43 }
 0xae5   : > { %9584 = vadd.xlane.f32.xlu0 %v9583_v49  ;;  %v9670_v49 = vld [vmem:[%s17315_s11 + $0x1a0] sm:$0xff] }
 0xae6   : > { %v9678_v0 = vmul.f32 %v9670_v49, %v9662_v1  ;;  %v9745_v1 = vld [vmem:[%s17318_s14 + $0xf8] sm:$0xff]  ;;  %v9749_v49 = vadd.f32 %v9741_v44, %v9733_v26 }
 0xb6e   : > { %v9585_v6 = vpop.xlane.xlu0 %9584 }
 0xb6f   : > { %v9586_v54 = vrot.slane %v9585_v6, 4 }
 0xb71   : > { %v9587_v25 = vadd.f32 %v9586_v54, %v9585_v6  ;;  %v9671_v6 = vld [vmem:[%s17315_s11 + $0x1a8] sm:$0xff]  ;;  %v9672_v54 = vld [vmem:[%s17315_s11 + $0x1b0] sm:$0xff] }
 0xb73   : > { %v9588_v24 = vrot.slane %v9587_v25, 2 }
 0xb75   : > { %v9589_v23 = vadd.f32 %v9588_v24, %v9587_v25  ;;  %v18615_v25 = vld [vmem:[#allocation72_spill] sm:$0xff] }
 0xb76   : > { %v9663_v24 = vmul.f32 %v18475_v7, %v18615_v25  ;;  %v9736_v25 = vmul.f32 %v9728_v48, %v9720_v2  ;;  %v9748_v48 = vadd.f32 %v9740_v30, %v9732_v17 }
 0xb77   : > { %v9590_v22 = vrot.slane %v9589_v23, 1 }
 0xb78   : > { %v9679_v9 = vmul.f32 %v9671_v6, %v9663_v24  ;;  %v9690_v6 = vadd.f32 %v9682_v58, %v9674_v56  ;;  %v9751_v24 = vadd.f32 %v9743_v37, %v9735_v61  ;;  %v9614_v56 = vld [vmem:[#allocation16 + $0x20] sm:$0xff] }
 0xb79   : > { %v9591_v14 = vadd.f32 %v9590_v22, %v9589_v23  ;;  %v18616_v23 = vld [vmem:[#allocation74_spill] sm:$0xff] }
 0xb7a   : > { %v9664_v22 = vmul.f32 %v18475_v7, %v18616_v23  ;;  %v9752_v23 = vadd.f32 %v9744_v32, %v9736_v25 }
 0xb7b   : > { %10307 = vpush %v9591_v14  ;;  %v18617_v14 = vld [vmem:[#allocation76_spill] sm:$0xff] }
 0xb7c   : > { %v9680_v2 = vmul.f32 %v9672_v54, %v9664_v22  ;;  %v9750_v54 = vadd.f32 %v9742_v16, %v9734_v12  ;;  %v9615_v12 = vld [vmem:[#allocation16 + $0x28] sm:$0xff] }
 0xbac   : > { %s10308_s1 = spop %10307 }
 0xbad   : > { %s9596_s4 = smul.f32 0.00012207031, %s10308_s1 }
 0xbaf   : > { %s9597_s26 = sadd.f32 1e-05, %s9596_s4 }
 0xbb1   : > { %v9598_v11 = vstv %s9597_s26 }
 0xbb2   : > { %10641 = vrsqrt.f32 %v9598_v11  ;;  %v9665_v11 = vmul.f32 %v18475_v7, %v18617_v14  ;;  %v9738_v7 = vld [vmem:[%s17318_s14 + $0xc0] sm:$0xff]  ;;  %v9692_v14 = vadd.f32 %v9684_v62, %v9676_v42  ;;  %v9617_v42 = vld [vmem:[#allocation16 + $0x38] sm:$0xff] }
 0xbb3   : > { %v9746_v4 = vadd.f32 %v9738_v7, %v9730_v41  ;;  %v9613_v41 = vld [vmem:[#allocation16 + $0x18] sm:$0xff] }
 0xbb4   : > { %v9681_v10 = vmul.f32 %v9673_v13, %v9665_v11  ;;  %v9693_v11 = vadd.f32 %v9685_v28, %v9677_v21  ;;  %v9696_v13 = vadd.f32 %v9688_v55, %v9680_v2  ;;  %v9756_v26 = vadd.f32 %v9748_v48, %v9692_v14  ;;  %v9626_v21 = vld [vmem:[#allocation17] sm:$0xff] }
 0xbb5   : > { %v9754_v43 = vadd.f32 %v9746_v4, %v9690_v6 }
 0xbb6   : > { %v9757_v58 = vadd.f32 %v9749_v49, %v9693_v11  ;;  %v9760_v25 = vadd.f32 %v9752_v23, %v9696_v13 }
 0xbbf   : > { %v10642_v46 = vpop.eup %10641 }
 0xbc0   : > { %10309 = vpush %v10642_v46  ;;  %v18618_v46 = vld [vmem:[#allocation67_spill] sm:$0xff] }
 0xbc1   : > { %v9721_v5 = vmul.f32 %v18603_v60, %v18618_v46  ;;  %v9683_v60 = vld [vmem:[%s17316_s12 + $0x188] sm:$0xff]  ;;  %v9694_v46 = vadd.f32 %v9686_v35, %v9678_v0  ;;  %v9628_v35 = vld [vmem:[#allocation17 + $0x10] sm:$0xff] }
 0xbc2   : > { %v9691_v22 = vadd.f32 %v9683_v60, %v9675_v15  ;;  %v9616_v60 = vld [vmem:[#allocation16 + $0x30] sm:$0xff]  ;;  %v9627_v0 = vld [vmem:[#allocation17 + $0x8] sm:$0xff] }
 0xbc3   : > { %v9737_v8 = vmul.f32 %v9729_v19, %v9721_v5  ;;  %v9695_v5 = vadd.f32 %v9687_v27, %v9679_v9  ;;  %v9697_v19 = vadd.f32 %v9689_v29, %v9681_v10  ;;  %v9758_v62 = vadd.f32 %v9750_v54, %v9694_v46  ;;  %v9629_v27 = vld [vmem:[#allocation17 + $0x18] sm:$0xff]  ;;  %v9631_v10 = vld [vmem:[#allocation17 + $0x28] sm:$0xff] }
 0xbc4   : > { %v9755_v17 = vadd.f32 %v9747_v40, %v9691_v22 }
 0xbc5   : > { %v9753_v59 = vadd.f32 %v9745_v1, %v9737_v8  ;;  %v9759_v61 = vadd.f32 %v9751_v24, %v9695_v5  ;;  %v9633_v8 = vld [vmem:[#allocation17 + $0x38] sm:$0xff] }
 0xbc7   : > { %v9761_v24 = vadd.f32 %v9753_v59, %v9697_v19  ;;  %v18619_v59 = vld [vmem:[#allocation37_spill] sm:$0xff] }
 0xbc8   : > { %v7618_v19 = vadd.f32 %v18619_v59, %v17024_v18 }
 0xbf1   : > { %s10310_s0 = spop %10309 }
 0xbf2   : > { %v9601_v7 = vstv %s10310_s0 }
 0xbf3   : > { %v9602_v31 = vmul.f32 %v9601_v7, %v17120_v38  ;;  %v9603_v30 = vmul.f32 %v9601_v7, %v17122_v3  ;;  %v9604_v44 = vmul.f32 %v9601_v7, %v17124_v63  ;;  %v9605_v15 = vmul.f32 %v9601_v7, %v17126_v53  ;;  %v9630_v38 = vld [vmem:[#allocation17 + $0x20] sm:$0xff]  ;;  %v9632_v53 = vld [vmem:[#allocation17 + $0x30] sm:$0xff] }
 0xbf4   : > { %v9606_v16 = vmul.f32 %v9601_v7, %v17132_v36  ;;  %v9607_v37 = vmul.f32 %v9601_v7, %v17136_v45  ;;  %v9608_v32 = vmul.f32 %v9601_v7, %v17140_v47  ;;  %v9609_v28 = vmul.f32 %v9601_v7, %v17144_v51 }
 0xbf5   : > { %v9618_v9 = vmul.f32 %v9610_v20, %v9602_v31  ;;  %v9619_v3 = vmul.f32 %v9611_v33, %v9603_v30  ;;  %v9620_v2 = vmul.f32 %v9612_v34, %v9604_v44  ;;  %v9621_v63 = vmul.f32 %v9613_v41, %v9605_v15 }
 0xbf6   : > { %v9622_v55 = vmul.f32 %v9614_v56, %v9606_v16  ;;  %v9623_v29 = vmul.f32 %v9615_v12, %v9607_v37  ;;  %v9624_v1 = vmul.f32 %v9616_v60, %v9608_v32  ;;  %v9625_v36 = vmul.f32 %v9617_v42, %v9609_v28 }
 0xbf7   : > { %v9634_v4 = vadd.f32 %v9626_v21, %v9618_v9  ;;  %v9635_v45 = vadd.f32 %v9627_v0, %v9619_v3  ;;  %v9636_v40 = vadd.f32 %v9628_v35, %v9620_v2  ;;  %v9637_v47 = vadd.f32 %v9629_v27, %v9621_v63 }
 0xbf8   : > { %v9638_v48 = vadd.f32 %v9630_v38, %v9622_v55  ;;  %v9639_v51 = vadd.f32 %v9631_v10, %v9623_v29  ;;  %v9640_v49 = vadd.f32 %v9632_v53, %v9624_v1  ;;  %v9641_v6 = vadd.f32 %v9633_v8, %v9625_v36 }
 0xbf9   : > { %v9762_v54 = vadd.f32 %v9754_v43, %v9634_v4  ;;  %v9763_v20 = vadd.f32 %v9755_v17, %v9635_v45  ;;  %v9764_v33 = vadd.f32 %v9756_v26, %v9636_v40  ;;  %v9765_v34 = vadd.f32 %v9757_v58, %v9637_v47  ;;  %v18620_v17 = vld [vmem:[#allocation46_spill] sm:$0xff]  ;;  %v18621_v58 = vld [vmem:[#allocation48_spill] sm:$0xff] }
 0xbfa   : > { %v9766_v23 = vadd.f32 %v9758_v62, %v9638_v48  ;;  %v9767_v22 = vadd.f32 %v9759_v61, %v9639_v51  ;;  %v9768_v14 = vadd.f32 %v9760_v25, %v9640_v49  ;;  %v9769_v13 = vadd.f32 %v9761_v24, %v9641_v6  ;;  %v18622_v62 = vld [vmem:[#allocation51_spill] sm:$0xff] }
 0xbfb   : > { %v10210_v11 = vmul.f32 -1.442695, %v9762_v54  ;;  %v10211_v46 = vmul.f32 -1.442695, %v9763_v20  ;;  %v10212_v5 = vmul.f32 -1.442695, %v9764_v33 }
 0xbfc   : > { %v10213_v41 = vmul.f32 -1.442695, %v9765_v34  ;;  %v10214_v7 = vmul.f32 -1.442695, %v9766_v23  ;;  %v10215_v56 = vmul.f32 -1.442695, %v9767_v22 }
 0xbfd   : > { %10643 = vpow2.f32 %v10210_v11  ;;  %v10216_v12 = vmul.f32 -1.442695, %v9768_v14  ;;  %v10217_v43 = vmul.f32 -1.442695, %v9769_v13 }
 0xbfe   : > { %10645 = vpow2.f32 %v10211_v46 }
 0xbff   : > { %10647 = vpow2.f32 %v10212_v5 }
 0xc00   : > { %10649 = vpow2.f32 %v10213_v41 }
 0xc01   : > { %10651 = vpow2.f32 %v10214_v7 }
 0xc02   : > { %10653 = vpow2.f32 %v10215_v56 }
 0xc03   : > { %10655 = vpow2.f32 %v10216_v12 }
 0xc04   : > { %10657 = vpow2.f32 %v10217_v43 }
 0xc05   : > { %10659 = vtanh.f32 %v17033_v52 }
 0xc06   : > { %10661 = vtanh.f32 %v17039_v57 }
 0xc07   : > { %10663 = vtanh.f32 %v17056_v50 }
 0xc08   : > { %10665 = vtanh.f32 %v17068_v39 }
 0xc09   : > { %10667 = vtanh.f32 %v18620_v17 }
 0xc0a   : > { %v10644_v26 = vpop.eup %10643  ;;  %10669 = vtanh.f32 %v18621_v58 }
 0xc0b   : > { %v10646_v60 = vpop.eup %10645  ;;  %10671 = vtanh.f32 %v18622_v62  ;;  %v9794_v61 = vadd.f32 1.0, %v10644_v26 }
 0xc0c   : > { %v10648_v25 = vpop.eup %10647  ;;  %10673 = vtanh.f32 %v7618_v19  ;;  %v9795_v52 = vadd.f32 1.0, %v10646_v60 }
 0xc0d   : > { %v10650_v57 = vpop.eup %10649  ;;  %v9796_v31 = vadd.f32 1.0, %v10648_v25  ;;  %10675 = vrcp.f32 %v9794_v61 }
 0xc0e   : > { %v10652_v50 = vpop.eup %10651  ;;  %v9797_v39 = vadd.f32 1.0, %v10650_v57  ;;  %10677 = vrcp.f32 %v9795_v52 }
 0xc0f   : > { %v10654_v30 = vpop.eup %10653  ;;  %v9798_v18 = vadd.f32 1.0, %v10652_v50  ;;  %10679 = vrcp.f32 %v9796_v31 }
 0xc10   : > { %v10656_v44 = vpop.eup %10655  ;;  %v9799_v15 = vadd.f32 1.0, %v10654_v30  ;;  %10681 = vrcp.f32 %v9797_v39 }
 0xc11   : > { %v10658_v42 = vpop.eup %10657  ;;  %v9800_v21 = vadd.f32 1.0, %v10656_v44  ;;  %10683 = vrcp.f32 %v9798_v18 }
 0xc12   : > { %v10660_v0 = vpop.eup %10659  ;;  %v9801_v16 = vadd.f32 1.0, %v10658_v42  ;;  %10685 = vrcp.f32 %v9799_v15 }
 0xc13   : > { %v10662_v37 = vpop.eup %10661  ;;  %10687 = vrcp.f32 %v9800_v21 }
 0xc14   : > { %v10664_v32 = vpop.eup %10663  ;;  %10689 = vrcp.f32 %v9801_v16 }
 0xc15   : > { %v10666_v28 = vpop.eup %10665 }
 0xc16   : > { %v10668_v35 = vpop.eup %10667 }
 0xc17   : > { %v10670_v27 = vpop.eup %10669 }
 0xc18   : > { %v10672_v38 = vpop.eup %10671 }
 0xc19   : > { %v10674_v9 = vpop.eup %10673 }
 0xc1a   : > { %v10676_v3 = vpop.eup %10675 }
 0xc1b   : > { %v10678_v2 = vpop.eup %10677  ;;  %v9834_v63 = vmul.f32 %v10676_v3, %v10660_v0 }
 0xc1c   : > { %v10680_v10 = vpop.eup %10679  ;;  %v9835_v53 = vmul.f32 %v10678_v2, %v10662_v37 }
 0xc1d   : > { %v10682_v8 = vpop.eup %10681  ;;  %v9836_v55 = vmul.f32 %v10680_v10, %v10664_v32  ;;  %9842 = vst [vmem:[%s819_s16] sm:$0xff] %v9834_v63 }
 0xc1e   : > { %v10684_v29 = vpop.eup %10683  ;;  %v9837_v1 = vmul.f32 %v10682_v8, %v10666_v28  ;;  %9843 = vst [vmem:[%s819_s16 + $0x8] sm:$0xff] %v9835_v53 }
 0xc1f   : > { %v10686_v36 = vpop.eup %10685  ;;  %v9838_v4 = vmul.f32 %v10684_v29, %v10668_v35  ;;  %9844 = vst [vmem:[%s819_s16 + $0x10] sm:$0xff] %v9836_v55 }
 0xc20   : > { %v10688_v45 = vpop.eup %10687  ;;  %v9839_v40 = vmul.f32 %v10686_v36, %v10670_v27  ;;  %9845 = vst [vmem:[%s819_s16 + $0x18] sm:$0xff] %v9837_v1 }
 0xc21   : > { %v10690_v47 = vpop.eup %10689  ;;  %v9840_v48 = vmul.f32 %v10688_v45, %v10672_v38  ;;  %9846 = vst [vmem:[%s819_s16 + $0x20] sm:$0xff] %v9838_v4 }
 0xc22   : > { %v9841_v51 = vmul.f32 %v10690_v47, %v10674_v9  ;;  %9847 = vst [vmem:[%s819_s16 + $0x28] sm:$0xff] %v9839_v40 }
 0xc23   : > { %9848 = vst [vmem:[%s819_s16 + $0x30] sm:$0xff] %v9840_v48 }
 0xc24   : > { %9849 = vst [vmem:[%s819_s16 + $0x38] sm:$0xff] %v9841_v51 }
 0xc25 PF: > { %s18623_s25 = sld [smem:[#allocation23_spill]] }
 0xc2b   : > { %s36_s2 = sadd.s32 1, %s18623_s25  }
 0xc2c   : > { %p33_p3 = scmp.ge.s32.totalorder %s36_s2, 4  }
 0xc2e   :  { %35 = sbr.rel (!%p33_p3) target bundleno = 19 (0x13), region = 185 }
 0xc33   :  { %9903 = vsyncpa [#allocation10], 1 }
 0xc34   :  { %9905 = vsyncpa [#allocation10 + $0x1], 1 }
 0xc35   :  { %9906 = vsyncpa [#allocation12], 1 }
 0xc36   :  { %9907 = vsyncpa [#allocation15], 1 }
 0xc37   :  { %9908 = vsyncpa [#allocation18], 1 }

</bundles_post_ra>
